<compile_context>
chip_gen: v7x
topology: tpu7x:2x2x1
jax: 0.10.0
libtpu: 0.0.40
codegen_flags: <defaults>
</compile_context>

<pallas_src>
import jax
import jax.numpy as jnp
from jax import lax
from jax.experimental import pallas as pl
from jax.experimental.pallas import tpu as pltpu

ALPHA = 100.0
EPS = 1e-12  # torch F.normalize default eps


def writer_res_kernel(x_ref, bw_ref, bb_ref, centT_ref, csq_ref, wT_ref, b_ref,
                      rep_xc_ref, rep_s2_ref, out_ref):
    """Fused backbone-standin + NetVLAD forward for one batch tile.

    x_ref      : (TN, IN)       input feature vectors
    bw_ref     : (IN, D)        backbone weight (stand-in linear)
    bb_ref     : (1, D)         backbone bias
    centT_ref  : (D, K)         centroids, transposed
    csq_ref    : (1, K)         ||c_k||^2 (host precomputed)
    wT_ref     : (D, K)         1x1 conv weight, transposed
    b_ref      : (1, K)         conv bias
    rep_xc_ref : (3D+3, K*D)    bf16: [I|I|I tiled K times ; -c_hi ; -c_mid ; -c_lo]
    rep_s2_ref : (2K, K*D)      bf16: [repeat-each-k-D-times ; same]
    out_ref    : (TN, K*D)      normalized VLAD, k-major / d-minor (== torch .view(N,-1))
    """
    f32 = jnp.float32
    bf16 = jnp.bfloat16
    hi = lax.Precision.HIGHEST   # exact f32 for the small matmuls (supported on Mosaic)

    # ---- backbone stand-in: linear + ReLU -> emb (TN, D) ----
    emb = jnp.dot(x_ref[...], bw_ref[...], preferred_element_type=f32, precision=hi)
    emb = jnp.maximum(emb + bb_ref[...], 0.0)

    # ---- F.normalize(x, p=2, dim=1): L2 over descriptor channels ----
    en2 = jnp.sum(emb * emb, axis=-1, keepdims=True)              # (TN, 1)
    inv_en = lax.rsqrt(jnp.maximum(en2, EPS * EPS))               # 1 / max(||emb||, eps)
    xn = emb * inv_en                                             # (TN, D)
    xnsq = en2 * (inv_en * inv_en)                                # ||xn||^2 (reuse, no reduce)

    # ---- soft assignment: 1x1 conv + softmax over clusters ----
    logits = jnp.dot(xn, wT_ref[...], preferred_element_type=f32,
                     precision=hi) + b_ref[...]                   # (TN, K)
    logits = logits - jnp.max(logits, axis=-1, keepdims=True)
    e = jnp.exp(logits)
    a = e / jnp.sum(e, axis=-1, keepdims=True)                    # (TN, K)

    # ---- per-cluster residual norms (analytic; ||c_k||^2 precomputed host-side) ----
    # NOTE: analytic ||xn - c_k||^2 can lose precision if a descriptor sits very
    # close to a centroid (trained weights); clamped at 0.
    dotxc = jnp.dot(xn, centT_ref[...], preferred_element_type=f32, precision=hi)  # (TN, K)
    ss = jnp.maximum(xnsq - 2.0 * dotxc + csq_ref[...], 0.0)      # ||xn - c_k||^2

    # ---- fused intra-norm (dim=2) + global-norm (dim=1) scales ----
    vn2 = a * a * ss                                              # ||a*(xn-c_k)||^2
    inv_intra = lax.rsqrt(jnp.maximum(vn2, EPS * EPS))            # 1/max(||vlad_k||, eps)
    g2 = jnp.sum(vn2 * inv_intra * inv_intra, axis=-1, keepdims=True)  # ||vlad_flat||^2
    inv_g = lax.rsqrt(jnp.maximum(g2, EPS * EPS))
    scale = a * inv_intra * inv_g                                 # (TN, K)

    # ---- lane-dense residual: out[n, k*D+d] = scale[n,k] * (xn[n,d] - c[k,d]) ----
    # Manual hi/mid/lo bf16 split of xn (~24 bits) fused with the "ones" columns that
    # pick up the -centroid rows: one plain bf16 MXU matmul, centroid subtract folded in.
    xn_hi = xn.astype(bf16).astype(f32)
    r1 = xn - xn_hi                                               # exact (Sterbenz)
    xn_mid = r1.astype(bf16).astype(f32)
    xn_lo = r1 - xn_mid                                           # exact
    ones3 = jnp.ones((xn.shape[0], 3), f32)
    lhs_x = jnp.concatenate([xn_hi, xn_mid, xn_lo, ones3], axis=-1).astype(bf16)  # (TN, 3D+3)
    resid = jnp.dot(lhs_x, rep_xc_ref[...], preferred_element_type=f32)           # (TN, K*D)

    # hi/lo bf16 split of the per-(n,k) scale (~16 bits), broadcast over D lanes via
    # the 0/1 repeat matrix: a second plain bf16 MXU matmul.
    s_hi = scale.astype(bf16).astype(f32)
    s_lo = scale - s_hi
    lhs_s = jnp.concatenate([s_hi, s_lo], axis=-1).astype(bf16)                    # (TN, 2K)
    scale_rep = jnp.dot(lhs_s, rep_s2_ref[...], preferred_element_type=f32)        # (TN, K*D)

    out_ref[...] = resid * scale_rep                              # single epilogue multiply


def _split3(v):
    """Exact-ish 3-piece bf16 decomposition of an f32 array (returned in f32)."""
    hi = v.astype(jnp.bfloat16).astype(jnp.float32)
    r = v - hi
    mid = r.astype(jnp.bfloat16).astype(jnp.float32)
    lo = r - mid
    return hi, mid, lo


def writer_res_model(x, bw, bb, centroids, conv_wT, conv_b, *, tn=256):
    """Returns the NetVLAD encoding, shape (N, K*D), k-major like torch .view(N, -1)."""
    N, IN = x.shape
    K, D = centroids.shape
    KD = K * D

    # Batch tile: sublane-aligned.  Default 256 keeps double-buffered (TN, KD) f32
    # outputs + the two (TN, KD) f32 temporaries + resident bf16 rep matrices well
    # under v7x's 64 MiB VMEM; v5e/v6e (128 MiB) can pass tn=512.
    TN = max(8, (min(int(tn), 512) // 8) * 8)
    TN = min(TN, ((N + 7) // 8) * 8)
    # Prefer >= 2 grid steps so ("parallel",) can shard the batch across both v7x TCs.
    if N > 8 and pl.cdiv(N, TN) < 2:
        TN = max(8, ((pl.cdiv(N, 2) + 7) // 8) * 8)
    n_pad = (-N) % TN
    xp = jnp.pad(x, ((0, n_pad), (0, 0))) if n_pad else x
    Np = N + n_pad
    grid = (Np // TN,)

    # Host-side constants.
    centT = centroids.T                                              # (D, K)
    csq = jnp.sum(centroids * centroids, axis=1).reshape(1, K)       # (1, K)
    c_flat = centroids.reshape(1, KD)                                # (1, K*D), k-major
    c_hi, c_mid, c_lo = _split3(c_flat)
    rep_tile = jnp.tile(jnp.eye(D, dtype=jnp.float32), (1, K))       # (D, K*D) 0/1 selection
    rep_xc = jnp.concatenate(
        [rep_tile, rep_tile, rep_tile, -c_hi, -c_mid, -c_lo], axis=0
    ).astype(jnp.bfloat16)                                           # (3D+3, K*D)
    rep_s = jnp.repeat(jnp.eye(K, dtype=jnp.float32), D, axis=1)     # (K, K*D) 0/1 repeat
    rep_s2 = jnp.concatenate([rep_s, rep_s], axis=0).astype(jnp.bfloat16)  # (2K, K*D)

    vmem_limit = (56 if TN <= 256 else 100) * 1024 * 1024
    cost = pl.CostEstimate(
        flops=2 * Np * (IN * D + 2 * D * K + (3 * D + 3) * KD + 2 * K * KD),
        transcendentals=Np * (K + 8),
        bytes_accessed=4 * Np * (IN + KD)
        + 4 * (IN * D + D + 2 * D * K + 2 * K)
        + 2 * ((3 * D + 3) * KD + 2 * K * KD),
    )

    out = pl.pallas_call(
        writer_res_kernel,
        out_shape=jax.ShapeDtypeStruct((Np, KD), jnp.float32),
        grid=grid,
        in_specs=[
            pl.BlockSpec((TN, IN), lambda i: (i, 0)),      # x: tiled over the batch
            pl.BlockSpec((IN, D), lambda i: (0, 0)),       # params: constant block index
            pl.BlockSpec((1, D), lambda i: (0, 0)),        #   -> fetched once, VMEM-resident
            pl.BlockSpec((D, K), lambda i: (0, 0)),
            pl.BlockSpec((1, K), lambda i: (0, 0)),
            pl.BlockSpec((D, K), lambda i: (0, 0)),
            pl.BlockSpec((1, K), lambda i: (0, 0)),
            pl.BlockSpec((3 * D + 3, KD), lambda i: (0, 0)),
            pl.BlockSpec((2 * K, KD), lambda i: (0, 0)),
        ],
        out_specs=pl.BlockSpec((TN, KD), lambda i: (i, 0)),
        compiler_params=pltpu.CompilerParams(
            dimension_semantics=("parallel",),             # shard batch tiles across TCs
            vmem_limit_bytes=vmem_limit,
        ),
        cost_estimate=cost,
    )(xp, bw, bb, centT, csq, conv_wT, conv_b, rep_xc, rep_s2)

    return out[:N] if n_pad else out


def writer_res_ref(x, bw, bb, centroids, conv_wT, conv_b):
    """Pure-JAX reference mirroring the torch forward (H = W = 1)."""
    hi = lax.Precision.HIGHEST
    emb = jnp.maximum(jnp.dot(x, bw, precision=hi) + bb, 0.0)
    xn = emb / jnp.maximum(jnp.linalg.norm(emb, axis=1, keepdims=True), EPS)
    logits = jnp.dot(xn, conv_wT, precision=hi) + conv_b
    a = jax.nn.softmax(logits, axis=1)                              # (N, K)
    resid = xn[:, None, :] - centroids[None, :, :]                  # (N, K, D)
    vlad = a[:, :, None] * resid
    vlad = vlad / jnp.maximum(jnp.linalg.norm(vlad, axis=2, keepdims=True), EPS)
    vlad = vlad.reshape(x.shape[0], -1)
    vlad = vlad / jnp.maximum(jnp.linalg.norm(vlad, axis=1, keepdims=True), EPS)
    return vlad


if __name__ == "__main__":
    # Small, deterministic setup consistent with the module defaults:
    #   num_clusters=100, dim=64; backbone stand-in maps IN=32 -> 64.
    # tn=8 with N=16 exercises a 2-step batch grid.
    N, IN, D, K = 16, 32, 64, 100

    key = jax.random.PRNGKey(0)
    k_x, k_bw, k_bb, k_cent = jax.random.split(key, 4)

    x = jax.random.normal(k_x, (N, IN), dtype=jnp.float32)

    # backbone stand-in params (resnet20 not provided; see TODO above)
    bw = 0.1 * jax.random.normal(k_bw, (IN, D), dtype=jnp.float32)
    bb = 0.1 * jax.random.normal(k_bb, (1, D), dtype=jnp.float32)

    # NetVLAD params, initialized exactly as the module's _init_params():
    #   centroids ~ U[0,1);  conv.weight = 2*alpha*centroids;  conv.bias = -alpha*||centroids||
    centroids = jax.random.uniform(k_cent, (K, D), dtype=jnp.float32)
    conv_wT = (2.0 * ALPHA * centroids).T                       # (D, K)
    conv_b = (-ALPHA * jnp.sqrt(jnp.sum(centroids * centroids, axis=1))).reshape(1, K)

    out = writer_res_model(x, bw, bb, centroids, conv_wT, conv_b, tn=8)
    out = jax.block_until_ready(out)

    ref = writer_res_ref(x, bw, bb, centroids, conv_wT, conv_b)

    assert out.shape == (N, K * D)
    assert bool(jnp.all(jnp.isfinite(out)))
    assert bool(jnp.allclose(out, ref, rtol=5e-3, atol=1e-4))
    print("KERNEL_OK")
</pallas_src>

<mosaic_0001>
module attributes {stable_mosaic.version = 11 : i64} {
  func.func @writer_res_kernel(%arg0: i32, %arg1: memref<8x32xf32, #tpu.memory_space<vmem>>, %arg2: memref<32x64xf32, #tpu.memory_space<vmem>>, %arg3: memref<1x64xf32, #tpu.memory_space<vmem>>, %arg4: memref<64x100xf32, #tpu.memory_space<vmem>>, %arg5: memref<1x100xf32, #tpu.memory_space<vmem>>, %arg6: memref<64x100xf32, #tpu.memory_space<vmem>>, %arg7: memref<1x100xf32, #tpu.memory_space<vmem>>, %arg8: memref<195x6400xbf16, #tpu.memory_space<vmem>>, %arg9: memref<200x6400xbf16, #tpu.memory_space<vmem>>, %arg10: memref<8x6400xf32, #tpu.memory_space<vmem>>) attributes {dimension_semantics = [#tpu.dimension_semantics<parallel>], iteration_bounds = array<i64: 2>, scalar_prefetch = 0 : i64, scratch_operands = 0 : i64, tpu.core_type = #tpu.core_type<tc>, window_params = [{transform_indices = @transform_0, window_bounds = array<i64: 8, 32>}, {pipeline_mode = #tpu.pipeline_mode<synchronous>, transform_indices = @transform_1, window_bounds = array<i64: 32, 64>}, {pipeline_mode = #tpu.pipeline_mode<synchronous>, transform_indices = @transform_2, window_bounds = array<i64: 1, 64>}, {pipeline_mode = #tpu.pipeline_mode<synchronous>, transform_indices = @transform_3, window_bounds = array<i64: 64, 100>}, {pipeline_mode = #tpu.pipeline_mode<synchronous>, transform_indices = @transform_4, window_bounds = array<i64: 1, 100>}, {pipeline_mode = #tpu.pipeline_mode<synchronous>, transform_indices = @transform_5, window_bounds = array<i64: 64, 100>}, {pipeline_mode = #tpu.pipeline_mode<synchronous>, transform_indices = @transform_6, window_bounds = array<i64: 1, 100>}, {pipeline_mode = #tpu.pipeline_mode<synchronous>, transform_indices = @transform_7, window_bounds = array<i64: 195, 6400>}, {pipeline_mode = #tpu.pipeline_mode<synchronous>, transform_indices = @transform_8, window_bounds = array<i64: 200, 6400>}, {transform_indices = @transform_9, window_bounds = array<i64: 8, 6400>}]} {
    %c0 = arith.constant 0 : index
    %c0_0 = arith.constant 0 : index
    %0 = vector.load %arg1[%c0, %c0_0] : memref<8x32xf32, #tpu.memory_space<vmem>>, vector<8x32xf32>
    %c0_1 = arith.constant 0 : index
    %c0_2 = arith.constant 0 : index
    %1 = vector.load %arg2[%c0_1, %c0_2] : memref<32x64xf32, #tpu.memory_space<vmem>>, vector<32x64xf32>
    %cst = arith.constant dense<0.000000e+00> : vector<8x64xf32>
    %2 = tpu.matmul %0, %1, %cst {dimension_numbers = #tpu.dot_dimension_numbers<[1], [0], [0], [1], [0, 0, 1, 1], [], []>, precision = #tpu.contract_precision<fp32>} : vector<8x32xf32>, vector<32x64xf32>, vector<8x64xf32> -> vector<8x64xf32>
    %c0_3 = arith.constant 0 : index
    %c0_4 = arith.constant 0 : index
    %3 = vector.load %arg3[%c0_3, %c0_4] : memref<1x64xf32, #tpu.memory_space<vmem>>, vector<1x64xf32>
    %4 = vector.broadcast %3 : vector<1x64xf32> to vector<8x64xf32>
    %5 = arith.addf %2, %4 : vector<8x64xf32>
    %cst_5 = arith.constant 0.000000e+00 : f32
    %6 = vector.broadcast %cst_5 : f32 to vector<8x64xf32>
    %7 = arith.maximumf %5, %6 : vector<8x64xf32>
    %8 = arith.mulf %7, %7 : vector<8x64xf32>
    %cst_6 = arith.constant dense<0.000000e+00> : vector<8xf32>
    %9 = vector.multi_reduction <add>, %8, %cst_6 [1] : vector<8x64xf32> to vector<8xf32>
    %10 = vector.shape_cast %9 : vector<8xf32> to vector<8x1xf32>
    %cst_7 = arith.constant 1.000000e-24 : f32
    %11 = vector.broadcast %cst_7 : f32 to vector<8x1xf32>
    %12 = arith.maximumf %10, %11 : vector<8x1xf32>
    %13 = math.rsqrt %12 : vector<8x1xf32>
    %14 = vector.broadcast %13 : vector<8x1xf32> to vector<8x64xf32>
    %15 = arith.mulf %7, %14 : vector<8x64xf32>
    %16 = arith.mulf %13, %13 : vector<8x1xf32>
    %17 = arith.mulf %10, %16 : vector<8x1xf32>
    %c0_8 = arith.constant 0 : index
    %c0_9 = arith.constant 0 : index
    %18 = vector.load %arg6[%c0_8, %c0_9] : memref<64x100xf32, #tpu.memory_space<vmem>>, vector<64x100xf32>
    %cst_10 = arith.constant dense<0.000000e+00> : vector<8x100xf32>
    %19 = tpu.matmul %15, %18, %cst_10 {dimension_numbers = #tpu.dot_dimension_numbers<[1], [0], [0], [1], [0, 0, 1, 1], [], []>, precision = #tpu.contract_precision<fp32>} : vector<8x64xf32>, vector<64x100xf32>, vector<8x100xf32> -> vector<8x100xf32>
    %c0_11 = arith.constant 0 : index
    %c0_12 = arith.constant 0 : index
    %20 = vector.load %arg7[%c0_11, %c0_12] : memref<1x100xf32, #tpu.memory_space<vmem>>, vector<1x100xf32>
    %21 = vector.broadcast %20 : vector<1x100xf32> to vector<8x100xf32>
    %22 = arith.addf %19, %21 : vector<8x100xf32>
    %cst_13 = arith.constant dense<0xFF800000> : vector<8xf32>
    %23 = vector.multi_reduction <maximumf>, %22, %cst_13 [1] : vector<8x100xf32> to vector<8xf32>
    %24 = vector.shape_cast %23 : vector<8xf32> to vector<8x1xf32>
    %25 = vector.broadcast %24 : vector<8x1xf32> to vector<8x100xf32>
    %26 = arith.subf %22, %25 : vector<8x100xf32>
    %27 = math.exp %26 : vector<8x100xf32>
    %cst_14 = arith.constant dense<0.000000e+00> : vector<8xf32>
    %28 = vector.multi_reduction <add>, %27, %cst_14 [1] : vector<8x100xf32> to vector<8xf32>
    %29 = vector.shape_cast %28 : vector<8xf32> to vector<8x1xf32>
    %30 = vector.broadcast %29 : vector<8x1xf32> to vector<8x100xf32>
    %31 = arith.divf %27, %30 : vector<8x100xf32>
    %c0_15 = arith.constant 0 : index
    %c0_16 = arith.constant 0 : index
    %32 = vector.load %arg4[%c0_15, %c0_16] : memref<64x100xf32, #tpu.memory_space<vmem>>, vector<64x100xf32>
    %cst_17 = arith.constant dense<0.000000e+00> : vector<8x100xf32>
    %33 = tpu.matmul %15, %32, %cst_17 {dimension_numbers = #tpu.dot_dimension_numbers<[1], [0], [0], [1], [0, 0, 1, 1], [], []>, precision = #tpu.contract_precision<fp32>} : vector<8x64xf32>, vector<64x100xf32>, vector<8x100xf32> -> vector<8x100xf32>
    %cst_18 = arith.constant 2.000000e+00 : f32
    %34 = vector.broadcast %cst_18 : f32 to vector<8x100xf32>
    %35 = arith.mulf %34, %33 : vector<8x100xf32>
    %36 = vector.broadcast %17 : vector<8x1xf32> to vector<8x100xf32>
    %37 = arith.subf %36, %35 : vector<8x100xf32>
    %c0_19 = arith.constant 0 : index
    %c0_20 = arith.constant 0 : index
    %38 = vector.load %arg5[%c0_19, %c0_20] : memref<1x100xf32, #tpu.memory_space<vmem>>, vector<1x100xf32>
    %39 = vector.broadcast %38 : vector<1x100xf32> to vector<8x100xf32>
    %40 = arith.addf %37, %39 : vector<8x100xf32>
    %cst_21 = arith.constant 0.000000e+00 : f32
    %41 = vector.broadcast %cst_21 : f32 to vector<8x100xf32>
    %42 = arith.maximumf %40, %41 : vector<8x100xf32>
    %43 = arith.mulf %31, %31 : vector<8x100xf32>
    %44 = arith.mulf %43, %42 : vector<8x100xf32>
    %cst_22 = arith.constant 1.000000e-24 : f32
    %45 = vector.broadcast %cst_22 : f32 to vector<8x100xf32>
    %46 = arith.maximumf %44, %45 : vector<8x100xf32>
    %47 = math.rsqrt %46 : vector<8x100xf32>
    %48 = arith.mulf %44, %47 : vector<8x100xf32>
    %49 = arith.mulf %48, %47 : vector<8x100xf32>
    %cst_23 = arith.constant dense<0.000000e+00> : vector<8xf32>
    %50 = vector.multi_reduction <add>, %49, %cst_23 [1] : vector<8x100xf32> to vector<8xf32>
    %51 = vector.shape_cast %50 : vector<8xf32> to vector<8x1xf32>
    %cst_24 = arith.constant 1.000000e-24 : f32
    %52 = vector.broadcast %cst_24 : f32 to vector<8x1xf32>
    %53 = arith.maximumf %51, %52 : vector<8x1xf32>
    %54 = math.rsqrt %53 : vector<8x1xf32>
    %55 = arith.mulf %31, %47 : vector<8x100xf32>
    %56 = vector.broadcast %54 : vector<8x1xf32> to vector<8x100xf32>
    %57 = arith.mulf %55, %56 : vector<8x100xf32>
    %58 = arith.truncf %15 : vector<8x64xf32> to vector<8x64xbf16>
    %59 = arith.extf %58 : vector<8x64xbf16> to vector<8x64xf32>
    %60 = arith.subf %15, %59 : vector<8x64xf32>
    %61 = arith.truncf %60 : vector<8x64xf32> to vector<8x64xbf16>
    %62 = arith.extf %61 : vector<8x64xbf16> to vector<8x64xf32>
    %63 = arith.subf %60, %62 : vector<8x64xf32>
    %cst_25 = arith.constant 1.000000e+00 : f32
    %64 = vector.broadcast %cst_25 : f32 to vector<8x3xf32>
    %65 = tpu.concatenate %59, %62, %63, %64 in 1 : vector<8x64xf32>, vector<8x64xf32>, vector<8x64xf32>, vector<8x3xf32> -> vector<8x195xf32>
    %66 = arith.truncf %65 : vector<8x195xf32> to vector<8x195xbf16>
    %c0_26 = arith.constant 0 : index
    %c0_27 = arith.constant 0 : index
    %67 = vector.load %arg8[%c0_26, %c0_27] : memref<195x6400xbf16, #tpu.memory_space<vmem>>, vector<195x6400xbf16>
    %cst_28 = arith.constant dense<0.000000e+00> : vector<8x6400xf32>
    %68 = tpu.matmul %66, %67, %cst_28 {dimension_numbers = #tpu.dot_dimension_numbers<[1], [0], [0], [1], [0, 0, 1, 1], [], []>} : vector<8x195xbf16>, vector<195x6400xbf16>, vector<8x6400xf32> -> vector<8x6400xf32>
    %69 = arith.truncf %57 : vector<8x100xf32> to vector<8x100xbf16>
    %70 = arith.extf %69 : vector<8x100xbf16> to vector<8x100xf32>
    %71 = arith.subf %57, %70 : vector<8x100xf32>
    %72 = tpu.concatenate %70, %71 in 1 : vector<8x100xf32>, vector<8x100xf32> -> vector<8x200xf32>
    %73 = arith.truncf %72 : vector<8x200xf32> to vector<8x200xbf16>
    %c0_29 = arith.constant 0 : index
    %c0_30 = arith.constant 0 : index
    %74 = vector.load %arg9[%c0_29, %c0_30] : memref<200x6400xbf16, #tpu.memory_space<vmem>>, vector<200x6400xbf16>
    %cst_31 = arith.constant dense<0.000000e+00> : vector<8x6400xf32>
    %75 = tpu.matmul %73, %74, %cst_31 {dimension_numbers = #tpu.dot_dimension_numbers<[1], [0], [0], [1], [0, 0, 1, 1], [], []>} : vector<8x200xbf16>, vector<200x6400xbf16>, vector<8x6400xf32> -> vector<8x6400xf32>
    %76 = arith.mulf %68, %75 : vector<8x6400xf32>
    %c0_32 = arith.constant 0 : index
    %c0_33 = arith.constant 0 : index
    %77 = vector.load %arg10[%c0_32, %c0_33] : memref<8x6400xf32, #tpu.memory_space<vmem>>, vector<8x6400xf32>
    tpu.vector_store %arg10[%c0_32, %c0_33], %76 {strides = array<i32>} : memref<8x6400xf32, #tpu.memory_space<vmem>>, vector<8x6400xf32>,
    return
  }
  func.func @transform_0(%arg0: i32) -> (i32, i32) {
    %c0_i32 = arith.constant 0 : i32
    %c0_i32_0 = arith.constant 0 : i32
    return %arg0, %c0_i32 : i32, i32
  }
  func.func @transform_1(%arg0: i32) -> (i32, i32) {
    %c0_i32 = arith.constant 0 : i32
    %c0_i32_0 = arith.constant 0 : i32
    %c0_i32_1 = arith.constant 0 : i32
    return %c0_i32, %c0_i32_0 : i32, i32
  }
  func.func @transform_2(%arg0: i32) -> (i32, i32) {
    %c0_i32 = arith.constant 0 : i32
    %c0_i32_0 = arith.constant 0 : i32
    %c0_i32_1 = arith.constant 0 : i32
    return %c0_i32, %c0_i32_0 : i32, i32
  }
  func.func @transform_3(%arg0: i32) -> (i32, i32) {
    %c0_i32 = arith.constant 0 : i32
    %c0_i32_0 = arith.constant 0 : i32
    %c0_i32_1 = arith.constant 0 : i32
    return %c0_i32, %c0_i32_0 : i32, i32
  }
  func.func @transform_4(%arg0: i32) -> (i32, i32) {
    %c0_i32 = arith.constant 0 : i32
    %c0_i32_0 = arith.constant 0 : i32
    %c0_i32_1 = arith.constant 0 : i32
    return %c0_i32, %c0_i32_0 : i32, i32
  }
  func.func @transform_5(%arg0: i32) -> (i32, i32) {
    %c0_i32 = arith.constant 0 : i32
    %c0_i32_0 = arith.constant 0 : i32
    %c0_i32_1 = arith.constant 0 : i32
    return %c0_i32, %c0_i32_0 : i32, i32
  }
  func.func @transform_6(%arg0: i32) -> (i32, i32) {
    %c0_i32 = arith.constant 0 : i32
    %c0_i32_0 = arith.constant 0 : i32
    %c0_i32_1 = arith.constant 0 : i32
    return %c0_i32, %c0_i32_0 : i32, i32
  }
  func.func @transform_7(%arg0: i32) -> (i32, i32) {
    %c0_i32 = arith.constant 0 : i32
    %c0_i32_0 = arith.constant 0 : i32
    %c0_i32_1 = arith.constant 0 : i32
    return %c0_i32, %c0_i32_0 : i32, i32
  }
  func.func @transform_8(%arg0: i32) -> (i32, i32) {
    %c0_i32 = arith.constant 0 : i32
    %c0_i32_0 = arith.constant 0 : i32
    %c0_i32_1 = arith.constant 0 : i32
    return %c0_i32, %c0_i32_0 : i32, i32
  }
  func.func @transform_9(%arg0: i32) -> (i32, i32) {
    %c0_i32 = arith.constant 0 : i32
    %c0_i32_0 = arith.constant 0 : i32
    return %arg0, %c0_i32 : i32, i32
  }
}

</mosaic_0001>

<bundles_post_ra>
// kernel: tpu_custom_call.1
= control target key start
LH: loop header
LB: loop body
LE: loop exit
PB: predicated region body
PF: predicated region fallthrough
CT: control target
= control target key end

     0   :  { %s18043_s0 = inlined_call_operand.hbm [shape: f32[16,32], index: 0, kind: input, shape index: {}]   ;;  %s18044_s1 = inlined_call_operand.hbm [shape: f32[32,64], index: 1, kind: input, shape index: {}]   ;;  %s18045_s2 = inlined_call_operand.hbm [shape: f32[1,64], index: 2, kind: input, shape index: {}]   ;;  %s18046_s3 = inlined_call_operand.hbm [shape: f32[64,100], index: 3, kind: input, shape index: {}]   ;;  %s18047_s4 = inlined_call_operand.hbm [shape: f32[1,100], index: 4, kind: input, shape index: {}]   ;;  %s18048_s5 = inlined_call_operand.hbm [shape: f32[64,100], index: 5, kind: input, shape index: {}]   ;;  %s18049_s6 = inlined_call_operand.hbm [shape: f32[1,100], index: 6, kind: input, shape index: {}]   ;;  %s18050_s7 = inlined_call_operand.hbm [shape: bf16[195,6400], index: 7, kind: input, shape index: {}]   ;;  %s18051_s8 = inlined_call_operand.hbm [shape: bf16[200,6400], index: 8, kind: input, shape index: {}]   ;;  %s18052_s9 = inlined_call_operand.hbm [shape: f32[16,6400], index: 9, kind: output, shape index: {}]  }
   0x1   :  { %18064 = sst [smem:[#allocation29_spill]] %s18044_s1 }
   0x2   :  { %18065 = sst [smem:[#allocation30_spill]] %s18052_s9 }
   0x3   :  { %14 = vsyncpa [#allocation3], 0 }
   0x4   :  { %16 = vsyncpa [#allocation3 + $0x1], 0 }
   0x5   :  { %17 = vsyncpa [#allocation6], 0 }
   0x6   :  { %18 = vsyncpa [#allocation9], 0 }
   0x7   :  { %19 = vsyncpa [#allocation12], 0 }
   0x8   :  { %20 = vsyncpa [#allocation15], 0 }
   0x9   :  { %21 = vsyncpa [#allocation4], 0 }
   0xa   :  { %23 = vsyncpa [#allocation4 + $0x1], 0  ;;  %s16758_s30 = smov 0   ;;  %s16760_s10 = smov 0  }
   0xb   :  { %s16762_s11 = smov 0   ;;  %s16764_s12 = smov 0  }
   0xc LB: > { %s16688_s13 = smov [#allocation5]   ;;  %s16779_s15 = sadd.s32 4294967295, %s16686_s12   ;;  %s16686_s12 = sphi %s16764_s12, %s18110_s12   ;;  %s16682_s11 = sphi %s16762_s11, %s18109_s11   ;;  %s16678_s10 = sphi %s16760_s10, %s18108_s10   ;;  %s16674_s30 = sphi %s16758_s30, %s18107_s30  }
   0xd   : > { %s266_s14 = sshll.u32 %s16688_s13, 4  ;;  %p12256_p0 = scmp.ge.s32.totalorder %s16686_s12, 1  ;;  %s16784_s14 = int_to_ptr.vmem [resolvable:$true] %s266_s14 }
   0xe   : > { %p18054_p1 = scmp.eq.s32.totalorder %s16779_s15, 0  ;;  %p254_p2 = scmp.lt.s32.totalorder %s16686_s12, 3 }
   0xf   : > { %s16689_s17 = smov [#allocation8]   ;;  %s16690_s20 = smov [#allocation11]  }
  0x10   : > { %p16786_p3 = pnand %p12256_p0, %p254_p2  ;;  %s290_s18 = sshll.u32 %s16689_s17, 4  ;;  %s16799_s18 = int_to_ptr.vmem [resolvable:$true] %s290_s18 }
  0x11   : > { %s314_s21 = sshll.u32 %s16690_s20, 4  ;;  %s18068_s1 = sld [smem:[#allocation29_spill]]  ;;  %s16801_s21 = int_to_ptr.vmem [resolvable:$true] %s314_s21 }
  0x12   : > { %s18066_s16 = scalar_select %p16786_p3, 1, 0 }
  0x13   : > { %p14339_p5 = pneg %p16786_p3 }
  0x15   : > { %p16795_p6 = pnand %p14339_p5, %p18054_p1 }
  0x17   : > { %s16350_s24 = scalar_lea.hbm %s18068_s1, 512  ;;  %p16811_p8 = pneg %p16795_p6 }
  0x18   : > { %p16351_p7 = scmp.ne.s32.totalorder %s18068_s1, %s16350_s24  ;;  %p16357_p11 = scmp.lt.u32.totalorder %s16350_s24, %s18068_s1 }
  0x1a   : > { %p16353_p9 = pnand %p16811_p8, %p16351_p7 }
  0x1c   : > { %p16354_p10 = pneg %p16353_p9 }
  0x1e   : > { %p16359_p12 = pnand %p16357_p11, %p16354_p10 }
  0x20   : > { %16362 = shalt.err (!%p16359_p12)
}
  0x21   : > { %s16363_s13 = scalar_lea.vmem %s16784_s14, 512  ;;  %p16371_p5 = scmp.lt.s32.totalorder %s16784_s14, %s16784_s14 }
  0x22   : > { %p16364_p13 = scmp.ne.s32.totalorder %s16784_s14, %s16363_s13  ;;  %p16372_p4 = scmp.lt.s32.totalorder %s16363_s13, %s16363_s13 }
  0x24   : > { %p16366_p0 = pnand %p16364_p13, %p16811_p8  ;;  %p16373_p7 = por %p16372_p4, %p16371_p5 }
  0x26   : > { %p16367_p2 = pneg %p16366_p0 }
  0x28   : > { %p16374_p9 = pnand %p16373_p7, %p16367_p2 }
  0x2a   : > { %16377 = shalt.err (!%p16374_p9)
}
  0x2b   : > { %s16691_s17 = smov 128   ;;  %s16692_s20 = smov 8  }
  0x2c   : > { %14342 = dma.hbm_to_vmem [thread:$0]  (!%p16795_p6), %s18068_s1, 512, %s16784_s14, [#allocation6], %s16691_s17, %s16691_s17, %s16692_s20  }
  0x2d   : > { %s16378_s26 = scalar_lea.hbm %s18046_s3, 1024 }
  0x2e   : > { %p16379_p4 = scmp.ne.s32.totalorder %s18046_s3, %s16378_s26  ;;  %p16385_p12 = scmp.lt.u32.totalorder %s16378_s26, %s18046_s3 }
  0x30   : > { %p16381_p10 = pnand %p16379_p4, %p16811_p8 }
  0x32   : > { %p16382_p11 = pneg %p16381_p10 }
  0x34   : > { %p16387_p13 = pnand %p16385_p12, %p16382_p11 }
  0x36   : > { %16390 = shalt.err (!%p16387_p13)
}
  0x37   : > { %s16391_s14 = scalar_lea.vmem %s16799_s18, 1024  ;;  %p16399_p7 = scmp.lt.s32.totalorder %s16799_s18, %s16799_s18 }
  0x38   : > { %p16392_p0 = scmp.ne.s32.totalorder %s16799_s18, %s16391_s14  ;;  %p16400_p9 = scmp.lt.s32.totalorder %s16391_s14, %s16391_s14 }
  0x3a   : > { %p16394_p2 = pnand %p16392_p0, %p16811_p8  ;;  %p16401_p4 = por %p16400_p9, %p16399_p7 }
  0x3c   : > { %p16395_p5 = pneg %p16394_p2 }
  0x3e   : > { %p16402_p10 = pnand %p16401_p4, %p16395_p5 }
  0x40   : > { %16405 = shalt.err (!%p16402_p10)
}
  0x41   : > { %14348 = dma.hbm_to_vmem [thread:$0]  (!%p16795_p6), %s18046_s3, 1024, %s16799_s18, [#allocation9], %s16691_s17, %s16691_s17, %s16692_s20  }
  0x42   : > { %s16406_s25 = scalar_lea.hbm %s18048_s5, 1024 }
  0x43   : > { %p16407_p11 = scmp.ne.s32.totalorder %s18048_s5, %s16406_s25  ;;  %p16413_p0 = scmp.lt.u32.totalorder %s16406_s25, %s18048_s5 }
  0x45   : > { %p16409_p12 = pnand %p16407_p11, %p16811_p8 }
  0x47   : > { %p16410_p13 = pneg %p16409_p12 }
  0x49   : > { %p16415_p2 = pnand %p16413_p0, %p16410_p13 }
  0x4b   : > { %16418 = shalt.err (!%p16415_p2)
}
  0x4c   : > { %s16419_s18 = scalar_lea.vmem %s16801_s21, 1024  ;;  %p16427_p4 = scmp.lt.s32.totalorder %s16801_s21, %s16801_s21 }
  0x4d   : > { %p16420_p5 = scmp.ne.s32.totalorder %s16801_s21, %s16419_s18  ;;  %p16428_p10 = scmp.lt.s32.totalorder %s16419_s18, %s16419_s18 }
  0x4f   : > { %p16422_p7 = pnand %p16420_p5, %p16811_p8  ;;  %p16429_p11 = por %p16428_p10, %p16427_p4 }
  0x51   : > { %p16423_p9 = pneg %p16422_p7 }
  0x53   : > { %p16430_p12 = pnand %p16429_p11, %p16423_p9 }
  0x55   : > { %16433 = shalt.err (!%p16430_p12)
}
  0x56   : > { %14354 = dma.hbm_to_vmem [thread:$0]  (!%p16795_p6), %s18048_s5, 1024, %s16801_s21, [#allocation12], %s16691_s17, %s16691_s17, %s16692_s20  }
  0x57   : > { %s16693_s22 = smov [#allocation14]   ;;  %s16434_s26 = scalar_lea.hbm %s18050_s7, 80000 }
  0x58   : > { %s338_s23 = sshll.u32 %s16693_s22, 4  ;;  %p16435_p13 = scmp.ne.s32.totalorder %s18050_s7, %s16434_s26  ;;  %s339_s23 = int_to_ptr.vmem [resolvable:$true] %s338_s23 }
  0x59   : > { %p16441_p5 = scmp.lt.u32.totalorder %s16434_s26, %s18050_s7 }
  0x5a   : > { %p16437_p0 = pnand %p16435_p13, %p16811_p8 }
  0x5c   : > { %p16438_p2 = pneg %p16437_p0 }
  0x5e   : > { %p16443_p7 = pnand %p16441_p5, %p16438_p2 }
  0x60   : > { %16446 = shalt.err (!%p16443_p7)
}
  0x61   : > { %s16447_s21 = scalar_lea.vmem %s339_s23, 80000  ;;  %p16455_p11 = scmp.lt.s32.totalorder %s339_s23, %s339_s23 }
  0x62   : > { %p16448_p9 = scmp.ne.s32.totalorder %s339_s23, %s16447_s21  ;;  %p16456_p12 = scmp.lt.s32.totalorder %s16447_s21, %s16447_s21 }
  0x64   : > { %p16450_p4 = pnand %p16448_p9, %p16811_p8  ;;  %p16457_p1 = por %p16456_p12, %p16455_p11 }
  0x66   : > { %p16451_p10 = pneg %p16450_p4 }
  0x68   : > { %p16458_p3 = pnand %p16457_p1, %p16451_p10 }
  0x6a   : > { %16461 = shalt.err (!%p16458_p3)
}
  0x6b   : > { %s16694_s17 = smov 3200   ;;  %s16695_s20 = smov 200  }
  0x6c   : > { %14360 = dma.hbm_to_vmem [thread:$0]  (!%p16795_p6), %s18050_s7, 80000, %s339_s23, [#allocation15], %s16694_s17, %s16694_s17, %s16695_s20  }
  0x6d   : > { %s16696_s22 = smov [#allocation7]   ;;  %s16697_s25 = smov [#allocation10]  }
  0x6e   : > { %s280_s24 = sshll.u32 %s16696_s22, 4  ;;  %s304_s26 = sshll.u32 %s16697_s25, 4  ;;  %s281_s24 = int_to_ptr.vmem [resolvable:$true] %s280_s24  ;;  %s16908_s26 = int_to_ptr.vmem [resolvable:$true] %s304_s26 }
  0x6f   : > { %s16462_s13 = scalar_lea.hbm %s18045_s2, 16 }
  0x70   : > { %p16463_p1 = scmp.ne.s32.totalorder %s18045_s2, %s16462_s13  ;;  %p16469_p0 = scmp.lt.u32.totalorder %s16462_s13, %s18045_s2 }
  0x72   : > { %p16465_p3 = pnand %p16463_p1, %p16811_p8 }
  0x74   : > { %p16466_p13 = pneg %p16465_p3 }
  0x76   : > { %p16471_p2 = pnand %p16469_p0, %p16466_p13 }
  0x78   : > { %16474 = shalt.err (!%p16471_p2)
}
  0x79   : > { %s16475_s9 = scalar_lea.vmem %s281_s24, 16  ;;  %s16482_s22 = scalar_lea.vmem %s281_s24, 32 }
  0x7a   : > { %p16476_p5 = scmp.ne.s32.totalorder %s281_s24, %s16475_s9  ;;  %p16483_p4 = scmp.lt.s32.totalorder %s281_s24, %s281_s24 }
  0x7b   : > { %p16484_p10 = scmp.lt.s32.totalorder %s16482_s22, %s16475_s9 }
  0x7c   : > { %p16478_p7 = pnand %p16476_p5, %p16811_p8 }
  0x7d   : > { %p16485_p11 = por %p16484_p10, %p16483_p4 }
  0x7e   : > { %p16479_p9 = pneg %p16478_p7 }
  0x80   : > { %p16486_p12 = pnand %p16485_p11, %p16479_p9 }
  0x82   : > { %16489 = shalt.err (!%p16486_p12)
}
  0x83   : > { %14345 = dma.hbm_to_vmem [thread:$0]  (!%p16795_p6), %s18045_s2, 16, %s281_s24, [#allocation6]  }
  0x84   : > { %s16490_s18 = scalar_lea.hbm %s18047_s4, 16 }
  0x85   : > { %p16491_p1 = scmp.ne.s32.totalorder %s18047_s4, %s16490_s18  ;;  %p16497_p0 = scmp.lt.u32.totalorder %s16490_s18, %s18047_s4 }
  0x87   : > { %p16493_p3 = pnand %p16491_p1, %p16811_p8 }
  0x89   : > { %p16494_p13 = pneg %p16493_p3 }
  0x8b   : > { %p16499_p2 = pnand %p16497_p0, %p16494_p13 }
  0x8d   : > { %16502 = shalt.err (!%p16499_p2)
}
  0x8e   : > { %s16503_s24 = scalar_lea.vmem %s16908_s26, 16  ;;  %s16510_s22 = scalar_lea.vmem %s16908_s26, 32 }
  0x8f   : > { %p16504_p5 = scmp.ne.s32.totalorder %s16908_s26, %s16503_s24  ;;  %p16511_p4 = scmp.lt.s32.totalorder %s16908_s26, %s16908_s26 }
  0x90   : > { %p16512_p10 = scmp.lt.s32.totalorder %s16510_s22, %s16503_s24 }
  0x91   : > { %p16506_p7 = pnand %p16504_p5, %p16811_p8 }
  0x92   : > { %p16513_p11 = por %p16512_p10, %p16511_p4 }
  0x93   : > { %p16507_p9 = pneg %p16506_p7 }
  0x95   : > { %p16514_p12 = pnand %p16513_p11, %p16507_p9 }
  0x97   : > { %16517 = shalt.err (!%p16514_p12)
}
  0x98   : > { %14351 = dma.hbm_to_vmem [thread:$0]  (!%p16795_p6), %s18047_s4, 16, %s16908_s26, [#allocation9]  }
  0x99   : > { %s16698_s29 = smov [#allocation13]   ;;  %s16699_s18 = smov [#allocation16]  }
  0x9a   : > { %s328_s13 = sshll.u32 %s16698_s29, 4  ;;  %s351_s21 = sshll.u32 %s16699_s18, 4  ;;  %s329_s13 = int_to_ptr.vmem [resolvable:$true] %s328_s13  ;;  %s16952_s21 = int_to_ptr.vmem [resolvable:$true] %s351_s21 }
  0x9b   : > { %s16518_s9 = scalar_lea.hbm %s18049_s6, 16 }
  0x9c   : > { %p16519_p1 = scmp.ne.s32.totalorder %s18049_s6, %s16518_s9  ;;  %p16525_p0 = scmp.lt.u32.totalorder %s16518_s9, %s18049_s6 }
  0x9e   : > { %p16521_p3 = pnand %p16519_p1, %p16811_p8 }
  0xa0   : > { %p16522_p13 = pneg %p16521_p3 }
  0xa2   : > { %p16527_p2 = pnand %p16525_p0, %p16522_p13 }
  0xa4   : > { %16530 = shalt.err (!%p16527_p2)
}
  0xa5   : > { %s16531_s28 = scalar_lea.vmem %s329_s13, 16  ;;  %s16538_s29 = scalar_lea.vmem %s329_s13, 32 }
  0xa6   : > { %p16532_p5 = scmp.ne.s32.totalorder %s329_s13, %s16531_s28  ;;  %p16539_p4 = scmp.lt.s32.totalorder %s329_s13, %s329_s13 }
  0xa7   : > { %p16540_p10 = scmp.lt.s32.totalorder %s16538_s29, %s16531_s28 }
  0xa8   : > { %p16534_p7 = pnand %p16532_p5, %p16811_p8 }
  0xa9   : > { %p16541_p11 = por %p16540_p10, %p16539_p4 }
  0xaa   : > { %p16535_p9 = pneg %p16534_p7 }
  0xac   : > { %p16542_p12 = pnand %p16541_p11, %p16535_p9 }
  0xae   : > { %16545 = shalt.err (!%p16542_p12)
}
  0xaf   : > { %14357 = dma.hbm_to_vmem [thread:$0]  (!%p16795_p6), %s18049_s6, 16, %s329_s13, [#allocation12]  }
  0xb0   : > { %s16546_s24 = scalar_lea.hbm %s18051_s8, 80000 }
  0xb1   : > { %p16547_p1 = scmp.ne.s32.totalorder %s18051_s8, %s16546_s24  ;;  %p16553_p0 = scmp.lt.u32.totalorder %s16546_s24, %s18051_s8 }
  0xb3   : > { %p16549_p3 = pnand %p16547_p1, %p16811_p8 }
  0xb5   : > { %p16550_p13 = pneg %p16549_p3 }
  0xb7   : > { %p16555_p2 = pnand %p16553_p0, %p16550_p13 }
  0xb9   : > { %16558 = shalt.err (!%p16555_p2)
}
  0xba   : > { %s16559_s13 = scalar_lea.vmem %s16952_s21, 80000  ;;  %p16567_p4 = scmp.lt.s32.totalorder %s16952_s21, %s16952_s21 }
  0xbb   : > { %p16560_p5 = scmp.ne.s32.totalorder %s16952_s21, %s16559_s13  ;;  %p16568_p10 = scmp.lt.s32.totalorder %s16559_s13, %s16559_s13 }
  0xbd   : > { %p16562_p7 = pnand %p16560_p5, %p16811_p8  ;;  %p16569_p11 = por %p16568_p10, %p16567_p4 }
  0xbf   : > { %p16563_p9 = pneg %p16562_p7 }
  0xc1   : > { %p16570_p12 = pnand %p16569_p11, %p16563_p9 }
  0xc3   : > { %16573 = shalt.err (!%p16570_p12)
}
  0xc4   : > { %14363 = dma.hbm_to_vmem [thread:$0]  (!%p16795_p6), %s18051_s8, 80000, %s16952_s21, [#allocation15], %s16694_s17, %s16694_s17, %s16695_s20  }
  0xc5   : > { %s12255_s19 = sadd.s32 4294967294, %s16686_s12   ;;  %s17000_s27 = sadd.s32 1, %s16686_s12  }
  0xc6   : > { %s33_s14 = ssub.s32 %s16686_s12, %s17000_s27  ;;  %s36_s23 = sadd.s32 1, %s16682_s11 }
  0xc7   : > { %p34_p8 = scmp.eq.s32.totalorder %s33_s14, 0  ;;  %p43_p1 = scmp.ne.s32.totalorder %s16682_s11, %s16678_s10 }
  0xc8   : > { %p44_p3 = scmp.eq.s32.totalorder %s16686_s12, 0  ;;  %p49_p13 = scmp.ne.s32.totalorder %s16678_s10, %s16674_s30 }
  0xc9   : > { %s17011_s9 = scalar_select %p34_p8, %s16682_s11, %s36_s23  }
  0xca   : > { %p17013_p0 = por %p44_p3, %p43_p1  ;;  %p18071_p2 = scmp.eq.s32.totalorder %s16779_s15, 0 }
  0xcb   : > { %p241_p5 = scmp.eq.s32.totalorder %s16779_s15, 1  ;;  %p247_p7 = scmp.eq.s32.totalorder %s12255_s19, 1 }
  0xcc   : > { %p17019_p6 = por %p18071_p2, %p49_p13  ;;  %p14380_p9 = scmp.lt.s32.totalorder %s16686_s12, 2 }
  0xcd   : > { %s365_s20 = sand.u32 1, %s16682_s11   ;;  %p17026_p4 = por %p241_p5, %p43_p1 }
  0xce   : > { %p17030_p10 = por %p247_p7, %p49_p13  ;;  %s12266_s25 = sshll.u32 %s365_s20, 3 }
  0xcf   : > { %s18073_s21 = scalar_select %p17026_p4, 1, 0 }
  0xd0   : > { %s18074_s22 = scalar_select %p17030_p10, 1, 0 }
  0xd1   : > { %s12267_s26 = sshll.u32 %s16686_s12, 7  ;;  %s369_s18 = scalar_lea.vmem [#allocation2], %s12266_s25 }
  0xd2   : > { %s17038_s29 = scalar_lea.hbm %s18043_s0, %s12267_s26  ;;  %s376_s19 = sshll.u32 %s369_s18, 4  ;;  %s17040_s19 = int_to_ptr.vmem [resolvable:$true] %s376_s19 }
  0xd3   : > { %p17044_p11 = pnand %p14380_p9, %p17013_p0  ;;  %s366_s23 = scalar_lea.sflag [#allocation3], %s365_s20 }
  0xd4   : > { %s16574_s1 = scalar_lea.hbm %s17038_s29, 128  ;;  %s16579_s28 = scalar_lea.hbm %s18043_s0, 256 }
  0xd5   : > { %p16575_p12 = scmp.ne.s32.totalorder %s17038_s29, %s16574_s1  ;;  %p16576_p8 = pneg %p17044_p11 }
  0xd6   : > { %p16580_p13 = scmp.lt.u32.totalorder %s17038_s29, %s18043_s0  ;;  %p16581_p0 = scmp.lt.u32.totalorder %s16579_s28, %s16574_s1 }
  0xd7   : > { %p16577_p1 = pnand %p16576_p8, %p16575_p12  ;;  %p16583_p5 = scmp.lt.u32.totalorder %s16574_s1, %s17038_s29 }
  0xd8   : > { %p16582_p2 = por %p16581_p0, %p16580_p13 }
  0xd9   : > { %p16578_p3 = pneg %p16577_p1 }
  0xda   : > { %p16584_p7 = por %p16583_p5, %p16582_p2 }
  0xdc   : > { %p16585_p9 = pnand %p16584_p7, %p16578_p3 }
  0xde   : > { %16588 = shalt.err (!%p16585_p9)
}
  0xdf   : > { %s16589_s20 = scalar_lea.vmem %s17040_s19, 128  ;;  %s16700_s18 = smov [#allocation2]  }
  0xe0   : > { %p16590_p12 = scmp.ne.s32.totalorder %s17040_s19, %s16589_s20  ;;  %s16594_s25 = sshll.u32 %s16700_s18, 4  ;;  %s16595_s25 = int_to_ptr.vmem [resolvable:$false] %s16594_s25 }
  0xe1   : > { %s16596_s26 = scalar_lea.vmem %s16595_s25, 256  ;;  %p16597_p4 = scmp.lt.s32.totalorder %s17040_s19, %s16595_s25 }
  0xe2   : > { %p16592_p1 = pnand %p16590_p12, %p16576_p8  ;;  %p16598_p13 = scmp.lt.s32.totalorder %s16596_s26, %s16589_s20 }
  0xe4   : > { %p16593_p10 = pneg %p16592_p1  ;;  %p16599_p0 = por %p16598_p13, %p16597_p4 }
  0xe6   : > { %p16600_p2 = pnand %p16599_p0, %p16593_p10 }
  0xe8   : > { %16603 = shalt.err (!%p16600_p2)
}
  0xe9   : > { %14367 = dma.hbm_to_vmem [thread:$0]  (!%p17044_p11), %s17038_s29, 128, %s17040_s19, %s366_s23  }
  0xea   : > { %p18076_p3 = scmp.ne.s32.totalorder %s18066_s16, 0 }
  0xec   : > { %385 = sbr.rel (%p18076_p3) target bundleno = 2462 (0x99e), region = 56 }
  0xf3   : > { %s17076_s1 = sand.u32 1, %s16678_s10  }
  0xf4   : > { %s12269_s28 = sshll.u32 %s17076_s1, 3  ;;  %s388_s24 = scalar_lea.sflag [#allocation3], %s17076_s1 }
  0xf5   : > { %s391_s13 = scalar_lea.vmem [#allocation2], %s12269_s28 }
  0xf6   : > { %16649 = dma.done.wait (%p17019_p6), %s388_s24, 128  }
  0xf7   : > { %16651 = vsyncadd (%p17019_p6), %s388_s24, 4294967168  ;;  %p18077_p4 = scmp.eq.s32.totalorder %s16779_s15, 0 }
  0xf9   : > { %16653 = dma.done.wait (%p18077_p4), [#allocation6], 528   ;;  %p18078_p10 = pmov %p18077_p4 }
  0xfa   : > { %p18079_p11 = pmov %p18077_p4 }
  0xfb   : > { %16655 = vsyncadd (%p18078_p10), [#allocation6], 4294966768 }
  0xfc   : > { %16657 = dma.done.wait (%p18079_p11), [#allocation9], 1040   ;;  %p18080_p8 = pmov %p18077_p4 }
  0xfd   : > { %p18081_p5 = pmov %p18077_p4 }
  0xfe   : > { %16659 = vsyncadd (%p18080_p8), [#allocation9], 4294966256 }
  0xff   : > { %16661 = dma.done.wait (%p18081_p5), [#allocation12], 1040   ;;  %p18082_p7 = pmov %p18077_p4 }
 0x100   : > { %p18083_p6 = pmov %p18077_p4 }
 0x101   : > { %16663 = vsyncadd (%p18082_p7), [#allocation12], 4294966256 }
 0x102   : > { %16665 = dma.done.wait (%p18083_p6), [#allocation15], 160000   ;;  %p18084_p9 = pmov %p18077_p4 }
 0x103   : > { %v18059_v0 = vmov 0.0|0.0   ;;  %vm16702_vm0 = vmmov 0   ;;  %v18057_v1 = vmov 0.0   ;;  %vm471_vm1 = vcmask 261120   ;;  %v460_v2 = vld [vmem:[#allocation5] sm:$0xff]  ;;  %v461_v3 = vld [vmem:[#allocation5 + $0x8] sm:$0xff] }
 0x104   : > { %16667 = vsyncadd (%p18084_p9), [#allocation15], 4294807296  ;;  %14097 = vmatprep.subr.bf16.mxu0 %v18059_v0  ;;  %13816 = vmatprep.mubr.msk.f32.mxu0 %vm16702_vm0, %v18057_v1  ;;  %v462_v4 = vld [vmem:[#allocation5 + $0x10] sm:$0xff]  ;;  %v476_v5 = vand.u32 4294901760, %v460_v2  ;;  %v479_v6 = vand.u32 4294901760, %v461_v3  ;;  %v463_v7 = vld [vmem:[#allocation5 + $0x18] sm:$0xff] }
 0x105   : > { %14091 = vmatprep.subr.bf16.mxu1 %v18059_v0  ;;  %13805 = vmatprep.mubr.msk.f32.mxu1 %vm16702_vm0, %v18057_v1  ;;  %v482_v8 = vand.u32 4294901760, %v462_v4  ;;  %v459_v9 = vld [vmem:[%s391_s13] sm:$0xff]  ;;  %v485_v10 = vand.u32 4294901760, %v463_v7  ;;  %v12278_v43 = vld [vmem:[#allocation7] ss:$0 sm:$0xff]  ;;  %vm962_vm2 = vcmask 523264  }
 0x106   : > { %v473_v11 = vsel %vm471_vm1, %v459_v9, 0  ;;  %v556_v12 = vsub.f32 %v460_v2, %v476_v5  ;;  %v563_v13 = vsub.f32 %v461_v3, %v479_v6  ;;  %v14092_v17 = vpack.c.bf16 %v479_v6, %v476_v5  ;;  %v17135_v51 = vld [vmem:[#allocation8] sm:$0xff]  ;;  %v17137_v52 = vld [vmem:[#allocation8 + $0x8] sm:$0xff]  ;;  %v17151_v57 = vld [vmem:[#allocation8 + $0x10] sm:$0xff]  ;;  %s16704_s16 = smov 64   ;;  %s16706_s17 = smov 100  }
 0x107   : > { %v570_v14 = vsub.f32 %v462_v4, %v482_v8  ;;  %v577_v15 = vsub.f32 %v463_v7, %v485_v10  ;;  %v544_v16 = vand.u32 4294901760, %v473_v11  ;;  %v14095_v27 = vpack.c.bf16 %v485_v10, %v482_v8  ;;  %v17153_v58 = vld [vmem:[#allocation8 + $0x18] sm:$0xff]  ;;  %v17175_v5 = vld [vmem:[#allocation8 + $0x20] sm:$0xff]  ;;  %v17177_v6 = vld [vmem:[#allocation8 + $0x28] sm:$0xff]  ;;  %s14301_s29 = smul.u32 400, %s17076_s1  ;;  %s18103_s25 = sld [smem:[#allocation30_spill]] }
 0x108   : > { %v557_v18 = vand.u32 4294901760, %v556_v12  ;;  %v564_v19 = vand.u32 4294901760, %v563_v13  ;;  %14093 = vmatpush3.bf16.msra.mxu1 %v14092_v17  ;;  %v14104_v37 = vpack.c.bf16 %v563_v13, %v556_v12  ;;  %v1547_v53 = vand.u32 4294901760, %v17135_v51  ;;  %s14302_s14 = smul.u32 6400, %s16779_s15  ;;  %s12095_s15 = scalar_lea.sflag [#allocation4], %s17076_s1 }
 0x109   : > { %v571_v20 = vand.u32 4294901760, %v570_v14  ;;  %v578_v21 = vand.u32 4294901760, %v577_v15  ;;  %v545_v22 = vsub.f32 %v473_v11, %v544_v16  ;;  %14094 = vmatprep.subr.bf16.mxu1 %v18059_v0  ;;  %v14107_v38 = vpack.c.bf16 %v577_v15, %v570_v14  ;;  %s17825_s19 = scalar_lea.vmem [#allocation17], %s14301_s29  ;;  %p18104_p1 = scmp.ne.s32.totalorder %s18073_s21, 0 }
 0x10a   : > { %v558_v23 = vsub.f32 %v556_v12, %v557_v18  ;;  %v565_v24 = vsub.f32 %v563_v13, %v564_v19  ;;  %v14116_v39 = vpack.c.bf16 %v564_v19, %v557_v18  ;;  %v1550_v54 = vand.u32 4294901760, %v17137_v52  ;;  %v17199_v18 = vld [vmem:[#allocation8 + $0x30] sm:$0xff]  ;;  %v17201_v19 = vld [vmem:[#allocation8 + $0x38] sm:$0xff]  ;;  %s12109_s23 = sshll.u32 %s17825_s19, 4  ;;  %s16707_s24 = smov [#allocation17]   ;;  %s17999_s23 = int_to_ptr.vmem [resolvable:$true] %s12109_s23 }
 0x10b   : > { %v572_v25 = vsub.f32 %v570_v14, %v571_v20  ;;  %v579_v26 = vsub.f32 %v577_v15, %v578_v21  ;;  %v546_v28 = vand.u32 4294901760, %v545_v22  ;;  %v14119_v40 = vpack.c.bf16 %v578_v21, %v571_v20  ;;  %s16604_s28 = scalar_lea.vmem %s17999_s23, 6400  ;;  %s16608_s13 = sshll.u32 %s16707_s24, 4  ;;  %s16609_s13 = int_to_ptr.vmem [resolvable:$false] %s16608_s13 }
 0x10c   : > { %v559_v29 = vand.u32 4294901760, %v558_v23  ;;  %v566_v30 = vand.u32 4294901760, %v565_v24  ;;  %14096 = vmatpush3.bf16.msra.mxu1 %v14095_v27  ;;  %v17144_v55 = vsub.f32 %v17135_v51, %v1547_v53  ;;  %v17149_v56 = vsub.f32 %v17137_v52, %v1550_v54  ;;  %p16605_p12 = scmp.ne.s32.totalorder %s17999_s23, %s16604_s28  ;;  %p16611_p2 = scmp.lt.s32.totalorder %s17999_s23, %s16609_s13 }
 0x10d   : > { %v573_v31 = vand.u32 4294901760, %v572_v25  ;;  %v580_v32 = vand.u32 4294901760, %v579_v26  ;;  %v547_v33 = vsub.f32 %v545_v22, %v546_v28  ;;  %14127 = vmatprep.subr.bf16.mxu1 %v18059_v0  ;;  %v1553_v61 = vand.u32 4294901760, %v17151_v57  ;;  %s17997_s26 = scalar_lea.hbm %s18103_s25, %s14302_s14 }
 0x10e   : > { %v14098_v34 = vpack.c.bf16 %v566_v30, %v559_v29  ;;  %v1632_v59 = vand.u32 4294901760, %v17144_v55  ;;  %v1639_v60 = vand.u32 4294901760, %v17149_v56  ;;  %v1556_v62 = vand.u32 4294901760, %v17153_v58  ;;  %v971_v29 = vld [vmem:[#allocation11] sm:$0xff]  ;;  %v972_v30 = vld [vmem:[#allocation11 + $0x8] sm:$0xff]  ;;  %p16606_p13 = pnand %p16605_p12, %p18104_p1 }
 0x10f   : > { %v548_v35 = vand.u32 4294901760, %v547_v33  ;;  %v14101_v36 = vpack.c.bf16 %v580_v32, %v573_v31  ;;  %v17168_v3 = vsub.f32 %v17151_v57, %v1553_v61  ;;  %v1559_v11 = vand.u32 4294901760, %v17175_v5 }
 0x110   : > { %14099 = vmatpush3.bf16.msra.mxu0 %v14098_v34  ;;  %v1633_v63 = vsub.f32 %v17144_v55, %v1632_v59  ;;  %v1640_v2 = vsub.f32 %v17149_v56, %v1639_v60  ;;  %v17173_v4 = vsub.f32 %v17153_v58, %v1556_v62  ;;  %v1562_v12 = vand.u32 4294901760, %v17177_v6  ;;  %p16607_p0 = pneg %p16606_p13 }
 0x111   : > { %14100 = vmatprep.subr.bf16.mxu0 %v18059_v0  ;;  %13806 = vmatmul.mubr.f32.vlgmr.msra.gmra.mrb[0].mxu1 %v548_v35  ;;  %v1646_v9 = vand.u32 4294901760, %v17168_v3  ;;  %v1568_v23 = vand.u32 4294901760, %v17201_v19  ;;  %v990_v33 = vand.u32 4294901760, %v971_v29  ;;  %v993_v34 = vand.u32 4294901760, %v972_v30 }
 0x112   : > { %13879 = vmatprep.mubr.msk.f32.mxu1 %vm16702_vm0, %v18057_v1  ;;  %v1634_v7 = vand.u32 4294901760, %v1633_v63  ;;  %v1641_v8 = vand.u32 4294901760, %v1640_v2  ;;  %v1653_v10 = vand.u32 4294901760, %v17173_v4  ;;  %v975_v2 = vld [vmem:[#allocation11 + $0x20] sm:$0xff]  ;;  %v17309_v52 = vpack.c.bf16 %v1562_v12, %v1559_v11 }
 0x113   : > { %v1647_v14 = vsub.f32 %v17168_v3, %v1646_v9  ;;  %v17325_v58 = vpack.c.bf16 %v1639_v60, %v1632_v59  ;;  %vm5871_vm3 = vcmask 547840   ;;  %vm5875_vm4 = vcmask 1040384  }
 0x114   : > { %14102 = vmatpush3.bf16.msra.mxu0 %v14101_v36  ;;  %v14212_v13 = vpack.c.bf16 %v1641_v8, %v1634_v7  ;;  %v1654_v15 = vsub.f32 %v17173_v4, %v1653_v10  ;;  %v976_v7 = vld [vmem:[#allocation11 + $0x28] sm:$0xff]  ;;  %v1002_v8 = vand.u32 4294901760, %v975_v2  ;;  %vm5876_vm5 = vcmask 1041408  }
 0x115   : > { %14103 = vmatprep.subr.bf16.mxu0 %v18059_v0  ;;  %v1648_v20 = vand.u32 4294901760, %v1647_v14  ;;  %v17242_v14 = vsub.f32 %v971_v29, %v990_v33  ;;  %v978_v29 = vld [vmem:[#allocation11 + $0x38] sm:$0xff]  ;;  %vm1526_vm6 = vcmask 818176   ;;  %vm10818_vm7 = vcmask 1043456  }
 0x116   : > { %v1655_v21 = vand.u32 4294901760, %v1654_v15  ;;  %v17244_v15 = vsub.f32 %v972_v30, %v993_v34  ;;  %vm10814_vm8 = vcmask 588800  }
 0x117   : > { %13817 = vmatmul.mubr.f32.vlgmr.msra.gmra.mrb[0].mxu0 %v544_v16 }
 0x118   : > { %14105 = vmatpush3.bf16.msra.mxu0 %v14104_v37  ;;  %13827 = vmatprep.mubr.msk.f32.mxu0 %vm16702_vm0, %v18057_v1  ;;  %v14215_v26 = vpack.c.bf16 %v1655_v21, %v1648_v20  ;;  %v14152_v51 = vpack.c.bf16 %v17244_v15, %v17242_v14 }
 0x119   : > { %14106 = vmatprep.subr.bf16.mxu0 %v18059_v0 }
 0x11c   : > { %14108 = vmatpush3.bf16.msra.mxu0 %v14107_v38 }
 0x11d   : > { %14109 = vmatprep.subr.bf16.mxu0 %v18059_v0 }
 0x11f   : > { %13828 = vmatmul.mubr.f32.vlgmr.msra.gmra.mrb[0].mxu0 %v545_v22  ;;  %v1565_v22 = vand.u32 4294901760, %v17199_v18 }
 0x120   : > { %14111 = vmatpush3.bf16.msra.mxu0 %v14092_v17  ;;  %13838 = vmatprep.mubr.msk.f32.mxu0 %vm16702_vm0, %v18057_v1 }
 0x121   : > { %14112 = vmatprep.subr.bf16.mxu0 %v18059_v0 }
 0x124   : > { %14114 = vmatpush3.bf16.msra.mxu0 %v14095_v27 }
 0x125   : > { %14115 = vmatprep.subr.bf16.mxu0 %v18059_v0 }
 0x127   : > { %13839 = vmatmul.mubr.f32.vlgmr.msra.gmra.mrb[0].mxu0 %v546_v28  ;;  %v17216_v28 = vsub.f32 %v17201_v19, %v1568_v23 }
 0x128   : > { %14117 = vmatpush3.bf16.msra.mxu0 %v14116_v39  ;;  %13849 = vmatprep.mubr.msk.f32.mxu0 %vm16702_vm0, %v18057_v1  ;;  %v17227_v39 = vpack.c.bf16 %v993_v34, %v990_v33  ;;  %v1011_v33 = vand.u32 4294901760, %v978_v29  ;;  %v1075_v34 = vand.u32 4294901760, %v17242_v14 }
 0x129   : > { %14118 = vmatprep.subr.bf16.mxu0 %v18059_v0  ;;  %v18061_v36 = vand.u32 4294901760, %v17216_v28  ;;  %v18087_v59 = vand.u32 4294901760, %v17216_v28 }
 0x12a   : > { %14129 = vmatpush3.bf16.msra.mxu1 %v17227_v39 }
 0x12b   : > { %14130 = vmatprep.subr.bf16.mxu1 %v18059_v0 }
 0x12c   : > { %14120 = vmatpush3.bf16.msra.mxu0 %v14119_v40 }
 0x12d   : > { %14121 = vmatprep.subr.bf16.mxu0 %v18059_v0 }
 0x12f   : > { %13850 = vmatmul.mubr.f32.vlgmr.msra.gmra.mrb[0].mxu0 %v544_v16 }
 0x130   : > { %14123 = vmatpush3.bf16.msra.mxu0 %v14092_v17  ;;  %13860 = vmatprep.mubr.msk.f32.mxu0 %vm16702_vm0, %v18057_v1  ;;  %v17197_v17 = vsub.f32 %v17177_v6, %v1562_v12 }
 0x131   : > { %14124 = vmatprep.subr.bf16.mxu0 %v18059_v0 }
 0x132   : > { %v18063_v25 = vand.u32 4294901760, %v17197_v17 }
 0x134   : > { %14126 = vmatpush3.bf16.msra.mxu0 %v14095_v27  ;;  %v17211_v27 = vsub.f32 %v17199_v18, %v1565_v22  ;;  %v1668_v32 = vsub.f32 %v17197_v17, %v18063_v25 }
 0x135   : > { %14211 = vmatprep.subr.bf16.mxu0 %v18059_v0 }
 0x136   : > { %v18062_v35 = vand.u32 4294901760, %v17211_v27  ;;  %v1669_v38 = vand.u32 4294901760, %v1668_v32 }
 0x137   : > { %13861 = vmatmul.mubr.f32.vlgmr.msra.gmra.mrb[0].mxu0 %v544_v16  ;;  %v17192_v16 = vsub.f32 %v17175_v5, %v1559_v11  ;;  %v18085_v5 = vand.u32 4294901760, %v17197_v17  ;;  %v18086_v11 = vand.u32 4294901760, %v17211_v27 }
 0x138   : > { %14012 = vmatprep.mubr.msk.f32.mxu0 %vm16702_vm0, %v18057_v1  ;;  %14213 = vmatpush3.bf16.msra.mxu0 %v14212_v13  ;;  %v1675_v40 = vsub.f32 %v17211_v27, %v18062_v35  ;;  %v1005_v13 = vand.u32 4294901760, %v976_v7  ;;  %v14233_v1 = vpack.c.bf16 %v17216_v28, %v17211_v27 }
 0x139   : > { %14214 = vmatprep.subr.bf16.mxu0 %v18059_v0  ;;  %v1660_v24 = vand.u32 4294901760, %v17192_v16  ;;  %v17345_v60 = vpack.c.bf16 %v18087_v59, %v18086_v11 }
 0x13a   : > { %v17255_v32 = vsub.f32 %v976_v7, %v1005_v13 }
 0x13b   : > { %v1661_v31 = vsub.f32 %v17192_v16, %v1660_v24  ;;  %v17339_v6 = vpack.c.bf16 %v18085_v5, %v1660_v24  ;;  %v14478_v5 = vld [vmem:[#allocation14 + $0x324] ss:$200 sps:$4 sm:$0xff]  }
 0x13c   : > { %14216 = vmatpush3.bf16.msra.mxu0 %v14215_v26  ;;  %v17251_v26 = vpack.c.bf16 %v1005_v13, %v1002_v8 }
 0x13d   : > { %14217 = vmatprep.subr.bf16.mxu0 %v18059_v0  ;;  %v1662_v37 = vand.u32 4294901760, %v1661_v31  ;;  %v17253_v31 = vsub.f32 %v975_v2, %v1002_v8 }
 0x13f   : > { %v14158_v57 = vpack.c.bf16 %v17255_v32, %v17253_v31 }
 0x1e4   : > { %v550_v41 = vpop.f32.mrb[0].mxu1 }
 0x1e5   : > { %v13807_v42 = vpop.f32.mrb[1].mxu1  ;;  %v551_v44 = vadd.f32 %v12278_v43, %v550_v41  ;;  %v1682_v41 = vsub.f32 %v17216_v28, %v18061_v36  ;;  %v973_v43 = vld [vmem:[#allocation11 + $0x10] sm:$0xff] }
 0x1e6   : > { %v14218_v42 = vpack.c.bf16 %v1669_v38, %v1662_v37  ;;  %v977_v38 = vld [vmem:[#allocation11 + $0x30] sm:$0xff] }
 0x1e7   : > { %v1008_v30 = vand.u32 4294901760, %v977_v38 }
 0x1e8   : > { %14219 = vmatpush3.bf16.msra.mxu0 %v14218_v42 }
 0x1e9   : > { %14220 = vmatprep.subr.bf16.mxu0 %v18059_v0  ;;  %v17265_v42 = vpack.c.bf16 %v1011_v33, %v1008_v30 }
 0x20a   : > { %v956_v45 = vpop.f32.mrb[0].mxu0 }
 0x20b   : > { %v14272_v46 = vadd.f32 %v956_v45, %v551_v44  ;;  %v13862_v47 = vpop.f32.mrb[1].mxu0  ;;  %v974_v44 = vld [vmem:[#allocation11 + $0x18] sm:$0xff]  ;;  %v996_v45 = vand.u32 4294901760, %v973_v43 }
 0x20c   : > { %v1676_v47 = vand.u32 4294901760, %v1675_v40  ;;  %v1082_v40 = vand.u32 4294901760, %v17244_v15 }
 0x20d   : > { %v17130_v48 = vmax.f32 %v14272_v46, 0.0  ;;  %v999_v46 = vand.u32 4294901760, %v974_v44  ;;  %v17246_v20 = vsub.f32 %v973_v43, %v996_v45  ;;  %v17267_v43 = vsub.f32 %v977_v38, %v1008_v30 }
 0x20e   : > { %v17347_v12 = vpack.c.bf16 %v1082_v40, %v1075_v34 }
 0x20f   : > { %v961_v49 = vmul.f32 %v17130_v48, %v17130_v48  ;;  %v17248_v21 = vsub.f32 %v974_v44, %v999_v46  ;;  %v17269_v44 = vsub.f32 %v978_v29, %v1011_v33  ;;  %v1103_v33 = vand.u32 4294901760, %v17253_v31 }
 0x210   : > { %v1117_v36 = vand.u32 4294901760, %v17267_v43 }
 0x211   : > { %v963_v50 = vsel %vm962_vm2, %v961_v49, 0.0  ;;  %v1683_v49 = vand.u32 4294901760, %v1682_v41 }
 0x212   : > { %964 = vadd.xlane.f32.xlu0 %v963_v50  ;;  %v17238_v50 = vpack.c.bf16 %v999_v46, %v996_v45  ;;  %v1076_v45 = vsub.f32 %v17242_v14, %v1075_v34  ;;  %v1083_v46 = vsub.f32 %v17244_v15, %v1082_v40  ;;  %v18088_v15 = vpack.c.bf16 %v17149_v56, %v17144_v55 }
 0x213   : > { %v14221_v63 = vpack.c.bf16 %v1683_v49, %v1676_v47  ;;  %v1089_v49 = vand.u32 4294901760, %v17246_v20 }
 0x214   : > { %14132 = vmatpush3.bf16.msra.mxu1 %v17238_v50  ;;  %v1077_v47 = vand.u32 4294901760, %v1076_v45  ;;  %v1084_v2 = vand.u32 4294901760, %v1083_v46  ;;  %v1110_v45 = vand.u32 4294901760, %v17255_v32  ;;  %v1104_v46 = vsub.f32 %v17253_v31, %v1103_v33  ;;  %v14443_v31 = vld [vmem:[#allocation14 + $0x198] ss:$200 sps:$4 sm:$0xff]  }
 0x215   : > { %14222 = vmatpush3.bf16.msra.mxu0 %v14221_v63  ;;  %14133 = vmatprep.subr.bf16.mxu1 %v18059_v0  ;;  %v1096_v63 = vand.u32 4294901760, %v17248_v21  ;;  %v1090_v8 = vsub.f32 %v17246_v20, %v1089_v49 }
 0x216   : > { %14223 = vmatprep.subr.bf16.mxu0 %v18059_v0  ;;  %v14140_v38 = vpack.c.bf16 %v1084_v2, %v1077_v47  ;;  %v1105_v7 = vand.u32 4294901760, %v1104_v46  ;;  %v1124_v47 = vand.u32 4294901760, %v17269_v44  ;;  %v17351_v19 = vpack.c.bf16 %v1110_v45, %v1103_v33  ;;  %v14457_v33 = vld [vmem:[#allocation14 + $0x7dc] ss:$200 sps:$4 sm:$0xff]  }
 0x217   : > { %v1097_v13 = vsub.f32 %v17248_v21, %v1096_v63  ;;  %v1091_v29 = vand.u32 4294901760, %v1090_v8  ;;  %v17293_v8 = vpack.c.bf16 %v1550_v54, %v1547_v53  ;;  %v14155_v53 = vpack.c.bf16 %v17248_v21, %v17246_v20  ;;  %v14463_v46 = vld [vmem:[#allocation14 + $0xafc] ss:$200 sps:$4 sm:$0xff]  }
 0x218   : > { %14135 = vmatpush3.bf16.msra.mxu1 %v17251_v26  ;;  %v17317_v54 = vpack.c.bf16 %v1568_v23, %v1565_v22  ;;  %v17349_v18 = vpack.c.bf16 %v1096_v63, %v1089_v49  ;;  %v18089_v21 = vmov 0.0   ;;  %v18091_v49 = vpack.c.bf16 %v17173_v4, %v17168_v3  ;;  %v14442_v3 = vld [vmem:[#allocation14 + $0xc] ss:$200 sps:$4 sm:$0xff]  }
 0x219   : > { %14136 = vmatprep.subr.bf16.mxu1 %v18059_v0  ;;  %v1098_v30 = vand.u32 4294901760, %v1097_v13  ;;  %v1118_v13 = vsub.f32 %v17267_v43, %v1117_v36  ;;  %v18092_v63 = vpack.c.bf16 %v17197_v17, %v17192_v16  ;;  %v14440_v16 = vld [vmem:[#allocation14 + $0x8] ss:$200 sps:$4 sm:$0xff]  }
 0x21b   : > { %v14143_v41 = vpack.c.bf16 %v1098_v30, %v1091_v29  ;;  %v1125_v29 = vsub.f32 %v17269_v44, %v1124_v47  ;;  %v1119_v30 = vand.u32 4294901760, %v1118_v13  ;;  %v14473_v13 = vld [vmem:[#allocation14 + $0xe18] ss:$200 sps:$4 sm:$0xff]  }
 0x21c   : > { %14138 = vmatpush3.bf16.msra.mxu1 %v17265_v42 }
 0x21d   : > { %14139 = vmatprep.subr.bf16.mxu1 %v18059_v0  ;;  %v1111_v0 = vsub.f32 %v17255_v32, %v1110_v45  ;;  %v1126_v35 = vand.u32 4294901760, %v1125_v29  ;;  %v14448_v32 = vld [vmem:[#allocation14 + $0x32c] ss:$200 sps:$4 sm:$0xff]  }
 0x21e   : > { %v14460_v45 = vld [vmem:[#allocation14 + $0x96c] ss:$200 sps:$4 sm:$0xff]  }
 0x21f   : > { %v1112_v37 = vand.u32 4294901760, %v1111_v0  ;;  %v14149_v25 = vpack.c.bf16 %v1126_v35, %v1119_v30  ;;  %v17301_v0 = vpack.c.bf16 %v1556_v62, %v1553_v61  ;;  %v14161_v61 = vpack.c.bf16 %v17269_v44, %v17267_v43  ;;  %v14451_v43 = vld [vmem:[#allocation14 + $0x4bc] ss:$200 sps:$4 sm:$0xff]   ;;  %v14449_v44 = vld [vmem:[#allocation14 + $0x4b8] ss:$200 sps:$4 sm:$0xff]  }
 0x220   : > { %v17333_v62 = vpack.c.bf16 %v1653_v10, %v1646_v9  ;;  %v17353_v9 = vpack.c.bf16 %v1124_v47, %v1117_v36  ;;  %v14469_v47 = vld [vmem:[#allocation14 + $0xc8c] ss:$200 sps:$4 sm:$0xff]  }
 0x221   : > { %v14146_v2 = vpack.c.bf16 %v1112_v37, %v1105_v7  ;;  %v14454_v7 = vld [vmem:[#allocation14 + $0x64c] ss:$200 sps:$4 sm:$0xff]  }
 0x222   : > { %v14481_v29 = vld [vmem:[#allocation14 + $0xfac] ss:$200 sps:$4 sm:$0xff]  }
 0x223   : > { %v2722_v30 = vld [vmem:[#allocation14 + $0x12c8] sm:$0x33] }
 0x224   : > { %v12883_v11 = vcombine.low %v2722_v30, %v2722_v30 }
 0x29f   : > { %v17355_v10 = vpop.xlane.xlu0 %964 }
 0x2a0   : > { %v966_v22 = vmax.f32 %v17355_v10, 1e-24 }
 0x2a2   : > { %16340 = vrsqrt.f32 %v966_v22  ;;  %v14490_v22 = vld [vmem:[#allocation14 + $0x644] ss:$200 sps:$4 sm:$0xff]  }
 0x2ac   : > { %v17358_v23 = vpop.eup %16340 }
 0x2ad   : > { %v968_v24 = vmul.f32 %v17358_v23, %v17130_v48  ;;  %v18090_v48 = vmov 0.0|0.0  }
 0x2af   : > { %v987_v27 = vsel %vm962_vm2, %v968_v24, 0  ;;  %v2107_v28 = vpack.c.bf16 %v968_v24, %v968_v24 }
 0x2b0   : > { %v17363_v35 = vand.u32 4294901760, %v987_v27 }
 0x2b1   : > { %v17365_v14 = vunpack.c.l.bf16 %v2107_v28 }
 0x2b2   : > { %14013 = vmatmul.mubr.f32.vlgmr.msra.gmra.mrb[2].mxu0 %v17363_v35  ;;  %v1063_v36 = vsub.f32 %v987_v27, %v17363_v35  ;;  %v14495_v27 = vld [vmem:[#allocation14 + $0x7d4] ss:$200 sps:$4 sm:$0xff]  }
 0x2b3   : > { %14225 = vmatpush3.bf16.msra.mxu0 %v18088_v15  ;;  %v17373_v20 = vsub.f32 %v968_v24, %v17365_v14  ;;  %14031 = vmatprep.mubr.msk.f32.mxu0 %vm16702_vm0, %v18089_v21  ;;  %v14488_v24 = vld [vmem:[#allocation14 + $0x640] ss:$200 sps:$4 sm:$0xff]  }
 0x2b4   : > { %14226 = vmatprep.subr.bf16.mxu0 %v18090_v48  ;;  %v17378_v37 = vand.u32 4294901760, %v1063_v36  ;;  %v14496_v15 = vld [vmem:[#allocation14 + $0x18] ss:$200 sps:$4 sm:$0xff]  }
 0x2b5   : > { %v2110_v34 = vpack.c.bf16 %v17373_v20, %v17373_v20 }
 0x2b6   : > { %v1065_v40 = vsub.f32 %v1063_v36, %v17378_v37 }
 0x2b7   : > { %14228 = vmatpush3.bf16.msra.mxu0 %v18091_v49  ;;  %v17386_v55 = vunpack.c.l.bf16 %v2110_v34  ;;  %v14502_v34 = vld [vmem:[#allocation14 + $0x1a8] ss:$200 sps:$4 sm:$0xff]   ;;  %v14510_v49 = vld [vmem:[#allocation14 + $0x33c] ss:$200 sps:$4 sm:$0xff]  }
 0x2b8   : > { %14229 = vmatprep.subr.bf16.mxu0 %v18090_v48  ;;  %v17389_v56 = vand.u32 4294901760, %v1065_v40  ;;  %v14507_v40 = vld [vmem:[#allocation14 + $0xaf4] ss:$200 sps:$4 sm:$0xff]  }
 0x2b9   : > { %2114 = vrot.lane.b32.xlu0 %v17386_v55, %s16704_s16  ;;  %s16610_s16 = scalar_lea.vmem %s16609_s13, 12800 }
 0x2ba   : > { %13880 = vmatmul.mubr.f32.vlgmr.msra.gmra.mrb[2].mxu1 %v17389_v56  ;;  %p16612_p3 = scmp.lt.s32.totalorder %s16610_s16, %s16604_s28 }
 0x2bb   : > { %14141 = vmatpush3.bf16.msra.mxu1 %v14140_v38  ;;  %14231 = vmatpush3.bf16.msra.mxu0 %v18092_v63  ;;  %v14452_v38 = vld [vmem:[#allocation14 + $0x648] ss:$200 sps:$4 sm:$0xff]   ;;  %v14516_v63 = vld [vmem:[#allocation14 + $0x4cc] ss:$200 sps:$4 sm:$0xff]  }
 0x2bc   : > { %14142 = vmatprep.subr.bf16.mxu1 %v18090_v48  ;;  %14232 = vmatprep.subr.bf16.mxu0 %v18090_v48  ;;  %p16613_p4 = por %p16612_p3, %p16611_p2 }
 0x2bd   : > { %13898 = vmatprep.mubr.msk.f32.mxu1 %vm16702_vm0, %v18089_v21 }
 0x2be   : > { %p16614_p10 = pnand %p16613_p4, %p16607_p0 }
 0x2bf   : > { %14144 = vmatpush3.bf16.msra.mxu1 %v14143_v41  ;;  %14234 = vmatpush3.bf16.msra.mxu0 %v14233_v1  ;;  %v2112_v1 = vsub.f32 %v17373_v20, %v17386_v55  ;;  %v14446_v41 = vld [vmem:[#allocation14 + $0x328] ss:$200 sps:$4 sm:$0xff]   ;;  %v14508_v55 = vld [vmem:[#allocation14 + $0x338] ss:$200 sps:$4 sm:$0xff]  }
 0x2c0   : > { %14145 = vmatprep.subr.bf16.mxu1 %v18090_v48  ;;  %14235 = vmatprep.subr.bf16.mxu0 %v18090_v48 }
 0x2c1   : > { %v2118_v4 = vsel %vm962_vm2, %v2112_v1, 1.0  ;;  %v14511_v1 = vld [vmem:[#allocation14 + $0xc80] ss:$200 sps:$4 sm:$0xff]  }
 0x2c2   : > { %14032 = vmatmul.mubr.f32.vlgmr.msra.gmra.mrb[2].mxu0 %v1063_v36  ;;  %v17468_v17 = vpack.c.bf16 %v2118_v4, %v2118_v4  ;;  %v14519_v4 = vld [vmem:[#allocation14 + $0xe14] ss:$200 sps:$4 sm:$0xff]  }
 0x2c3   : > { %14147 = vmatpush3.bf16.msra.mxu1 %v14146_v2  ;;  %14237 = vmatpush3.bf16.msra.mxu0 %v17293_v8  ;;  %v14475_v2 = vld [vmem:[#allocation14 + $0xe1c] ss:$200 sps:$4 sm:$0xff]  }
 0x2c4   : > { %14148 = vmatprep.subr.bf16.mxu1 %v18090_v48  ;;  %14238 = vmatprep.subr.bf16.mxu0 %v18090_v48 }
 0x2c5   : > { %14050 = vmatprep.mubr.msk.f32.mxu0 %vm16702_vm0, %v18089_v21 }
 0x2c7   : > { %14150 = vmatpush3.bf16.msra.mxu1 %v14149_v25  ;;  %14240 = vmatpush3.bf16.msra.mxu0 %v17301_v0  ;;  %v14445_v25 = vld [vmem:[#allocation14 + $0x19c] ss:$200 sps:$4 sm:$0xff]  }
 0x2c8   : > { %14151 = vmatprep.subr.bf16.mxu1 %v18090_v48  ;;  %14241 = vmatprep.subr.bf16.mxu0 %v18090_v48 }
 0x2ca   : > { %13899 = vmatmul.mubr.f32.vlgmr.msra.gmra.mrb[2].mxu1 %v17363_v35 }
 0x2cb   : > { %14153 = vmatpush3.bf16.msra.mxu1 %v14152_v51  ;;  %14243 = vmatpush3.bf16.msra.mxu0 %v17309_v52  ;;  %v16705_v51 = vmov 65535  }
 0x2cc   : > { %14154 = vmatprep.subr.bf16.mxu1 %v18090_v48  ;;  %14244 = vmatprep.subr.bf16.mxu0 %v18090_v48 }
 0x2cd   : > { %13917 = vmatprep.mubr.msk.f32.mxu1 %vm16702_vm0, %v18089_v21 }
 0x2cf   : > { %14156 = vmatpush3.bf16.msra.mxu1 %v14155_v53  ;;  %14246 = vmatpush3.bf16.msra.mxu0 %v17317_v54  ;;  %v5877_v53 = vsel %vm5875_vm4, 4294967295, %v16705_v51  ;;  %v14551_v51 = vld [vmem:[#allocation14 + $0xe2c] ss:$200 sps:$4 sm:$0xff]  }
 0x2d0   : > { %14157 = vmatprep.subr.bf16.mxu1 %v18090_v48  ;;  %14247 = vmatprep.subr.bf16.mxu0 %v18090_v48 }
 0x2d2   : > { %14051 = vmatmul.mubr.f32.vlgmr.msra.gmra.mrb[2].mxu0 %v17378_v37 }
 0x2d3   : > { %14159 = vmatpush3.bf16.msra.mxu1 %v14158_v57  ;;  %14249 = vmatpush3.bf16.msra.mxu0 %v17325_v58  ;;  %v14472_v57 = vld [vmem:[#allocation14 + $0x194] ss:$200 sps:$4 sm:$0xff]   ;;  %v14479_v58 = vld [vmem:[#allocation14 + $0xfa8] ss:$200 sps:$4 sm:$0xff]  }
 0x2d4   : > { %14160 = vmatprep.subr.bf16.mxu1 %v18090_v48  ;;  %14250 = vmatprep.subr.bf16.mxu0 %v18090_v48 }
 0x2d5   : > { %14069 = vmatprep.mubr.msk.f32.mxu0 %vm16702_vm0, %v18089_v21 }
 0x2d7   : > { %14162 = vmatpush3.bf16.msra.mxu1 %v14161_v61  ;;  %14252 = vmatpush3.bf16.msra.mxu0 %v17333_v62  ;;  %v12884_v61 = vcombine.high %v2722_v30, %v2722_v30  ;;  %v17499_v62 = vsel %vm5876_vm5, %v5877_v53, 0  ;;  %v14543_v30 = vld [vmem:[#allocation14 + $0xc98] ss:$200 sps:$4 sm:$0xff]  }
 0x2d8   : > { %14163 = vmatprep.subr.bf16.mxu1 %v18090_v48  ;;  %14253 = vmatprep.subr.bf16.mxu0 %v18090_v48  ;;  %v14546_v53 = vld [vmem:[#allocation14 + $0x1a0] ss:$200 sps:$4 sm:$0xff]  }
 0x2d9   : > { %v5889_v59 = vand.u32 %v12884_v61, %v17499_v62  ;;  %v2724_v61 = vld [vmem:[#allocation14 + $0x12d8] sm:$0x33] }
 0x2da   : > { %13918 = vmatmul.mubr.f32.vlgmr.msra.gmra.mrb[2].mxu1 %v1063_v36 }
 0x2db   : > { %14165 = vmatpush3.bf16.msra.mxu1 %v17227_v39  ;;  %14255 = vmatpush3.bf16.msra.mxu0 %v17339_v6  ;;  %v14485_v6 = vld [vmem:[#allocation14 + $0x1138] ss:$200 sps:$4 sm:$0xff]  }
 0x2dc   : > { %14166 = vmatprep.subr.bf16.mxu1 %v18090_v48  ;;  %14256 = vmatprep.subr.bf16.mxu0 %v18090_v48 }
 0x2dd   : > { %13936 = vmatprep.mubr.msk.f32.mxu1 %vm16702_vm0, %v18089_v21 }
 0x2df   : > { %14168 = vmatpush3.bf16.msra.mxu1 %v17238_v50  ;;  %14258 = vmatpush3.bf16.msra.mxu0 %v17345_v60  ;;  %v14476_v60 = vld [vmem:[#allocation14 + $0x320] ss:$200 sps:$4 sm:$0xff]  }
 0x2e0   : > { %14169 = vmatprep.subr.bf16.mxu1 %v18090_v48  ;;  %14259 = vmatprep.subr.bf16.mxu0 %v18090_v48 }
 0x2e2   : > { %14070 = vmatmul.mubr.f32.vlgmr.msra.gmra.mrb[2].mxu0 %v17363_v35 }
 0x2e3   : > { %14171 = vmatpush3.bf16.msra.mxu1 %v17251_v26  ;;  %14261 = vmatpush3.bf16.msra.mxu0 %v17293_v8 }
 0x2e4   : > { %14172 = vmatprep.subr.bf16.mxu1 %v18090_v48  ;;  %14262 = vmatprep.subr.bf16.mxu0 %v18090_v48 }
 0x2e5   : > { %14088 = vmatprep.mubr.msk.f32.mxu0 %vm16702_vm0, %v18089_v21 }
 0x2e7   : > { %14174 = vmatpush3.bf16.msra.mxu1 %v17265_v42  ;;  %14264 = vmatpush3.bf16.msra.mxu0 %v17301_v0 }
 0x2e8   : > { %14175 = vmatprep.subr.bf16.mxu1 %v18090_v48  ;;  %14265 = vmatprep.subr.bf16.mxu0 %v18090_v48 }
 0x2ea   : > { %13937 = vmatmul.mubr.f32.vlgmr.msra.gmra.mrb[2].mxu1 %v17378_v37  ;;  %v14499_v37 = vld [vmem:[#allocation14 + $0x960] ss:$200 sps:$4 sm:$0xff]  }
 0x2eb   : > { %14177 = vmatpush3.bf16.msra.mxu1 %v17347_v12  ;;  %14267 = vmatpush3.bf16.msra.mxu0 %v17309_v52  ;;  %v14484_v12 = vld [vmem:[#allocation14 + $0x4b4] ss:$200 sps:$4 sm:$0xff]  }
 0x2ec   : > { %14178 = vmatprep.subr.bf16.mxu1 %v18090_v48  ;;  %14268 = vmatprep.subr.bf16.mxu0 %v18090_v48 }
 0x2ed   : > { %13955 = vmatprep.mubr.msk.f32.mxu1 %vm16702_vm0, %v18089_v21 }
 0x2ef   : > { %14180 = vmatpush3.bf16.msra.mxu1 %v17349_v18  ;;  %14270 = vmatpush3.bf16.msra.mxu0 %v17317_v54  ;;  %v5886_v18 = vand.u32 %v12883_v11, %v17499_v62  ;;  %v14563_v11 = vld [vmem:[#allocation14 + $0x114c] ss:$200 sps:$4 sm:$0xff]  }
 0x2f0   : > { %14181 = vmatprep.subr.bf16.mxu1 %v18090_v48  ;;  %6070 = vmatprep.subr.bf16.mxu0 %v14442_v3  ;;  %v14514_v3 = vld [vmem:[#allocation14 + $0x4c8] ss:$200 sps:$4 sm:$0xff]  }
 0x2f2   : > { %14089 = vmatmul.mubr.f32.vlgmr.msra.gmra.mrb[2].mxu0 %v17363_v35 }
 0x2f3   : > { %14183 = vmatpush3.bf16.msra.mxu1 %v17351_v19  ;;  %12932 = vmatprep.mubr.msk.bf16.mxu0 %vm5871_vm3, %v17468_v17  ;;  %v14498_v19 = vld [vmem:[#allocation14 + $0x1c] ss:$200 sps:$4 sm:$0xff]  }
 0x2f4   : > { %14184 = vmatprep.subr.bf16.mxu1 %v18090_v48  ;;  %6071 = vmatpush1.bf16.msra.mxu0 %v14440_v16  ;;  %v14522_v16 = vld [vmem:[#allocation14 + $0x65c] ss:$200 sps:$4 sm:$0xff]  }
 0x2f5   : > { %6072 = vmatprep.subr.bf16.mxu0 %v14445_v25  ;;  %v14517_v25 = vld [vmem:[#allocation14 + $0xe10] ss:$200 sps:$4 sm:$0xff]  }
 0x2f7   : > { %14186 = vmatpush3.bf16.msra.mxu1 %v17353_v9  ;;  %v14482_v9 = vld [vmem:[#allocation14 + $0x4b0] ss:$200 sps:$4 sm:$0xff]  }
 0x2f8   : > { %14187 = vmatprep.subr.bf16.mxu1 %v18090_v48  ;;  %6073 = vmatpush1.bf16.msra.mxu0 %v14443_v31  ;;  %v14520_v31 = vld [vmem:[#allocation14 + $0x658] ss:$200 sps:$4 sm:$0xff]  }
 0x2f9   : > { %6074 = vmatprep.subr.bf16.mxu0 %v14448_v32  ;;  %v14525_v32 = vld [vmem:[#allocation14 + $0xfa4] ss:$200 sps:$4 sm:$0xff]  }
 0x2fa   : > { %13956 = vmatmul.mubr.f32.vlgmr.msra.gmra.mrb[2].mxu1 %v17363_v35 }
 0x2fb   : > { %14189 = vmatpush3.bf16.msra.mxu1 %v17227_v39  ;;  %13974 = vmatprep.mubr.msk.f32.mxu1 %vm16702_vm0, %v18089_v21  ;;  %v14455_v39 = vld [vmem:[#allocation14 + $0x7d8] ss:$200 sps:$4 sm:$0xff]  }
 0x2fc   : > { %14190 = vmatprep.subr.bf16.mxu1 %v18090_v48  ;;  %6075 = vmatpush1.bf16.msra.mxu0 %v14446_v41  ;;  %v14528_v41 = vld [vmem:[#allocation14 + $0x7ec] ss:$200 sps:$4 sm:$0xff]  }
 0x2fd   : > { %6076 = vmatprep.subr.bf16.mxu0 %v14451_v43  ;;  %v2721_v43 = vld [vmem:[#allocation14 + $0x12c0] sm:$0x33] }
 0x2ff   : > { %14192 = vmatpush3.bf16.msra.mxu1 %v17238_v50  ;;  %v14458_v50 = vld [vmem:[#allocation14 + $0x968] ss:$200 sps:$4 sm:$0xff]  }
 0x300   : > { %14193 = vmatprep.subr.bf16.mxu1 %v18090_v48  ;;  %6077 = vmatpush1.bf16.msra.mxu0 %v14449_v44  ;;  %v14523_v44 = vld [vmem:[#allocation14 + $0xfa0] ss:$200 sps:$4 sm:$0xff]  }
 0x301   : > { %6078 = vmatprep.subr.bf16.mxu0 %v14454_v7  ;;  %v14526_v7 = vld [vmem:[#allocation14 + $0x7e8] ss:$200 sps:$4 sm:$0xff]  }
 0x303   : > { %14195 = vmatpush3.bf16.msra.mxu1 %v17251_v26  ;;  %v14461_v26 = vld [vmem:[#allocation14 + $0xaf8] ss:$200 sps:$4 sm:$0xff]  }
 0x304   : > { %14196 = vmatprep.subr.bf16.mxu1 %v18090_v48  ;;  %6079 = vmatpush1.bf16.msra.mxu0 %v14452_v38  ;;  %v14531_v38 = vld [vmem:[#allocation14 + $0x1134] ss:$200 sps:$4 sm:$0xff]  }
 0x305   : > { %6080 = vmatprep.subr.bf16.mxu0 %v14457_v33  ;;  %v12882_v33 = vcombine.high %v2721_v43, %v2721_v43 }
 0x307   : > { %14198 = vmatpush3.bf16.msra.mxu1 %v17265_v42  ;;  %v14467_v42 = vld [vmem:[#allocation14 + $0xc88] ss:$200 sps:$4 sm:$0xff]  }
 0x308   : > { %14199 = vmatprep.subr.bf16.mxu1 %v18090_v48  ;;  %6081 = vmatpush1.bf16.msra.mxu0 %v14455_v39  ;;  %v14534_v39 = vld [vmem:[#allocation14 + $0x97c] ss:$200 sps:$4 sm:$0xff]  }
 0x309   : > { %6082 = vmatprep.subr.bf16.mxu0 %v14460_v45  ;;  %v14529_v45 = vld [vmem:[#allocation14 + $0x1130] ss:$200 sps:$4 sm:$0xff]  }
 0x30a   : > { %13975 = vmatmul.mubr.f32.vlgmr.msra.gmra.mrb[2].mxu1 %v17363_v35  ;;  %v14493_v35 = vld [vmem:[#allocation14 + $0x7d0] ss:$200 sps:$4 sm:$0xff]  }
 0x30b   : > { %14201 = vmatpush3.bf16.msra.mxu1 %v17293_v8  ;;  %13993 = vmatprep.mubr.msk.f32.mxu1 %vm16702_vm0, %v18089_v21  ;;  %v14466_v8 = vld [vmem:[#allocation14 + $0x4] ss:$200 sps:$4 sm:$0xff]  }
 0x30c   : > { %14202 = vmatprep.subr.bf16.mxu1 %v18090_v48  ;;  %6083 = vmatpush1.bf16.msra.mxu0 %v14458_v50  ;;  %v14501_v21 = vld [vmem:[#allocation14 + $0x964] ss:$200 sps:$4 sm:$0xff]   ;;  %v12881_v50 = vcombine.low %v2721_v43, %v2721_v43  ;;  %v14599_v43 = vld [vmem:[#allocation14 + $0xfb0] ss:$200 sps:$4 sm:$0xff]  }
 0x30d   : > { %6084 = vmatprep.subr.bf16.mxu0 %v14463_v46  ;;  %v14532_v46 = vld [vmem:[#allocation14 + $0x978] ss:$200 sps:$4 sm:$0xff]  }
 0x30f   : > { %14204 = vmatpush3.bf16.msra.mxu1 %v17301_v0  ;;  %v14464_v0 = vld [vmem:[#allocation14] ss:$200 sps:$4 sm:$0xff]  }
 0x310   : > { %14205 = vmatprep.subr.bf16.mxu1 %v18090_v48  ;;  %6085 = vmatpush1.bf16.msra.mxu0 %v14461_v26  ;;  %v5883_v26 = vand.u32 %v12882_v33, %v17499_v62  ;;  %v14610_v33 = vld [vmem:[#allocation14 + $0x98c] ss:$200 sps:$4 sm:$0xff]  }
 0x311   : > { %6086 = vmatprep.subr.bf16.mxu0 %v14469_v47  ;;  %v14539_v47 = vld [vmem:[#allocation14 + $0xb0c] ss:$200 sps:$4 sm:$0xff]  }
 0x313   : > { %14207 = vmatpush3.bf16.msra.mxu1 %v17309_v52  ;;  %v14487_v52 = vld [vmem:[#allocation14 + $0x113c] ss:$200 sps:$4 sm:$0xff]  }
 0x314   : > { %14208 = vmatprep.subr.bf16.mxu1 %v18090_v48  ;;  %6087 = vmatpush1.bf16.msra.mxu0 %v14467_v42  ;;  %v14504_v48 = vld [vmem:[#allocation14 + $0x1ac] ss:$200 sps:$4 sm:$0xff]   ;;  %v5880_v42 = vand.u32 %v12881_v50, %v17499_v62  ;;  %v14608_v50 = vld [vmem:[#allocation14 + $0x988] ss:$200 sps:$4 sm:$0xff]  }
 0x315   : > { %6088 = vmatprep.subr.bf16.mxu0 %v14475_v2  ;;  %v14537_v2 = vld [vmem:[#allocation14 + $0xb08] ss:$200 sps:$4 sm:$0xff]  }
 0x317   : > { %14210 = vmatpush3.bf16.msra.mxu1 %v17317_v54  ;;  %v14470_v54 = vld [vmem:[#allocation14 + $0x190] ss:$200 sps:$4 sm:$0xff]  }
 0x318   : > { %6029 = vmatprep.subr.bf16.mxu1 %v14466_v8  ;;  %6089 = vmatpush1.bf16.msra.mxu0 %v14473_v13  ;;  %v14542_v8 = vld [vmem:[#allocation14 + $0x14] ss:$200 sps:$4 sm:$0xff]  }
 0x319   : > { %6090 = vmatprep.subr.bf16.mxu0 %v14481_v29  ;;  %v14545_v13 = vld [vmem:[#allocation14 + $0xc9c] ss:$200 sps:$4 sm:$0xff]   ;;  %v14540_v29 = vld [vmem:[#allocation14 + $0x10] ss:$200 sps:$4 sm:$0xff]  }
 0x31a   : > { %13994 = vmatmul.mubr.f32.vlgmr.msra.gmra.mrb[4].mxu1 %v17389_v56  ;;  %v14513_v56 = vld [vmem:[#allocation14 + $0xc84] ss:$200 sps:$4 sm:$0xff]  }
 0x31b   : > { %6030 = vmatpush1.bf16.msra.mxu1 %v14464_v0  ;;  %12931 = vmatprep.mubr.msk.bf16.mxu1 %vm5871_vm3, %v17468_v17  ;;  %v14548_v0 = vld [vmem:[#allocation14 + $0x1a4] ss:$200 sps:$4 sm:$0xff]  }
 0x31c   : > { %6031 = vmatprep.subr.bf16.mxu1 %v14472_v57  ;;  %6091 = vmatpush1.bf16.msra.mxu0 %v14479_v58  ;;  %v14549_v57 = vld [vmem:[#allocation14 + $0xe28] ss:$200 sps:$4 sm:$0xff]   ;;  %v14554_v58 = vld [vmem:[#allocation14 + $0x334] ss:$200 sps:$4 sm:$0xff]  }
 0x31d   : > { %6092 = vmatprep.subr.bf16.mxu0 %v14487_v52  ;;  %v14557_v52 = vld [vmem:[#allocation14 + $0xfbc] ss:$200 sps:$4 sm:$0xff]  }
 0x31f   : > { %6032 = vmatpush1.bf16.msra.mxu1 %v14470_v54  ;;  %v14552_v54 = vld [vmem:[#allocation14 + $0x330] ss:$200 sps:$4 sm:$0xff]  }
 0x320   : > { %6033 = vmatprep.subr.bf16.mxu1 %v14478_v5  ;;  %6093 = vmatpush1.bf16.msra.mxu0 %v14485_v6  ;;  %v14555_v5 = vld [vmem:[#allocation14 + $0xfb8] ss:$200 sps:$4 sm:$0xff]   ;;  %v14560_v6 = vld [vmem:[#allocation14 + $0x4c4] ss:$200 sps:$4 sm:$0xff]  }
 0x321   : > { %6094 = vmatprep.subr.bf16.mxu0 %v5889_v59  ;;  %v12888_v59 = vcombine.high %v2724_v61, %v2724_v61 }
 0x323   : > { %6034 = vmatpush1.bf16.msra.mxu1 %v14476_v60  ;;  %v14558_v60 = vld [vmem:[#allocation14 + $0x4c0] ss:$200 sps:$4 sm:$0xff]  }
 0x324   : > { %6035 = vmatprep.subr.bf16.mxu1 %v14484_v12  ;;  %6095 = vmatpush1.bf16.msra.mxu0 %v5886_v18  ;;  %v14561_v12 = vld [vmem:[#allocation14 + $0x1148] ss:$200 sps:$4 sm:$0xff]   ;;  %v14566_v18 = vld [vmem:[#allocation14 + $0x654] ss:$200 sps:$4 sm:$0xff]  }
 0x325   : > { %6152 = vmatprep.subr.bf16.mxu0 %v14498_v19  ;;  %v12887_v19 = vcombine.low %v2724_v61, %v2724_v61  ;;  %v14628_v61 = vld [vmem:[#allocation14 + $0x340] ss:$200 sps:$4 sm:$0xff]  }
 0x327   : > { %6036 = vmatpush1.bf16.msra.mxu1 %v14482_v9  ;;  %v5901_v9 = vand.u32 %v12888_v59, %v17499_v62  ;;  %v14634_v59 = vld [vmem:[#allocation14 + $0x4d0] ss:$200 sps:$4 sm:$0xff]  }
 0x328   : > { %6037 = vmatprep.subr.bf16.mxu1 %v14490_v22  ;;  %v14564_v22 = vld [vmem:[#allocation14 + $0x650] ss:$200 sps:$4 sm:$0xff]  }
 0x32b   : > { %6038 = vmatpush1.bf16.msra.mxu1 %v14488_v24  ;;  %v2115_v28 = vpop.permute.xlu0 %2114  ;;  %v5898_v24 = vand.u32 %v12887_v19, %v17499_v62 }
 0x32c   : > { %v2117_v36 = vsel %vm962_vm2, %v17365_v14, %v2115_v28  ;;  %6039 = vmatprep.subr.bf16.mxu1 %v14495_v27  ;;  %v14505_v14 = vld [vmem:[#allocation14 + $0xaf0] ss:$200 sps:$4 sm:$0xff]   ;;  %v14571_v27 = vld [vmem:[#allocation14 + $0x7e4] ss:$200 sps:$4 sm:$0xff]  }
 0x32d   : > { %v17507_v20 = vpack.c.bf16 %v2117_v36, %v2117_v36  ;;  %v14574_v28 = vld [vmem:[#allocation14 + $0x2c] ss:$200 sps:$4 sm:$0xff]   ;;  %v14572_v36 = vld [vmem:[#allocation14 + $0x28] ss:$200 sps:$4 sm:$0xff]  }
 0x32f   : > { %6040 = vmatpush1.bf16.msra.mxu1 %v14493_v35  ;;  %6103 = vmatmul.mubr.bf16.vlgmr.msra.gmra.mrb[4].mxu0 %v17507_v20  ;;  %v14569_v35 = vld [vmem:[#allocation14 + $0x7e0] ss:$200 sps:$4 sm:$0xff]  }
 0x330   : > { %6153 = vmatpush1.bf16.msra.mxu0 %v14496_v15  ;;  %12934 = vmatprep.mubr.msk.bf16.mxu0 %vm5871_vm3, %v17468_v17  ;;  %v14577_v15 = vld [vmem:[#allocation14 + $0x974] ss:$200 sps:$4 sm:$0xff]  }
 0x331   : > { %6041 = vmatprep.subr.bf16.mxu1 %v14501_v21  ;;  %6154 = vmatprep.subr.bf16.mxu0 %v14504_v48  ;;  %v14580_v21 = vld [vmem:[#allocation14 + $0x1bc] ss:$200 sps:$4 sm:$0xff]   ;;  %v14575_v48 = vld [vmem:[#allocation14 + $0x970] ss:$200 sps:$4 sm:$0xff]  }
 0x333   : > { %6042 = vmatpush1.bf16.msra.mxu1 %v14499_v37  ;;  %v14578_v37 = vld [vmem:[#allocation14 + $0x1b8] ss:$200 sps:$4 sm:$0xff]  }
 0x334   : > { %6155 = vmatpush1.bf16.msra.mxu0 %v14502_v34  ;;  %6043 = vmatprep.subr.bf16.mxu1 %v14507_v40  ;;  %v14583_v34 = vld [vmem:[#allocation14 + $0xb04] ss:$200 sps:$4 sm:$0xff]  }
 0x335   : > { %6156 = vmatprep.subr.bf16.mxu0 %v14510_v49  ;;  %v14586_v40 = vld [vmem:[#allocation14 + $0x34c] ss:$200 sps:$4 sm:$0xff]   ;;  %v14581_v49 = vld [vmem:[#allocation14 + $0xb00] ss:$200 sps:$4 sm:$0xff]  }
 0x337   : > { %6044 = vmatpush1.bf16.msra.mxu1 %v14505_v14  ;;  %v14584_v14 = vld [vmem:[#allocation14 + $0x348] ss:$200 sps:$4 sm:$0xff]  }
 0x338   : > { %6157 = vmatpush1.bf16.msra.mxu0 %v14508_v55  ;;  %6045 = vmatprep.subr.bf16.mxu1 %v14513_v56  ;;  %v14589_v55 = vld [vmem:[#allocation14 + $0xc94] ss:$200 sps:$4 sm:$0xff]  }
 0x339   : > { %6158 = vmatprep.subr.bf16.mxu0 %v14516_v63  ;;  %v14592_v56 = vld [vmem:[#allocation14 + $0x4dc] ss:$200 sps:$4 sm:$0xff]   ;;  %v14587_v63 = vld [vmem:[#allocation14 + $0xc90] ss:$200 sps:$4 sm:$0xff]  }
 0x33b   : > { %6046 = vmatpush1.bf16.msra.mxu1 %v14511_v1  ;;  %v14590_v1 = vld [vmem:[#allocation14 + $0x4d8] ss:$200 sps:$4 sm:$0xff]  }
 0x33c   : > { %6159 = vmatpush1.bf16.msra.mxu0 %v14514_v3  ;;  %6047 = vmatprep.subr.bf16.mxu1 %v14519_v4  ;;  %v14595_v3 = vld [vmem:[#allocation14 + $0xe24] ss:$200 sps:$4 sm:$0xff]  }
 0x33d   : > { %6160 = vmatprep.subr.bf16.mxu0 %v14522_v16  ;;  %v14598_v4 = vld [vmem:[#allocation14 + $0x66c] ss:$200 sps:$4 sm:$0xff]   ;;  %v14593_v16 = vld [vmem:[#allocation14 + $0xe20] ss:$200 sps:$4 sm:$0xff]  }
 0x33f   : > { %6048 = vmatpush1.bf16.msra.mxu1 %v14517_v25  ;;  %v14596_v25 = vld [vmem:[#allocation14 + $0x668] ss:$200 sps:$4 sm:$0xff]  }
 0x340   : > { %6161 = vmatpush1.bf16.msra.mxu0 %v14520_v31  ;;  %6049 = vmatprep.subr.bf16.mxu1 %v14525_v32  ;;  %v14601_v31 = vld [vmem:[#allocation14 + $0xfb4] ss:$200 sps:$4 sm:$0xff]  }
 0x341   : > { %6162 = vmatprep.subr.bf16.mxu0 %v14528_v41  ;;  %v14604_v32 = vld [vmem:[#allocation14 + $0x7fc] ss:$200 sps:$4 sm:$0xff]   ;;  %v2723_v41 = vld [vmem:[#allocation14 + $0x12d0] sm:$0x33] }
 0x343   : > { %6050 = vmatpush1.bf16.msra.mxu1 %v14523_v44  ;;  %v14602_v44 = vld [vmem:[#allocation14 + $0x7f8] ss:$200 sps:$4 sm:$0xff]  }
 0x344   : > { %6163 = vmatpush1.bf16.msra.mxu0 %v14526_v7  ;;  %6051 = vmatprep.subr.bf16.mxu1 %v14531_v38  ;;  %v14607_v7 = vld [vmem:[#allocation14 + $0x1144] ss:$200 sps:$4 sm:$0xff]   ;;  %v12886_v38 = vcombine.high %v2723_v41, %v2723_v41 }
 0x345   : > { %6164 = vmatprep.subr.bf16.mxu0 %v14534_v39  ;;  %v14605_v39 = vld [vmem:[#allocation14 + $0x1140] ss:$200 sps:$4 sm:$0xff]  }
 0x347   : > { %6052 = vmatpush1.bf16.msra.mxu1 %v14529_v45  ;;  %v12885_v45 = vcombine.low %v2723_v41, %v2723_v41  ;;  %v14675_v41 = vld [vmem:[#allocation14 + $0xfc0] ss:$200 sps:$4 sm:$0xff]  }
 0x348   : > { %6165 = vmatpush1.bf16.msra.mxu0 %v14532_v46  ;;  %6053 = vmatprep.subr.bf16.mxu1 %v5883_v26  ;;  %v5895_v46 = vand.u32 %v12886_v38, %v17499_v62  ;;  %v14615_v26 = vld [vmem:[#allocation14 + $0xb1c] ss:$200 sps:$4 sm:$0xff]  }
 0x349   : > { %6166 = vmatprep.subr.bf16.mxu0 %v14539_v47  ;;  %v5892_v47 = vand.u32 %v12885_v45, %v17499_v62  ;;  %v14686_v38 = vld [vmem:[#allocation14 + $0x99c] ss:$200 sps:$4 sm:$0xff]   ;;  %v14684_v45 = vld [vmem:[#allocation14 + $0x998] ss:$200 sps:$4 sm:$0xff]  }
 0x34b   : > { %6054 = vmatpush1.bf16.msra.mxu1 %v5880_v42  ;;  %v14613_v42 = vld [vmem:[#allocation14 + $0xb18] ss:$200 sps:$4 sm:$0xff]  }
 0x34c   : > { %6167 = vmatpush1.bf16.msra.mxu0 %v14537_v2  ;;  %6111 = vmatprep.subr.bf16.mxu1 %v14542_v8  ;;  %v14618_v2 = vld [vmem:[#allocation14 + $0x24] ss:$200 sps:$4 sm:$0xff]  }
 0x34d   : > { %6168 = vmatprep.subr.bf16.mxu0 %v14545_v13  ;;  %v14621_v8 = vld [vmem:[#allocation14 + $0xcac] ss:$200 sps:$4 sm:$0xff]   ;;  %v14616_v13 = vld [vmem:[#allocation14 + $0x20] ss:$200 sps:$4 sm:$0xff]  }
 0x34e   : > { %6062 = vmatmul.mubr.bf16.vlgmr.msra.gmra.mrb[8].mxu1 %v17507_v20 }
 0x34f   : > { %6112 = vmatpush1.bf16.msra.mxu1 %v14540_v29  ;;  %12933 = vmatprep.mubr.msk.bf16.mxu1 %vm5871_vm3, %v17468_v17  ;;  %v14619_v29 = vld [vmem:[#allocation14 + $0xca8] ss:$200 sps:$4 sm:$0xff]  }
 0x350   : > { %6169 = vmatpush1.bf16.msra.mxu0 %v14543_v30  ;;  %6113 = vmatprep.subr.bf16.mxu1 %v14548_v0  ;;  %v14624_v30 = vld [vmem:[#allocation14 + $0x1b4] ss:$200 sps:$4 sm:$0xff]  }
 0x351   : > { %6170 = vmatprep.subr.bf16.mxu0 %v14551_v51  ;;  %v14627_v0 = vld [vmem:[#allocation14 + $0xe3c] ss:$200 sps:$4 sm:$0xff]   ;;  %v14622_v51 = vld [vmem:[#allocation14 + $0x1b0] ss:$200 sps:$4 sm:$0xff]  }
 0x353   : > { %6114 = vmatpush1.bf16.msra.mxu1 %v14546_v53  ;;  %v14625_v53 = vld [vmem:[#allocation14 + $0xe38] ss:$200 sps:$4 sm:$0xff]  }
 0x354   : > { %6171 = vmatpush1.bf16.msra.mxu0 %v14549_v57  ;;  %6115 = vmatprep.subr.bf16.mxu1 %v14554_v58  ;;  %v14630_v57 = vld [vmem:[#allocation14 + $0x344] ss:$200 sps:$4 sm:$0xff]  }
 0x355   : > { %6172 = vmatprep.subr.bf16.mxu0 %v14557_v52  ;;  %v14633_v58 = vld [vmem:[#allocation14 + $0xfcc] ss:$200 sps:$4 sm:$0xff]  }
 0x356   : > { %v2726_v52 = vld [vmem:[#allocation14 + $0x12e8] sm:$0x33] }
 0x357   : > { %6116 = vmatpush1.bf16.msra.mxu1 %v14552_v54  ;;  %v14631_v54 = vld [vmem:[#allocation14 + $0xfc8] ss:$200 sps:$4 sm:$0xff]  }
 0x358   : > { %6173 = vmatpush1.bf16.msra.mxu0 %v14555_v5  ;;  %6117 = vmatprep.subr.bf16.mxu1 %v14560_v6  ;;  %v14636_v5 = vld [vmem:[#allocation14 + $0x4d4] ss:$200 sps:$4 sm:$0xff]  }
 0x359   : > { %6174 = vmatprep.subr.bf16.mxu0 %v14563_v11  ;;  %v14639_v6 = vld [vmem:[#allocation14 + $0x115c] ss:$200 sps:$4 sm:$0xff]   ;;  %v12892_v11 = vcombine.high %v2726_v52, %v2726_v52 }
 0x35b   : > { %6118 = vmatpush1.bf16.msra.mxu1 %v14558_v60  ;;  %v14637_v60 = vld [vmem:[#allocation14 + $0x1158] ss:$200 sps:$4 sm:$0xff]   ;;  %v5913_v19 = vand.u32 %v12892_v11, %v17499_v62 }
 0x35c   : > { %6175 = vmatpush1.bf16.msra.mxu0 %v14561_v12  ;;  %6119 = vmatprep.subr.bf16.mxu1 %v14566_v18  ;;  %v14642_v12 = vld [vmem:[#allocation14 + $0x664] ss:$200 sps:$4 sm:$0xff]   ;;  %v12891_v18 = vcombine.low %v2726_v52, %v2726_v52  ;;  %v14704_v52 = vld [vmem:[#allocation14 + $0x350] ss:$200 sps:$4 sm:$0xff]   ;;  %v14710_v11 = vld [vmem:[#allocation14 + $0x4e0] ss:$200 sps:$4 sm:$0xff]  }
 0x35d   : > { %6176 = vmatprep.subr.bf16.mxu0 %v5901_v9  ;;  %v14640_v9 = vld [vmem:[#allocation14 + $0x660] ss:$200 sps:$4 sm:$0xff]  }
 0x35f   : > { %6120 = vmatpush1.bf16.msra.mxu1 %v14564_v22  ;;  %v5910_v22 = vand.u32 %v12891_v18, %v17499_v62 }
 0x360   : > { %6177 = vmatpush1.bf16.msra.mxu0 %v5898_v24  ;;  %6121 = vmatprep.subr.bf16.mxu1 %v14571_v27  ;;  %v14647_v24 = vld [vmem:[#allocation14 + $0x7f4] ss:$200 sps:$4 sm:$0xff]  }
 0x361   : > { %6234 = vmatprep.subr.bf16.mxu0 %v14574_v28  ;;  %v14650_v27 = vld [vmem:[#allocation14 + $0x3c] ss:$200 sps:$4 sm:$0xff]   ;;  %v14645_v28 = vld [vmem:[#allocation14 + $0x7f0] ss:$200 sps:$4 sm:$0xff]  }
 0x363   : > { %6122 = vmatpush1.bf16.msra.mxu1 %v14569_v35  ;;  %6185 = vmatmul.mubr.bf16.vlgmr.msra.gmra.mrb[8].mxu0 %v17507_v20  ;;  %v14648_v35 = vld [vmem:[#allocation14 + $0x38] ss:$200 sps:$4 sm:$0xff]  }
 0x364   : > { %6235 = vmatpush1.bf16.msra.mxu0 %v14572_v36  ;;  %12936 = vmatprep.mubr.msk.bf16.mxu0 %vm5871_vm3, %v17468_v17  ;;  %v14653_v36 = vld [vmem:[#allocation14 + $0x984] ss:$200 sps:$4 sm:$0xff]  }
 0x365   : > { %6123 = vmatprep.subr.bf16.mxu1 %v14577_v15  ;;  %6236 = vmatprep.subr.bf16.mxu0 %v14580_v21  ;;  %v14656_v15 = vld [vmem:[#allocation14 + $0x1cc] ss:$200 sps:$4 sm:$0xff]   ;;  %v14651_v21 = vld [vmem:[#allocation14 + $0x980] ss:$200 sps:$4 sm:$0xff]  }
 0x367   : > { %6124 = vmatpush1.bf16.msra.mxu1 %v14575_v48  ;;  %v14654_v48 = vld [vmem:[#allocation14 + $0x1c8] ss:$200 sps:$4 sm:$0xff]  }
 0x368   : > { %6237 = vmatpush1.bf16.msra.mxu0 %v14578_v37  ;;  %6125 = vmatprep.subr.bf16.mxu1 %v14583_v34  ;;  %v14659_v37 = vld [vmem:[#allocation14 + $0xb14] ss:$200 sps:$4 sm:$0xff]  }
 0x369   : > { %6238 = vmatprep.subr.bf16.mxu0 %v14586_v40  ;;  %v14662_v34 = vld [vmem:[#allocation14 + $0x35c] ss:$200 sps:$4 sm:$0xff]   ;;  %v14657_v40 = vld [vmem:[#allocation14 + $0xb10] ss:$200 sps:$4 sm:$0xff]  }
 0x36b   : > { %6126 = vmatpush1.bf16.msra.mxu1 %v14581_v49  ;;  %v14660_v49 = vld [vmem:[#allocation14 + $0x358] ss:$200 sps:$4 sm:$0xff]  }
 0x36c   : > { %6239 = vmatpush1.bf16.msra.mxu0 %v14584_v14  ;;  %6127 = vmatprep.subr.bf16.mxu1 %v14589_v55  ;;  %v14665_v14 = vld [vmem:[#allocation14 + $0xca4] ss:$200 sps:$4 sm:$0xff]  }
 0x36d   : > { %6240 = vmatprep.subr.bf16.mxu0 %v14592_v56  ;;  %v14668_v55 = vld [vmem:[#allocation14 + $0x4ec] ss:$200 sps:$4 sm:$0xff]   ;;  %v14663_v56 = vld [vmem:[#allocation14 + $0xca0] ss:$200 sps:$4 sm:$0xff]  }
 0x36f   : > { %6128 = vmatpush1.bf16.msra.mxu1 %v14587_v63  ;;  %v14666_v63 = vld [vmem:[#allocation14 + $0x4e8] ss:$200 sps:$4 sm:$0xff]  }
 0x370   : > { %6241 = vmatpush1.bf16.msra.mxu0 %v14590_v1  ;;  %6129 = vmatprep.subr.bf16.mxu1 %v14595_v3  ;;  %v14671_v1 = vld [vmem:[#allocation14 + $0xe34] ss:$200 sps:$4 sm:$0xff]  }
 0x371   : > { %6242 = vmatprep.subr.bf16.mxu0 %v14598_v4  ;;  %v14674_v3 = vld [vmem:[#allocation14 + $0x67c] ss:$200 sps:$4 sm:$0xff]   ;;  %v14669_v4 = vld [vmem:[#allocation14 + $0xe30] ss:$200 sps:$4 sm:$0xff]  }
 0x373   : > { %6130 = vmatpush1.bf16.msra.mxu1 %v14593_v16  ;;  %v14672_v16 = vld [vmem:[#allocation14 + $0x678] ss:$200 sps:$4 sm:$0xff]  }
 0x374   : > { %6243 = vmatpush1.bf16.msra.mxu0 %v14596_v25  ;;  %6131 = vmatprep.subr.bf16.mxu1 %v14601_v31  ;;  %v14677_v25 = vld [vmem:[#allocation14 + $0xfc4] ss:$200 sps:$4 sm:$0xff]  }
 0x375   : > { %6244 = vmatprep.subr.bf16.mxu0 %v14604_v32  ;;  %v14680_v31 = vld [vmem:[#allocation14 + $0x80c] ss:$200 sps:$4 sm:$0xff]   ;;  %v2725_v32 = vld [vmem:[#allocation14 + $0x12e0] sm:$0x33] }
 0x377   : > { %6132 = vmatpush1.bf16.msra.mxu1 %v14599_v43  ;;  %v14678_v43 = vld [vmem:[#allocation14 + $0x808] ss:$200 sps:$4 sm:$0xff]  }
 0x378   : > { %6245 = vmatpush1.bf16.msra.mxu0 %v14602_v44  ;;  %6133 = vmatprep.subr.bf16.mxu1 %v14607_v7  ;;  %v14683_v44 = vld [vmem:[#allocation14 + $0x1154] ss:$200 sps:$4 sm:$0xff]   ;;  %v12890_v7 = vcombine.high %v2725_v32, %v2725_v32 }
 0x379   : > { %6246 = vmatprep.subr.bf16.mxu0 %v14610_v33  ;;  %v14681_v33 = vld [vmem:[#allocation14 + $0x1150] ss:$200 sps:$4 sm:$0xff]  }
 0x37b   : > { %6134 = vmatpush1.bf16.msra.mxu1 %v14605_v39  ;;  %v12889_v39 = vcombine.low %v2725_v32, %v2725_v32  ;;  %v14756_v32 = vld [vmem:[#allocation14 + $0x81c] ss:$200 sps:$4 sm:$0xff]  }
 0x37c   : > { %6247 = vmatpush1.bf16.msra.mxu0 %v14608_v50  ;;  %6135 = vmatprep.subr.bf16.mxu1 %v5895_v46  ;;  %v5907_v50 = vand.u32 %v12890_v7, %v17499_v62  ;;  %v14691_v46 = vld [vmem:[#allocation14 + $0xb2c] ss:$200 sps:$4 sm:$0xff]   ;;  %v14754_v7 = vld [vmem:[#allocation14 + $0x818] ss:$200 sps:$4 sm:$0xff]  }
 0x37d   : > { %6248 = vmatprep.subr.bf16.mxu0 %v14615_v26  ;;  %v5904_v26 = vand.u32 %v12889_v39, %v17499_v62 }
 0x37f   : > { %6136 = vmatpush1.bf16.msra.mxu1 %v5892_v47  ;;  %v14689_v47 = vld [vmem:[#allocation14 + $0xb28] ss:$200 sps:$4 sm:$0xff]  }
 0x380   : > { %6249 = vmatpush1.bf16.msra.mxu0 %v14613_v42  ;;  %6193 = vmatprep.subr.bf16.mxu1 %v14618_v2  ;;  %v14694_v42 = vld [vmem:[#allocation14 + $0x34] ss:$200 sps:$4 sm:$0xff]  }
 0x381   : > { %6250 = vmatprep.subr.bf16.mxu0 %v14621_v8  ;;  %v14697_v2 = vld [vmem:[#allocation14 + $0xcbc] ss:$200 sps:$4 sm:$0xff]   ;;  %v14692_v8 = vld [vmem:[#allocation14 + $0x30] ss:$200 sps:$4 sm:$0xff]  }
 0x382   : > { %6144 = vmatmul.mubr.bf16.vlgmr.msra.gmra.mrb[12].mxu1 %v17507_v20 }
 0x383   : > { %6194 = vmatpush1.bf16.msra.mxu1 %v14616_v13  ;;  %12935 = vmatprep.mubr.msk.bf16.mxu1 %vm5871_vm3, %v17468_v17  ;;  %v14695_v13 = vld [vmem:[#allocation14 + $0xcb8] ss:$200 sps:$4 sm:$0xff]  }
 0x384   : > { %6251 = vmatpush1.bf16.msra.mxu0 %v14619_v29  ;;  %6195 = vmatprep.subr.bf16.mxu1 %v14624_v30  ;;  %v14700_v29 = vld [vmem:[#allocation14 + $0x1c4] ss:$200 sps:$4 sm:$0xff]  }
 0x385   : > { %6252 = vmatprep.subr.bf16.mxu0 %v14627_v0  ;;  %v14703_v30 = vld [vmem:[#allocation14 + $0xe4c] ss:$200 sps:$4 sm:$0xff]   ;;  %v14698_v0 = vld [vmem:[#allocation14 + $0x1c0] ss:$200 sps:$4 sm:$0xff]  }
 0x387   : > { %6196 = vmatpush1.bf16.msra.mxu1 %v14622_v51  ;;  %v14701_v51 = vld [vmem:[#allocation14 + $0xe48] ss:$200 sps:$4 sm:$0xff]  }
 0x388   : > { %6253 = vmatpush1.bf16.msra.mxu0 %v14625_v53  ;;  %6197 = vmatprep.subr.bf16.mxu1 %v14630_v57  ;;  %v14706_v53 = vld [vmem:[#allocation14 + $0x354] ss:$200 sps:$4 sm:$0xff]  }
 0x389   : > { %6254 = vmatprep.subr.bf16.mxu0 %v14633_v58  ;;  %v14709_v57 = vld [vmem:[#allocation14 + $0xfdc] ss:$200 sps:$4 sm:$0xff]  }
 0x38a   : > { %v2728_v58 = vld [vmem:[#allocation14 + $0x12f8] sm:$0x33] }
 0x38b   : > { %6198 = vmatpush1.bf16.msra.mxu1 %v14628_v61  ;;  %v14707_v61 = vld [vmem:[#allocation14 + $0xfd8] ss:$200 sps:$4 sm:$0xff]  }
 0x38c   : > { %6255 = vmatpush1.bf16.msra.mxu0 %v14631_v54  ;;  %6199 = vmatprep.subr.bf16.mxu1 %v14636_v5  ;;  %v14712_v54 = vld [vmem:[#allocation14 + $0x4e4] ss:$200 sps:$4 sm:$0xff]  }
 0x38d   : > { %6256 = vmatprep.subr.bf16.mxu0 %v14639_v6  ;;  %v14715_v5 = vld [vmem:[#allocation14 + $0x116c] ss:$200 sps:$4 sm:$0xff]   ;;  %v12896_v6 = vcombine.high %v2728_v58, %v2728_v58 }
 0x38f   : > { %6200 = vmatpush1.bf16.msra.mxu1 %v14634_v59  ;;  %v14713_v59 = vld [vmem:[#allocation14 + $0x1168] ss:$200 sps:$4 sm:$0xff]   ;;  %v5925_v18 = vand.u32 %v12896_v6, %v17499_v62  ;;  %v14782_v6 = vld [vmem:[#allocation14 + $0x364] ss:$200 sps:$4 sm:$0xff]  }
 0x390   : > { %6257 = vmatpush1.bf16.msra.mxu0 %v14637_v60  ;;  %6201 = vmatprep.subr.bf16.mxu1 %v14642_v12  ;;  %v14718_v60 = vld [vmem:[#allocation14 + $0x674] ss:$200 sps:$4 sm:$0xff]   ;;  %v12895_v12 = vcombine.low %v2728_v58, %v2728_v58 }
 0x391   : > { %6258 = vmatprep.subr.bf16.mxu0 %v5913_v19  ;;  %v14716_v19 = vld [vmem:[#allocation14 + $0x670] ss:$200 sps:$4 sm:$0xff]   ;;  %v14776_v58 = vld [vmem:[#allocation14 + $0x1d4] ss:$200 sps:$4 sm:$0xff]  }
 0x393   : > { %6202 = vmatpush1.bf16.msra.mxu1 %v14640_v9  ;;  %v5922_v9 = vand.u32 %v12895_v12, %v17499_v62 }
 0x394   : > { %6259 = vmatpush1.bf16.msra.mxu0 %v5910_v22  ;;  %6203 = vmatprep.subr.bf16.mxu1 %v14647_v24  ;;  %v14723_v22 = vld [vmem:[#allocation14 + $0x804] ss:$200 sps:$4 sm:$0xff]  }
 0x395   : > { %6316 = vmatprep.subr.bf16.mxu0 %v14650_v27  ;;  %v14726_v27 = vld [vmem:[#allocation14 + $0x4c] ss:$200 sps:$4 sm:$0xff]  }
 0x397   : > { %6204 = vmatpush1.bf16.msra.mxu1 %v14645_v28  ;;  %6267 = vmatmul.mubr.bf16.vlgmr.msra.gmra.mrb[12].mxu0 %v17507_v20 }
 0x398   : > { %6317 = vmatpush1.bf16.msra.mxu0 %v14648_v35  ;;  %12938 = vmatprep.mubr.msk.bf16.mxu0 %vm5871_vm3, %v17468_v17  ;;  %v14721_v35 = vld [vmem:[#allocation14 + $0x800] ss:$200 sps:$4 sm:$0xff]  }
 0x399   : > { %6205 = vmatprep.subr.bf16.mxu1 %v14653_v36  ;;  %6318 = vmatprep.subr.bf16.mxu0 %v14656_v15  ;;  %v14724_v36 = vld [vmem:[#allocation14 + $0x48] ss:$200 sps:$4 sm:$0xff]   ;;  %v14729_v15 = vld [vmem:[#allocation14 + $0x994] ss:$200 sps:$4 sm:$0xff]  }
 0x39b   : > { %6206 = vmatpush1.bf16.msra.mxu1 %v14651_v21  ;;  %v14732_v21 = vld [vmem:[#allocation14 + $0x1dc] ss:$200 sps:$4 sm:$0xff]  }
 0x39c   : > { %6319 = vmatpush1.bf16.msra.mxu0 %v14654_v48  ;;  %6207 = vmatprep.subr.bf16.mxu1 %v14659_v37  ;;  %v14727_v48 = vld [vmem:[#allocation14 + $0x990] ss:$200 sps:$4 sm:$0xff]  }
 0x39d   : > { %6320 = vmatprep.subr.bf16.mxu0 %v14662_v34  ;;  %v14730_v37 = vld [vmem:[#allocation14 + $0x1d8] ss:$200 sps:$4 sm:$0xff]   ;;  %v14735_v34 = vld [vmem:[#allocation14 + $0xb24] ss:$200 sps:$4 sm:$0xff]  }
 0x39f   : > { %6208 = vmatpush1.bf16.msra.mxu1 %v14657_v40  ;;  %v14738_v40 = vld [vmem:[#allocation14 + $0x36c] ss:$200 sps:$4 sm:$0xff]  }
 0x3a0   : > { %6321 = vmatpush1.bf16.msra.mxu0 %v14660_v49  ;;  %6209 = vmatprep.subr.bf16.mxu1 %v14665_v14  ;;  %v14733_v49 = vld [vmem:[#allocation14 + $0xb20] ss:$200 sps:$4 sm:$0xff]  }
 0x3a1   : > { %6322 = vmatprep.subr.bf16.mxu0 %v14668_v55  ;;  %v14736_v14 = vld [vmem:[#allocation14 + $0x368] ss:$200 sps:$4 sm:$0xff]   ;;  %v14741_v55 = vld [vmem:[#allocation14 + $0xcb4] ss:$200 sps:$4 sm:$0xff]  }
 0x3a3   : > { %6210 = vmatpush1.bf16.msra.mxu1 %v14663_v56  ;;  %v14744_v56 = vld [vmem:[#allocation14 + $0x4fc] ss:$200 sps:$4 sm:$0xff]  }
 0x3a4   : > { %6323 = vmatpush1.bf16.msra.mxu0 %v14666_v63  ;;  %6211 = vmatprep.subr.bf16.mxu1 %v14671_v1  ;;  %v14739_v63 = vld [vmem:[#allocation14 + $0xcb0] ss:$200 sps:$4 sm:$0xff]  }
 0x3a5   : > { %6324 = vmatprep.subr.bf16.mxu0 %v14674_v3  ;;  %v14742_v1 = vld [vmem:[#allocation14 + $0x4f8] ss:$200 sps:$4 sm:$0xff]   ;;  %v14747_v3 = vld [vmem:[#allocation14 + $0xe44] ss:$200 sps:$4 sm:$0xff]  }
 0x3a7   : > { %6212 = vmatpush1.bf16.msra.mxu1 %v14669_v4  ;;  %v14750_v4 = vld [vmem:[#allocation14 + $0x68c] ss:$200 sps:$4 sm:$0xff]  }
 0x3a8   : > { %6325 = vmatpush1.bf16.msra.mxu0 %v14672_v16  ;;  %6213 = vmatprep.subr.bf16.mxu1 %v14677_v25  ;;  %v14745_v16 = vld [vmem:[#allocation14 + $0xe40] ss:$200 sps:$4 sm:$0xff]  }
 0x3a9   : > { %6326 = vmatprep.subr.bf16.mxu0 %v14680_v31  ;;  %v14748_v25 = vld [vmem:[#allocation14 + $0x688] ss:$200 sps:$4 sm:$0xff]   ;;  %v14753_v31 = vld [vmem:[#allocation14 + $0xfd4] ss:$200 sps:$4 sm:$0xff]  }
 0x3ab   : > { %6214 = vmatpush1.bf16.msra.mxu1 %v14675_v41  ;;  %v2727_v41 = vld [vmem:[#allocation14 + $0x12f0] sm:$0x33] }
 0x3ac   : > { %6327 = vmatpush1.bf16.msra.mxu0 %v14678_v43  ;;  %6215 = vmatprep.subr.bf16.mxu1 %v14683_v44  ;;  %v12279_v43 = vld [vmem:[#allocation13] ss:$0 sm:$0xff]  ;;  %v14751_v44 = vld [vmem:[#allocation14 + $0xfd0] ss:$200 sps:$4 sm:$0xff]  }
 0x3ad   : > { %6328 = vmatprep.subr.bf16.mxu0 %v14686_v38  ;;  %v14759_v38 = vld [vmem:[#allocation14 + $0x1164] ss:$200 sps:$4 sm:$0xff]  }
 0x3af   : > { %6216 = vmatpush1.bf16.msra.mxu1 %v14681_v33  ;;  %v12894_v33 = vcombine.high %v2727_v41, %v2727_v41 }
 0x3b0   : > { %6329 = vmatpush1.bf16.msra.mxu0 %v14684_v45  ;;  %6217 = vmatprep.subr.bf16.mxu1 %v5907_v50  ;;  %v14762_v45 = vld [vmem:[#allocation14 + $0x9ac] ss:$200 sps:$4 sm:$0xff]  }
 0x3b1   : > { %6330 = vmatprep.subr.bf16.mxu0 %v14691_v46 }
 0x3b3   : > { %6218 = vmatpush1.bf16.msra.mxu1 %v5904_v26  ;;  %v14757_v26 = vld [vmem:[#allocation14 + $0x1160] ss:$200 sps:$4 sm:$0xff]  }
 0x3b4   : > { %6331 = vmatpush1.bf16.msra.mxu0 %v14689_v47  ;;  %6275 = vmatprep.subr.bf16.mxu1 %v14694_v42  ;;  %v12893_v47 = vcombine.low %v2727_v41, %v2727_v41 }
 0x3b5   : > { %6332 = vmatprep.subr.bf16.mxu0 %v14697_v2  ;;  %v14760_v2 = vld [vmem:[#allocation14 + $0x9a8] ss:$200 sps:$4 sm:$0xff]  }
 0x3b6   : > { %6226 = vmatmul.mubr.bf16.vlgmr.msra.gmra.mrb[16].mxu1 %v17507_v20 }
 0x3b7   : > { %6276 = vmatpush1.bf16.msra.mxu1 %v14692_v8  ;;  %12937 = vmatprep.mubr.msk.bf16.mxu1 %vm5871_vm3, %v17468_v17  ;;  %v5919_v8 = vand.u32 %v12894_v33, %v17499_v62  ;;  %v14815_v33 = vld [vmem:[#allocation14 + $0xcc0] ss:$200 sps:$4 sm:$0xff]  }
 0x3b8   : > { %6333 = vmatpush1.bf16.msra.mxu0 %v14695_v13  ;;  %6277 = vmatprep.subr.bf16.mxu1 %v14700_v29  ;;  %v14767_v13 = vld [vmem:[#allocation14 + $0xb3c] ss:$200 sps:$4 sm:$0xff]   ;;  %v5916_v29 = vand.u32 %v12893_v47, %v17499_v62  ;;  %v14824_v47 = vld [vmem:[#allocation14 + $0x698] ss:$200 sps:$4 sm:$0xff]  }
 0x3b9   : > { %6334 = vmatprep.subr.bf16.mxu0 %v14703_v30  ;;  %v14765_v30 = vld [vmem:[#allocation14 + $0xb38] ss:$200 sps:$4 sm:$0xff]  }
 0x3bb   : > { %6278 = vmatpush1.bf16.msra.mxu1 %v14698_v0  ;;  %v14770_v0 = vld [vmem:[#allocation14 + $0x44] ss:$200 sps:$4 sm:$0xff]  }
 0x3bc   : > { %6335 = vmatpush1.bf16.msra.mxu0 %v14701_v51  ;;  %6279 = vmatprep.subr.bf16.mxu1 %v14706_v53  ;;  %v14773_v51 = vld [vmem:[#allocation14 + $0xccc] ss:$200 sps:$4 sm:$0xff]   ;;  %v14768_v53 = vld [vmem:[#allocation14 + $0x40] ss:$200 sps:$4 sm:$0xff]  }
 0x3bd   : > { %6336 = vmatprep.subr.bf16.mxu0 %v14709_v57  ;;  %v14771_v57 = vld [vmem:[#allocation14 + $0xcc8] ss:$200 sps:$4 sm:$0xff]  }
 0x3bf   : > { %6280 = vmatpush1.bf16.msra.mxu1 %v14704_v52  ;;  %v14779_v52 = vld [vmem:[#allocation14 + $0xe5c] ss:$200 sps:$4 sm:$0xff]  }
 0x3c0   : > { %6337 = vmatpush1.bf16.msra.mxu0 %v14707_v61  ;;  %6281 = vmatprep.subr.bf16.mxu1 %v14712_v54  ;;  %v14774_v61 = vld [vmem:[#allocation14 + $0x1d0] ss:$200 sps:$4 sm:$0xff]   ;;  %v969_v54 = vmul.f32 %v17358_v23, %v17358_v23 }
 0x3c1   : > { %6338 = vmatprep.subr.bf16.mxu0 %v14715_v5  ;;  %v14777_v5 = vld [vmem:[#allocation14 + $0xe58] ss:$200 sps:$4 sm:$0xff]   ;;  %v14783_v23 = vld [vmem:[#allocation14 + $0xfe8] ss:$200 sps:$4 sm:$0xff]  }
 0x3c3   : > { %6282 = vmatpush1.bf16.msra.mxu1 %v14710_v11 }
 0x3c4   : > { %6339 = vmatpush1.bf16.msra.mxu0 %v14713_v59  ;;  %6283 = vmatprep.subr.bf16.mxu1 %v14718_v60  ;;  %v14785_v59 = vld [vmem:[#allocation14 + $0xfec] ss:$200 sps:$4 sm:$0xff]  }
 0x3c5   : > { %v17539_v24 = vpop.f32.mrb[2].mxu0  ;;  %6340 = vmatprep.subr.bf16.mxu0 %v5925_v18  ;;  %v2730_v18 = vld [vmem:[#allocation14 + $0x1308] sm:$0x33] }
 0x3c6   : > { %v14090_v28 = vpop.f32.mrb[3].mxu0 }
 0x3c7   : > { %6284 = vmatpush1.bf16.msra.mxu1 %v14716_v19  ;;  %v14780_v19 = vld [vmem:[#allocation14 + $0x360] ss:$200 sps:$4 sm:$0xff]   ;;  %v14791_v28 = vld [vmem:[#allocation14 + $0x117c] ss:$200 sps:$4 sm:$0xff]  }
 0x3c8   : > { %6341 = vmatpush1.bf16.msra.mxu0 %v5922_v9  ;;  %6285 = vmatprep.subr.bf16.mxu1 %v14723_v22  ;;  %v17557_v9 = vmul.f32 %v969_v54, %v17355_v10  ;;  %v12899_v10 = vcombine.low %v2730_v18, %v2730_v18 }
 0x3c9   : > { %6398 = vmatprep.subr.bf16.mxu0 %v14726_v27  ;;  %v14788_v27 = vld [vmem:[#allocation14 + $0x4f4] ss:$200 sps:$4 sm:$0xff]  }
 0x3cb   : > { %6286 = vmatpush1.bf16.msra.mxu1 %v14721_v35  ;;  %6349 = vmatmul.mubr.bf16.vlgmr.msra.gmra.mrb[16].mxu0 %v17507_v20  ;;  %v12900_v35 = vcombine.high %v2730_v18, %v2730_v18  ;;  %v14855_v18 = vld [vmem:[#allocation14 + $0xe6c] ss:$200 sps:$4 sm:$0xff]  }
 0x3cc   : > { %6399 = vmatpush1.bf16.msra.mxu0 %v14724_v36  ;;  %12940 = vmatprep.mubr.msk.bf16.mxu0 %vm5871_vm3, %v17468_v17 }
 0x3cd   : > { %6287 = vmatprep.subr.bf16.mxu1 %v14729_v15  ;;  %6400 = vmatprep.subr.bf16.mxu0 %v14732_v21  ;;  %v14789_v15 = vld [vmem:[#allocation14 + $0x1178] ss:$200 sps:$4 sm:$0xff]   ;;  %v14794_v21 = vld [vmem:[#allocation14 + $0x684] ss:$200 sps:$4 sm:$0xff]  }
 0x3cf   : > { %6288 = vmatpush1.bf16.msra.mxu1 %v14727_v48  ;;  %v5937_v48 = vand.u32 %v12900_v35, %v17499_v62  ;;  %v14861_v35 = vld [vmem:[#allocation14 + $0xffc] ss:$200 sps:$4 sm:$0xff]  }
 0x3d0   : > { %6401 = vmatpush1.bf16.msra.mxu0 %v14730_v37  ;;  %6289 = vmatprep.subr.bf16.mxu1 %v14735_v34  ;;  %v14792_v37 = vld [vmem:[#allocation14 + $0x680] ss:$200 sps:$4 sm:$0xff]   ;;  %v5934_v34 = vand.u32 %v12899_v10, %v17499_v62  ;;  %v14856_v10 = vld [vmem:[#allocation14 + $0x370] ss:$200 sps:$4 sm:$0xff]  }
 0x3d1   : > { %6402 = vmatprep.subr.bf16.mxu0 %v14738_v40  ;;  %v14799_v40 = vld [vmem:[#allocation14 + $0x814] ss:$200 sps:$4 sm:$0xff]  }
 0x3d3   : > { %6290 = vmatpush1.bf16.msra.mxu1 %v14733_v49  ;;  %v14802_v49 = vld [vmem:[#allocation14 + $0x5c] ss:$200 sps:$4 sm:$0xff]  }
 0x3d4   : > { %6403 = vmatpush1.bf16.msra.mxu0 %v14736_v14  ;;  %6291 = vmatprep.subr.bf16.mxu1 %v14741_v55  ;;  %v14797_v14 = vld [vmem:[#allocation14 + $0x810] ss:$200 sps:$4 sm:$0xff]  }
 0x3d5   : > { %6404 = vmatprep.subr.bf16.mxu0 %v14744_v56  ;;  %v14800_v55 = vld [vmem:[#allocation14 + $0x58] ss:$200 sps:$4 sm:$0xff]   ;;  %v14805_v56 = vld [vmem:[#allocation14 + $0x9a4] ss:$200 sps:$4 sm:$0xff]  }
 0x3d7   : > { %6292 = vmatpush1.bf16.msra.mxu1 %v14739_v63  ;;  %v14808_v63 = vld [vmem:[#allocation14 + $0x1ec] ss:$200 sps:$4 sm:$0xff]  }
 0x3d8   : > { %6405 = vmatpush1.bf16.msra.mxu0 %v14742_v1  ;;  %6293 = vmatprep.subr.bf16.mxu1 %v14747_v3  ;;  %v14803_v1 = vld [vmem:[#allocation14 + $0x9a0] ss:$200 sps:$4 sm:$0xff]  }
 0x3d9   : > { %6406 = vmatprep.subr.bf16.mxu0 %v14750_v4  ;;  %v14806_v3 = vld [vmem:[#allocation14 + $0x1e8] ss:$200 sps:$4 sm:$0xff]   ;;  %v14811_v4 = vld [vmem:[#allocation14 + $0xb34] ss:$200 sps:$4 sm:$0xff]  }
 0x3db   : > { %6294 = vmatpush1.bf16.msra.mxu1 %v14745_v16  ;;  %v14814_v16 = vld [vmem:[#allocation14 + $0x37c] ss:$200 sps:$4 sm:$0xff]  }
 0x3dc   : > { %6407 = vmatpush1.bf16.msra.mxu0 %v14748_v25  ;;  %6295 = vmatprep.subr.bf16.mxu1 %v14753_v31 }
 0x3dd   : > { %v1522_v39 = vpop.f32.mrb[2].mxu1  ;;  %6408 = vmatprep.subr.bf16.mxu0 %v14756_v32  ;;  %v14809_v32 = vld [vmem:[#allocation14 + $0xb30] ss:$200 sps:$4 sm:$0xff]  }
 0x3de   : > { %v17544_v50 = vadd.f32 %v12279_v43, %v1522_v39  ;;  %v13976_v46 = vpop.f32.mrb[3].mxu1  ;;  %v14812_v43 = vld [vmem:[#allocation14 + $0x378] ss:$200 sps:$4 sm:$0xff]   ;;  %v14818_v39 = vld [vmem:[#allocation14 + $0x508] ss:$200 sps:$4 sm:$0xff]  }
 0x3df   : > { %6296 = vmatpush1.bf16.msra.mxu1 %v14751_v44  ;;  %v14817_v44 = vld [vmem:[#allocation14 + $0xcc4] ss:$200 sps:$4 sm:$0xff]  }
 0x3e0   : > { %6409 = vmatpush1.bf16.msra.mxu0 %v14754_v7  ;;  %v1527_v42 = vsel %vm1526_vm6, %v17544_v50, -inf  ;;  %6297 = vmatprep.subr.bf16.mxu1 %v14759_v38  ;;  %v14820_v38 = vld [vmem:[#allocation14 + $0x50c] ss:$200 sps:$4 sm:$0xff]   ;;  %v14826_v46 = vld [vmem:[#allocation14 + $0x69c] ss:$200 sps:$4 sm:$0xff]  }
 0x3e1   : > { %1528 = vmax.xlane.f32.xlu1 %v1527_v42  ;;  %6410 = vmatprep.subr.bf16.mxu0 %v14762_v45  ;;  %v14823_v45 = vld [vmem:[#allocation14 + $0xe54] ss:$200 sps:$4 sm:$0xff]   ;;  %v14829_v42 = vld [vmem:[#allocation14 + $0xfe4] ss:$200 sps:$4 sm:$0xff]  }
 0x3e3   : > { %6298 = vmatpush1.bf16.msra.mxu1 %v14757_v26  ;;  %v14821_v26 = vld [vmem:[#allocation14 + $0xe50] ss:$200 sps:$4 sm:$0xff]  }
 0x3e4   : > { %6411 = vmatpush1.bf16.msra.mxu0 %v14760_v2  ;;  %6299 = vmatprep.subr.bf16.mxu1 %v5919_v8  ;;  %v14832_v2 = vld [vmem:[#allocation14 + $0x82c] ss:$200 sps:$4 sm:$0xff]   ;;  %v2729_v8 = vld [vmem:[#allocation14 + $0x1300] sm:$0x33] }
 0x3e5   : > { %6412 = vmatprep.subr.bf16.mxu0 %v14767_v13  ;;  %v14827_v13 = vld [vmem:[#allocation14 + $0xfe0] ss:$200 sps:$4 sm:$0xff]  }
 0x3e7   : > { %6300 = vmatpush1.bf16.msra.mxu1 %v5916_v29  ;;  %v14830_v29 = vld [vmem:[#allocation14 + $0x828] ss:$200 sps:$4 sm:$0xff]  }
 0x3e8   : > { %6413 = vmatpush1.bf16.msra.mxu0 %v14765_v30  ;;  %6357 = vmatprep.subr.bf16.mxu1 %v14770_v0  ;;  %v14835_v30 = vld [vmem:[#allocation14 + $0x1174] ss:$200 sps:$4 sm:$0xff]   ;;  %v12898_v0 = vcombine.high %v2729_v8, %v2729_v8 }
 0x3e9   : > { %6414 = vmatprep.subr.bf16.mxu0 %v14773_v51  ;;  %v14838_v51 = vld [vmem:[#allocation14 + $0x9bc] ss:$200 sps:$4 sm:$0xff]  }
 0x3ea   : > { %6308 = vmatmul.mubr.bf16.vlgmr.msra.gmra.mrb[20].mxu1 %v17507_v20 }
 0x3eb   : > { %6358 = vmatpush1.bf16.msra.mxu1 %v14768_v53  ;;  %12939 = vmatprep.mubr.msk.bf16.mxu1 %vm5871_vm3, %v17468_v17  ;;  %v14833_v53 = vld [vmem:[#allocation14 + $0x1170] ss:$200 sps:$4 sm:$0xff]  }
 0x3ec   : > { %6415 = vmatpush1.bf16.msra.mxu0 %v14771_v57  ;;  %6359 = vmatprep.subr.bf16.mxu1 %v14776_v58  ;;  %v12897_v57 = vcombine.low %v2729_v8, %v2729_v8  ;;  %v14836_v58 = vld [vmem:[#allocation14 + $0x9b8] ss:$200 sps:$4 sm:$0xff]   ;;  %v14893_v8 = vld [vmem:[#allocation14 + $0xcd4] ss:$200 sps:$4 sm:$0xff]  }
 0x3ed   : > { %v1625_v11 = vpop.f32.mrb[4].mxu1  ;;  %6416 = vmatprep.subr.bf16.mxu0 %v14779_v52  ;;  %v5931_v52 = vand.u32 %v12898_v0, %v17499_v62  ;;  %v14894_v0 = vld [vmem:[#allocation14 + $0x518] ss:$200 sps:$4 sm:$0xff]  }
 0x3ee   : > { %v14274_v60 = vadd.f32 %v17539_v24, %v1625_v11  ;;  %v13995_v12 = vpop.f32.mrb[5].mxu1  ;;  %v14786_v24 = vld [vmem:[#allocation14 + $0x4f0] ss:$200 sps:$4 sm:$0xff]   ;;  %v5928_v54 = vand.u32 %v12897_v57, %v17499_v62  ;;  %v14849_v11 = vld [vmem:[#allocation14 + $0xcdc] ss:$200 sps:$4 sm:$0xff]  }
 0x3ef   : > { %6360 = vmatpush1.bf16.msra.mxu1 %v14774_v61  ;;  %v14843_v61 = vld [vmem:[#allocation14 + $0xb4c] ss:$200 sps:$4 sm:$0xff]   ;;  %v14897_v57 = vld [vmem:[#allocation14 + $0xe60] ss:$200 sps:$4 sm:$0xff]  }
 0x3f0   : > { %v17559_v22 = vmul.f32 2.0, %v14274_v60  ;;  %6417 = vmatpush1.bf16.msra.mxu0 %v14777_v5  ;;  %6361 = vmatprep.subr.bf16.mxu1 %v14782_v6  ;;  %v14841_v5 = vld [vmem:[#allocation14 + $0xb48] ss:$200 sps:$4 sm:$0xff]   ;;  %v14846_v6 = vld [vmem:[#allocation14 + $0x54] ss:$200 sps:$4 sm:$0xff]  }
 0x3f1   : > { %6418 = vmatprep.subr.bf16.mxu0 %v14785_v59  ;;  %v14844_v59 = vld [vmem:[#allocation14 + $0x50] ss:$200 sps:$4 sm:$0xff]   ;;  %v14852_v12 = vld [vmem:[#allocation14 + $0x1e4] ss:$200 sps:$4 sm:$0xff]  }
 0x3f2   : > { %v2084_v36 = vsub.f32 %v17557_v9, %v17559_v22  ;;  %v14847_v60 = vld [vmem:[#allocation14 + $0xcd8] ss:$200 sps:$4 sm:$0xff]   ;;  %v15226_v22 = vld [vmem:[#allocation14 + $0xa4] ss:$200 sps:$4 sm:$0xff]  }
 0x3f3   : > { %6362 = vmatpush1.bf16.msra.mxu1 %v14780_v19  ;;  %v14850_v19 = vld [vmem:[#allocation14 + $0x1e0] ss:$200 sps:$4 sm:$0xff]  }
 0x3f4   : > { %6419 = vmatpush1.bf16.msra.mxu0 %v14783_v23  ;;  %6363 = vmatprep.subr.bf16.mxu1 %v14788_v27  ;;  %v14853_v23 = vld [vmem:[#allocation14 + $0xe68] ss:$200 sps:$4 sm:$0xff]   ;;  %v14858_v27 = vld [vmem:[#allocation14 + $0x374] ss:$200 sps:$4 sm:$0xff]   ;;  %v15221_v9 = vld [vmem:[#allocation14 + $0xb98] ss:$200 sps:$4 sm:$0xff]  }
 0x3f5   : > { %6420 = vmatprep.subr.bf16.mxu0 %v14791_v28 }
 0x3f7   : > { %6364 = vmatpush1.bf16.msra.mxu1 %v14786_v24 }
 0x3f8   : > { %6421 = vmatpush1.bf16.msra.mxu0 %v14789_v15  ;;  %6365 = vmatprep.subr.bf16.mxu1 %v14794_v21  ;;  %v2732_v15 = vld [vmem:[#allocation14 + $0x1318] sm:$0x33] }
 0x3f9   : > { %6422 = vmatprep.subr.bf16.mxu0 %v5937_v48 }
 0x3fb   : > { %6366 = vmatpush1.bf16.msra.mxu1 %v14792_v37  ;;  %v14859_v37 = vld [vmem:[#allocation14 + $0xff8] ss:$200 sps:$4 sm:$0xff]  }
 0x3fc   : > { %6423 = vmatpush1.bf16.msra.mxu0 %v5934_v34  ;;  %6367 = vmatprep.subr.bf16.mxu1 %v14799_v40  ;;  %v14864_v34 = vld [vmem:[#allocation14 + $0x504] ss:$200 sps:$4 sm:$0xff]  }
 0x3fd   : > { %6480 = vmatprep.subr.bf16.mxu0 %v14802_v49  ;;  %v14867_v40 = vld [vmem:[#allocation14 + $0x118c] ss:$200 sps:$4 sm:$0xff]   ;;  %v12904_v49 = vcombine.high %v2732_v15, %v2732_v15 }
 0x3ff   : > { %6368 = vmatpush1.bf16.msra.mxu1 %v14797_v14  ;;  %6431 = vmatmul.mubr.bf16.vlgmr.msra.gmra.mrb[20].mxu0 %v17507_v20  ;;  %v14862_v14 = vld [vmem:[#allocation14 + $0x500] ss:$200 sps:$4 sm:$0xff]  }
 0x400   : > { %6481 = vmatpush1.bf16.msra.mxu0 %v14800_v55  ;;  %12942 = vmatprep.mubr.msk.bf16.mxu0 %vm5871_vm3, %v17468_v17  ;;  %v14865_v55 = vld [vmem:[#allocation14 + $0x1188] ss:$200 sps:$4 sm:$0xff]  }
 0x401   : > { %6369 = vmatprep.subr.bf16.mxu1 %v14805_v56  ;;  %6482 = vmatprep.subr.bf16.mxu0 %v14808_v63  ;;  %v14870_v56 = vld [vmem:[#allocation14 + $0x694] ss:$200 sps:$4 sm:$0xff]   ;;  %v12903_v63 = vcombine.low %v2732_v15, %v2732_v15  ;;  %v14917_v15 = vld [vmem:[#allocation14 + $0xb58] ss:$200 sps:$4 sm:$0xff]  }
 0x402   : > { %v17568_v25 = vpop.f32.mrb[4].mxu0 }
 0x403   : > { %6370 = vmatpush1.bf16.msra.mxu1 %v14803_v1  ;;  %v17570_v31 = vpop.f32.mrb[5].mxu0  ;;  %v5949_v1 = vand.u32 %v12904_v49, %v17499_v62  ;;  %v14926_v49 = vld [vmem:[#allocation14 + $0x1f0] ss:$200 sps:$4 sm:$0xff]  }
 0x404   : > { %6483 = vmatpush1.bf16.msra.mxu0 %v14806_v3  ;;  %v6108_v41 = vpop.f32.mrb[6].mxu0  ;;  %6371 = vmatprep.subr.bf16.mxu1 %v14811_v4  ;;  %v14868_v3 = vld [vmem:[#allocation14 + $0x690] ss:$200 sps:$4 sm:$0xff]   ;;  %v5946_v4 = vand.u32 %v12903_v63, %v17499_v62  ;;  %v14937_v63 = vld [vmem:[#allocation14 + $0x100c] ss:$200 sps:$4 sm:$0xff]  }
 0x405   : > { %v6109_v7 = vpop.f32.mrb[7].mxu0  ;;  %6484 = vmatprep.subr.bf16.mxu0 %v14814_v16  ;;  %v14875_v16 = vld [vmem:[#allocation14 + $0x824] ss:$200 sps:$4 sm:$0xff]   ;;  %v14873_v41 = vld [vmem:[#allocation14 + $0x820] ss:$200 sps:$4 sm:$0xff]  }
 0x406   : > { %v14884_v7 = vld [vmem:[#allocation14 + $0x1fc] ss:$200 sps:$4 sm:$0xff]  }
 0x407   : > { %6372 = vmatpush1.bf16.msra.mxu1 %v14809_v32  ;;  %v14878_v32 = vld [vmem:[#allocation14 + $0x6c] ss:$200 sps:$4 sm:$0xff]  }
 0x408   : > { %6485 = vmatpush1.bf16.msra.mxu0 %v14812_v43  ;;  %6373 = vmatprep.subr.bf16.mxu1 %v14817_v44  ;;  %v14876_v43 = vld [vmem:[#allocation14 + $0x68] ss:$200 sps:$4 sm:$0xff]   ;;  %v14881_v44 = vld [vmem:[#allocation14 + $0x9b4] ss:$200 sps:$4 sm:$0xff]  }
 0x409   : > { %6486 = vmatprep.subr.bf16.mxu0 %v14820_v38  ;;  %v14879_v38 = vld [vmem:[#allocation14 + $0x9b0] ss:$200 sps:$4 sm:$0xff]  }
 0x40b   : > { %6374 = vmatpush1.bf16.msra.mxu1 %v14815_v33  ;;  %v14882_v33 = vld [vmem:[#allocation14 + $0x1f8] ss:$200 sps:$4 sm:$0xff]  }
 0x40c   : > { %6487 = vmatpush1.bf16.msra.mxu0 %v14818_v39  ;;  %6375 = vmatprep.subr.bf16.mxu1 %v14823_v45  ;;  %v14887_v39 = vld [vmem:[#allocation14 + $0xb44] ss:$200 sps:$4 sm:$0xff]  }
 0x40d   : > { %6488 = vmatprep.subr.bf16.mxu0 %v14826_v46  ;;  %v14890_v45 = vld [vmem:[#allocation14 + $0x38c] ss:$200 sps:$4 sm:$0xff]  }
 0x40f   : > { %6376 = vmatpush1.bf16.msra.mxu1 %v14821_v26 }
 0x410   : > { %6489 = vmatpush1.bf16.msra.mxu0 %v14824_v47  ;;  %6377 = vmatprep.subr.bf16.mxu1 %v14829_v42  ;;  %v14885_v47 = vld [vmem:[#allocation14 + $0xb40] ss:$200 sps:$4 sm:$0xff]  }
 0x411   : > { %6490 = vmatprep.subr.bf16.mxu0 %v14832_v2  ;;  %v14888_v2 = vld [vmem:[#allocation14 + $0x388] ss:$200 sps:$4 sm:$0xff]  }
 0x413   : > { %6378 = vmatpush1.bf16.msra.mxu1 %v14827_v13 }
 0x414   : > { %6491 = vmatpush1.bf16.msra.mxu0 %v14830_v29  ;;  %6379 = vmatprep.subr.bf16.mxu1 %v14835_v30  ;;  %v14896_v29 = vld [vmem:[#allocation14 + $0x51c] ss:$200 sps:$4 sm:$0xff]   ;;  %v14891_v30 = vld [vmem:[#allocation14 + $0xcd0] ss:$200 sps:$4 sm:$0xff]  }
 0x415   : > { %6492 = vmatprep.subr.bf16.mxu0 %v14838_v51  ;;  %v14899_v51 = vld [vmem:[#allocation14 + $0xe64] ss:$200 sps:$4 sm:$0xff]  }
 0x417   : > { %6380 = vmatpush1.bf16.msra.mxu1 %v14833_v53  ;;  %v14902_v53 = vld [vmem:[#allocation14 + $0x6ac] ss:$200 sps:$4 sm:$0xff]  }
 0x418   : > { %6493 = vmatpush1.bf16.msra.mxu0 %v14836_v58  ;;  %6381 = vmatprep.subr.bf16.mxu1 %v5931_v52  ;;  %v14900_v58 = vld [vmem:[#allocation14 + $0x6a8] ss:$200 sps:$4 sm:$0xff]   ;;  %v14905_v52 = vld [vmem:[#allocation14 + $0xff4] ss:$200 sps:$4 sm:$0xff]  }
 0x419   : > { %6494 = vmatprep.subr.bf16.mxu0 %v14843_v61  ;;  %v14908_v61 = vld [vmem:[#allocation14 + $0x83c] ss:$200 sps:$4 sm:$0xff]  }
 0x41b   : > { %6382 = vmatpush1.bf16.msra.mxu1 %v5928_v54  ;;  %v2731_v54 = vld [vmem:[#allocation14 + $0x1310] sm:$0x33] }
 0x41c   : > { %6495 = vmatpush1.bf16.msra.mxu0 %v14841_v5  ;;  %6439 = vmatprep.subr.bf16.mxu1 %v14846_v6  ;;  %v14903_v5 = vld [vmem:[#allocation14 + $0xff0] ss:$200 sps:$4 sm:$0xff]  }
 0x41d   : > { %6496 = vmatprep.subr.bf16.mxu0 %v14849_v11  ;;  %v14906_v6 = vld [vmem:[#allocation14 + $0x838] ss:$200 sps:$4 sm:$0xff]   ;;  %v14911_v11 = vld [vmem:[#allocation14 + $0x1184] ss:$200 sps:$4 sm:$0xff]  }
 0x41e   : > { %6390 = vmatmul.mubr.bf16.vlgmr.msra.gmra.mrb[24].mxu1 %v17507_v20 }
 0x41f   : > { %6440 = vmatpush1.bf16.msra.mxu1 %v14844_v59  ;;  %12941 = vmatprep.mubr.msk.bf16.mxu1 %vm5871_vm3, %v17468_v17  ;;  %v12902_v59 = vcombine.high %v2731_v54, %v2731_v54 }
 0x420   : > { %6497 = vmatpush1.bf16.msra.mxu0 %v14847_v60  ;;  %6441 = vmatprep.subr.bf16.mxu1 %v14852_v12  ;;  %v14914_v60 = vld [vmem:[#allocation14 + $0x9cc] ss:$200 sps:$4 sm:$0xff]   ;;  %v14909_v12 = vld [vmem:[#allocation14 + $0x1180] ss:$200 sps:$4 sm:$0xff]  }
 0x421   : > { %v17577_v28 = vpop.f32.mrb[8].mxu1  ;;  %6498 = vmatprep.subr.bf16.mxu0 %v14855_v18  ;;  %v12901_v18 = vcombine.low %v2731_v54, %v2731_v54 }
 0x422   : > { %v17579_v24 = vpop.f32.mrb[9].mxu1 }
 0x423   : > { %v6067_v21 = vpop.f32.mrb[10].mxu1  ;;  %6442 = vmatpush1.bf16.msra.mxu1 %v14850_v19  ;;  %v14912_v19 = vld [vmem:[#allocation14 + $0x9c8] ss:$200 sps:$4 sm:$0xff]  }
 0x424   : > { %v6068_v48 = vpop.f32.mrb[11].mxu1  ;;  %6499 = vmatpush1.bf16.msra.mxu0 %v14853_v23  ;;  %6443 = vmatprep.subr.bf16.mxu1 %v14858_v27  ;;  %v5943_v23 = vand.u32 %v12902_v59, %v17499_v62  ;;  %v14919_v27 = vld [vmem:[#allocation14 + $0xb5c] ss:$200 sps:$4 sm:$0xff]  }
 0x425   : > { %6500 = vmatprep.subr.bf16.mxu0 %v14861_v35  ;;  %v5940_v35 = vand.u32 %v12901_v18, %v17499_v62  ;;  %v14922_v21 = vld [vmem:[#allocation14 + $0x64] ss:$200 sps:$4 sm:$0xff]   ;;  %v14920_v48 = vld [vmem:[#allocation14 + $0x60] ss:$200 sps:$4 sm:$0xff]  }
 0x426   : > { %v14969_v59 = vld [vmem:[#allocation14 + $0xce4] ss:$200 sps:$4 sm:$0xff]  }
 0x427   : > { %6444 = vmatpush1.bf16.msra.mxu1 %v14856_v10  ;;  %v14925_v10 = vld [vmem:[#allocation14 + $0xcec] ss:$200 sps:$4 sm:$0xff]  }
 0x428   : > { %6501 = vmatpush1.bf16.msra.mxu0 %v14859_v37  ;;  %6445 = vmatprep.subr.bf16.mxu1 %v14864_v34  ;;  %v14923_v37 = vld [vmem:[#allocation14 + $0xce8] ss:$200 sps:$4 sm:$0xff]   ;;  %v14928_v34 = vld [vmem:[#allocation14 + $0x1f4] ss:$200 sps:$4 sm:$0xff]  }
 0x429   : > { %6502 = vmatprep.subr.bf16.mxu0 %v14867_v40  ;;  %v14931_v40 = vld [vmem:[#allocation14 + $0xe7c] ss:$200 sps:$4 sm:$0xff]  }
 0x42b   : > { %6446 = vmatpush1.bf16.msra.mxu1 %v14862_v14  ;;  %v14929_v14 = vld [vmem:[#allocation14 + $0xe78] ss:$200 sps:$4 sm:$0xff]  }
 0x42c   : > { %6503 = vmatpush1.bf16.msra.mxu0 %v14865_v55  ;;  %6447 = vmatprep.subr.bf16.mxu1 %v14870_v56  ;;  %v14934_v55 = vld [vmem:[#allocation14 + $0x384] ss:$200 sps:$4 sm:$0xff]  }
 0x42d   : > { %6504 = vmatprep.subr.bf16.mxu0 %v5949_v1 }
 0x42f   : > { %6448 = vmatpush1.bf16.msra.mxu1 %v14868_v3  ;;  %v2734_v3 = vld [vmem:[#allocation14 + $0x1328] sm:$0x33] }
 0x430   : > { %6505 = vmatpush1.bf16.msra.mxu0 %v5946_v4  ;;  %6449 = vmatprep.subr.bf16.mxu1 %v14875_v16  ;;  %v14932_v16 = vld [vmem:[#allocation14 + $0x380] ss:$200 sps:$4 sm:$0xff]  }
 0x431   : > { %6562 = vmatprep.subr.bf16.mxu0 %v14878_v32 }
 0x433   : > { %6450 = vmatpush1.bf16.msra.mxu1 %v14873_v41  ;;  %6513 = vmatmul.mubr.bf16.vlgmr.msra.gmra.mrb[24].mxu0 %v17507_v20  ;;  %v14935_v41 = vld [vmem:[#allocation14 + $0x1008] ss:$200 sps:$4 sm:$0xff]  }
 0x434   : > { %6563 = vmatpush1.bf16.msra.mxu0 %v14876_v43  ;;  %12944 = vmatprep.mubr.msk.bf16.mxu0 %vm5871_vm3, %v17468_v17  ;;  %v14940_v43 = vld [vmem:[#allocation14 + $0x514] ss:$200 sps:$4 sm:$0xff]  }
 0x435   : > { %6451 = vmatprep.subr.bf16.mxu1 %v14881_v44  ;;  %6564 = vmatprep.subr.bf16.mxu0 %v14884_v7  ;;  %v14943_v44 = vld [vmem:[#allocation14 + $0x119c] ss:$200 sps:$4 sm:$0xff]   ;;  %v12908_v7 = vcombine.high %v2734_v3, %v2734_v3 }
 0x436   : > { %v17586_v46 = vpop.f32.mrb[8].mxu0 }
 0x437   : > { %v17588_v26 = vpop.f32.mrb[9].mxu0  ;;  %6452 = vmatpush1.bf16.msra.mxu1 %v14879_v38  ;;  %v14938_v38 = vld [vmem:[#allocation14 + $0x510] ss:$200 sps:$4 sm:$0xff]  }
 0x438   : > { %v6190_v42 = vpop.f32.mrb[10].mxu0  ;;  %6565 = vmatpush1.bf16.msra.mxu0 %v14882_v33  ;;  %6453 = vmatprep.subr.bf16.mxu1 %v14887_v39  ;;  %v14941_v33 = vld [vmem:[#allocation14 + $0x1198] ss:$200 sps:$4 sm:$0xff]   ;;  %v14946_v39 = vld [vmem:[#allocation14 + $0x6a4] ss:$200 sps:$4 sm:$0xff]  }
 0x439   : > { %v6191_v13 = vpop.f32.mrb[11].mxu0  ;;  %6566 = vmatprep.subr.bf16.mxu0 %v14890_v45  ;;  %v12907_v45 = vcombine.low %v2734_v3, %v2734_v3  ;;  %v14944_v42 = vld [vmem:[#allocation14 + $0x6a0] ss:$200 sps:$4 sm:$0xff]   ;;  %v14985_v3 = vld [vmem:[#allocation14 + $0x1190] ss:$200 sps:$4 sm:$0xff]  }
 0x43a   : > { %v14954_v13 = vld [vmem:[#allocation14 + $0x7c] ss:$200 sps:$4 sm:$0xff]  }
 0x43b   : > { %6454 = vmatpush1.bf16.msra.mxu1 %v14885_v47  ;;  %v5961_v47 = vand.u32 %v12908_v7, %v17499_v62 }
 0x43c   : > { %6567 = vmatpush1.bf16.msra.mxu0 %v14888_v2  ;;  %6455 = vmatprep.subr.bf16.mxu1 %v14893_v8  ;;  %v5958_v2 = vand.u32 %v12907_v45, %v17499_v62  ;;  %v14951_v8 = vld [vmem:[#allocation14 + $0x834] ss:$200 sps:$4 sm:$0xff]   ;;  %v14996_v45 = vld [vmem:[#allocation14 + $0x70] ss:$200 sps:$4 sm:$0xff]  }
 0x43d   : > { %6568 = vmatprep.subr.bf16.mxu0 %v14896_v29  ;;  %v14949_v29 = vld [vmem:[#allocation14 + $0x830] ss:$200 sps:$4 sm:$0xff]  }
 0x43f   : > { %6456 = vmatpush1.bf16.msra.mxu1 %v14891_v30  ;;  %v14952_v30 = vld [vmem:[#allocation14 + $0x78] ss:$200 sps:$4 sm:$0xff]  }
 0x440   : > { %6569 = vmatpush1.bf16.msra.mxu0 %v14894_v0  ;;  %6457 = vmatprep.subr.bf16.mxu1 %v14899_v51  ;;  %v14957_v0 = vld [vmem:[#allocation14 + $0x9c4] ss:$200 sps:$4 sm:$0xff]  }
 0x441   : > { %6570 = vmatprep.subr.bf16.mxu0 %v14902_v53  ;;  %v14960_v51 = vld [vmem:[#allocation14 + $0x20c] ss:$200 sps:$4 sm:$0xff]   ;;  %v14955_v53 = vld [vmem:[#allocation14 + $0x9c0] ss:$200 sps:$4 sm:$0xff]  }
 0x443   : > { %6458 = vmatpush1.bf16.msra.mxu1 %v14897_v57  ;;  %v14958_v57 = vld [vmem:[#allocation14 + $0x208] ss:$200 sps:$4 sm:$0xff]  }
 0x444   : > { %6571 = vmatpush1.bf16.msra.mxu0 %v14900_v58  ;;  %6459 = vmatprep.subr.bf16.mxu1 %v14905_v52  ;;  %v14963_v58 = vld [vmem:[#allocation14 + $0xb54] ss:$200 sps:$4 sm:$0xff]  }
 0x445   : > { %6572 = vmatprep.subr.bf16.mxu0 %v14908_v61  ;;  %v14966_v52 = vld [vmem:[#allocation14 + $0x39c] ss:$200 sps:$4 sm:$0xff]  }
 0x447   : > { %6460 = vmatpush1.bf16.msra.mxu1 %v14903_v5  ;;  %v14961_v5 = vld [vmem:[#allocation14 + $0xb50] ss:$200 sps:$4 sm:$0xff]  }
 0x448   : > { %6573 = vmatpush1.bf16.msra.mxu0 %v14906_v6  ;;  %6461 = vmatprep.subr.bf16.mxu1 %v14911_v11  ;;  %v14964_v11 = vld [vmem:[#allocation14 + $0x398] ss:$200 sps:$4 sm:$0xff]  }
 0x449   : > { %6574 = vmatprep.subr.bf16.mxu0 %v14914_v60 }
 0x44b   : > { %6462 = vmatpush1.bf16.msra.mxu1 %v14909_v12  ;;  %v14972_v12 = vld [vmem:[#allocation14 + $0x52c] ss:$200 sps:$4 sm:$0xff]  }
 0x44c   : > { %6575 = vmatpush1.bf16.msra.mxu0 %v14912_v19  ;;  %6463 = vmatprep.subr.bf16.mxu1 %v5943_v23  ;;  %v14967_v23 = vld [vmem:[#allocation14 + $0xce0] ss:$200 sps:$4 sm:$0xff]  }
 0x44d   : > { %6576 = vmatprep.subr.bf16.mxu0 %v14919_v27  ;;  %v14970_v27 = vld [vmem:[#allocation14 + $0x528] ss:$200 sps:$4 sm:$0xff]  }
 0x44f   : > { %6464 = vmatpush1.bf16.msra.mxu1 %v5940_v35  ;;  %v14975_v35 = vld [vmem:[#allocation14 + $0xe74] ss:$200 sps:$4 sm:$0xff]  }
 0x450   : > { %6577 = vmatpush1.bf16.msra.mxu0 %v14917_v15  ;;  %6521 = vmatprep.subr.bf16.mxu1 %v14922_v21  ;;  %v14978_v21 = vld [vmem:[#allocation14 + $0x6bc] ss:$200 sps:$4 sm:$0xff]  }
 0x451   : > { %6578 = vmatprep.subr.bf16.mxu0 %v14925_v10  ;;  %v14973_v10 = vld [vmem:[#allocation14 + $0xe70] ss:$200 sps:$4 sm:$0xff]  }
 0x452   : > { %6472 = vmatmul.mubr.bf16.vlgmr.msra.gmra.mrb[28].mxu1 %v17507_v20 }
 0x453   : > { %6522 = vmatpush1.bf16.msra.mxu1 %v14920_v48  ;;  %12943 = vmatprep.mubr.msk.bf16.mxu1 %vm5871_vm3, %v17468_v17  ;;  %v14976_v48 = vld [vmem:[#allocation14 + $0x6b8] ss:$200 sps:$4 sm:$0xff]  }
 0x454   : > { %6579 = vmatpush1.bf16.msra.mxu0 %v14923_v37  ;;  %6523 = vmatprep.subr.bf16.mxu1 %v14928_v34  ;;  %v14981_v37 = vld [vmem:[#allocation14 + $0x1004] ss:$200 sps:$4 sm:$0xff]  }
 0x455   : > { %v17595_v56 = vpop.f32.mrb[12].mxu1  ;;  %6580 = vmatprep.subr.bf16.mxu0 %v14931_v40  ;;  %v14984_v34 = vld [vmem:[#allocation14 + $0x84c] ss:$200 sps:$4 sm:$0xff]   ;;  %v2733_v40 = vld [vmem:[#allocation14 + $0x1320] sm:$0x33] }
 0x456   : > { %v17597_v1 = vpop.f32.mrb[13].mxu1 }
 0x457   : > { %v6149_v4 = vpop.f32.mrb[14].mxu1  ;;  %6524 = vmatpush1.bf16.msra.mxu1 %v14926_v49  ;;  %v14982_v49 = vld [vmem:[#allocation14 + $0x848] ss:$200 sps:$4 sm:$0xff]  }
 0x458   : > { %v6150_v32 = vpop.f32.mrb[15].mxu1  ;;  %6581 = vmatpush1.bf16.msra.mxu0 %v14929_v14  ;;  %6525 = vmatprep.subr.bf16.mxu1 %v14934_v55  ;;  %v14987_v14 = vld [vmem:[#allocation14 + $0x1194] ss:$200 sps:$4 sm:$0xff]   ;;  %v12906_v55 = vcombine.high %v2733_v40, %v2733_v40  ;;  %v12905_v4 = vcombine.low %v2733_v40, %v2733_v40  ;;  %v15031_v40 = vld [vmem:[#allocation14 + $0x9d0] ss:$200 sps:$4 sm:$0xff]  }
 0x459   : > { %6582 = vmatprep.subr.bf16.mxu0 %v14937_v63  ;;  %v14990_v63 = vld [vmem:[#allocation14 + $0x9dc] ss:$200 sps:$4 sm:$0xff]  }
 0x45a   : > { %v5955_v32 = vand.u32 %v12906_v55, %v17499_v62  ;;  %v5952_v7 = vand.u32 %v12905_v4, %v17499_v62 }
 0x45b   : > { %6526 = vmatpush1.bf16.msra.mxu1 %v14932_v16  ;;  %v14988_v16 = vld [vmem:[#allocation14 + $0x9d8] ss:$200 sps:$4 sm:$0xff]  }
 0x45c   : > { %6583 = vmatpush1.bf16.msra.mxu0 %v14935_v41  ;;  %6527 = vmatprep.subr.bf16.mxu1 %v14940_v43  ;;  %v14995_v43 = vld [vmem:[#allocation14 + $0xb6c] ss:$200 sps:$4 sm:$0xff]  }
 0x45d   : > { %6584 = vmatprep.subr.bf16.mxu0 %v14943_v44 }
 0x45f   : > { %6528 = vmatpush1.bf16.msra.mxu1 %v14938_v38  ;;  %v14993_v38 = vld [vmem:[#allocation14 + $0xb68] ss:$200 sps:$4 sm:$0xff]  }
 0x460   : > { %6585 = vmatpush1.bf16.msra.mxu0 %v14941_v33  ;;  %6529 = vmatprep.subr.bf16.mxu1 %v14946_v39  ;;  %v14998_v33 = vld [vmem:[#allocation14 + $0x74] ss:$200 sps:$4 sm:$0xff]  }
 0x461   : > { %6586 = vmatprep.subr.bf16.mxu0 %v5961_v47  ;;  %v15001_v39 = vld [vmem:[#allocation14 + $0xcfc] ss:$200 sps:$4 sm:$0xff]   ;;  %v14999_v47 = vld [vmem:[#allocation14 + $0xcf8] ss:$200 sps:$4 sm:$0xff]  }
 0x463   : > { %6530 = vmatpush1.bf16.msra.mxu1 %v14944_v42  ;;  %v15004_v42 = vld [vmem:[#allocation14 + $0x204] ss:$200 sps:$4 sm:$0xff]  }
 0x464   : > { %6587 = vmatpush1.bf16.msra.mxu0 %v5958_v2  ;;  %6531 = vmatprep.subr.bf16.mxu1 %v14951_v8  ;;  %v15007_v2 = vld [vmem:[#allocation14 + $0xe8c] ss:$200 sps:$4 sm:$0xff]   ;;  %v15002_v8 = vld [vmem:[#allocation14 + $0x200] ss:$200 sps:$4 sm:$0xff]  }
 0x465   : > { %6644 = vmatprep.subr.bf16.mxu0 %v14954_v13  ;;  %v15005_v13 = vld [vmem:[#allocation14 + $0xe88] ss:$200 sps:$4 sm:$0xff]  }
 0x467   : > { %6532 = vmatpush1.bf16.msra.mxu1 %v14949_v29  ;;  %6595 = vmatmul.mubr.bf16.vlgmr.msra.gmra.mrb[28].mxu0 %v17507_v20  ;;  %v15010_v29 = vld [vmem:[#allocation14 + $0x394] ss:$200 sps:$4 sm:$0xff]  }
 0x468   : > { %6645 = vmatpush1.bf16.msra.mxu0 %v14952_v30  ;;  %12946 = vmatprep.mubr.msk.bf16.mxu0 %vm5871_vm3, %v17468_v17 }
 0x469   : > { %6533 = vmatprep.subr.bf16.mxu1 %v14957_v0  ;;  %6646 = vmatprep.subr.bf16.mxu0 %v14960_v51  ;;  %v15013_v0 = vld [vmem:[#allocation14 + $0x101c] ss:$200 sps:$4 sm:$0xff]  }
 0x46a   : > { %v17604_v61 = vpop.f32.mrb[12].mxu0 }
 0x46b   : > { %v17606_v54 = vpop.f32.mrb[13].mxu0  ;;  %6534 = vmatpush1.bf16.msra.mxu1 %v14955_v53  ;;  %v2736_v53 = vld [vmem:[#allocation14 + $0x1338] sm:$0x33] }
 0x46c   : > { %v6272_v6 = vpop.f32.mrb[14].mxu0  ;;  %6647 = vmatpush1.bf16.msra.mxu0 %v14958_v57  ;;  %6535 = vmatprep.subr.bf16.mxu1 %v14963_v58  ;;  %v15008_v58 = vld [vmem:[#allocation14 + $0x390] ss:$200 sps:$4 sm:$0xff]  }
 0x46d   : > { %v6273_v60 = vpop.f32.mrb[15].mxu0  ;;  %6648 = vmatprep.subr.bf16.mxu0 %v14966_v52  ;;  %v15016_v6 = vld [vmem:[#allocation14 + $0x524] ss:$200 sps:$4 sm:$0xff]  }
 0x46e   : > { %v1529_v18 = vpop.xlane.xlu1 %1528  ;;  %v15014_v60 = vld [vmem:[#allocation14 + $0x520] ss:$200 sps:$4 sm:$0xff]  }
 0x46f   : > { %v1530_v19 = vsub.f32 %v17544_v50, %v1529_v18  ;;  %6536 = vmatpush1.bf16.msra.mxu1 %v14961_v5  ;;  %v14979_v50 = vld [vmem:[#allocation14 + $0x1000] ss:$200 sps:$4 sm:$0xff]   ;;  %v15022_v18 = vld [vmem:[#allocation14 + $0x6b4] ss:$200 sps:$4 sm:$0xff]  }
 0x470   : > { %6649 = vmatpush1.bf16.msra.mxu0 %v14964_v11  ;;  %6537 = vmatprep.subr.bf16.mxu1 %v14969_v59  ;;  %v15011_v5 = vld [vmem:[#allocation14 + $0x1018] ss:$200 sps:$4 sm:$0xff]   ;;  %v15019_v11 = vld [vmem:[#allocation14 + $0x11ac] ss:$200 sps:$4 sm:$0xff]   ;;  %v12912_v59 = vcombine.high %v2736_v53, %v2736_v53 }
 0x471   : > { %v1531_v15 = vmul.f32 1.442695, %v1530_v19  ;;  %6650 = vmatprep.subr.bf16.mxu0 %v14972_v12  ;;  %v15017_v12 = vld [vmem:[#allocation14 + $0x11a8] ss:$200 sps:$4 sm:$0xff]   ;;  %v12911_v19 = vcombine.low %v2736_v53, %v2736_v53 }
 0x473   : > { %16342 = vpow2.f32 %v1531_v15  ;;  %6538 = vmatpush1.bf16.msra.mxu1 %v14967_v23  ;;  %v5973_v23 = vand.u32 %v12912_v59, %v17499_v62  ;;  %v15027_v15 = vld [vmem:[#allocation14 + $0x844] ss:$200 sps:$4 sm:$0xff]  }
 0x474   : > { %6651 = vmatpush1.bf16.msra.mxu0 %v14970_v27  ;;  %6539 = vmatprep.subr.bf16.mxu1 %v14975_v35  ;;  %v15020_v27 = vld [vmem:[#allocation14 + $0x6b0] ss:$200 sps:$4 sm:$0xff]   ;;  %v5970_v35 = vand.u32 %v12911_v19, %v17499_v62  ;;  %v15072_v19 = vld [vmem:[#allocation14 + $0x80] ss:$200 sps:$4 sm:$0xff]  }
 0x475   : > { %6652 = vmatprep.subr.bf16.mxu0 %v14978_v21  ;;  %v15030_v21 = vld [vmem:[#allocation14 + $0x8c] ss:$200 sps:$4 sm:$0xff]  }
 0x477   : > { %6540 = vmatpush1.bf16.msra.mxu1 %v14973_v10  ;;  %v15025_v10 = vld [vmem:[#allocation14 + $0x840] ss:$200 sps:$4 sm:$0xff]  }
 0x478   : > { %6653 = vmatpush1.bf16.msra.mxu0 %v14976_v48  ;;  %6541 = vmatprep.subr.bf16.mxu1 %v14981_v37  ;;  %v15028_v48 = vld [vmem:[#allocation14 + $0x88] ss:$200 sps:$4 sm:$0xff]   ;;  %v15033_v37 = vld [vmem:[#allocation14 + $0x9d4] ss:$200 sps:$4 sm:$0xff]  }
 0x479   : > { %6654 = vmatprep.subr.bf16.mxu0 %v14984_v34  ;;  %v15036_v34 = vld [vmem:[#allocation14 + $0x21c] ss:$200 sps:$4 sm:$0xff]  }
 0x47b   : > { %6542 = vmatpush1.bf16.msra.mxu1 %v14979_v50  ;;  %v15034_v50 = vld [vmem:[#allocation14 + $0x218] ss:$200 sps:$4 sm:$0xff]  }
 0x47c   : > { %6655 = vmatpush1.bf16.msra.mxu0 %v14982_v49  ;;  %6543 = vmatprep.subr.bf16.mxu1 %v14987_v14  ;;  %v15039_v49 = vld [vmem:[#allocation14 + $0xb64] ss:$200 sps:$4 sm:$0xff]  }
 0x47d   : > { %v17610_v41 = vpop.eup %16342  ;;  %6656 = vmatprep.subr.bf16.mxu0 %v14990_v63  ;;  %v15042_v14 = vld [vmem:[#allocation14 + $0x3ac] ss:$200 sps:$4 sm:$0xff]  }
 0x47e   : > { %v1533_v44 = vsel %vm1526_vm6, %v17610_v41, 0.0 }
 0x47f   : > { %6544 = vmatpush1.bf16.msra.mxu1 %v14985_v3  ;;  %1534 = vadd.xlane.f32.xlu1 %v1533_v44  ;;  %v15037_v3 = vld [vmem:[#allocation14 + $0xb60] ss:$200 sps:$4 sm:$0xff]   ;;  %v15048_v44 = vld [vmem:[#allocation14 + $0x53c] ss:$200 sps:$4 sm:$0xff]  }
 0x480   : > { %6657 = vmatpush1.bf16.msra.mxu0 %v14988_v16  ;;  %6545 = vmatprep.subr.bf16.mxu1 %v5955_v32  ;;  %v15040_v16 = vld [vmem:[#allocation14 + $0x3a8] ss:$200 sps:$4 sm:$0xff]   ;;  %v15045_v32 = vld [vmem:[#allocation14 + $0xcf4] ss:$200 sps:$4 sm:$0xff]  }
 0x481   : > { %6658 = vmatprep.subr.bf16.mxu0 %v14995_v43 }
 0x483   : > { %6546 = vmatpush1.bf16.msra.mxu1 %v5952_v7  ;;  %v15043_v7 = vld [vmem:[#allocation14 + $0xcf0] ss:$200 sps:$4 sm:$0xff]  }
 0x484   : > { %6659 = vmatpush1.bf16.msra.mxu0 %v14993_v38  ;;  %6603 = vmatprep.subr.bf16.mxu1 %v14998_v33  ;;  %v15046_v38 = vld [vmem:[#allocation14 + $0x538] ss:$200 sps:$4 sm:$0xff]   ;;  %v15051_v33 = vld [vmem:[#allocation14 + $0xe84] ss:$200 sps:$4 sm:$0xff]  }
 0x485   : > { %6660 = vmatprep.subr.bf16.mxu0 %v15001_v39  ;;  %v15054_v39 = vld [vmem:[#allocation14 + $0x6cc] ss:$200 sps:$4 sm:$0xff]  }
 0x486   : > { %6554 = vmatmul.mubr.bf16.vlgmr.msra.gmra.mrb[32].mxu1 %v17507_v20 }
 0x487   : > { %6604 = vmatpush1.bf16.msra.mxu1 %v14996_v45  ;;  %12945 = vmatprep.mubr.msk.bf16.mxu1 %vm5871_vm3, %v17468_v17  ;;  %v15049_v45 = vld [vmem:[#allocation14 + $0xe80] ss:$200 sps:$4 sm:$0xff]  }
 0x488   : > { %6661 = vmatpush1.bf16.msra.mxu0 %v14999_v47  ;;  %6605 = vmatprep.subr.bf16.mxu1 %v15004_v42  ;;  %v15052_v47 = vld [vmem:[#allocation14 + $0x6c8] ss:$200 sps:$4 sm:$0xff]   ;;  %v15057_v42 = vld [vmem:[#allocation14 + $0x1014] ss:$200 sps:$4 sm:$0xff]  }
 0x489   : > { %v17618_v30 = vpop.f32.mrb[16].mxu1  ;;  %6662 = vmatprep.subr.bf16.mxu0 %v15007_v2  ;;  %v15060_v2 = vld [vmem:[#allocation14 + $0x85c] ss:$200 sps:$4 sm:$0xff]  }
 0x48a   : > { %v17620_v51 = vpop.f32.mrb[17].mxu1 }
 0x48b   : > { %v6231_v57 = vpop.f32.mrb[18].mxu1  ;;  %6606 = vmatpush1.bf16.msra.mxu1 %v15002_v8  ;;  %v2735_v8 = vld [vmem:[#allocation14 + $0x1330] sm:$0x33] }
 0x48c   : > { %v6232_v52 = vpop.f32.mrb[19].mxu1  ;;  %6663 = vmatpush1.bf16.msra.mxu0 %v15005_v13  ;;  %6607 = vmatprep.subr.bf16.mxu1 %v15010_v29  ;;  %v15055_v13 = vld [vmem:[#allocation14 + $0x1010] ss:$200 sps:$4 sm:$0xff]   ;;  %v12910_v53 = vcombine.high %v2735_v8, %v2735_v8  ;;  %v15066_v57 = vld [vmem:[#allocation14 + $0x9ec] ss:$200 sps:$4 sm:$0xff]  }
 0x48d   : > { %6664 = vmatprep.subr.bf16.mxu0 %v15013_v0  ;;  %v15058_v29 = vld [vmem:[#allocation14 + $0x858] ss:$200 sps:$4 sm:$0xff]   ;;  %v15063_v0 = vld [vmem:[#allocation14 + $0x11a4] ss:$200 sps:$4 sm:$0xff]   ;;  %v12909_v52 = vcombine.low %v2735_v8, %v2735_v8 }
 0x48e   : > { %v15104_v8 = vld [vmem:[#allocation14 + $0x98] ss:$200 sps:$4 sm:$0xff]  }
 0x48f   : > { %6608 = vmatpush1.bf16.msra.mxu1 %v15008_v58  ;;  %v15061_v58 = vld [vmem:[#allocation14 + $0x11a0] ss:$200 sps:$4 sm:$0xff]   ;;  %v5964_v59 = vand.u32 %v12909_v52, %v17499_v62 }
 0x490   : > { %6665 = vmatpush1.bf16.msra.mxu0 %v15011_v5  ;;  %6609 = vmatprep.subr.bf16.mxu1 %v15016_v6  ;;  %v15064_v5 = vld [vmem:[#allocation14 + $0x9e8] ss:$200 sps:$4 sm:$0xff]   ;;  %v5967_v6 = vand.u32 %v12910_v53, %v17499_v62 }
 0x491   : > { %6666 = vmatprep.subr.bf16.mxu0 %v15019_v11  ;;  %v15071_v11 = vld [vmem:[#allocation14 + $0xb7c] ss:$200 sps:$4 sm:$0xff]   ;;  %v15110_v53 = vld [vmem:[#allocation14 + $0x228] ss:$200 sps:$4 sm:$0xff]  }
 0x493   : > { %6610 = vmatpush1.bf16.msra.mxu1 %v15014_v60  ;;  %v15069_v60 = vld [vmem:[#allocation14 + $0xb78] ss:$200 sps:$4 sm:$0xff]  }
 0x494   : > { %6667 = vmatpush1.bf16.msra.mxu0 %v15017_v12  ;;  %6611 = vmatprep.subr.bf16.mxu1 %v15022_v18  ;;  %v15074_v12 = vld [vmem:[#allocation14 + $0x84] ss:$200 sps:$4 sm:$0xff]  }
 0x495   : > { %6668 = vmatprep.subr.bf16.mxu0 %v5973_v23  ;;  %v15077_v18 = vld [vmem:[#allocation14 + $0xd0c] ss:$200 sps:$4 sm:$0xff]   ;;  %v15075_v23 = vld [vmem:[#allocation14 + $0xd08] ss:$200 sps:$4 sm:$0xff]  }
 0x497   : > { %6612 = vmatpush1.bf16.msra.mxu1 %v15020_v27  ;;  %v15080_v27 = vld [vmem:[#allocation14 + $0x214] ss:$200 sps:$4 sm:$0xff]  }
 0x498   : > { %6669 = vmatpush1.bf16.msra.mxu0 %v5970_v35  ;;  %6613 = vmatprep.subr.bf16.mxu1 %v15027_v15  ;;  %v15083_v35 = vld [vmem:[#allocation14 + $0xe9c] ss:$200 sps:$4 sm:$0xff]   ;;  %v15078_v15 = vld [vmem:[#allocation14 + $0x210] ss:$200 sps:$4 sm:$0xff]  }
 0x499   : > { %6726 = vmatprep.subr.bf16.mxu0 %v15030_v21  ;;  %v15081_v21 = vld [vmem:[#allocation14 + $0xe98] ss:$200 sps:$4 sm:$0xff]  }
 0x49b   : > { %6614 = vmatpush1.bf16.msra.mxu1 %v15025_v10  ;;  %6677 = vmatmul.mubr.bf16.vlgmr.msra.gmra.mrb[32].mxu0 %v17507_v20  ;;  %v15086_v10 = vld [vmem:[#allocation14 + $0x3a4] ss:$200 sps:$4 sm:$0xff]  }
 0x49c   : > { %6727 = vmatpush1.bf16.msra.mxu0 %v15028_v48  ;;  %12948 = vmatprep.mubr.msk.bf16.mxu0 %vm5871_vm3, %v17468_v17 }
 0x49d   : > { %6615 = vmatprep.subr.bf16.mxu1 %v15033_v37  ;;  %6728 = vmatprep.subr.bf16.mxu0 %v15036_v34  ;;  %v15089_v37 = vld [vmem:[#allocation14 + $0x102c] ss:$200 sps:$4 sm:$0xff]  }
 0x49e   : > { %v17627_v55 = vpop.f32.mrb[16].mxu0 }
 0x49f   : > { %v17629_v63 = vpop.f32.mrb[17].mxu0  ;;  %6616 = vmatpush1.bf16.msra.mxu1 %v15031_v40  ;;  %v2738_v40 = vld [vmem:[#allocation14 + $0x1348] sm:$0x33] }
 0x4a0   : > { %v6354_v4 = vpop.f32.mrb[18].mxu0  ;;  %6729 = vmatpush1.bf16.msra.mxu0 %v15034_v50  ;;  %6617 = vmatprep.subr.bf16.mxu1 %v15039_v49  ;;  %v15084_v49 = vld [vmem:[#allocation14 + $0x3a0] ss:$200 sps:$4 sm:$0xff]  }
 0x4a1   : > { %v6355_v43 = vpop.f32.mrb[19].mxu0  ;;  %6730 = vmatprep.subr.bf16.mxu0 %v15042_v14  ;;  %v15092_v4 = vld [vmem:[#allocation14 + $0x534] ss:$200 sps:$4 sm:$0xff]  }
 0x4a2   : > { %v15090_v43 = vld [vmem:[#allocation14 + $0x530] ss:$200 sps:$4 sm:$0xff]  }
 0x4a3   : > { %6618 = vmatpush1.bf16.msra.mxu1 %v15037_v3  ;;  %v15087_v3 = vld [vmem:[#allocation14 + $0x1028] ss:$200 sps:$4 sm:$0xff]  }
 0x4a4   : > { %6731 = vmatpush1.bf16.msra.mxu0 %v15040_v16  ;;  %6619 = vmatprep.subr.bf16.mxu1 %v15045_v32  ;;  %v15095_v16 = vld [vmem:[#allocation14 + $0x11bc] ss:$200 sps:$4 sm:$0xff]   ;;  %v12916_v32 = vcombine.high %v2738_v40, %v2738_v40 }
 0x4a5   : > { %6732 = vmatprep.subr.bf16.mxu0 %v15048_v44  ;;  %v15093_v44 = vld [vmem:[#allocation14 + $0x11b8] ss:$200 sps:$4 sm:$0xff]  }
 0x4a7   : > { %6620 = vmatpush1.bf16.msra.mxu1 %v15043_v7  ;;  %v15098_v7 = vld [vmem:[#allocation14 + $0x6c4] ss:$200 sps:$4 sm:$0xff]  }
 0x4a8   : > { %6733 = vmatpush1.bf16.msra.mxu0 %v15046_v38  ;;  %6621 = vmatprep.subr.bf16.mxu1 %v15051_v33  ;;  %v12915_v38 = vcombine.low %v2738_v40, %v2738_v40  ;;  %v5985_v33 = vand.u32 %v12916_v32, %v17499_v62  ;;  %v2737_v40 = vld [vmem:[#allocation14 + $0x1340] sm:$0x33] }
 0x4a9   : > { %6734 = vmatprep.subr.bf16.mxu0 %v15054_v39  ;;  %v15096_v39 = vld [vmem:[#allocation14 + $0x6c0] ss:$200 sps:$4 sm:$0xff]   ;;  %v12913_v32 = vcombine.low %v2737_v40, %v2737_v40 }
 0x4ab   : > { %6622 = vmatpush1.bf16.msra.mxu1 %v15049_v45  ;;  %v5982_v45 = vand.u32 %v12915_v38, %v17499_v62  ;;  %v5976_v38 = vand.u32 %v12913_v32, %v17499_v62  ;;  %v15183_v32 = vld [vmem:[#allocation14 + $0x9f0] ss:$200 sps:$4 sm:$0xff]  }
 0x4ac   : > { %6735 = vmatpush1.bf16.msra.mxu0 %v15052_v47  ;;  %6623 = vmatprep.subr.bf16.mxu1 %v15057_v42  ;;  %v15103_v47 = vld [vmem:[#allocation14 + $0x854] ss:$200 sps:$4 sm:$0xff]  }
 0x4ad   : > { %6736 = vmatprep.subr.bf16.mxu0 %v15060_v2  ;;  %v15106_v42 = vld [vmem:[#allocation14 + $0x9c] ss:$200 sps:$4 sm:$0xff]   ;;  %v15101_v2 = vld [vmem:[#allocation14 + $0x850] ss:$200 sps:$4 sm:$0xff]  }
 0x4af   : > { %6624 = vmatpush1.bf16.msra.mxu1 %v15055_v13  ;;  %v15109_v13 = vld [vmem:[#allocation14 + $0x9e4] ss:$200 sps:$4 sm:$0xff]  }
 0x4b0   : > { %6737 = vmatpush1.bf16.msra.mxu0 %v15058_v29  ;;  %6625 = vmatprep.subr.bf16.mxu1 %v15063_v0  ;;  %v15112_v29 = vld [vmem:[#allocation14 + $0x22c] ss:$200 sps:$4 sm:$0xff]   ;;  %v15107_v0 = vld [vmem:[#allocation14 + $0x9e0] ss:$200 sps:$4 sm:$0xff]  }
 0x4b1   : > { %6738 = vmatprep.subr.bf16.mxu0 %v15066_v57  ;;  %v15115_v57 = vld [vmem:[#allocation14 + $0xb74] ss:$200 sps:$4 sm:$0xff]  }
 0x4b3   : > { %6626 = vmatpush1.bf16.msra.mxu1 %v15061_v58  ;;  %v15118_v58 = vld [vmem:[#allocation14 + $0x3bc] ss:$200 sps:$4 sm:$0xff]  }
 0x4b4   : > { %6739 = vmatpush1.bf16.msra.mxu0 %v15064_v5  ;;  %6627 = vmatprep.subr.bf16.mxu1 %v5967_v6  ;;  %v15113_v6 = vld [vmem:[#allocation14 + $0xb70] ss:$200 sps:$4 sm:$0xff]  }
 0x4b5   : > { %6740 = vmatprep.subr.bf16.mxu0 %v15071_v11 }
 0x4b7   : > { %6628 = vmatpush1.bf16.msra.mxu1 %v5964_v59  ;;  %v15116_v59 = vld [vmem:[#allocation14 + $0x3b8] ss:$200 sps:$4 sm:$0xff]  }
 0x4b8   : > { %6741 = vmatpush1.bf16.msra.mxu0 %v15069_v60  ;;  %6685 = vmatprep.subr.bf16.mxu1 %v15074_v12  ;;  %v15121_v60 = vld [vmem:[#allocation14 + $0xd04] ss:$200 sps:$4 sm:$0xff]  }
 0x4b9   : > { %6742 = vmatprep.subr.bf16.mxu0 %v15077_v18  ;;  %v15124_v18 = vld [vmem:[#allocation14 + $0x54c] ss:$200 sps:$4 sm:$0xff]  }
 0x4ba   : > { %6636 = vmatmul.mubr.bf16.vlgmr.msra.gmra.mrb[36].mxu1 %v17507_v20 }
 0x4bb   : > { %6686 = vmatpush1.bf16.msra.mxu1 %v15072_v19  ;;  %12947 = vmatprep.mubr.msk.bf16.mxu1 %vm5871_vm3, %v17468_v17  ;;  %v15119_v19 = vld [vmem:[#allocation14 + $0xd00] ss:$200 sps:$4 sm:$0xff]  }
 0x4bc   : > { %6743 = vmatpush1.bf16.msra.mxu0 %v15075_v23  ;;  %6687 = vmatprep.subr.bf16.mxu1 %v15080_v27  ;;  %v15122_v23 = vld [vmem:[#allocation14 + $0x548] ss:$200 sps:$4 sm:$0xff]   ;;  %v15127_v27 = vld [vmem:[#allocation14 + $0xe94] ss:$200 sps:$4 sm:$0xff]  }
 0x4bd   : > { %v17636_v48 = vpop.f32.mrb[20].mxu1  ;;  %6744 = vmatprep.subr.bf16.mxu0 %v15083_v35  ;;  %v15130_v35 = vld [vmem:[#allocation14 + $0x6dc] ss:$200 sps:$4 sm:$0xff]  }
 0x4be   : > { %v17638_v34 = vpop.f32.mrb[21].mxu1 }
 0x4bf   : > { %v6313_v50 = vpop.f32.mrb[22].mxu1  ;;  %6688 = vmatpush1.bf16.msra.mxu1 %v15078_v15  ;;  %v15125_v15 = vld [vmem:[#allocation14 + $0xe90] ss:$200 sps:$4 sm:$0xff]  }
 0x4c0   : > { %v6314_v14 = vpop.f32.mrb[23].mxu1  ;;  %6745 = vmatpush1.bf16.msra.mxu0 %v15081_v21  ;;  %6689 = vmatprep.subr.bf16.mxu1 %v15086_v10  ;;  %v15128_v21 = vld [vmem:[#allocation14 + $0x6d8] ss:$200 sps:$4 sm:$0xff]   ;;  %v15133_v10 = vld [vmem:[#allocation14 + $0x1024] ss:$200 sps:$4 sm:$0xff]  }
 0x4c1   : > { %6746 = vmatprep.subr.bf16.mxu0 %v15089_v37  ;;  %v15136_v37 = vld [vmem:[#allocation14 + $0x86c] ss:$200 sps:$4 sm:$0xff]   ;;  %v15131_v50 = vld [vmem:[#allocation14 + $0x1020] ss:$200 sps:$4 sm:$0xff]  }
 0x4c2   : > { %v15139_v14 = vld [vmem:[#allocation14 + $0x11b4] ss:$200 sps:$4 sm:$0xff]  }
 0x4c3   : > { %6690 = vmatpush1.bf16.msra.mxu1 %v15084_v49  ;;  %v15134_v49 = vld [vmem:[#allocation14 + $0x868] ss:$200 sps:$4 sm:$0xff]  }
 0x4c4   : > { %6747 = vmatpush1.bf16.msra.mxu0 %v15087_v3  ;;  %6691 = vmatprep.subr.bf16.mxu1 %v15092_v4  ;;  %v12914_v3 = vcombine.high %v2737_v40, %v2737_v40  ;;  %v15142_v4 = vld [vmem:[#allocation14 + $0x9fc] ss:$200 sps:$4 sm:$0xff]  }
 0x4c5   : > { %6748 = vmatprep.subr.bf16.mxu0 %v15095_v16  ;;  %v15137_v16 = vld [vmem:[#allocation14 + $0x11b0] ss:$200 sps:$4 sm:$0xff]  }
 0x4c7   : > { %6692 = vmatpush1.bf16.msra.mxu1 %v15090_v43  ;;  %v15140_v43 = vld [vmem:[#allocation14 + $0x9f8] ss:$200 sps:$4 sm:$0xff]  }
 0x4c8   : > { %6749 = vmatpush1.bf16.msra.mxu0 %v15093_v44  ;;  %6693 = vmatprep.subr.bf16.mxu1 %v15098_v7  ;;  %v5979_v44 = vand.u32 %v12914_v3, %v17499_v62  ;;  %v15147_v7 = vld [vmem:[#allocation14 + $0xb8c] ss:$200 sps:$4 sm:$0xff]   ;;  %v15180_v3 = vld [vmem:[#allocation14 + $0xa8] ss:$200 sps:$4 sm:$0xff]  }
 0x4c9   : > { %6750 = vmatprep.subr.bf16.mxu0 %v5985_v33  ;;  %v15145_v33 = vld [vmem:[#allocation14 + $0xb88] ss:$200 sps:$4 sm:$0xff]  }
 0x4cb   : > { %6694 = vmatpush1.bf16.msra.mxu1 %v15096_v39  ;;  %v15150_v39 = vld [vmem:[#allocation14 + $0x94] ss:$200 sps:$4 sm:$0xff]  }
 0x4cc   : > { %6751 = vmatpush1.bf16.msra.mxu0 %v5982_v45  ;;  %6695 = vmatprep.subr.bf16.mxu1 %v15103_v47  ;;  %v15153_v45 = vld [vmem:[#allocation14 + $0xd1c] ss:$200 sps:$4 sm:$0xff]   ;;  %v15148_v47 = vld [vmem:[#allocation14 + $0x90] ss:$200 sps:$4 sm:$0xff]  }
 0x4cd   : > { %6808 = vmatprep.subr.bf16.mxu0 %v15106_v42  ;;  %v15151_v42 = vld [vmem:[#allocation14 + $0xd18] ss:$200 sps:$4 sm:$0xff]  }
 0x4cf   : > { %6696 = vmatpush1.bf16.msra.mxu1 %v15101_v2  ;;  %6759 = vmatmul.mubr.bf16.vlgmr.msra.gmra.mrb[36].mxu0 %v17507_v20  ;;  %v15156_v2 = vld [vmem:[#allocation14 + $0x224] ss:$200 sps:$4 sm:$0xff]  }
 0x4d0   : > { %6809 = vmatpush1.bf16.msra.mxu0 %v15104_v8  ;;  %12950 = vmatprep.mubr.msk.bf16.mxu0 %vm5871_vm3, %v17468_v17  ;;  %v15159_v8 = vld [vmem:[#allocation14 + $0xeac] ss:$200 sps:$4 sm:$0xff]  }
 0x4d1   : > { %6697 = vmatprep.subr.bf16.mxu1 %v15109_v13  ;;  %6810 = vmatprep.subr.bf16.mxu0 %v15112_v29  ;;  %v15154_v13 = vld [vmem:[#allocation14 + $0x220] ss:$200 sps:$4 sm:$0xff]  }
 0x4d2   : > { %v17645_v52 = vpop.f32.mrb[20].mxu0  ;;  %v15157_v29 = vld [vmem:[#allocation14 + $0xea8] ss:$200 sps:$4 sm:$0xff]  }
 0x4d3   : > { %v17647_v5 = vpop.f32.mrb[21].mxu0  ;;  %6698 = vmatpush1.bf16.msra.mxu1 %v15107_v0  ;;  %v15162_v0 = vld [vmem:[#allocation14 + $0x3b4] ss:$200 sps:$4 sm:$0xff]  }
 0x4d4   : > { %v6436_v11 = vpop.f32.mrb[22].mxu0  ;;  %6811 = vmatpush1.bf16.msra.mxu0 %v15110_v53  ;;  %6699 = vmatprep.subr.bf16.mxu1 %v15115_v57  ;;  %v15165_v57 = vld [vmem:[#allocation14 + $0x103c] ss:$200 sps:$4 sm:$0xff]  }
 0x4d5   : > { %v6437_v12 = vpop.f32.mrb[23].mxu0  ;;  %6812 = vmatprep.subr.bf16.mxu0 %v15118_v58 }
 0x4d6   : > { %v15163_v12 = vld [vmem:[#allocation14 + $0x1038] ss:$200 sps:$4 sm:$0xff]  }
 0x4d7   : > { %6700 = vmatpush1.bf16.msra.mxu1 %v15113_v6  ;;  %v2740_v6 = vld [vmem:[#allocation14 + $0x1358] sm:$0x33] }
 0x4d8   : > { %6813 = vmatpush1.bf16.msra.mxu0 %v15116_v59  ;;  %6701 = vmatprep.subr.bf16.mxu1 %v15121_v60  ;;  %v15160_v59 = vld [vmem:[#allocation14 + $0x3b0] ss:$200 sps:$4 sm:$0xff]  }
 0x4d9   : > { %6814 = vmatprep.subr.bf16.mxu0 %v15124_v18  ;;  %v15168_v18 = vld [vmem:[#allocation14 + $0x544] ss:$200 sps:$4 sm:$0xff]  }
 0x4db   : > { %6702 = vmatpush1.bf16.msra.mxu1 %v15119_v19  ;;  %v15171_v19 = vld [vmem:[#allocation14 + $0x11cc] ss:$200 sps:$4 sm:$0xff]  }
 0x4dc   : > { %6815 = vmatpush1.bf16.msra.mxu0 %v15122_v23  ;;  %6703 = vmatprep.subr.bf16.mxu1 %v15127_v27  ;;  %v12920_v23 = vcombine.high %v2740_v6, %v2740_v6  ;;  %v15166_v27 = vld [vmem:[#allocation14 + $0x540] ss:$200 sps:$4 sm:$0xff]  }
 0x4dd   : > { %6816 = vmatprep.subr.bf16.mxu0 %v15130_v35  ;;  %v15169_v35 = vld [vmem:[#allocation14 + $0x11c8] ss:$200 sps:$4 sm:$0xff]  }
 0x4df   : > { %6704 = vmatpush1.bf16.msra.mxu1 %v15125_v15  ;;  %v15174_v15 = vld [vmem:[#allocation14 + $0x6d4] ss:$200 sps:$4 sm:$0xff]  }
 0x4e0   : > { %6817 = vmatpush1.bf16.msra.mxu0 %v15128_v21  ;;  %6705 = vmatprep.subr.bf16.mxu1 %v15133_v10  ;;  %v12919_v21 = vcombine.low %v2740_v6, %v2740_v6  ;;  %v5997_v10 = vand.u32 %v12920_v23, %v17499_v62  ;;  %v15206_v6 = vld [vmem:[#allocation14 + $0x6ec] ss:$200 sps:$4 sm:$0xff]   ;;  %v15207_v23 = vld [vmem:[#allocation14 + $0x1030] ss:$200 sps:$4 sm:$0xff]  }
 0x4e1   : > { %6818 = vmatprep.subr.bf16.mxu0 %v15136_v37  ;;  %v15172_v37 = vld [vmem:[#allocation14 + $0x6d0] ss:$200 sps:$4 sm:$0xff]  }
 0x4e2   : > { %v5994_v40 = vand.u32 %v12919_v21, %v17499_v62  ;;  %v15218_v21 = vld [vmem:[#allocation14 + $0xa0c] ss:$200 sps:$4 sm:$0xff]  }
 0x4e3   : > { %6706 = vmatpush1.bf16.msra.mxu1 %v15131_v50  ;;  %v15179_v50 = vld [vmem:[#allocation14 + $0x864] ss:$200 sps:$4 sm:$0xff]  }
 0x4e4   : > { %6819 = vmatpush1.bf16.msra.mxu0 %v15134_v49  ;;  %6707 = vmatprep.subr.bf16.mxu1 %v15139_v14  ;;  %v15182_v49 = vld [vmem:[#allocation14 + $0xac] ss:$200 sps:$4 sm:$0xff]   ;;  %v15177_v14 = vld [vmem:[#allocation14 + $0x860] ss:$200 sps:$4 sm:$0xff]  }
 0x4e5   : > { %6820 = vmatprep.subr.bf16.mxu0 %v15142_v4  ;;  %v15185_v4 = vld [vmem:[#allocation14 + $0x9f4] ss:$200 sps:$4 sm:$0xff]  }
 0x4e7   : > { %6708 = vmatpush1.bf16.msra.mxu1 %v15137_v16  ;;  %v15188_v16 = vld [vmem:[#allocation14 + $0x23c] ss:$200 sps:$4 sm:$0xff]  }
 0x4e8   : > { %6821 = vmatpush1.bf16.msra.mxu0 %v15140_v43  ;;  %6709 = vmatprep.subr.bf16.mxu1 %v5979_v44  ;;  %v15186_v43 = vld [vmem:[#allocation14 + $0x238] ss:$200 sps:$4 sm:$0xff]   ;;  %v15191_v44 = vld [vmem:[#allocation14 + $0xb84] ss:$200 sps:$4 sm:$0xff]  }
 0x4e9   : > { %6822 = vmatprep.subr.bf16.mxu0 %v15147_v7  ;;  %v15194_v7 = vld [vmem:[#allocation14 + $0x3cc] ss:$200 sps:$4 sm:$0xff]  }
 0x4eb   : > { %6710 = vmatpush1.bf16.msra.mxu1 %v5976_v38 }
 0x4ec   : > { %6823 = vmatpush1.bf16.msra.mxu0 %v15145_v33  ;;  %6767 = vmatprep.subr.bf16.mxu1 %v15150_v39  ;;  %v15189_v39 = vld [vmem:[#allocation14 + $0xb80] ss:$200 sps:$4 sm:$0xff]  }
 0x4ed   : > { %6824 = vmatprep.subr.bf16.mxu0 %v15153_v45 }
 0x4ee   : > { %6718 = vmatmul.mubr.bf16.vlgmr.msra.gmra.mrb[40].mxu1 %v17507_v20 }
 0x4ef   : > { %6768 = vmatpush1.bf16.msra.mxu1 %v15148_v47  ;;  %12949 = vmatprep.mubr.msk.bf16.mxu1 %vm5871_vm3, %v17468_v17  ;;  %v15192_v47 = vld [vmem:[#allocation14 + $0x3c8] ss:$200 sps:$4 sm:$0xff]  }
 0x4f0   : > { %6825 = vmatpush1.bf16.msra.mxu0 %v15151_v42  ;;  %6769 = vmatprep.subr.bf16.mxu1 %v15156_v2  ;;  %v15197_v42 = vld [vmem:[#allocation14 + $0xd14] ss:$200 sps:$4 sm:$0xff]  }
 0x4f1   : > { %v17654_v53 = vpop.f32.mrb[24].mxu1  ;;  %6826 = vmatprep.subr.bf16.mxu0 %v15159_v8  ;;  %v15200_v8 = vld [vmem:[#allocation14 + $0x55c] ss:$200 sps:$4 sm:$0xff]  }
 0x4f2   : > { %v17656_v58 = vpop.f32.mrb[25].mxu1 }
 0x4f3   : > { %v6395_v11 = vpop.f32.mrb[26].mxu1  ;;  %6770 = vmatpush1.bf16.msra.mxu1 %v15154_v13  ;;  %v15195_v13 = vld [vmem:[#allocation14 + $0xd10] ss:$200 sps:$4 sm:$0xff]  }
 0x4f4   : > { %v6396_v60 = vpop.f32.mrb[27].mxu1  ;;  %6827 = vmatpush1.bf16.msra.mxu0 %v15157_v29  ;;  %6771 = vmatprep.subr.bf16.mxu1 %v15162_v0  ;;  %v15198_v0 = vld [vmem:[#allocation14 + $0x558] ss:$200 sps:$4 sm:$0xff]  }
 0x4f5   : > { %6828 = vmatprep.subr.bf16.mxu0 %v15165_v57  ;;  %v15203_v57 = vld [vmem:[#allocation14 + $0xea4] ss:$200 sps:$4 sm:$0xff]   ;;  %v15201_v11 = vld [vmem:[#allocation14 + $0xea0] ss:$200 sps:$4 sm:$0xff]   ;;  %v15209_v60 = vld [vmem:[#allocation14 + $0x1034] ss:$200 sps:$4 sm:$0xff]  }
 0x4f7   : > { %6772 = vmatpush1.bf16.msra.mxu1 %v15160_v59  ;;  %v15204_v59 = vld [vmem:[#allocation14 + $0x6e8] ss:$200 sps:$4 sm:$0xff]  }
 0x4f8   : > { %6829 = vmatpush1.bf16.msra.mxu0 %v15163_v12  ;;  %6773 = vmatprep.subr.bf16.mxu1 %v15168_v18  ;;  %v15212_v12 = vld [vmem:[#allocation14 + $0x87c] ss:$200 sps:$4 sm:$0xff]   ;;  %v2739_v18 = vld [vmem:[#allocation14 + $0x1350] sm:$0x33] }
 0x4f9   : > { %6830 = vmatprep.subr.bf16.mxu0 %v15171_v19  ;;  %v12280_v19 = vld [vmem:[#allocation10] ss:$0 sm:$0xff] }
 0x4fb   : > { %6774 = vmatpush1.bf16.msra.mxu1 %v15166_v27  ;;  %v15210_v27 = vld [vmem:[#allocation14 + $0x878] ss:$200 sps:$4 sm:$0xff]  }
 0x4fc   : > { %6831 = vmatpush1.bf16.msra.mxu0 %v15169_v35  ;;  %6775 = vmatprep.subr.bf16.mxu1 %v15174_v15  ;;  %v15215_v35 = vld [vmem:[#allocation14 + $0x11c4] ss:$200 sps:$4 sm:$0xff]   ;;  %v12918_v15 = vcombine.high %v2739_v18, %v2739_v18 }
 0x4fd   : > { %6832 = vmatprep.subr.bf16.mxu0 %v5997_v10  ;;  %v2092_v10 = vadd.f32 %v12280_v19, %v2084_v36 }
 0x4ff   : > { %6776 = vmatpush1.bf16.msra.mxu1 %v15172_v37 }
 0x500   : > { %6833 = vmatpush1.bf16.msra.mxu0 %v5994_v40  ;;  %6777 = vmatprep.subr.bf16.mxu1 %v15179_v50  ;;  %v15213_v40 = vld [vmem:[#allocation14 + $0x11c0] ss:$200 sps:$4 sm:$0xff]   ;;  %v12917_v50 = vcombine.low %v2739_v18, %v2739_v18  ;;  %v15247_v18 = vld [vmem:[#allocation14 + $0x11dc] ss:$200 sps:$4 sm:$0xff]  }
 0x501   : > { %6890 = vmatprep.subr.bf16.mxu0 %v15182_v49  ;;  %v15216_v49 = vld [vmem:[#allocation14 + $0xa08] ss:$200 sps:$4 sm:$0xff]  }
 0x503   : > { %6778 = vmatpush1.bf16.msra.mxu1 %v15177_v14  ;;  %6841 = vmatmul.mubr.bf16.vlgmr.msra.gmra.mrb[40].mxu0 %v17507_v20  ;;  %v5991_v14 = vand.u32 %v12918_v15, %v17499_v62 }
 0x504   : > { %6891 = vmatpush1.bf16.msra.mxu0 %v15180_v3  ;;  %12952 = vmatprep.mubr.msk.bf16.mxu0 %vm5871_vm3, %v17468_v17 }
 0x505   : > { %6779 = vmatprep.subr.bf16.mxu1 %v15185_v4  ;;  %6892 = vmatprep.subr.bf16.mxu0 %v15188_v16  ;;  %v15223_v4 = vld [vmem:[#allocation14 + $0xb9c] ss:$200 sps:$4 sm:$0xff]   ;;  %v2093_v16 = vmax.f32 %v2092_v10, 0.0 }
 0x506   : > { %v17663_v38 = vpop.f32.mrb[24].mxu0 }
 0x507   : > { %v17665_v33 = vpop.f32.mrb[25].mxu0  ;;  %6780 = vmatpush1.bf16.msra.mxu1 %v15183_v32 }
 0x508   : > { %v6518_v45 = vpop.f32.mrb[26].mxu0  ;;  %6893 = vmatpush1.bf16.msra.mxu0 %v15186_v43  ;;  %6781 = vmatprep.subr.bf16.mxu1 %v15191_v44  ;;  %v5988_v43 = vand.u32 %v12917_v50, %v17499_v62  ;;  %v15229_v44 = vld [vmem:[#allocation14 + $0xd2c] ss:$200 sps:$4 sm:$0xff]  }
 0x509   : > { %v6519_v2 = vpop.f32.mrb[27].mxu0  ;;  %6894 = vmatprep.subr.bf16.mxu0 %v15194_v7  ;;  %v15232_v45 = vld [vmem:[#allocation14 + $0x234] ss:$200 sps:$4 sm:$0xff]  }
 0x50a   : > { %v15233_v2 = vld [vmem:[#allocation14 + $0xeb8] ss:$200 sps:$4 sm:$0xff]  }
 0x50b   : > { %6782 = vmatpush1.bf16.msra.mxu1 %v15189_v39  ;;  %v15224_v39 = vld [vmem:[#allocation14 + $0xa0] ss:$200 sps:$4 sm:$0xff]  }
 0x50c   : > { %6895 = vmatpush1.bf16.msra.mxu0 %v15192_v47  ;;  %v1535_v29 = vpop.xlane.xlu1 %1534  ;;  %6783 = vmatprep.subr.bf16.mxu1 %v15197_v42  ;;  %v15235_v47 = vld [vmem:[#allocation14 + $0xebc] ss:$200 sps:$4 sm:$0xff]   ;;  %v15230_v42 = vld [vmem:[#allocation14 + $0x230] ss:$200 sps:$4 sm:$0xff]  }
 0x50d   : > { %16344 = vrcp.f32 %v1535_v29  ;;  %6896 = vmatprep.subr.bf16.mxu0 %v15200_v8  ;;  %v15238_v8 = vld [vmem:[#allocation14 + $0x3c4] ss:$200 sps:$4 sm:$0xff]  }
 0x50e   : > { %v15241_v29 = vld [vmem:[#allocation14 + $0x104c] ss:$200 sps:$4 sm:$0xff]  }
 0x50f   : > { %6784 = vmatpush1.bf16.msra.mxu1 %v15195_v13 }
 0x510   : > { %6897 = vmatpush1.bf16.msra.mxu0 %v15198_v0  ;;  %6785 = vmatprep.subr.bf16.mxu1 %v15203_v57  ;;  %v2742_v57 = vld [vmem:[#allocation14 + $0x1368] sm:$0x33] }
 0x511   : > { %6898 = vmatprep.subr.bf16.mxu0 %v15206_v6  ;;  %v12924_v19 = vcombine.high %v2742_v57, %v2742_v57  ;;  %v12923_v10 = vcombine.low %v2742_v57, %v2742_v57  ;;  %v15276_v57 = vld [vmem:[#allocation14 + $0x56c] ss:$200 sps:$4 sm:$0xff]  }
 0x513   : > { %6786 = vmatpush1.bf16.msra.mxu1 %v15201_v11  ;;  %v15236_v11 = vld [vmem:[#allocation14 + $0x3c0] ss:$200 sps:$4 sm:$0xff]   ;;  %v6009_v50 = vand.u32 %v12924_v19, %v17499_v62  ;;  %v15285_v19 = vld [vmem:[#allocation14 + $0x1044] ss:$200 sps:$4 sm:$0xff]  }
 0x514   : > { %6899 = vmatpush1.bf16.msra.mxu0 %v15204_v59  ;;  %6787 = vmatprep.subr.bf16.mxu1 %v15209_v60  ;;  %v15239_v60 = vld [vmem:[#allocation14 + $0x1048] ss:$200 sps:$4 sm:$0xff]  }
 0x515   : > { %6900 = vmatprep.subr.bf16.mxu0 %v15212_v12  ;;  %v15244_v12 = vld [vmem:[#allocation14 + $0x554] ss:$200 sps:$4 sm:$0xff]  }
 0x517   : > { %v16345_v37 = vpop.eup %16344  ;;  %6788 = vmatpush1.bf16.msra.mxu1 %v15207_v23 }
 0x518   : > { %6901 = vmatpush1.bf16.msra.mxu0 %v15210_v27  ;;  %6789 = vmatprep.subr.bf16.mxu1 %v15215_v35  ;;  %v1537_v3 = vmul.f32 %v16345_v37, %v17610_v41  ;;  %v15227_v41 = vld [vmem:[#allocation14 + $0xd28] ss:$200 sps:$4 sm:$0xff]  }
 0x519   : > { %6902 = vmatprep.subr.bf16.mxu0 %v15218_v21  ;;  %v15242_v27 = vld [vmem:[#allocation14 + $0x550] ss:$200 sps:$4 sm:$0xff]  }
 0x51a   : > { %v2094_v32 = vmul.f32 %v1537_v3, %v1537_v3  ;;  %v15245_v21 = vld [vmem:[#allocation14 + $0x11d8] ss:$200 sps:$4 sm:$0xff]  }
 0x51b   : > { %6790 = vmatpush1.bf16.msra.mxu1 %v15213_v40  ;;  %v15250_v40 = vld [vmem:[#allocation14 + $0x6e4] ss:$200 sps:$4 sm:$0xff]  }
 0x51c   : > { %6903 = vmatpush1.bf16.msra.mxu0 %v15216_v49  ;;  %6791 = vmatprep.subr.bf16.mxu1 %v5991_v14  ;;  %v2095_v36 = vmul.f32 %v2094_v32, %v2093_v16  ;;  %v15248_v14 = vld [vmem:[#allocation14 + $0x6e0] ss:$200 sps:$4 sm:$0xff]   ;;  %v15255_v16 = vld [vmem:[#allocation14 + $0x874] ss:$200 sps:$4 sm:$0xff]   ;;  %v15253_v32 = vld [vmem:[#allocation14 + $0x870] ss:$200 sps:$4 sm:$0xff]  }
 0x51d   : > { %6904 = vmatprep.subr.bf16.mxu0 %v15223_v4  ;;  %v6006_v4 = vand.u32 %v12923_v10, %v17499_v62  ;;  %v15291_v10 = vld [vmem:[#allocation14 + $0x11d4] ss:$200 sps:$4 sm:$0xff]  }
 0x51e   : > { %v2096_v7 = vmax.f32 %v2095_v36, 1e-24 }
 0x51f   : > { %6792 = vmatpush1.bf16.msra.mxu1 %v5988_v43  ;;  %v15256_v43 = vld [vmem:[#allocation14 + $0xb8] ss:$200 sps:$4 sm:$0xff]  }
 0x520   : > { %6905 = vmatpush1.bf16.msra.mxu0 %v15221_v9  ;;  %6849 = vmatprep.subr.bf16.mxu1 %v15226_v22  ;;  %16346 = vrsqrt.f32 %v2096_v7  ;;  %v15261_v9 = vld [vmem:[#allocation14 + $0xa04] ss:$200 sps:$4 sm:$0xff]   ;;  %v15267_v7 = vld [vmem:[#allocation14 + $0xb94] ss:$200 sps:$4 sm:$0xff]  }
 0x521   : > { %6906 = vmatprep.subr.bf16.mxu0 %v15229_v44  ;;  %v15264_v22 = vld [vmem:[#allocation14 + $0x24c] ss:$200 sps:$4 sm:$0xff]   ;;  %v15262_v44 = vld [vmem:[#allocation14 + $0x248] ss:$200 sps:$4 sm:$0xff]  }
 0x522   : > { %6800 = vmatmul.mubr.bf16.vlgmr.msra.gmra.mrb[44].mxu1 %v17507_v20 }
 0x523   : > { %6850 = vmatpush1.bf16.msra.mxu1 %v15224_v39  ;;  %12951 = vmatprep.mubr.msk.bf16.mxu1 %vm5871_vm3, %v17468_v17  ;;  %v15270_v39 = vld [vmem:[#allocation14 + $0x3dc] ss:$200 sps:$4 sm:$0xff]  }
 0x524   : > { %6907 = vmatpush1.bf16.msra.mxu0 %v15227_v41  ;;  %6851 = vmatprep.subr.bf16.mxu1 %v15232_v45 }
 0x525   : > { %v17676_v13 = vpop.f32.mrb[28].mxu1  ;;  %6908 = vmatprep.subr.bf16.mxu0 %v15235_v47  ;;  %v15265_v47 = vld [vmem:[#allocation14 + $0xb90] ss:$200 sps:$4 sm:$0xff]  }
 0x526   : > { %v17678_v0 = vpop.f32.mrb[29].mxu1 }
 0x527   : > { %v6477_v6 = vpop.f32.mrb[30].mxu1  ;;  %6852 = vmatpush1.bf16.msra.mxu1 %v15230_v42 }
 0x528   : > { %v6478_v59 = vpop.f32.mrb[31].mxu1  ;;  %6909 = vmatpush1.bf16.msra.mxu0 %v15233_v2  ;;  %6853 = vmatprep.subr.bf16.mxu1 %v15238_v8  ;;  %v15268_v2 = vld [vmem:[#allocation14 + $0x3d8] ss:$200 sps:$4 sm:$0xff]   ;;  %v15273_v8 = vld [vmem:[#allocation14 + $0xd24] ss:$200 sps:$4 sm:$0xff]  }
 0x529   : > { %6910 = vmatprep.subr.bf16.mxu0 %v15241_v29  ;;  %v15271_v6 = vld [vmem:[#allocation14 + $0xd20] ss:$200 sps:$4 sm:$0xff]   ;;  %v15279_v59 = vld [vmem:[#allocation14 + $0xeb4] ss:$200 sps:$4 sm:$0xff]  }
 0x52a   : > { %v16347_v23 = vpop.eup %16346 }
 0x52b   : > { %6854 = vmatpush1.bf16.msra.mxu1 %v15236_v11  ;;  %v2098_v35 = vmul.f32 %v16347_v23, %v2095_v36  ;;  %v17680_v15 = vmul.f32 %v16347_v23, %v1537_v3  ;;  %v15258_v3 = vld [vmem:[#allocation14 + $0xbc] ss:$200 sps:$4 sm:$0xff]   ;;  %v15259_v36 = vld [vmem:[#allocation14 + $0xa00] ss:$200 sps:$4 sm:$0xff]  }
 0x52c   : > { %6911 = vmatpush1.bf16.msra.mxu0 %v15239_v60  ;;  %6855 = vmatprep.subr.bf16.mxu1 %v15244_v12  ;;  %v15274_v11 = vld [vmem:[#allocation14 + $0x568] ss:$200 sps:$4 sm:$0xff]   ;;  %v15282_v60 = vld [vmem:[#allocation14 + $0x6fc] ss:$200 sps:$4 sm:$0xff]  }
 0x52d   : > { %6912 = vmatprep.subr.bf16.mxu0 %v15247_v18  ;;  %v2099_v37 = vmul.f32 %v16347_v23, %v2098_v35  ;;  %v15277_v12 = vld [vmem:[#allocation14 + $0xeb0] ss:$200 sps:$4 sm:$0xff]   ;;  %v15288_v23 = vld [vmem:[#allocation14 + $0x88c] ss:$200 sps:$4 sm:$0xff]   ;;  %v15283_v35 = vld [vmem:[#allocation14 + $0x1040] ss:$200 sps:$4 sm:$0xff]  }
 0x52e   : > { %v15280_v18 = vld [vmem:[#allocation14 + $0x6f8] ss:$200 sps:$4 sm:$0xff]  }
 0x52f   : > { %6856 = vmatpush1.bf16.msra.mxu1 %v15242_v27  ;;  %v2100_v49 = vsel %vm1526_vm6, %v2099_v37, 0.0  ;;  %v2741_v27 = vld [vmem:[#allocation14 + $0x1360] sm:$0x33] }
 0x530   : > { %6913 = vmatpush1.bf16.msra.mxu0 %v15245_v21  ;;  %2101 = vadd.xlane.f32.xlu1 %v2100_v49  ;;  %v15286_v21 = vld [vmem:[#allocation14 + $0x888] ss:$200 sps:$4 sm:$0xff]   ;;  %v12922_v37 = vcombine.high %v2741_v27, %v2741_v27  ;;  %v12921_v49 = vcombine.low %v2741_v27, %v2741_v27 }
 0x531   : > { %6857 = vmatprep.subr.bf16.mxu1 %v15250_v40  ;;  %6914 = vmatprep.subr.bf16.mxu0 %v6009_v50  ;;  %v15294_v40 = vld [vmem:[#allocation14 + $0xa1c] ss:$200 sps:$4 sm:$0xff]   ;;  %v15289_v50 = vld [vmem:[#allocation14 + $0x11d0] ss:$200 sps:$4 sm:$0xff]  }
 0x532   : > { %v15321_v27 = vld [vmem:[#allocation14 + $0x11e8] ss:$200 sps:$4 sm:$0xff]  }
 0x533   : > { %6858 = vmatpush1.bf16.msra.mxu1 %v15248_v14  ;;  %v15292_v14 = vld [vmem:[#allocation14 + $0xa18] ss:$200 sps:$4 sm:$0xff]  }
 0x534   : > { %6915 = vmatpush1.bf16.msra.mxu0 %v6006_v4  ;;  %6859 = vmatprep.subr.bf16.mxu1 %v15255_v16  ;;  %v6003_v4 = vand.u32 %v12922_v37, %v17499_v62  ;;  %v15299_v16 = vld [vmem:[#allocation14 + $0xbac] ss:$200 sps:$4 sm:$0xff]   ;;  %v15324_v37 = vld [vmem:[#allocation14 + $0x6f0] ss:$200 sps:$4 sm:$0xff]  }
 0x535   : > { %6972 = vmatprep.subr.bf16.mxu0 %v15258_v3  ;;  %v6000_v3 = vand.u32 %v12921_v49, %v17499_v62  ;;  %v15329_v49 = vld [vmem:[#allocation14 + $0x880] ss:$200 sps:$4 sm:$0xff]  }
 0x537   : > { %6860 = vmatpush1.bf16.msra.mxu1 %v15253_v32  ;;  %6923 = vmatmul.mubr.bf16.vlgmr.msra.gmra.mrb[44].mxu0 %v17507_v20  ;;  %v15297_v32 = vld [vmem:[#allocation14 + $0xba8] ss:$200 sps:$4 sm:$0xff]  }
 0x538   : > { %6973 = vmatpush1.bf16.msra.mxu0 %v15256_v43  ;;  %12954 = vmatprep.mubr.msk.bf16.mxu0 %vm5871_vm3, %v17468_v17  ;;  %v15302_v43 = vld [vmem:[#allocation14 + $0xb4] ss:$200 sps:$4 sm:$0xff]  }
 0x539   : > { %6861 = vmatprep.subr.bf16.mxu1 %v15261_v9  ;;  %6974 = vmatprep.subr.bf16.mxu0 %v15264_v22  ;;  %v15305_v9 = vld [vmem:[#allocation14 + $0xd3c] ss:$200 sps:$4 sm:$0xff]   ;;  %v15300_v22 = vld [vmem:[#allocation14 + $0xb0] ss:$200 sps:$4 sm:$0xff]  }
 0x53a   : > { %v17688_v41 = vpop.f32.mrb[28].mxu0 }
 0x53b   : > { %v17690_v45 = vpop.f32.mrb[29].mxu0  ;;  %6862 = vmatpush1.bf16.msra.mxu1 %v15259_v36  ;;  %v15303_v36 = vld [vmem:[#allocation14 + $0xd38] ss:$200 sps:$4 sm:$0xff]  }
 0x53c   : > { %v6600_v42 = vpop.f32.mrb[30].mxu0  ;;  %6975 = vmatpush1.bf16.msra.mxu0 %v15262_v44  ;;  %6863 = vmatprep.subr.bf16.mxu1 %v15267_v7  ;;  %v15308_v44 = vld [vmem:[#allocation14 + $0x244] ss:$200 sps:$4 sm:$0xff]  }
 0x53d   : > { %v6601_v29 = vpop.f32.mrb[31].mxu0  ;;  %6976 = vmatprep.subr.bf16.mxu0 %v15270_v39  ;;  %v15311_v7 = vld [vmem:[#allocation14 + $0xecc] ss:$200 sps:$4 sm:$0xff]   ;;  %v15306_v39 = vld [vmem:[#allocation14 + $0x240] ss:$200 sps:$4 sm:$0xff]  }
 0x53e   : > { %v15314_v42 = vld [vmem:[#allocation14 + $0x3d4] ss:$200 sps:$4 sm:$0xff]  }
 0x53f   : > { %6864 = vmatpush1.bf16.msra.mxu1 %v15265_v47  ;;  %v15309_v47 = vld [vmem:[#allocation14 + $0xec8] ss:$200 sps:$4 sm:$0xff]  }
 0x540   : > { %6977 = vmatpush1.bf16.msra.mxu0 %v15268_v2  ;;  %6865 = vmatprep.subr.bf16.mxu1 %v15273_v8  ;;  %v15317_v8 = vld [vmem:[#allocation14 + $0x105c] ss:$200 sps:$4 sm:$0xff]  }
 0x541   : > { %6978 = vmatprep.subr.bf16.mxu0 %v15276_v57  ;;  %v2744_v57 = vld [vmem:[#allocation14 + $0x1378] sm:$0x33] }
 0x543   : > { %6866 = vmatpush1.bf16.msra.mxu1 %v15271_v6 }
 0x544   : > { %6979 = vmatpush1.bf16.msra.mxu0 %v15274_v11  ;;  %6867 = vmatprep.subr.bf16.mxu1 %v15279_v59  ;;  %v15312_v11 = vld [vmem:[#allocation14 + $0x3d0] ss:$200 sps:$4 sm:$0xff]  }
 0x545   : > { %6980 = vmatprep.subr.bf16.mxu0 %v15282_v60  ;;  %v15315_v60 = vld [vmem:[#allocation14 + $0x1058] ss:$200 sps:$4 sm:$0xff]  }
 0x547   : > { %6868 = vmatpush1.bf16.msra.mxu1 %v15277_v12  ;;  %v15320_v12 = vld [vmem:[#allocation14 + $0x564] ss:$200 sps:$4 sm:$0xff]  }
 0x548   : > { %6981 = vmatpush1.bf16.msra.mxu0 %v15280_v18  ;;  %6869 = vmatprep.subr.bf16.mxu1 %v15285_v19  ;;  %v15323_v18 = vld [vmem:[#allocation14 + $0x11ec] ss:$200 sps:$4 sm:$0xff]   ;;  %v12928_v19 = vcombine.high %v2744_v57, %v2744_v57 }
 0x549   : > { %6982 = vmatprep.subr.bf16.mxu0 %v15288_v23  ;;  %v15318_v23 = vld [vmem:[#allocation14 + $0x560] ss:$200 sps:$4 sm:$0xff]  }
 0x54b   : > { %6870 = vmatpush1.bf16.msra.mxu1 %v15283_v35  ;;  %v15326_v35 = vld [vmem:[#allocation14 + $0x6f4] ss:$200 sps:$4 sm:$0xff]  }
 0x54c   : > { %6983 = vmatpush1.bf16.msra.mxu0 %v15286_v21  ;;  %6871 = vmatprep.subr.bf16.mxu1 %v15291_v10  ;;  %v12927_v21 = vcombine.low %v2744_v57, %v2744_v57  ;;  %v6021_v10 = vand.u32 %v12928_v19, %v17499_v62  ;;  %v15349_v57 = vld [vmem:[#allocation14 + $0x11e4] ss:$200 sps:$4 sm:$0xff]   ;;  %v15352_v19 = vld [vmem:[#allocation14 + $0xc0] ss:$200 sps:$4 sm:$0xff]  }
 0x54d   : > { %6984 = vmatprep.subr.bf16.mxu0 %v15294_v40 }
 0x54e   : > { %v6018_v40 = vand.u32 %v12927_v21, %v17499_v62 }
 0x54f   : > { %6872 = vmatpush1.bf16.msra.mxu1 %v15289_v50  ;;  %v15331_v50 = vld [vmem:[#allocation14 + $0x884] ss:$200 sps:$4 sm:$0xff]  }
 0x550   : > { %6985 = vmatpush1.bf16.msra.mxu0 %v15292_v14  ;;  %6873 = vmatprep.subr.bf16.mxu1 %v6003_v4  ;;  %v15334_v14 = vld [vmem:[#allocation14 + $0xa14] ss:$200 sps:$4 sm:$0xff]   ;;  %v15332_v4 = vld [vmem:[#allocation14 + $0xa10] ss:$200 sps:$4 sm:$0xff]  }
 0x551   : > { %6986 = vmatprep.subr.bf16.mxu0 %v15299_v16  ;;  %v15337_v16 = vld [vmem:[#allocation14 + $0xba4] ss:$200 sps:$4 sm:$0xff]  }
 0x553   : > { %6874 = vmatpush1.bf16.msra.mxu1 %v6000_v3 }
 0x554   : > { %6987 = vmatpush1.bf16.msra.mxu0 %v15297_v32  ;;  %6931 = vmatprep.subr.bf16.mxu1 %v15302_v43  ;;  %v15335_v43 = vld [vmem:[#allocation14 + $0xba0] ss:$200 sps:$4 sm:$0xff]  }
 0x555   : > { %6988 = vmatprep.subr.bf16.mxu0 %v15305_v9 }
 0x556   : > { %6882 = vmatmul.mubr.bf16.vlgmr.msra.gmra.mrb[48].mxu1 %v17507_v20 }
 0x557   : > { %6932 = vmatpush1.bf16.msra.mxu1 %v15300_v22  ;;  %12953 = vmatprep.mubr.msk.bf16.mxu1 %vm5871_vm3, %v17468_v17  ;;  %v15340_v22 = vld [vmem:[#allocation14 + $0xd34] ss:$200 sps:$4 sm:$0xff]  }
 0x558   : > { %6989 = vmatpush1.bf16.msra.mxu0 %v15303_v36  ;;  %6933 = vmatprep.subr.bf16.mxu1 %v15308_v44  ;;  %v15338_v44 = vld [vmem:[#allocation14 + $0xd30] ss:$200 sps:$4 sm:$0xff]  }
 0x559   : > { %v17697_v2 = vpop.f32.mrb[32].mxu1  ;;  %6990 = vmatprep.subr.bf16.mxu0 %v15311_v7  ;;  %v15343_v7 = vld [vmem:[#allocation14 + $0xec4] ss:$200 sps:$4 sm:$0xff]  }
 0x55a   : > { %v17699_v29 = vpop.f32.mrb[33].mxu1 }
 0x55b   : > { %v6559_v6 = vpop.f32.mrb[34].mxu1  ;;  %6934 = vmatpush1.bf16.msra.mxu1 %v15306_v39  ;;  %v15341_v39 = vld [vmem:[#allocation14 + $0xec0] ss:$200 sps:$4 sm:$0xff]  }
 0x55c   : > { %v6560_v59 = vpop.f32.mrb[35].mxu1  ;;  %6991 = vmatpush1.bf16.msra.mxu0 %v15309_v47  ;;  %6935 = vmatprep.subr.bf16.mxu1 %v15314_v42  ;;  %v15346_v47 = vld [vmem:[#allocation14 + $0x1054] ss:$200 sps:$4 sm:$0xff]  }
 0x55d   : > { %6992 = vmatprep.subr.bf16.mxu0 %v15317_v8  ;;  %v2743_v42 = vld [vmem:[#allocation14 + $0x1370] sm:$0x33] }
 0x55e   : > { %v15344_v8 = vld [vmem:[#allocation14 + $0x1050] ss:$200 sps:$4 sm:$0xff]   ;;  %v12926_v6 = vcombine.high %v2743_v42, %v2743_v42  ;;  %v12925_v59 = vcombine.low %v2743_v42, %v2743_v42  ;;  %v15416_v42 = vld [vmem:[#allocation16 + $0x644] ss:$200 sps:$4 sm:$0xff]  }
 0x55f   : > { %6936 = vmatpush1.bf16.msra.mxu1 %v15312_v11  ;;  %v15347_v11 = vld [vmem:[#allocation14 + $0x11e0] ss:$200 sps:$4 sm:$0xff]  }
 0x560   : > { %6993 = vmatpush1.bf16.msra.mxu0 %v15315_v60  ;;  %6937 = vmatprep.subr.bf16.mxu1 %v15320_v12  ;;  %v6015_v60 = vand.u32 %v12926_v6, %v17499_v62  ;;  %v6012_v12 = vand.u32 %v12925_v59, %v17499_v62  ;;  %v15414_v6 = vld [vmem:[#allocation16 + $0x640] ss:$200 sps:$4 sm:$0xff]  }
 0x561   : > { %6994 = vmatprep.subr.bf16.mxu0 %v15323_v18  ;;  %v15354_v18 = vld [vmem:[#allocation14 + $0xc4] ss:$200 sps:$4 sm:$0xff]   ;;  %v15370_v59 = vld [vmem:[#allocation14 + $0xa20] ss:$200 sps:$4 sm:$0xff]  }
 0x563   : > { %6938 = vmatpush1.bf16.msra.mxu1 %v15318_v23  ;;  %v15357_v23 = vld [vmem:[#allocation14 + $0x254] ss:$200 sps:$4 sm:$0xff]  }
 0x564   : > { %6995 = vmatpush1.bf16.msra.mxu0 %v15321_v27  ;;  %6939 = vmatprep.subr.bf16.mxu1 %v15326_v35  ;;  %v15355_v27 = vld [vmem:[#allocation14 + $0x250] ss:$200 sps:$4 sm:$0xff]   ;;  %v15360_v35 = vld [vmem:[#allocation14 + $0x3e4] ss:$200 sps:$4 sm:$0xff]  }
 0x565   : > { %6996 = vmatprep.subr.bf16.mxu0 %v6021_v10  ;;  %v15390_v10 = vld [vmem:[#allocation16] ss:$200 sps:$4 sm:$0xff]  }
 0x567   : > { %6940 = vmatpush1.bf16.msra.mxu1 %v15324_v37  ;;  %v15392_v37 = vld [vmem:[#allocation16 + $0x4] ss:$200 sps:$4 sm:$0xff]  }
 0x568   : > { %6997 = vmatpush1.bf16.msra.mxu0 %v6018_v40  ;;  %6941 = vmatprep.subr.bf16.mxu1 %v15331_v50 }
 0x569   : > { %10969 = vmatprep.subr.bf16.mxu0 %v15392_v37  ;;  %v15376_v37 = vld [vmem:[#allocation14 + $0xd40] ss:$200 sps:$4 sm:$0xff]  }
 0x56b   : > { %6942 = vmatpush1.bf16.msra.mxu1 %v15329_v49  ;;  %7005 = vmatmul.mubr.bf16.vlgmr.msra.gmra.mrb[48].mxu0 %v17507_v20  ;;  %v15358_v49 = vld [vmem:[#allocation14 + $0x3e0] ss:$200 sps:$4 sm:$0xff]  }
 0x56c   : > { %6943 = vmatprep.subr.bf16.mxu1 %v15334_v14  ;;  %v15398_v14 = vld [vmem:[#allocation16 + $0x194] ss:$200 sps:$4 sm:$0xff]   ;;  %10970 = vmatpush1.bf16.msra.mxu0 %v15390_v10 }
 0x56d   : > { %10971 = vmatprep.subr.bf16.mxu0 %v15398_v14  ;;  %v15379_v14 = vld [vmem:[#allocation14 + $0xed0] ss:$200 sps:$4 sm:$0xff]  }
 0x56e   : > { %v17704_v3 = vpop.f32.mrb[32].mxu0 }
 0x56f   : > { %v17706_v32 = vpop.f32.mrb[33].mxu0  ;;  %6944 = vmatpush1.bf16.msra.mxu1 %v15332_v4 }
 0x570   : > { %v6682_v9 = vpop.f32.mrb[34].mxu0  ;;  %6945 = vmatprep.subr.bf16.mxu1 %v15337_v16  ;;  %v15363_v16 = vld [vmem:[#allocation14 + $0x574] ss:$200 sps:$4 sm:$0xff]  }
 0x571   : > { %v6683_v36 = vpop.f32.mrb[35].mxu0  ;;  %v15361_v9 = vld [vmem:[#allocation14 + $0x570] ss:$200 sps:$4 sm:$0xff]  }
 0x572   : > { %v15402_v36 = vld [vmem:[#allocation16 + $0x320] ss:$200 sps:$4 sm:$0xff]  }
 0x573   : > { %6946 = vmatpush1.bf16.msra.mxu1 %v15335_v43  ;;  %v15396_v43 = vld [vmem:[#allocation16 + $0x190] ss:$200 sps:$4 sm:$0xff]  }
 0x574   : > { %6947 = vmatprep.subr.bf16.mxu1 %v15340_v22  ;;  %v15366_v22 = vld [vmem:[#allocation14 + $0x704] ss:$200 sps:$4 sm:$0xff]   ;;  %10972 = vmatpush1.bf16.msra.mxu0 %v15396_v43 }
 0x575   : > { %v15434_v43 = vld [vmem:[#allocation16 + $0xaf4] ss:$200 sps:$4 sm:$0xff]  }
 0x577   : > { %6948 = vmatpush1.bf16.msra.mxu1 %v15338_v44  ;;  %v15410_v44 = vld [vmem:[#allocation16 + $0x4b4] ss:$200 sps:$4 sm:$0xff]  }
 0x578   : > { %6949 = vmatprep.subr.bf16.mxu1 %v15343_v7  ;;  %v15364_v7 = vld [vmem:[#allocation14 + $0x700] ss:$200 sps:$4 sm:$0xff]  }
 0x57b   : > { %6950 = vmatpush1.bf16.msra.mxu1 %v15341_v39  ;;  %v15369_v39 = vld [vmem:[#allocation14 + $0x894] ss:$200 sps:$4 sm:$0xff]  }
 0x57c   : > { %6951 = vmatprep.subr.bf16.mxu1 %v15346_v47  ;;  %v15408_v47 = vld [vmem:[#allocation16 + $0x4b0] ss:$200 sps:$4 sm:$0xff]  }
 0x57f   : > { %6952 = vmatpush1.bf16.msra.mxu1 %v15344_v8  ;;  %v15367_v8 = vld [vmem:[#allocation14 + $0x890] ss:$200 sps:$4 sm:$0xff]  }
 0x580   : > { %6953 = vmatprep.subr.bf16.mxu1 %v15349_v57  ;;  %v15372_v57 = vld [vmem:[#allocation14 + $0xa24] ss:$200 sps:$4 sm:$0xff]  }
 0x583   : > { %6954 = vmatpush1.bf16.msra.mxu1 %v15347_v11  ;;  %v15422_v11 = vld [vmem:[#allocation16 + $0x7d4] ss:$200 sps:$4 sm:$0xff]  }
 0x584   : > { %6955 = vmatprep.subr.bf16.mxu1 %v6015_v60  ;;  %v15375_v60 = vld [vmem:[#allocation14 + $0xbb4] ss:$200 sps:$4 sm:$0xff]  }
 0x587   : > { %6956 = vmatpush1.bf16.msra.mxu1 %v6012_v12  ;;  %v15420_v12 = vld [vmem:[#allocation16 + $0x7d0] ss:$200 sps:$4 sm:$0xff]  }
 0x588   : > { %7013 = vmatprep.subr.bf16.mxu1 %v15354_v18 }
 0x58a   : > { %6964 = vmatmul.mubr.bf16.vlgmr.msra.gmra.mrb[52].mxu1 %v17507_v20 }
 0x58b   : > { %7014 = vmatpush1.bf16.msra.mxu1 %v15352_v19  ;;  %12955 = vmatprep.mubr.msk.bf16.mxu1 %vm5871_vm3, %v17468_v17  ;;  %v15404_v17 = vld [vmem:[#allocation16 + $0x324] ss:$200 sps:$4 sm:$0xff]  }
 0x58c   : > { %7015 = vmatprep.subr.bf16.mxu1 %v15357_v23  ;;  %10973 = vmatprep.subr.bf16.mxu0 %v15404_v17  ;;  %v15373_v23 = vld [vmem:[#allocation14 + $0xbb0] ss:$200 sps:$4 sm:$0xff]   ;;  %v2745_v17 = vld [vmem:[#allocation14 + $0x1380] sm:$0x33] }
 0x58d   : > { %v17713_v21 = vpop.f32.mrb[36].mxu1  ;;  %10974 = vmatpush1.bf16.msra.mxu0 %v15402_v36  ;;  %v15382_v36 = vld [vmem:[#allocation14 + $0x1060] ss:$200 sps:$4 sm:$0xff]  }
 0x58e   : > { %v17715_v40 = vpop.f32.mrb[37].mxu1  ;;  %10975 = vmatprep.subr.bf16.mxu0 %v15410_v44  ;;  %v15387_v44 = vld [vmem:[#allocation14 + $0x11f4] ss:$200 sps:$4 sm:$0xff]  }
 0x58f   : > { %v6641_v50 = vpop.f32.mrb[38].mxu1  ;;  %7016 = vmatpush1.bf16.msra.mxu1 %v15355_v27 }
 0x590   : > { %v6642_v4 = vpop.f32.mrb[39].mxu1  ;;  %7017 = vmatprep.subr.bf16.mxu1 %v15360_v35  ;;  %v15378_v35 = vld [vmem:[#allocation14 + $0xd44] ss:$200 sps:$4 sm:$0xff]   ;;  %v15381_v50 = vld [vmem:[#allocation14 + $0xed4] ss:$200 sps:$4 sm:$0xff]  }
 0x591   : > { %10976 = vmatpush1.bf16.msra.mxu0 %v15408_v47  ;;  %v15426_v4 = vld [vmem:[#allocation16 + $0x960] ss:$200 sps:$4 sm:$0xff]   ;;  %v15446_v47 = vld [vmem:[#allocation16 + $0xe14] ss:$200 sps:$4 sm:$0xff]  }
 0x592   : > { %10977 = vmatprep.subr.bf16.mxu0 %v15416_v42  ;;  %v15385_v42 = vld [vmem:[#allocation14 + $0x11f0] ss:$200 sps:$4 sm:$0xff]  }
 0x593   : > { %7018 = vmatpush1.bf16.msra.mxu1 %v15358_v49  ;;  %v15428_v49 = vld [vmem:[#allocation16 + $0x964] ss:$200 sps:$4 sm:$0xff]  }
 0x594   : > { %7019 = vmatprep.subr.bf16.mxu1 %v15363_v16  ;;  %v15384_v16 = vld [vmem:[#allocation14 + $0x1064] ss:$200 sps:$4 sm:$0xff]  }
 0x595   : > { %10978 = vmatpush1.bf16.msra.mxu0 %v15414_v6  ;;  %v15444_v6 = vld [vmem:[#allocation16 + $0xe10] ss:$200 sps:$4 sm:$0xff]  }
 0x596   : > { %10979 = vmatprep.subr.bf16.mxu0 %v15422_v11  ;;  %v15452_v11 = vld [vmem:[#allocation16 + $0xfa4] ss:$200 sps:$4 sm:$0xff]  }
 0x597   : > { %7020 = vmatpush1.bf16.msra.mxu1 %v15361_v9  ;;  %v15432_v9 = vld [vmem:[#allocation16 + $0xaf0] ss:$200 sps:$4 sm:$0xff]  }
 0x598   : > { %7021 = vmatprep.subr.bf16.mxu1 %v15366_v22  ;;  %v15440_v22 = vld [vmem:[#allocation16 + $0xc84] ss:$200 sps:$4 sm:$0xff]  }
 0x599   : > { %10980 = vmatpush1.bf16.msra.mxu0 %v15420_v12  ;;  %v15450_v12 = vld [vmem:[#allocation16 + $0xfa0] ss:$200 sps:$4 sm:$0xff]  }
 0x59a   : > { %10981 = vmatprep.subr.bf16.mxu0 %v15428_v49  ;;  %v15456_v49 = vld [vmem:[#allocation16 + $0x1130] ss:$200 sps:$4 sm:$0xff]  }
 0x59b   : > { %7022 = vmatpush1.bf16.msra.mxu1 %v15364_v7  ;;  %v12930_v7 = vcombine.high %v2745_v17, %v2745_v17 }
 0x59c   : > { %7023 = vmatprep.subr.bf16.mxu1 %v15369_v39  ;;  %v15438_v39 = vld [vmem:[#allocation16 + $0xc80] ss:$200 sps:$4 sm:$0xff]  }
 0x59d   : > { %10982 = vmatpush1.bf16.msra.mxu0 %v15426_v4  ;;  %v7664_v4 = vld [vmem:[#allocation16 + $0x12c0] sm:$0xff] }
 0x59e   : > { %10983 = vmatprep.subr.bf16.mxu0 %v15434_v43  ;;  %v13557_v43 = vcombine.high %v7664_v4, %v7664_v4 }
 0x59f   : > { %7024 = vmatpush1.bf16.msra.mxu1 %v15367_v8  ;;  %v12929_v8 = vcombine.low %v2745_v17, %v2745_v17  ;;  %v13556_v17 = vcombine.low %v7664_v4, %v7664_v4  ;;  %v15441_v4 = vld [vmem:[#allocation16 + $0xc88] ss:$200 sps:$4 sm:$0xff]  }
 0x5a0   : > { %7025 = vmatprep.subr.bf16.mxu1 %v15372_v57  ;;  %v6027_v57 = vand.u32 %v12930_v7, %v17499_v62  ;;  %v15468_v7 = vld [vmem:[#allocation16 + $0x14] ss:$200 sps:$4 sm:$0xff]  }
 0x5a1   : > { %10984 = vmatpush1.bf16.msra.mxu0 %v15432_v9 }
 0x5a2   : > { %v17717_v18 = vpop.f32.mrb[36].mxu0  ;;  %10985 = vmatprep.subr.bf16.mxu0 %v15440_v22 }
 0x5a3   : > { %v17719_v19 = vpop.f32.mrb[37].mxu0  ;;  %7026 = vmatpush1.bf16.msra.mxu1 %v15370_v59  ;;  %v6024_v59 = vand.u32 %v12929_v8, %v17499_v62  ;;  %v15407_v62 = vld [vmem:[#allocation16 + $0x32c] ss:$200 sps:$4 sm:$0xff]  }
 0x5a4   : > { %v6764_v27 = vpop.f32.mrb[38].mxu0  ;;  %7027 = vmatprep.subr.bf16.mxu1 %v15375_v60  ;;  %v15395_v60 = vld [vmem:[#allocation16 + $0xc] ss:$200 sps:$4 sm:$0xff]  }
 0x5a5   : > { %v6765_v10 = vpop.f32.mrb[39].mxu0  ;;  %10986 = vmatpush1.bf16.msra.mxu0 %v15438_v39  ;;  %v15401_v27 = vld [vmem:[#allocation16 + $0x19c] ss:$200 sps:$4 sm:$0xff]   ;;  %v15411_v39 = vld [vmem:[#allocation16 + $0x4b8] ss:$200 sps:$4 sm:$0xff]  }
 0x5a6   : > { %10987 = vmatprep.subr.bf16.mxu0 %v15446_v47  ;;  %v15419_v47 = vld [vmem:[#allocation16 + $0x64c] ss:$200 sps:$4 sm:$0xff]  }
 0x5a7   : > { %7028 = vmatpush1.bf16.msra.mxu1 %v15373_v23  ;;  %v15393_v23 = vld [vmem:[#allocation16 + $0x8] ss:$200 sps:$4 sm:$0xff]  }
 0x5a8   : > { %7029 = vmatprep.subr.bf16.mxu1 %v15378_v35 }
 0x5a9   : > { %10988 = vmatpush1.bf16.msra.mxu0 %v15444_v6  ;;  %v15425_v6 = vld [vmem:[#allocation16 + $0x7dc] ss:$200 sps:$4 sm:$0xff]  }
 0x5aa   : > { %10989 = vmatprep.subr.bf16.mxu0 %v15452_v11 }
 0x5ab   : > { %7030 = vmatpush1.bf16.msra.mxu1 %v15376_v37  ;;  %v15458_v37 = vld [vmem:[#allocation16 + $0x1134] ss:$200 sps:$4 sm:$0xff]  }
 0x5ac   : > { %7031 = vmatprep.subr.bf16.mxu1 %v15381_v50  ;;  %v15399_v50 = vld [vmem:[#allocation16 + $0x198] ss:$200 sps:$4 sm:$0xff]  }
 0x5ad   : > { %10990 = vmatpush1.bf16.msra.mxu0 %v15450_v12  ;;  %v15431_v12 = vld [vmem:[#allocation16 + $0x96c] ss:$200 sps:$4 sm:$0xff]  }
 0x5ae   : > { %10991 = vmatprep.subr.bf16.mxu0 %v15458_v37  ;;  %v15435_v37 = vld [vmem:[#allocation16 + $0xaf8] ss:$200 sps:$4 sm:$0xff]  }
 0x5af   : > { %7032 = vmatpush1.bf16.msra.mxu1 %v15379_v14 }
 0x5b0   : > { %7033 = vmatprep.subr.bf16.mxu1 %v15384_v16 }
 0x5b1   : > { %10992 = vmatpush1.bf16.msra.mxu0 %v15456_v49  ;;  %v15443_v49 = vld [vmem:[#allocation16 + $0xc8c] ss:$200 sps:$4 sm:$0xff]  }
 0x5b2   : > { %13606 = vmatprep.subr.msk.bf16.mxu0 %vm10818_vm7, %v13557_v43  ;;  %v15449_v43 = vld [vmem:[#allocation16 + $0xe1c] ss:$200 sps:$4 sm:$0xff]  }
 0x5b3   : > { %7034 = vmatpush1.bf16.msra.mxu1 %v15382_v36  ;;  %v15413_v36 = vld [vmem:[#allocation16 + $0x4bc] ss:$200 sps:$4 sm:$0xff]  }
 0x5b4   : > { %7035 = vmatprep.subr.bf16.mxu1 %v15387_v44  ;;  %v10820_v44 = vsel %vm10818_vm7, %v13556_v17, 0  ;;  %v15447_v17 = vld [vmem:[#allocation16 + $0xe18] ss:$200 sps:$4 sm:$0xff]  }
 0x5b5   : > { %10994 = vmatpush1.bf16.msra.mxu0 %v10820_v44  ;;  %v15459_v44 = vld [vmem:[#allocation16 + $0x1138] ss:$200 sps:$4 sm:$0xff]  }
 0x5b6   : > { %11051 = vmatprep.subr.bf16.mxu0 %v15468_v7 }
 0x5b7   : > { %7036 = vmatpush1.bf16.msra.mxu1 %v15385_v42 }
 0x5b8   : > { %7037 = vmatprep.subr.bf16.mxu1 %v6027_v57  ;;  %v15417_v57 = vld [vmem:[#allocation16 + $0x648] ss:$200 sps:$4 sm:$0xff]  }
 0x5bb   : > { %7038 = vmatpush1.bf16.msra.mxu1 %v6024_v59 }
 0x5bc   : > { %11010 = vmatprep.subr.bf16.mxu1 %v15395_v60  ;;  %v15423_v60 = vld [vmem:[#allocation16 + $0x7d8] ss:$200 sps:$4 sm:$0xff]  }
 0x5bd   : > { %v2102_v35 = vpop.xlane.xlu1 %2101 }
 0x5be   : > { %v2103_v10 = vmax.f32 %v2102_v35, 1e-24  ;;  %7046 = vmatmul.mubr.bf16.vlgmr.msra.gmra.mrb[56].mxu1 %v17507_v20  ;;  %v15405_v20 = vld [vmem:[#allocation16 + $0x328] ss:$200 sps:$4 sm:$0xff]   ;;  %v15437_v35 = vld [vmem:[#allocation16 + $0xafc] ss:$200 sps:$4 sm:$0xff]  }
 0x5bf   : > { %11011 = vmatpush1.bf16.msra.mxu1 %v15393_v23 }
 0x5c0   : > { %16348 = vrsqrt.f32 %v2103_v10  ;;  %11012 = vmatprep.subr.bf16.mxu1 %v15401_v27  ;;  %v15429_v27 = vld [vmem:[#allocation16 + $0x968] ss:$200 sps:$4 sm:$0xff]  }
 0x5c1   : > { %v17724_v14 = vpop.f32.mrb[40].mxu1 }
 0x5c2   : > { %v17726_v16 = vpop.f32.mrb[41].mxu1 }
 0x5c3   : > { %v6723_v9 = vpop.f32.mrb[42].mxu1  ;;  %11013 = vmatpush1.bf16.msra.mxu1 %v15399_v50 }
 0x5c4   : > { %v6724_v22 = vpop.f32.mrb[43].mxu1  ;;  %11014 = vmatprep.subr.bf16.mxu1 %v15407_v62  ;;  %v15455_v9 = vld [vmem:[#allocation16 + $0xfac] ss:$200 sps:$4 sm:$0xff]  }
 0x5c5   : > { %v15461_v22 = vld [vmem:[#allocation16 + $0x113c] ss:$200 sps:$4 sm:$0xff]  }
 0x5c7   : > { %11015 = vmatpush1.bf16.msra.mxu1 %v15405_v20  ;;  %v15453_v20 = vld [vmem:[#allocation16 + $0xfa8] ss:$200 sps:$4 sm:$0xff]  }
 0x5c8   : > { %11016 = vmatprep.subr.bf16.mxu1 %v15413_v36  ;;  %v7665_v36 = vld [vmem:[#allocation16 + $0x12c8] sm:$0xff] }
 0x5c9   : > { %v13559_v7 = vcombine.high %v7665_v36, %v7665_v36 }
 0x5ca   : > { %v16349_v42 = vpop.eup %16348 }
 0x5cb   : > { %v2106_v8 = vmul.f32 %v16349_v42, %v17680_v15  ;;  %11017 = vmatpush1.bf16.msra.mxu1 %v15411_v39  ;;  %v13558_v39 = vcombine.low %v7665_v36, %v7665_v36  ;;  %v15471_v42 = vld [vmem:[#allocation16 + $0x1c] ss:$200 sps:$4 sm:$0xff]   ;;  %v15466_v36 = vld [vmem:[#allocation16 + $0x10] ss:$200 sps:$4 sm:$0xff]  }
 0x5cc   : > { %11018 = vmatprep.subr.bf16.mxu1 %v15419_v47 }
 0x5cd   : > { %v7054_v11 = vpack.c.bf16 %v2106_v8, %v2106_v8  ;;  %v10826_v47 = vsel %vm10818_vm7, %v13558_v39, 0  ;;  %v15474_v39 = vld [vmem:[#allocation16 + $0x1a4] ss:$200 sps:$4 sm:$0xff]  }
 0x5cf   : > { %v17731_v59 = vunpack.c.l.bf16 %v7054_v11  ;;  %11019 = vmatpush1.bf16.msra.mxu1 %v15417_v57 }
 0x5d0   : > { %11020 = vmatprep.subr.bf16.mxu1 %v15425_v6 }
 0x5d1   : > { %v7056_v23 = vsub.f32 %v2106_v8, %v17731_v59 }
 0x5d3   : > { %7058 = vrot.lane.b32.xlu1 %v7056_v23, %s16706_s17  ;;  %11021 = vmatpush1.bf16.msra.mxu1 %v15423_v60 }
 0x5d4   : > { %11022 = vmatprep.subr.bf16.mxu1 %v15431_v12 }
 0x5d6   : > { %v17734_v15 = vpop.f32.mrb[40].mxu0 }
 0x5d7   : > { %v17736_v10 = vpop.f32.mrb[41].mxu0  ;;  %11023 = vmatpush1.bf16.msra.mxu1 %v15429_v27 }
 0x5d8   : > { %v6846_v50 = vpop.f32.mrb[42].mxu0  ;;  %11024 = vmatprep.subr.bf16.mxu1 %v15437_v35 }
 0x5d9   : > { %v6847_v62 = vpop.f32.mrb[43].mxu0 }
 0x5db   : > { %11025 = vmatpush1.bf16.msra.mxu1 %v15435_v37 }
 0x5dc   : > { %11026 = vmatprep.subr.bf16.mxu1 %v15443_v49 }
 0x5df   : > { %11027 = vmatpush1.bf16.msra.mxu1 %v15441_v4 }
 0x5e0   : > { %11028 = vmatprep.subr.bf16.mxu1 %v15449_v43 }
 0x5e3   : > { %11029 = vmatpush1.bf16.msra.mxu1 %v15447_v17 }
 0x5e4   : > { %11030 = vmatprep.subr.bf16.mxu1 %v15455_v9 }
 0x5e7   : > { %11031 = vmatpush1.bf16.msra.mxu1 %v15453_v20 }
 0x5e8   : > { %11032 = vmatprep.subr.bf16.mxu1 %v15461_v22 }
 0x5eb   : > { %11033 = vmatpush1.bf16.msra.mxu1 %v15459_v44  ;;  %v15469_v44 = vld [vmem:[#allocation16 + $0x18] ss:$200 sps:$4 sm:$0xff]  }
 0x5ec   : > { %13608 = vmatprep.subr.msk.bf16.mxu1 %vm10818_vm7, %v13559_v7 }
 0x5ef   : > { %11035 = vmatpush1.bf16.msra.mxu1 %v10826_v47  ;;  %v15477_v47 = vld [vmem:[#allocation16 + $0x1ac] ss:$200 sps:$4 sm:$0xff]  }
 0x5f0   : > { %11092 = vmatprep.subr.bf16.mxu1 %v15471_v42  ;;  %v15475_v42 = vld [vmem:[#allocation16 + $0x1a8] ss:$200 sps:$4 sm:$0xff]  }
 0x5f5   : > { %v17740_v8 = vpop.f32.mrb[44].mxu1 }
 0x5f6   : > { %v17742_v57 = vpop.f32.mrb[45].mxu1 }
 0x5f7   : > { %v6805_v6 = vpop.f32.mrb[46].mxu1 }
 0x5f8   : > { %v6806_v11 = vpop.f32.mrb[47].mxu1  ;;  %v15480_v6 = vld [vmem:[#allocation16 + $0x334] ss:$200 sps:$4 sm:$0xff]  }
 0x5f9   : > { %v15483_v11 = vld [vmem:[#allocation16 + $0x33c] ss:$200 sps:$4 sm:$0xff]  }
 0x60a   : > { %v17744_v60 = vpop.f32.mrb[44].mxu0 }
 0x60b   : > { %v17746_v12 = vpop.f32.mrb[45].mxu0 }
 0x60c   : > { %v6928_v23 = vpop.f32.mrb[46].mxu0 }
 0x60d   : > { %v6929_v27 = vpop.f32.mrb[47].mxu0  ;;  %v15478_v23 = vld [vmem:[#allocation16 + $0x330] ss:$200 sps:$4 sm:$0xff]  }
 0x60e   : > { %v15481_v27 = vld [vmem:[#allocation16 + $0x338] ss:$200 sps:$4 sm:$0xff]  }
 0x629   : > { %v17748_v35 = vpop.f32.mrb[48].mxu1 }
 0x62a   : > { %v17750_v37 = vpop.f32.mrb[49].mxu1 }
 0x62b   : > { %v6887_v50 = vpop.f32.mrb[50].mxu1 }
 0x62c   : > { %v6888_v49 = vpop.f32.mrb[51].mxu1  ;;  %v15486_v50 = vld [vmem:[#allocation16 + $0x4c4] ss:$200 sps:$4 sm:$0xff]  }
 0x62d   : > { %v15489_v49 = vld [vmem:[#allocation16 + $0x4cc] ss:$200 sps:$4 sm:$0xff]  }
 0x63e   : > { %v17752_v62 = vpop.f32.mrb[48].mxu0 }
 0x63f   : > { %18093 = vst [vmem:[#allocation24_spill] sm:$0xff] %v17752_v62  ;;  %v17754_v4 = vpop.f32.mrb[49].mxu0  ;;  %v15782_v62 = vld [vmem:[#allocation16 + $0x370] ss:$200 sps:$4 sm:$0xff]  }
 0x640   : > { %18094 = vst [vmem:[#allocation25_spill] sm:$0xff] %v17754_v4  ;;  %v7010_v43 = vpop.f32.mrb[50].mxu0 }
 0x641   : > { %v7011_v17 = vpop.f32.mrb[51].mxu0  ;;  %v15484_v43 = vld [vmem:[#allocation16 + $0x4c0] ss:$200 sps:$4 sm:$0xff]  }
 0x642   : > { %v15487_v17 = vld [vmem:[#allocation16 + $0x4c8] ss:$200 sps:$4 sm:$0xff]  }
 0x645   : > { %v7059_v9 = vpop.permute.xlu1 %7058 }
 0x646   : > { %v7061_v20 = vsel %vm1526_vm6, %v17731_v59, %v7059_v9  ;;  %v17758_v22 = vpack.c.bf16 %v7059_v9, %v7059_v9  ;;  %v15472_v59 = vld [vmem:[#allocation16 + $0x1a0] ss:$200 sps:$4 sm:$0xff]   ;;  %v15492_v9 = vld [vmem:[#allocation16 + $0x654] ss:$200 sps:$4 sm:$0xff]  }
 0x647   : > { %v17760_v7 = vpack.c.bf16 %v7061_v20, %v7061_v20  ;;  %v15495_v20 = vld [vmem:[#allocation16 + $0x65c] ss:$200 sps:$4 sm:$0xff]  }
 0x648   : > { %13607 = vmatprep.mubr.msk.bf16.mxu0 %vm10814_vm8, %v17758_v22  ;;  %13609 = vmatprep.mubr.msk.bf16.mxu1 %vm10814_vm8, %v17758_v22 }
 0x649   : > { %11002 = vmatmul.mubr.bf16.vlgmr.msra.gmra.mrb[52].mxu0 %v17760_v7  ;;  %11043 = vmatmul.mubr.bf16.vlgmr.msra.gmra.mrb[60].mxu1 %v17760_v7 }
 0x64a   : > { %11052 = vmatpush1.bf16.msra.mxu0 %v15466_v36  ;;  %11093 = vmatpush1.bf16.msra.mxu1 %v15469_v44  ;;  %v15490_v36 = vld [vmem:[#allocation16 + $0x650] ss:$200 sps:$4 sm:$0xff]  }
 0x64b   : > { %13611 = vmatprep.mubr.msk.bf16.mxu0 %vm10814_vm8, %v17758_v22  ;;  %13613 = vmatprep.mubr.msk.bf16.mxu1 %vm10814_vm8, %v17758_v22  ;;  %v15493_v44 = vld [vmem:[#allocation16 + $0x658] ss:$200 sps:$4 sm:$0xff]  }
 0x64c   : > { %11053 = vmatprep.subr.bf16.mxu0 %v15474_v39  ;;  %11094 = vmatprep.subr.bf16.mxu1 %v15477_v47  ;;  %v15498_v39 = vld [vmem:[#allocation16 + $0x7e4] ss:$200 sps:$4 sm:$0xff]  }
 0x64d   : > { %v15501_v47 = vld [vmem:[#allocation16 + $0x7ec] ss:$200 sps:$4 sm:$0xff]  }
 0x64e   : > { %11054 = vmatpush1.bf16.msra.mxu0 %v15472_v59  ;;  %11095 = vmatpush1.bf16.msra.mxu1 %v15475_v42  ;;  %v15496_v59 = vld [vmem:[#allocation16 + $0x7e0] ss:$200 sps:$4 sm:$0xff]  }
 0x64f   : > { %11055 = vmatprep.subr.bf16.mxu0 %v15480_v6  ;;  %11096 = vmatprep.subr.bf16.mxu1 %v15483_v11  ;;  %v15499_v42 = vld [vmem:[#allocation16 + $0x7e8] ss:$200 sps:$4 sm:$0xff]   ;;  %v15504_v6 = vld [vmem:[#allocation16 + $0x974] ss:$200 sps:$4 sm:$0xff]  }
 0x650   : > { %v15507_v11 = vld [vmem:[#allocation16 + $0x97c] ss:$200 sps:$4 sm:$0xff]  }
 0x652   : > { %11056 = vmatpush1.bf16.msra.mxu0 %v15478_v23  ;;  %11097 = vmatpush1.bf16.msra.mxu1 %v15481_v27 }
 0x653   : > { %11057 = vmatprep.subr.bf16.mxu0 %v15486_v50  ;;  %11098 = vmatprep.subr.bf16.mxu1 %v15489_v49  ;;  %v15502_v50 = vld [vmem:[#allocation16 + $0x970] ss:$200 sps:$4 sm:$0xff]  }
 0x654   : > { %v15505_v49 = vld [vmem:[#allocation16 + $0x978] ss:$200 sps:$4 sm:$0xff]  }
 0x656   : > { %11058 = vmatpush1.bf16.msra.mxu0 %v15484_v43  ;;  %11099 = vmatpush1.bf16.msra.mxu1 %v15487_v17  ;;  %v15510_v17 = vld [vmem:[#allocation16 + $0xb04] ss:$200 sps:$4 sm:$0xff]  }
 0x657   : > { %11059 = vmatprep.subr.bf16.mxu0 %v15492_v9  ;;  %11100 = vmatprep.subr.bf16.mxu1 %v15495_v20  ;;  %v15513_v9 = vld [vmem:[#allocation16 + $0xb0c] ss:$200 sps:$4 sm:$0xff]  }
 0x65a   : > { %11060 = vmatpush1.bf16.msra.mxu0 %v15490_v36  ;;  %11101 = vmatpush1.bf16.msra.mxu1 %v15493_v44  ;;  %v15508_v36 = vld [vmem:[#allocation16 + $0xb00] ss:$200 sps:$4 sm:$0xff]  }
 0x65b   : > { %11061 = vmatprep.subr.bf16.mxu0 %v15498_v39  ;;  %11102 = vmatprep.subr.bf16.mxu1 %v15501_v47  ;;  %v15511_v44 = vld [vmem:[#allocation16 + $0xb08] ss:$200 sps:$4 sm:$0xff]   ;;  %v15516_v39 = vld [vmem:[#allocation16 + $0xc94] ss:$200 sps:$4 sm:$0xff]  }
 0x65c   : > { %v15519_v47 = vld [vmem:[#allocation16 + $0xc9c] ss:$200 sps:$4 sm:$0xff]  }
 0x65d   : > { %v17772_v23 = vpop.f32.mrb[52].mxu1 }
 0x65e   : > { %11062 = vmatpush1.bf16.msra.mxu0 %v15496_v59  ;;  %11103 = vmatpush1.bf16.msra.mxu1 %v15499_v42  ;;  %v17774_v27 = vpop.f32.mrb[53].mxu1  ;;  %v15514_v59 = vld [vmem:[#allocation16 + $0xc90] ss:$200 sps:$4 sm:$0xff]  }
 0x65f   : > { %18095 = vst [vmem:[#allocation26_spill] sm:$0xff] %v17774_v27  ;;  %v6969_v43 = vpop.f32.mrb[54].mxu1  ;;  %11063 = vmatprep.subr.bf16.mxu0 %v15504_v6  ;;  %11104 = vmatprep.subr.bf16.mxu1 %v15507_v11  ;;  %v15517_v42 = vld [vmem:[#allocation16 + $0xc98] ss:$200 sps:$4 sm:$0xff]   ;;  %v15525_v6 = vld [vmem:[#allocation16 + $0xe2c] ss:$200 sps:$4 sm:$0xff]  }
 0x660   : > { %v6970_v20 = vpop.f32.mrb[55].mxu1  ;;  %v15522_v43 = vld [vmem:[#allocation16 + $0xe24] ss:$200 sps:$4 sm:$0xff]   ;;  %v15520_v11 = vld [vmem:[#allocation16 + $0xe20] ss:$200 sps:$4 sm:$0xff]  }
 0x661   : > { %v15523_v20 = vld [vmem:[#allocation16 + $0xe28] ss:$200 sps:$4 sm:$0xff]  }
 0x662   : > { %11064 = vmatpush1.bf16.msra.mxu0 %v15502_v50  ;;  %11105 = vmatpush1.bf16.msra.mxu1 %v15505_v49  ;;  %v15528_v50 = vld [vmem:[#allocation16 + $0xfb4] ss:$200 sps:$4 sm:$0xff]  }
 0x663   : > { %11065 = vmatprep.subr.bf16.mxu0 %v15510_v17  ;;  %11106 = vmatprep.subr.bf16.mxu1 %v15513_v9  ;;  %v15531_v49 = vld [vmem:[#allocation16 + $0xfbc] ss:$200 sps:$4 sm:$0xff]   ;;  %v15526_v17 = vld [vmem:[#allocation16 + $0xfb0] ss:$200 sps:$4 sm:$0xff]  }
 0x664   : > { %v15529_v9 = vld [vmem:[#allocation16 + $0xfb8] ss:$200 sps:$4 sm:$0xff]  }
 0x666   : > { %11066 = vmatpush1.bf16.msra.mxu0 %v15508_v36  ;;  %11107 = vmatpush1.bf16.msra.mxu1 %v15511_v44  ;;  %v15534_v36 = vld [vmem:[#allocation16 + $0x1144] ss:$200 sps:$4 sm:$0xff]  }
 0x667   : > { %11067 = vmatprep.subr.bf16.mxu0 %v15516_v39  ;;  %11108 = vmatprep.subr.bf16.mxu1 %v15519_v47  ;;  %v15537_v44 = vld [vmem:[#allocation16 + $0x114c] ss:$200 sps:$4 sm:$0xff]   ;;  %v7667_v47 = vld [vmem:[#allocation16 + $0x12d8] sm:$0xff] }
 0x668   : > { %v7666_v39 = vld [vmem:[#allocation16 + $0x12d0] sm:$0xff]  ;;  %v13562_v27 = vcombine.low %v7667_v47, %v7667_v47 }
 0x669   : > { %v13561_v4 = vcombine.high %v7666_v39, %v7666_v39 }
 0x66a   : > { %11068 = vmatpush1.bf16.msra.mxu0 %v15514_v59  ;;  %11109 = vmatpush1.bf16.msra.mxu1 %v15517_v42  ;;  %v15532_v59 = vld [vmem:[#allocation16 + $0x1140] ss:$200 sps:$4 sm:$0xff]  }
 0x66b   : > { %11069 = vmatprep.subr.bf16.mxu0 %v15522_v43  ;;  %11110 = vmatprep.subr.bf16.mxu1 %v15525_v6  ;;  %v15535_v42 = vld [vmem:[#allocation16 + $0x1148] ss:$200 sps:$4 sm:$0xff]   ;;  %v13563_v43 = vcombine.high %v7667_v47, %v7667_v47  ;;  %v13560_v6 = vcombine.low %v7666_v39, %v7666_v39  ;;  %v15556_v39 = vld [vmem:[#allocation16 + $0x344] ss:$200 sps:$4 sm:$0xff]  }
 0x66c   : > { %v15559_v47 = vld [vmem:[#allocation16 + $0x34c] ss:$200 sps:$4 sm:$0xff]  }
 0x66e   : > { %11070 = vmatpush1.bf16.msra.mxu0 %v15520_v11  ;;  %11111 = vmatpush1.bf16.msra.mxu1 %v15523_v20  ;;  %v10832_v11 = vsel %vm10818_vm7, %v13560_v6, 0  ;;  %v10838_v20 = vsel %vm10818_vm7, %v13562_v27, 0  ;;  %v15551_v27 = vld [vmem:[#allocation16 + $0x1b8] ss:$200 sps:$4 sm:$0xff]   ;;  %v15565_v6 = vld [vmem:[#allocation16 + $0x4dc] ss:$200 sps:$4 sm:$0xff]  }
 0x66f   : > { %11071 = vmatprep.subr.bf16.mxu0 %v15528_v50  ;;  %11112 = vmatprep.subr.bf16.mxu1 %v15531_v49  ;;  %v15544_v50 = vld [vmem:[#allocation16 + $0x24] ss:$200 sps:$4 sm:$0xff]  }
 0x670   : > { %v15547_v49 = vld [vmem:[#allocation16 + $0x2c] ss:$200 sps:$4 sm:$0xff]  }
 0x672   : > { %11072 = vmatpush1.bf16.msra.mxu0 %v15526_v17  ;;  %11113 = vmatpush1.bf16.msra.mxu1 %v15529_v9  ;;  %v15542_v17 = vld [vmem:[#allocation16 + $0x20] ss:$200 sps:$4 sm:$0xff]  }
 0x673   : > { %11073 = vmatprep.subr.bf16.mxu0 %v15534_v36  ;;  %11114 = vmatprep.subr.bf16.mxu1 %v15537_v44  ;;  %v15545_v9 = vld [vmem:[#allocation16 + $0x28] ss:$200 sps:$4 sm:$0xff]   ;;  %v15550_v36 = vld [vmem:[#allocation16 + $0x1b4] ss:$200 sps:$4 sm:$0xff]  }
 0x674   : > { %v15553_v44 = vld [vmem:[#allocation16 + $0x1bc] ss:$200 sps:$4 sm:$0xff]  }
 0x676   : > { %11074 = vmatpush1.bf16.msra.mxu0 %v15532_v59  ;;  %11115 = vmatpush1.bf16.msra.mxu1 %v15535_v42  ;;  %v15554_v59 = vld [vmem:[#allocation16 + $0x340] ss:$200 sps:$4 sm:$0xff]  }
 0x677   : > { %13610 = vmatprep.subr.msk.bf16.mxu0 %vm10818_vm7, %v13561_v4  ;;  %13612 = vmatprep.subr.msk.bf16.mxu1 %vm10818_vm7, %v13563_v43  ;;  %v15548_v4 = vld [vmem:[#allocation16 + $0x1b0] ss:$200 sps:$4 sm:$0xff]   ;;  %v15562_v43 = vld [vmem:[#allocation16 + $0x4d4] ss:$200 sps:$4 sm:$0xff]  }
 0x678   : > { %v15557_v42 = vld [vmem:[#allocation16 + $0x348] ss:$200 sps:$4 sm:$0xff]  }
 0x67a   : > { %11076 = vmatpush1.bf16.msra.mxu0 %v10832_v11  ;;  %11117 = vmatpush1.bf16.msra.mxu1 %v10838_v20  ;;  %v15560_v11 = vld [vmem:[#allocation16 + $0x4d0] ss:$200 sps:$4 sm:$0xff]  }
 0x67b   : > { %11133 = vmatprep.subr.bf16.mxu0 %v15544_v50  ;;  %11174 = vmatprep.subr.bf16.mxu1 %v15547_v49  ;;  %v15563_v20 = vld [vmem:[#allocation16 + $0x4d8] ss:$200 sps:$4 sm:$0xff]   ;;  %v15568_v50 = vld [vmem:[#allocation16 + $0x664] ss:$200 sps:$4 sm:$0xff]  }
 0x67c   : > { %v15571_v49 = vld [vmem:[#allocation16 + $0x66c] ss:$200 sps:$4 sm:$0xff]  }
 0x67d   : > { %11084 = vmatmul.mubr.bf16.vlgmr.msra.gmra.mrb[56].mxu0 %v17760_v7  ;;  %11125 = vmatmul.mubr.bf16.vlgmr.msra.gmra.mrb[64].mxu1 %v17760_v7 }
 0x67e   : > { %11134 = vmatpush1.bf16.msra.mxu0 %v15542_v17  ;;  %13615 = vmatprep.mubr.msk.bf16.mxu0 %vm10814_vm8, %v17758_v22  ;;  %v15566_v17 = vld [vmem:[#allocation16 + $0x660] ss:$200 sps:$4 sm:$0xff]  }
 0x67f   : > { %11175 = vmatpush1.bf16.msra.mxu1 %v15545_v9  ;;  %13617 = vmatprep.mubr.msk.bf16.mxu1 %vm10814_vm8, %v17758_v22  ;;  %v15569_v9 = vld [vmem:[#allocation16 + $0x668] ss:$200 sps:$4 sm:$0xff]  }
 0x680   : > { %11135 = vmatprep.subr.bf16.mxu0 %v15550_v36  ;;  %11176 = vmatprep.subr.bf16.mxu1 %v15553_v44  ;;  %v15574_v36 = vld [vmem:[#allocation16 + $0x7f4] ss:$200 sps:$4 sm:$0xff]  }
 0x681   : > { %v15577_v44 = vld [vmem:[#allocation16 + $0x7fc] ss:$200 sps:$4 sm:$0xff]  }
 0x682   : > { %11136 = vmatpush1.bf16.msra.mxu0 %v15548_v4  ;;  %v15572_v4 = vld [vmem:[#allocation16 + $0x7f0] ss:$200 sps:$4 sm:$0xff]  }
 0x683   : > { %11177 = vmatpush1.bf16.msra.mxu1 %v15551_v27  ;;  %11137 = vmatprep.subr.bf16.mxu0 %v15556_v39  ;;  %v15575_v27 = vld [vmem:[#allocation16 + $0x7f8] ss:$200 sps:$4 sm:$0xff]   ;;  %v15580_v39 = vld [vmem:[#allocation16 + $0x984] ss:$200 sps:$4 sm:$0xff]  }
 0x684   : > { %11178 = vmatprep.subr.bf16.mxu1 %v15559_v47  ;;  %v15583_v47 = vld [vmem:[#allocation16 + $0x98c] ss:$200 sps:$4 sm:$0xff]  }
 0x686   : > { %11138 = vmatpush1.bf16.msra.mxu0 %v15554_v59 }
 0x687   : > { %11179 = vmatpush1.bf16.msra.mxu1 %v15557_v42  ;;  %11139 = vmatprep.subr.bf16.mxu0 %v15562_v43  ;;  %v15578_v43 = vld [vmem:[#allocation16 + $0x980] ss:$200 sps:$4 sm:$0xff]  }
 0x688   : > { %11180 = vmatprep.subr.bf16.mxu1 %v15565_v6 }
 0x68a   : > { %11140 = vmatpush1.bf16.msra.mxu0 %v15560_v11  ;;  %v15581_v11 = vld [vmem:[#allocation16 + $0x988] ss:$200 sps:$4 sm:$0xff]  }
 0x68b   : > { %11181 = vmatpush1.bf16.msra.mxu1 %v15563_v20  ;;  %11141 = vmatprep.subr.bf16.mxu0 %v15568_v50  ;;  %v15586_v20 = vld [vmem:[#allocation16 + $0xb14] ss:$200 sps:$4 sm:$0xff]  }
 0x68c   : > { %11182 = vmatprep.subr.bf16.mxu1 %v15571_v49  ;;  %v15589_v49 = vld [vmem:[#allocation16 + $0xb1c] ss:$200 sps:$4 sm:$0xff]  }
 0x68e   : > { %11142 = vmatpush1.bf16.msra.mxu0 %v15566_v17  ;;  %v15584_v17 = vld [vmem:[#allocation16 + $0xb10] ss:$200 sps:$4 sm:$0xff]  }
 0x68f   : > { %11183 = vmatpush1.bf16.msra.mxu1 %v15569_v9  ;;  %11143 = vmatprep.subr.bf16.mxu0 %v15574_v36  ;;  %v15587_v9 = vld [vmem:[#allocation16 + $0xb18] ss:$200 sps:$4 sm:$0xff]   ;;  %v15592_v36 = vld [vmem:[#allocation16 + $0xca4] ss:$200 sps:$4 sm:$0xff]  }
 0x690   : > { %11184 = vmatprep.subr.bf16.mxu1 %v15577_v44  ;;  %v15595_v44 = vld [vmem:[#allocation16 + $0xcac] ss:$200 sps:$4 sm:$0xff]  }
 0x691   : > { %v17786_v59 = vpop.f32.mrb[56].mxu1 }
 0x692   : > { %18096 = vst [vmem:[#allocation27_spill] sm:$0xff] %v17786_v59  ;;  %11144 = vmatpush1.bf16.msra.mxu0 %v15572_v4  ;;  %v17788_v42 = vpop.f32.mrb[57].mxu1  ;;  %v15590_v4 = vld [vmem:[#allocation16 + $0xca0] ss:$200 sps:$4 sm:$0xff]  }
 0x693   : > { %18097 = vst [vmem:[#allocation28_spill] sm:$0xff] %v17788_v42  ;;  %11185 = vmatpush1.bf16.msra.mxu1 %v15575_v27  ;;  %v7051_v6 = vpop.f32.mrb[58].mxu1  ;;  %11145 = vmatprep.subr.bf16.mxu0 %v15580_v39  ;;  %v15593_v27 = vld [vmem:[#allocation16 + $0xca8] ss:$200 sps:$4 sm:$0xff]   ;;  %v15601_v39 = vld [vmem:[#allocation16 + $0xe3c] ss:$200 sps:$4 sm:$0xff]  }
 0x694   : > { %v7052_v50 = vpop.f32.mrb[59].mxu1  ;;  %11186 = vmatprep.subr.bf16.mxu1 %v15583_v47  ;;  %v15598_v6 = vld [vmem:[#allocation16 + $0xe34] ss:$200 sps:$4 sm:$0xff]   ;;  %v15599_v47 = vld [vmem:[#allocation16 + $0xe38] ss:$200 sps:$4 sm:$0xff]   ;;  %v7669_v42 = vld [vmem:[#allocation16 + $0x12e8] sm:$0xff] }
 0x695   : > { %v15596_v50 = vld [vmem:[#allocation16 + $0xe30] ss:$200 sps:$4 sm:$0xff]   ;;  %v13566_v59 = vcombine.low %v7669_v42, %v7669_v42 }
 0x696   : > { %11146 = vmatpush1.bf16.msra.mxu0 %v15578_v43  ;;  %v15604_v43 = vld [vmem:[#allocation16 + $0xfc4] ss:$200 sps:$4 sm:$0xff]  }
 0x697   : > { %11187 = vmatpush1.bf16.msra.mxu1 %v15581_v11  ;;  %11147 = vmatprep.subr.bf16.mxu0 %v15586_v20  ;;  %v15607_v11 = vld [vmem:[#allocation16 + $0xfcc] ss:$200 sps:$4 sm:$0xff]   ;;  %v15602_v20 = vld [vmem:[#allocation16 + $0xfc0] ss:$200 sps:$4 sm:$0xff]  }
 0x698   : > { %11188 = vmatprep.subr.bf16.mxu1 %v15589_v49  ;;  %v15605_v49 = vld [vmem:[#allocation16 + $0xfc8] ss:$200 sps:$4 sm:$0xff]  }
 0x69a   : > { %11148 = vmatpush1.bf16.msra.mxu0 %v15584_v17  ;;  %v15610_v17 = vld [vmem:[#allocation16 + $0x1154] ss:$200 sps:$4 sm:$0xff]  }
 0x69b   : > { %11189 = vmatpush1.bf16.msra.mxu1 %v15587_v9  ;;  %11149 = vmatprep.subr.bf16.mxu0 %v15592_v36  ;;  %v15613_v9 = vld [vmem:[#allocation16 + $0x115c] ss:$200 sps:$4 sm:$0xff]  }
 0x69c   : > { %11190 = vmatprep.subr.bf16.mxu1 %v15595_v44  ;;  %v7668_v36 = vld [vmem:[#allocation16 + $0x12e0] sm:$0xff]  ;;  %v15608_v44 = vld [vmem:[#allocation16 + $0x1150] ss:$200 sps:$4 sm:$0xff]  }
 0x69e   : > { %11150 = vmatpush1.bf16.msra.mxu0 %v15590_v4  ;;  %v15611_v4 = vld [vmem:[#allocation16 + $0x1158] ss:$200 sps:$4 sm:$0xff]  }
 0x69f   : > { %11191 = vmatpush1.bf16.msra.mxu1 %v15593_v27  ;;  %11151 = vmatprep.subr.bf16.mxu0 %v15598_v6  ;;  %v13565_v27 = vcombine.high %v7668_v36, %v7668_v36  ;;  %v13564_v6 = vcombine.low %v7668_v36, %v7668_v36  ;;  %v15632_v36 = vld [vmem:[#allocation16 + $0x354] ss:$200 sps:$4 sm:$0xff]  }
 0x6a0   : > { %11192 = vmatprep.subr.bf16.mxu1 %v15601_v39  ;;  %v13567_v39 = vcombine.high %v7669_v42, %v7669_v42  ;;  %v15629_v42 = vld [vmem:[#allocation16 + $0x1cc] ss:$200 sps:$4 sm:$0xff]  }
 0x6a2   : > { %11152 = vmatpush1.bf16.msra.mxu0 %v15596_v50  ;;  %v10844_v50 = vsel %vm10818_vm7, %v13564_v6, 0  ;;  %v15638_v6 = vld [vmem:[#allocation16 + $0x4e4] ss:$200 sps:$4 sm:$0xff]  }
 0x6a3   : > { %11193 = vmatpush1.bf16.msra.mxu1 %v15599_v47  ;;  %11153 = vmatprep.subr.bf16.mxu0 %v15604_v43  ;;  %v15620_v47 = vld [vmem:[#allocation16 + $0x34] ss:$200 sps:$4 sm:$0xff]   ;;  %v10850_v43 = vsel %vm10818_vm7, %v13566_v59, 0  ;;  %v15627_v59 = vld [vmem:[#allocation16 + $0x1c8] ss:$200 sps:$4 sm:$0xff]  }
 0x6a4   : > { %11194 = vmatprep.subr.bf16.mxu1 %v15607_v11  ;;  %v15623_v11 = vld [vmem:[#allocation16 + $0x3c] ss:$200 sps:$4 sm:$0xff]  }
 0x6a6   : > { %11154 = vmatpush1.bf16.msra.mxu0 %v15602_v20  ;;  %v15618_v20 = vld [vmem:[#allocation16 + $0x30] ss:$200 sps:$4 sm:$0xff]  }
 0x6a7   : > { %11195 = vmatpush1.bf16.msra.mxu1 %v15605_v49  ;;  %11155 = vmatprep.subr.bf16.mxu0 %v15610_v17  ;;  %v15621_v49 = vld [vmem:[#allocation16 + $0x38] ss:$200 sps:$4 sm:$0xff]   ;;  %v15626_v17 = vld [vmem:[#allocation16 + $0x1c4] ss:$200 sps:$4 sm:$0xff]  }
 0x6a8   : > { %11196 = vmatprep.subr.bf16.mxu1 %v15613_v9  ;;  %v15624_v9 = vld [vmem:[#allocation16 + $0x1c0] ss:$200 sps:$4 sm:$0xff]  }
 0x6aa   : > { %11156 = vmatpush1.bf16.msra.mxu0 %v15608_v44  ;;  %v15635_v44 = vld [vmem:[#allocation16 + $0x35c] ss:$200 sps:$4 sm:$0xff]  }
 0x6ab   : > { %11197 = vmatpush1.bf16.msra.mxu1 %v15611_v4  ;;  %13614 = vmatprep.subr.msk.bf16.mxu0 %vm10818_vm7, %v13565_v27  ;;  %v15630_v4 = vld [vmem:[#allocation16 + $0x350] ss:$200 sps:$4 sm:$0xff]  }
 0x6ac   : > { %13616 = vmatprep.subr.msk.bf16.mxu1 %vm10818_vm7, %v13567_v39  ;;  %v15633_v27 = vld [vmem:[#allocation16 + $0x358] ss:$200 sps:$4 sm:$0xff]   ;;  %v15641_v39 = vld [vmem:[#allocation16 + $0x4ec] ss:$200 sps:$4 sm:$0xff]  }
 0x6ae   : > { %11158 = vmatpush1.bf16.msra.mxu0 %v10844_v50  ;;  %v15636_v50 = vld [vmem:[#allocation16 + $0x4e0] ss:$200 sps:$4 sm:$0xff]  }
 0x6af   : > { %11199 = vmatpush1.bf16.msra.mxu1 %v10850_v43  ;;  %11215 = vmatprep.subr.bf16.mxu0 %v15620_v47  ;;  %v15639_v47 = vld [vmem:[#allocation16 + $0x4e8] ss:$200 sps:$4 sm:$0xff]   ;;  %v15644_v43 = vld [vmem:[#allocation16 + $0x674] ss:$200 sps:$4 sm:$0xff]  }
 0x6b0   : > { %11256 = vmatprep.subr.bf16.mxu1 %v15623_v11  ;;  %v15647_v11 = vld [vmem:[#allocation16 + $0x67c] ss:$200 sps:$4 sm:$0xff]  }
 0x6b1   : > { %11166 = vmatmul.mubr.bf16.vlgmr.msra.gmra.mrb[60].mxu0 %v17760_v7 }
 0x6b2   : > { %11207 = vmatmul.mubr.bf16.vlgmr.msra.gmra.mrb[68].mxu1 %v17760_v7  ;;  %11216 = vmatpush1.bf16.msra.mxu0 %v15618_v20  ;;  %v15642_v20 = vld [vmem:[#allocation16 + $0x670] ss:$200 sps:$4 sm:$0xff]  }
 0x6b3   : > { %13619 = vmatprep.mubr.msk.bf16.mxu0 %vm10814_vm8, %v17758_v22  ;;  %11257 = vmatpush1.bf16.msra.mxu1 %v15621_v49  ;;  %v15645_v49 = vld [vmem:[#allocation16 + $0x678] ss:$200 sps:$4 sm:$0xff]  }
 0x6b4   : > { %13621 = vmatprep.mubr.msk.bf16.mxu1 %vm10814_vm8, %v17758_v22  ;;  %11217 = vmatprep.subr.bf16.mxu0 %v15626_v17  ;;  %v15650_v17 = vld [vmem:[#allocation16 + $0x804] ss:$200 sps:$4 sm:$0xff]  }
 0x6b5   : > { %11258 = vmatprep.subr.bf16.mxu1 %v15629_v42  ;;  %v15653_v42 = vld [vmem:[#allocation16 + $0x80c] ss:$200 sps:$4 sm:$0xff]  }
 0x6b6   : > { %11218 = vmatpush1.bf16.msra.mxu0 %v15624_v9  ;;  %v15648_v9 = vld [vmem:[#allocation16 + $0x800] ss:$200 sps:$4 sm:$0xff]  }
 0x6b7   : > { %11259 = vmatpush1.bf16.msra.mxu1 %v15627_v59  ;;  %11219 = vmatprep.subr.bf16.mxu0 %v15632_v36  ;;  %v15651_v59 = vld [vmem:[#allocation16 + $0x808] ss:$200 sps:$4 sm:$0xff]   ;;  %v15656_v36 = vld [vmem:[#allocation16 + $0x994] ss:$200 sps:$4 sm:$0xff]  }
 0x6b8   : > { %11260 = vmatprep.subr.bf16.mxu1 %v15635_v44  ;;  %v15659_v44 = vld [vmem:[#allocation16 + $0x99c] ss:$200 sps:$4 sm:$0xff]  }
 0x6ba   : > { %11220 = vmatpush1.bf16.msra.mxu0 %v15630_v4  ;;  %v15654_v4 = vld [vmem:[#allocation16 + $0x990] ss:$200 sps:$4 sm:$0xff]  }
 0x6bb   : > { %11261 = vmatpush1.bf16.msra.mxu1 %v15633_v27  ;;  %11221 = vmatprep.subr.bf16.mxu0 %v15638_v6  ;;  %v15657_v27 = vld [vmem:[#allocation16 + $0x998] ss:$200 sps:$4 sm:$0xff]   ;;  %v15662_v6 = vld [vmem:[#allocation16 + $0xb24] ss:$200 sps:$4 sm:$0xff]  }
 0x6bc   : > { %11262 = vmatprep.subr.bf16.mxu1 %v15641_v39  ;;  %v15665_v39 = vld [vmem:[#allocation16 + $0xb2c] ss:$200 sps:$4 sm:$0xff]  }
 0x6be   : > { %11222 = vmatpush1.bf16.msra.mxu0 %v15636_v50  ;;  %v15660_v50 = vld [vmem:[#allocation16 + $0xb20] ss:$200 sps:$4 sm:$0xff]  }
 0x6bf   : > { %11263 = vmatpush1.bf16.msra.mxu1 %v15639_v47  ;;  %11223 = vmatprep.subr.bf16.mxu0 %v15644_v43  ;;  %v15663_v47 = vld [vmem:[#allocation16 + $0xb28] ss:$200 sps:$4 sm:$0xff]   ;;  %v15668_v43 = vld [vmem:[#allocation16 + $0xcb4] ss:$200 sps:$4 sm:$0xff]  }
 0x6c0   : > { %11264 = vmatprep.subr.bf16.mxu1 %v15647_v11  ;;  %v15671_v11 = vld [vmem:[#allocation16 + $0xcbc] ss:$200 sps:$4 sm:$0xff]  }
 0x6c2   : > { %11224 = vmatpush1.bf16.msra.mxu0 %v15642_v20  ;;  %v15666_v20 = vld [vmem:[#allocation16 + $0xcb0] ss:$200 sps:$4 sm:$0xff]  }
 0x6c3   : > { %11265 = vmatpush1.bf16.msra.mxu1 %v15645_v49  ;;  %11225 = vmatprep.subr.bf16.mxu0 %v15650_v17  ;;  %v15669_v49 = vld [vmem:[#allocation16 + $0xcb8] ss:$200 sps:$4 sm:$0xff]   ;;  %v15674_v17 = vld [vmem:[#allocation16 + $0xe44] ss:$200 sps:$4 sm:$0xff]  }
 0x6c4   : > { %11266 = vmatprep.subr.bf16.mxu1 %v15653_v42  ;;  %v15677_v42 = vld [vmem:[#allocation16 + $0xe4c] ss:$200 sps:$4 sm:$0xff]  }
 0x6c6   : > { %11226 = vmatpush1.bf16.msra.mxu0 %v15648_v9  ;;  %v15672_v9 = vld [vmem:[#allocation16 + $0xe40] ss:$200 sps:$4 sm:$0xff]  }
 0x6c7   : > { %11267 = vmatpush1.bf16.msra.mxu1 %v15651_v59  ;;  %11227 = vmatprep.subr.bf16.mxu0 %v15656_v36  ;;  %v15675_v59 = vld [vmem:[#allocation16 + $0xe48] ss:$200 sps:$4 sm:$0xff]   ;;  %v15680_v36 = vld [vmem:[#allocation16 + $0xfd4] ss:$200 sps:$4 sm:$0xff]  }
 0x6c8   : > { %11268 = vmatprep.subr.bf16.mxu1 %v15659_v44  ;;  %v15683_v44 = vld [vmem:[#allocation16 + $0xfdc] ss:$200 sps:$4 sm:$0xff]  }
 0x6ca   : > { %11228 = vmatpush1.bf16.msra.mxu0 %v15654_v4  ;;  %v15678_v4 = vld [vmem:[#allocation16 + $0xfd0] ss:$200 sps:$4 sm:$0xff]  }
 0x6cb   : > { %11269 = vmatpush1.bf16.msra.mxu1 %v15657_v27  ;;  %11229 = vmatprep.subr.bf16.mxu0 %v15662_v6  ;;  %v15681_v27 = vld [vmem:[#allocation16 + $0xfd8] ss:$200 sps:$4 sm:$0xff]   ;;  %v15686_v6 = vld [vmem:[#allocation16 + $0x1164] ss:$200 sps:$4 sm:$0xff]  }
 0x6cc   : > { %11270 = vmatprep.subr.bf16.mxu1 %v15665_v39  ;;  %v15689_v39 = vld [vmem:[#allocation16 + $0x116c] ss:$200 sps:$4 sm:$0xff]  }
 0x6ce   : > { %11230 = vmatpush1.bf16.msra.mxu0 %v15660_v50  ;;  %v7670_v50 = vld [vmem:[#allocation16 + $0x12f0] sm:$0xff] }
 0x6cf   : > { %11271 = vmatpush1.bf16.msra.mxu1 %v15663_v47  ;;  %11231 = vmatprep.subr.bf16.mxu0 %v15668_v43  ;;  %v7671_v47 = vld [vmem:[#allocation16 + $0x12f8] sm:$0xff]  ;;  %v15684_v43 = vld [vmem:[#allocation16 + $0x1160] ss:$200 sps:$4 sm:$0xff]  }
 0x6d0   : > { %11272 = vmatprep.subr.bf16.mxu1 %v15671_v11  ;;  %v15687_v11 = vld [vmem:[#allocation16 + $0x1168] ss:$200 sps:$4 sm:$0xff]  }
 0x6d2   : > { %11232 = vmatpush1.bf16.msra.mxu0 %v15666_v20  ;;  %v13569_v20 = vcombine.high %v7670_v50, %v7670_v50 }
 0x6d3   : > { %11273 = vmatpush1.bf16.msra.mxu1 %v15669_v49  ;;  %11233 = vmatprep.subr.bf16.mxu0 %v15674_v17  ;;  %v13568_v49 = vcombine.low %v7670_v50, %v7670_v50  ;;  %v13571_v17 = vcombine.high %v7671_v47, %v7671_v47  ;;  %v15700_v50 = vld [vmem:[#allocation16 + $0x1d0] ss:$200 sps:$4 sm:$0xff]  }
 0x6d4   : > { %11274 = vmatprep.subr.bf16.mxu1 %v15677_v42  ;;  %v13570_v42 = vcombine.low %v7671_v47, %v7671_v47  ;;  %v15703_v47 = vld [vmem:[#allocation16 + $0x1d8] ss:$200 sps:$4 sm:$0xff]  }
 0x6d6   : > { %11234 = vmatpush1.bf16.msra.mxu0 %v15672_v9  ;;  %v10856_v9 = vsel %vm10818_vm7, %v13568_v49, 0  ;;  %v15709_v49 = vld [vmem:[#allocation16 + $0x368] ss:$200 sps:$4 sm:$0xff]  }
 0x6d7   : > { %11275 = vmatpush1.bf16.msra.mxu1 %v15675_v59  ;;  %11235 = vmatprep.subr.bf16.mxu0 %v15680_v36  ;;  %v15696_v59 = vld [vmem:[#allocation16 + $0x44] ss:$200 sps:$4 sm:$0xff]   ;;  %v10862_v36 = vsel %vm10818_vm7, %v13570_v42, 0 }
 0x6d8   : > { %11276 = vmatprep.subr.bf16.mxu1 %v15683_v44  ;;  %v15699_v44 = vld [vmem:[#allocation16 + $0x4c] ss:$200 sps:$4 sm:$0xff]   ;;  %v15717_v42 = vld [vmem:[#allocation16 + $0x4fc] ss:$200 sps:$4 sm:$0xff]  }
 0x6da   : > { %11236 = vmatpush1.bf16.msra.mxu0 %v15678_v4  ;;  %v15694_v4 = vld [vmem:[#allocation16 + $0x40] ss:$200 sps:$4 sm:$0xff]  }
 0x6db   : > { %11277 = vmatpush1.bf16.msra.mxu1 %v15681_v27  ;;  %11237 = vmatprep.subr.bf16.mxu0 %v15686_v6  ;;  %v15697_v27 = vld [vmem:[#allocation16 + $0x48] ss:$200 sps:$4 sm:$0xff]   ;;  %v15702_v6 = vld [vmem:[#allocation16 + $0x1d4] ss:$200 sps:$4 sm:$0xff]  }
 0x6dc   : > { %11278 = vmatprep.subr.bf16.mxu1 %v15689_v39  ;;  %v15705_v39 = vld [vmem:[#allocation16 + $0x1dc] ss:$200 sps:$4 sm:$0xff]  }
 0x6de   : > { %11238 = vmatpush1.bf16.msra.mxu0 %v15684_v43  ;;  %v15708_v43 = vld [vmem:[#allocation16 + $0x364] ss:$200 sps:$4 sm:$0xff]  }
 0x6df   : > { %11279 = vmatpush1.bf16.msra.mxu1 %v15687_v11  ;;  %13618 = vmatprep.subr.msk.bf16.mxu0 %vm10818_vm7, %v13569_v20  ;;  %v15711_v11 = vld [vmem:[#allocation16 + $0x36c] ss:$200 sps:$4 sm:$0xff]   ;;  %v15706_v20 = vld [vmem:[#allocation16 + $0x360] ss:$200 sps:$4 sm:$0xff]  }
 0x6e0   : > { %13620 = vmatprep.subr.msk.bf16.mxu1 %vm10818_vm7, %v13571_v17  ;;  %v15714_v17 = vld [vmem:[#allocation16 + $0x4f4] ss:$200 sps:$4 sm:$0xff]  }
 0x6e2   : > { %11240 = vmatpush1.bf16.msra.mxu0 %v10856_v9  ;;  %v15712_v9 = vld [vmem:[#allocation16 + $0x4f0] ss:$200 sps:$4 sm:$0xff]  }
 0x6e3   : > { %11281 = vmatpush1.bf16.msra.mxu1 %v10862_v36  ;;  %11297 = vmatprep.subr.bf16.mxu0 %v15696_v59  ;;  %v15715_v59 = vld [vmem:[#allocation16 + $0x4f8] ss:$200 sps:$4 sm:$0xff]   ;;  %v15720_v36 = vld [vmem:[#allocation16 + $0x684] ss:$200 sps:$4 sm:$0xff]  }
 0x6e4   : > { %11338 = vmatprep.subr.bf16.mxu1 %v15699_v44  ;;  %v15723_v44 = vld [vmem:[#allocation16 + $0x68c] ss:$200 sps:$4 sm:$0xff]  }
 0x6e5   : > { %11248 = vmatmul.mubr.bf16.vlgmr.msra.gmra.mrb[64].mxu0 %v17760_v7 }
 0x6e6   : > { %11289 = vmatmul.mubr.bf16.vlgmr.msra.gmra.mrb[72].mxu1 %v17760_v7  ;;  %11298 = vmatpush1.bf16.msra.mxu0 %v15694_v4  ;;  %v15718_v4 = vld [vmem:[#allocation16 + $0x680] ss:$200 sps:$4 sm:$0xff]  }
 0x6e7   : > { %13623 = vmatprep.mubr.msk.bf16.mxu0 %vm10814_vm8, %v17758_v22  ;;  %11339 = vmatpush1.bf16.msra.mxu1 %v15697_v27  ;;  %v15721_v27 = vld [vmem:[#allocation16 + $0x688] ss:$200 sps:$4 sm:$0xff]  }
 0x6e8   : > { %13625 = vmatprep.mubr.msk.bf16.mxu1 %vm10814_vm8, %v17758_v22  ;;  %11299 = vmatprep.subr.bf16.mxu0 %v15702_v6  ;;  %v15726_v6 = vld [vmem:[#allocation16 + $0x814] ss:$200 sps:$4 sm:$0xff]  }
 0x6e9   : > { %11340 = vmatprep.subr.bf16.mxu1 %v15705_v39  ;;  %v15729_v39 = vld [vmem:[#allocation16 + $0x81c] ss:$200 sps:$4 sm:$0xff]  }
 0x6ea   : > { %11300 = vmatpush1.bf16.msra.mxu0 %v15700_v50  ;;  %v15724_v50 = vld [vmem:[#allocation16 + $0x810] ss:$200 sps:$4 sm:$0xff]  }
 0x6eb   : > { %11341 = vmatpush1.bf16.msra.mxu1 %v15703_v47  ;;  %11301 = vmatprep.subr.bf16.mxu0 %v15708_v43  ;;  %v15727_v47 = vld [vmem:[#allocation16 + $0x818] ss:$200 sps:$4 sm:$0xff]   ;;  %v15732_v43 = vld [vmem:[#allocation16 + $0x9a4] ss:$200 sps:$4 sm:$0xff]  }
 0x6ec   : > { %11342 = vmatprep.subr.bf16.mxu1 %v15711_v11  ;;  %v15735_v11 = vld [vmem:[#allocation16 + $0x9ac] ss:$200 sps:$4 sm:$0xff]  }
 0x6ee   : > { %11302 = vmatpush1.bf16.msra.mxu0 %v15706_v20  ;;  %v15730_v20 = vld [vmem:[#allocation16 + $0x9a0] ss:$200 sps:$4 sm:$0xff]  }
 0x6ef   : > { %11343 = vmatpush1.bf16.msra.mxu1 %v15709_v49  ;;  %11303 = vmatprep.subr.bf16.mxu0 %v15714_v17  ;;  %v15733_v49 = vld [vmem:[#allocation16 + $0x9a8] ss:$200 sps:$4 sm:$0xff]   ;;  %v15738_v17 = vld [vmem:[#allocation16 + $0xb34] ss:$200 sps:$4 sm:$0xff]  }
 0x6f0   : > { %11344 = vmatprep.subr.bf16.mxu1 %v15717_v42  ;;  %v15741_v42 = vld [vmem:[#allocation16 + $0xb3c] ss:$200 sps:$4 sm:$0xff]  }
 0x6f2   : > { %11304 = vmatpush1.bf16.msra.mxu0 %v15712_v9  ;;  %v15736_v9 = vld [vmem:[#allocation16 + $0xb30] ss:$200 sps:$4 sm:$0xff]  }
 0x6f3   : > { %11345 = vmatpush1.bf16.msra.mxu1 %v15715_v59  ;;  %11305 = vmatprep.subr.bf16.mxu0 %v15720_v36  ;;  %v15739_v59 = vld [vmem:[#allocation16 + $0xb38] ss:$200 sps:$4 sm:$0xff]   ;;  %v15744_v36 = vld [vmem:[#allocation16 + $0xcc4] ss:$200 sps:$4 sm:$0xff]  }
 0x6f4   : > { %11346 = vmatprep.subr.bf16.mxu1 %v15723_v44  ;;  %v15747_v44 = vld [vmem:[#allocation16 + $0xccc] ss:$200 sps:$4 sm:$0xff]  }
 0x6f6   : > { %11306 = vmatpush1.bf16.msra.mxu0 %v15718_v4  ;;  %v15742_v4 = vld [vmem:[#allocation16 + $0xcc0] ss:$200 sps:$4 sm:$0xff]  }
 0x6f7   : > { %11347 = vmatpush1.bf16.msra.mxu1 %v15721_v27  ;;  %11307 = vmatprep.subr.bf16.mxu0 %v15726_v6  ;;  %v15745_v27 = vld [vmem:[#allocation16 + $0xcc8] ss:$200 sps:$4 sm:$0xff]   ;;  %v15750_v6 = vld [vmem:[#allocation16 + $0xe54] ss:$200 sps:$4 sm:$0xff]  }
 0x6f8   : > { %11348 = vmatprep.subr.bf16.mxu1 %v15729_v39  ;;  %v15753_v39 = vld [vmem:[#allocation16 + $0xe5c] ss:$200 sps:$4 sm:$0xff]  }
 0x6fa   : > { %11308 = vmatpush1.bf16.msra.mxu0 %v15724_v50  ;;  %v15748_v50 = vld [vmem:[#allocation16 + $0xe50] ss:$200 sps:$4 sm:$0xff]  }
 0x6fb   : > { %11349 = vmatpush1.bf16.msra.mxu1 %v15727_v47  ;;  %11309 = vmatprep.subr.bf16.mxu0 %v15732_v43  ;;  %v15751_v47 = vld [vmem:[#allocation16 + $0xe58] ss:$200 sps:$4 sm:$0xff]   ;;  %v15756_v43 = vld [vmem:[#allocation16 + $0xfe4] ss:$200 sps:$4 sm:$0xff]  }
 0x6fc   : > { %11350 = vmatprep.subr.bf16.mxu1 %v15735_v11  ;;  %v15759_v11 = vld [vmem:[#allocation16 + $0xfec] ss:$200 sps:$4 sm:$0xff]  }
 0x6fe   : > { %11310 = vmatpush1.bf16.msra.mxu0 %v15730_v20  ;;  %v15754_v20 = vld [vmem:[#allocation16 + $0xfe0] ss:$200 sps:$4 sm:$0xff]  }
 0x6ff   : > { %11351 = vmatpush1.bf16.msra.mxu1 %v15733_v49  ;;  %11311 = vmatprep.subr.bf16.mxu0 %v15738_v17  ;;  %v15757_v49 = vld [vmem:[#allocation16 + $0xfe8] ss:$200 sps:$4 sm:$0xff]   ;;  %v15762_v17 = vld [vmem:[#allocation16 + $0x1174] ss:$200 sps:$4 sm:$0xff]  }
 0x700   : > { %11352 = vmatprep.subr.bf16.mxu1 %v15741_v42  ;;  %v15765_v42 = vld [vmem:[#allocation16 + $0x117c] ss:$200 sps:$4 sm:$0xff]  }
 0x702   : > { %11312 = vmatpush1.bf16.msra.mxu0 %v15736_v9  ;;  %v7672_v9 = vld [vmem:[#allocation16 + $0x1300] sm:$0xff] }
 0x703   : > { %11353 = vmatpush1.bf16.msra.mxu1 %v15739_v59  ;;  %11313 = vmatprep.subr.bf16.mxu0 %v15744_v36  ;;  %v7673_v59 = vld [vmem:[#allocation16 + $0x1308] sm:$0xff]  ;;  %v15760_v36 = vld [vmem:[#allocation16 + $0x1170] ss:$200 sps:$4 sm:$0xff]  }
 0x704   : > { %11354 = vmatprep.subr.bf16.mxu1 %v15747_v44  ;;  %v15763_v44 = vld [vmem:[#allocation16 + $0x1178] ss:$200 sps:$4 sm:$0xff]  }
 0x706   : > { %11314 = vmatpush1.bf16.msra.mxu0 %v15742_v4  ;;  %v13573_v4 = vcombine.high %v7672_v9, %v7672_v9 }
 0x707   : > { %11355 = vmatpush1.bf16.msra.mxu1 %v15745_v27  ;;  %11315 = vmatprep.subr.bf16.mxu0 %v15750_v6  ;;  %v13572_v27 = vcombine.low %v7672_v9, %v7672_v9  ;;  %v13575_v6 = vcombine.high %v7673_v59, %v7673_v59  ;;  %v15776_v9 = vld [vmem:[#allocation16 + $0x1e0] ss:$200 sps:$4 sm:$0xff]  }
 0x708   : > { %11356 = vmatprep.subr.bf16.mxu1 %v15753_v39  ;;  %v13574_v39 = vcombine.low %v7673_v59, %v7673_v59  ;;  %v15779_v59 = vld [vmem:[#allocation16 + $0x1e8] ss:$200 sps:$4 sm:$0xff]  }
 0x70a   : > { %11316 = vmatpush1.bf16.msra.mxu0 %v15748_v50  ;;  %v10868_v50 = vsel %vm10818_vm7, %v13572_v27, 0  ;;  %v15787_v27 = vld [vmem:[#allocation16 + $0x37c] ss:$200 sps:$4 sm:$0xff]  }
 0x70b   : > { %11357 = vmatpush1.bf16.msra.mxu1 %v15751_v47  ;;  %11317 = vmatprep.subr.bf16.mxu0 %v15756_v43  ;;  %v15772_v47 = vld [vmem:[#allocation16 + $0x54] ss:$200 sps:$4 sm:$0xff]   ;;  %v10874_v43 = vsel %vm10818_vm7, %v13574_v39, 0 }
 0x70c   : > { %11358 = vmatprep.subr.bf16.mxu1 %v15759_v11  ;;  %v15775_v11 = vld [vmem:[#allocation16 + $0x5c] ss:$200 sps:$4 sm:$0xff]  }
 0x70e   : > { %11318 = vmatpush1.bf16.msra.mxu0 %v15754_v20  ;;  %v15770_v20 = vld [vmem:[#allocation16 + $0x50] ss:$200 sps:$4 sm:$0xff]  }
 0x70f   : > { %11359 = vmatpush1.bf16.msra.mxu1 %v15757_v49  ;;  %11319 = vmatprep.subr.bf16.mxu0 %v15762_v17  ;;  %v15773_v49 = vld [vmem:[#allocation16 + $0x58] ss:$200 sps:$4 sm:$0xff]   ;;  %v15778_v17 = vld [vmem:[#allocation16 + $0x1e4] ss:$200 sps:$4 sm:$0xff]  }
 0x710   : > { %11360 = vmatprep.subr.bf16.mxu1 %v15765_v42  ;;  %v15781_v42 = vld [vmem:[#allocation16 + $0x1ec] ss:$200 sps:$4 sm:$0xff]  }
 0x712   : > { %11320 = vmatpush1.bf16.msra.mxu0 %v15760_v36  ;;  %v15784_v36 = vld [vmem:[#allocation16 + $0x374] ss:$200 sps:$4 sm:$0xff]  }
 0x713   : > { %11361 = vmatpush1.bf16.msra.mxu1 %v15763_v44  ;;  %13622 = vmatprep.subr.msk.bf16.mxu0 %vm10818_vm7, %v13573_v4 }
 0x714   : > { %13624 = vmatprep.subr.msk.bf16.mxu1 %vm10818_vm7, %v13575_v6 }
 0x716   : > { %11322 = vmatpush1.bf16.msra.mxu0 %v10868_v50 }
 0x717   : > { %11363 = vmatpush1.bf16.msra.mxu1 %v10874_v43  ;;  %11379 = vmatprep.subr.bf16.mxu0 %v15772_v47 }
 0x718   : > { %11420 = vmatprep.subr.bf16.mxu1 %v15775_v11 }
 0x719   : > { %11330 = vmatmul.mubr.bf16.vlgmr.msra.gmra.mrb[68].mxu0 %v17760_v7 }
 0x71a   : > { %11371 = vmatmul.mubr.bf16.vlgmr.msra.gmra.mrb[76].mxu1 %v17760_v7  ;;  %11380 = vmatpush1.bf16.msra.mxu0 %v15770_v20 }
 0x71b   : > { %13627 = vmatprep.mubr.msk.bf16.mxu0 %vm10814_vm8, %v17758_v22  ;;  %11421 = vmatpush1.bf16.msra.mxu1 %v15773_v49 }
 0x71c   : > { %13629 = vmatprep.mubr.msk.bf16.mxu1 %vm10814_vm8, %v17758_v22  ;;  %v11003_v44 = vpop.f32.mrb[52].mxu0  ;;  %v11044_v4 = vpop.f32.mrb[60].mxu1  ;;  %11381 = vmatprep.subr.bf16.mxu0 %v15778_v17  ;;  %v15785_v17 = vld [vmem:[#allocation16 + $0x378] ss:$200 sps:$4 sm:$0xff]  }
 0x71d   : > { %v11994_v6 = vmul.f32 %v11003_v44, %v17577_v28  ;;  %v11996_v39 = vmul.f32 %v11044_v4, %v17568_v25  ;;  %11422 = vmatprep.subr.bf16.mxu1 %v15781_v42  ;;  %v11005_v50 = vpop.f32.mrb[53].mxu0  ;;  %v11046_v47 = vpop.f32.mrb[61].mxu1  ;;  %v15788_v42 = vld [vmem:[#allocation16 + $0x500] ss:$200 sps:$4 sm:$0xff]   ;;  %v15796_v44 = vld [vmem:[#allocation16 + $0x694] ss:$200 sps:$4 sm:$0xff]  }
 0x71e   : > { %v11995_v43 = vmul.f32 %v11005_v50, %v17579_v24  ;;  %v11997_v11 = vmul.f32 %v11046_v47, %v17570_v31  ;;  %11382 = vmatpush1.bf16.msra.mxu0 %v15776_v9  ;;  %v11007_v20 = vpop.f32.mrb[54].mxu0  ;;  %v11048_v49 = vpop.f32.mrb[62].mxu1  ;;  %v15790_v24 = vld [vmem:[#allocation16 + $0x504] ss:$200 sps:$4 sm:$0xff]   ;;  %v15791_v9 = vld [vmem:[#allocation16 + $0x508] ss:$200 sps:$4 sm:$0xff]  }
 0x71f   : > { %12044 = vst [vmem:[%s17825_s19] sm:$0xff] %v11994_v6  ;;  %12046 = vst [vmem:[%s17825_s19 + $0x10] sm:$0xff] %v11996_v39  ;;  %11423 = vmatpush1.bf16.msra.mxu1 %v15779_v59  ;;  %v11008_v25 = vpop.f32.mrb[55].mxu0  ;;  %v11049_v28 = vpop.f32.mrb[63].mxu1  ;;  %11383 = vmatprep.subr.bf16.mxu0 %v15784_v36  ;;  %v15793_v31 = vld [vmem:[#allocation16 + $0x50c] ss:$200 sps:$4 sm:$0xff]  }
 0x720   : > { %12045 = vst [vmem:[%s17825_s19 + $0x8] sm:$0xff] %v11995_v43  ;;  %12047 = vst [vmem:[%s17825_s19 + $0x18] sm:$0xff] %v11997_v11  ;;  %11424 = vmatprep.subr.bf16.mxu1 %v15787_v27  ;;  %v15799_v4 = vld [vmem:[#allocation16 + $0x69c] ss:$200 sps:$4 sm:$0xff]   ;;  %v15794_v6 = vld [vmem:[#allocation16 + $0x690] ss:$200 sps:$4 sm:$0xff]  }
 0x721   : > { %v15797_v59 = vld [vmem:[#allocation16 + $0x698] ss:$200 sps:$4 sm:$0xff]   ;;  %v15802_v36 = vld [vmem:[#allocation16 + $0x824] ss:$200 sps:$4 sm:$0xff]   ;;  %v15808_v27 = vld [vmem:[#allocation16 + $0x9b4] ss:$200 sps:$4 sm:$0xff]  }
 0x722   : > { %11384 = vmatpush1.bf16.msra.mxu0 %v15782_v62  ;;  %v15805_v39 = vld [vmem:[#allocation16 + $0x82c] ss:$200 sps:$4 sm:$0xff]   ;;  %v15800_v50 = vld [vmem:[#allocation16 + $0x820] ss:$200 sps:$4 sm:$0xff]   ;;  %v15811_v47 = vld [vmem:[#allocation16 + $0x9bc] ss:$200 sps:$4 sm:$0xff]  }
 0x723   : > { %11425 = vmatpush1.bf16.msra.mxu1 %v15785_v17  ;;  %11385 = vmatprep.subr.bf16.mxu0 %v15790_v24  ;;  %v15803_v62 = vld [vmem:[#allocation16 + $0x828] ss:$200 sps:$4 sm:$0xff]   ;;  %v15809_v11 = vld [vmem:[#allocation16 + $0x9b8] ss:$200 sps:$4 sm:$0xff]   ;;  %v15814_v20 = vld [vmem:[#allocation16 + $0xb44] ss:$200 sps:$4 sm:$0xff]  }
 0x724   : > { %11426 = vmatprep.subr.bf16.mxu1 %v15793_v31  ;;  %v15806_v43 = vld [vmem:[#allocation16 + $0x9b0] ss:$200 sps:$4 sm:$0xff]   ;;  %v15817_v49 = vld [vmem:[#allocation16 + $0xb4c] ss:$200 sps:$4 sm:$0xff]   ;;  %v15812_v25 = vld [vmem:[#allocation16 + $0xb40] ss:$200 sps:$4 sm:$0xff]  }
 0x725   : > { %v15815_v28 = vld [vmem:[#allocation16 + $0xb48] ss:$200 sps:$4 sm:$0xff]   ;;  %v15820_v17 = vld [vmem:[#allocation16 + $0xcd4] ss:$200 sps:$4 sm:$0xff]  }
 0x726   : > { %11386 = vmatpush1.bf16.msra.mxu0 %v15788_v42  ;;  %v15823_v24 = vld [vmem:[#allocation16 + $0xcdc] ss:$200 sps:$4 sm:$0xff]   ;;  %v15818_v31 = vld [vmem:[#allocation16 + $0xcd0] ss:$200 sps:$4 sm:$0xff]  }
 0x727   : > { %11427 = vmatpush1.bf16.msra.mxu1 %v15791_v9  ;;  %11387 = vmatprep.subr.bf16.mxu0 %v15796_v44  ;;  %v15821_v42 = vld [vmem:[#allocation16 + $0xcd8] ss:$200 sps:$4 sm:$0xff]   ;;  %v15826_v9 = vld [vmem:[#allocation16 + $0xe64] ss:$200 sps:$4 sm:$0xff]  }
 0x728   : > { %11428 = vmatprep.subr.bf16.mxu1 %v15799_v4  ;;  %v15829_v44 = vld [vmem:[#allocation16 + $0xe6c] ss:$200 sps:$4 sm:$0xff]   ;;  %v15824_v4 = vld [vmem:[#allocation16 + $0xe60] ss:$200 sps:$4 sm:$0xff]  }
 0x72a   : > { %11388 = vmatpush1.bf16.msra.mxu0 %v15794_v6  ;;  %v15827_v6 = vld [vmem:[#allocation16 + $0xe68] ss:$200 sps:$4 sm:$0xff]  }
 0x72b   : > { %11429 = vmatpush1.bf16.msra.mxu1 %v15797_v59  ;;  %11389 = vmatprep.subr.bf16.mxu0 %v15802_v36  ;;  %v15832_v59 = vld [vmem:[#allocation16 + $0xff4] ss:$200 sps:$4 sm:$0xff]  }
 0x72c   : > { %11430 = vmatprep.subr.bf16.mxu1 %v15805_v39  ;;  %v15835_v36 = vld [vmem:[#allocation16 + $0xffc] ss:$200 sps:$4 sm:$0xff]   ;;  %v15830_v39 = vld [vmem:[#allocation16 + $0xff0] ss:$200 sps:$4 sm:$0xff]  }
 0x72e   : > { %11390 = vmatpush1.bf16.msra.mxu0 %v15800_v50  ;;  %v15833_v50 = vld [vmem:[#allocation16 + $0xff8] ss:$200 sps:$4 sm:$0xff]  }
 0x72f   : > { %11431 = vmatpush1.bf16.msra.mxu1 %v15803_v62  ;;  %11391 = vmatprep.subr.bf16.mxu0 %v15808_v27  ;;  %v15838_v62 = vld [vmem:[#allocation16 + $0x1184] ss:$200 sps:$4 sm:$0xff]  }
 0x730   : > { %11432 = vmatprep.subr.bf16.mxu1 %v15811_v47  ;;  %v15841_v27 = vld [vmem:[#allocation16 + $0x118c] ss:$200 sps:$4 sm:$0xff]  }
 0x731   : > { %v7674_v47 = vld [vmem:[#allocation16 + $0x1310] sm:$0xff] }
 0x732   : > { %11392 = vmatpush1.bf16.msra.mxu0 %v15806_v43  ;;  %v7675_v43 = vld [vmem:[#allocation16 + $0x1318] sm:$0xff] }
 0x733   : > { %11433 = vmatpush1.bf16.msra.mxu1 %v15809_v11  ;;  %11393 = vmatprep.subr.bf16.mxu0 %v15814_v20  ;;  %v15836_v11 = vld [vmem:[#allocation16 + $0x1180] ss:$200 sps:$4 sm:$0xff]  }
 0x734   : > { %11434 = vmatprep.subr.bf16.mxu1 %v15817_v49  ;;  %v15839_v20 = vld [vmem:[#allocation16 + $0x1188] ss:$200 sps:$4 sm:$0xff]   ;;  %v13577_v49 = vcombine.high %v7674_v47, %v7674_v47 }
 0x736   : > { %11394 = vmatpush1.bf16.msra.mxu0 %v15812_v25  ;;  %v13576_v25 = vcombine.low %v7674_v47, %v7674_v47  ;;  %v15863_v47 = vld [vmem:[#allocation16 + $0x38c] ss:$200 sps:$4 sm:$0xff]  }
 0x737   : > { %11435 = vmatpush1.bf16.msra.mxu1 %v15815_v28  ;;  %11395 = vmatprep.subr.bf16.mxu0 %v15820_v17  ;;  %v13579_v28 = vcombine.high %v7675_v43, %v7675_v43  ;;  %v13578_v17 = vcombine.low %v7675_v43, %v7675_v43 }
 0x738   : > { %11436 = vmatprep.subr.bf16.mxu1 %v15823_v24  ;;  %v10880_v24 = vsel %vm10818_vm7, %v13576_v25, 0 }
 0x73a   : > { %11396 = vmatpush1.bf16.msra.mxu0 %v15818_v31  ;;  %v15848_v31 = vld [vmem:[#allocation16 + $0x64] ss:$200 sps:$4 sm:$0xff]  }
 0x73b   : > { %11437 = vmatpush1.bf16.msra.mxu1 %v15821_v42  ;;  %11397 = vmatprep.subr.bf16.mxu0 %v15826_v9  ;;  %v10886_v42 = vsel %vm10818_vm7, %v13578_v17, 0  ;;  %v15851_v9 = vld [vmem:[#allocation16 + $0x6c] ss:$200 sps:$4 sm:$0xff]  }
 0x73c   : > { %11438 = vmatprep.subr.bf16.mxu1 %v15829_v44  ;;  %v15846_v44 = vld [vmem:[#allocation16 + $0x60] ss:$200 sps:$4 sm:$0xff]  }
 0x73e   : > { %11398 = vmatpush1.bf16.msra.mxu0 %v15824_v4  ;;  %v15849_v4 = vld [vmem:[#allocation16 + $0x68] ss:$200 sps:$4 sm:$0xff]  }
 0x73f   : > { %11439 = vmatpush1.bf16.msra.mxu1 %v15827_v6  ;;  %11399 = vmatprep.subr.bf16.mxu0 %v15832_v59  ;;  %v15854_v6 = vld [vmem:[#allocation16 + $0x1f4] ss:$200 sps:$4 sm:$0xff]  }
 0x740   : > { %11440 = vmatprep.subr.bf16.mxu1 %v15835_v36  ;;  %v15857_v59 = vld [vmem:[#allocation16 + $0x1fc] ss:$200 sps:$4 sm:$0xff]   ;;  %v15852_v36 = vld [vmem:[#allocation16 + $0x1f0] ss:$200 sps:$4 sm:$0xff]  }
 0x742   : > { %11400 = vmatpush1.bf16.msra.mxu0 %v15830_v39  ;;  %v15855_v39 = vld [vmem:[#allocation16 + $0x1f8] ss:$200 sps:$4 sm:$0xff]  }
 0x743   : > { %11441 = vmatpush1.bf16.msra.mxu1 %v15833_v50  ;;  %11401 = vmatprep.subr.bf16.mxu0 %v15838_v62  ;;  %v15860_v50 = vld [vmem:[#allocation16 + $0x384] ss:$200 sps:$4 sm:$0xff]  }
 0x744   : > { %11442 = vmatprep.subr.bf16.mxu1 %v15841_v27 }
 0x746   : > { %11402 = vmatpush1.bf16.msra.mxu0 %v15836_v11 }
 0x747   : > { %11443 = vmatpush1.bf16.msra.mxu1 %v15839_v20  ;;  %13626 = vmatprep.subr.msk.bf16.mxu0 %vm10818_vm7, %v13577_v49 }
 0x748   : > { %13628 = vmatprep.subr.msk.bf16.mxu1 %vm10818_vm7, %v13579_v28 }
 0x74a   : > { %11404 = vmatpush1.bf16.msra.mxu0 %v10880_v24 }
 0x74b   : > { %11445 = vmatpush1.bf16.msra.mxu1 %v10886_v42  ;;  %11461 = vmatprep.subr.bf16.mxu0 %v15848_v31  ;;  %v15858_v31 = vld [vmem:[#allocation16 + $0x380] ss:$200 sps:$4 sm:$0xff]  }
 0x74c   : > { %11502 = vmatprep.subr.bf16.mxu1 %v15851_v9  ;;  %v15866_v9 = vld [vmem:[#allocation16 + $0x514] ss:$200 sps:$4 sm:$0xff]  }
 0x74d   : > { %11412 = vmatmul.mubr.bf16.vlgmr.msra.gmra.mrb[72].mxu0 %v17760_v7 }
 0x74e   : > { %11453 = vmatmul.mubr.bf16.vlgmr.msra.gmra.mrb[80].mxu1 %v17760_v7  ;;  %11462 = vmatpush1.bf16.msra.mxu0 %v15846_v44  ;;  %v15869_v44 = vld [vmem:[#allocation16 + $0x51c] ss:$200 sps:$4 sm:$0xff]  }
 0x74f   : > { %13631 = vmatprep.mubr.msk.bf16.mxu0 %vm10814_vm8, %v17758_v22  ;;  %11503 = vmatpush1.bf16.msra.mxu1 %v15849_v4  ;;  %v15872_v4 = vld [vmem:[#allocation16 + $0x6a4] ss:$200 sps:$4 sm:$0xff]  }
 0x750   : > { %13633 = vmatprep.mubr.msk.bf16.mxu1 %vm10814_vm8, %v17758_v22  ;;  %v11085_v62 = vpop.f32.mrb[56].mxu0  ;;  %v11126_v27 = vpop.f32.mrb[64].mxu1  ;;  %11463 = vmatprep.subr.bf16.mxu0 %v15854_v6  ;;  %v15875_v6 = vld [vmem:[#allocation16 + $0x6ac] ss:$200 sps:$4 sm:$0xff]  }
 0x751   : > { %v11998_v43 = vmul.f32 %v11085_v62, %v17595_v56  ;;  %v12000_v11 = vmul.f32 %v11126_v27, %v17586_v46  ;;  %v11087_v20 = vpop.f32.mrb[57].mxu0  ;;  %v11128_v49 = vpop.f32.mrb[65].mxu1  ;;  %11504 = vmatprep.subr.bf16.mxu1 %v15857_v59  ;;  %v15861_v46 = vld [vmem:[#allocation16 + $0x388] ss:$200 sps:$4 sm:$0xff]   ;;  %v15879_v27 = vld [vmem:[#allocation16 + $0x838] ss:$200 sps:$4 sm:$0xff]  }
 0x752   : > { %v11999_v25 = vmul.f32 %v11087_v20, %v17597_v1  ;;  %v12001_v28 = vmul.f32 %v11128_v49, %v17588_v26  ;;  %v11089_v17 = vpop.f32.mrb[58].mxu0  ;;  %v11130_v24 = vpop.f32.mrb[66].mxu1  ;;  %11464 = vmatpush1.bf16.msra.mxu0 %v15852_v36  ;;  %v15864_v1 = vld [vmem:[#allocation16 + $0x510] ss:$200 sps:$4 sm:$0xff]   ;;  %v15870_v59 = vld [vmem:[#allocation16 + $0x6a0] ss:$200 sps:$4 sm:$0xff]  }
 0x753   : > { %12048 = vst [vmem:[%s17825_s19 + $0x20] sm:$0xff] %v11998_v43  ;;  %12050 = vst [vmem:[%s17825_s19 + $0x30] sm:$0xff] %v12000_v11  ;;  %11505 = vmatpush1.bf16.msra.mxu1 %v15855_v39  ;;  %v11090_v42 = vpop.f32.mrb[59].mxu0  ;;  %v11131_v56 = vpop.f32.mrb[67].mxu1  ;;  %11465 = vmatprep.subr.bf16.mxu0 %v15860_v50  ;;  %v15867_v26 = vld [vmem:[#allocation16 + $0x518] ss:$200 sps:$4 sm:$0xff]  }
 0x754   : > { %12049 = vst [vmem:[%s17825_s19 + $0x28] sm:$0xff] %v11999_v25  ;;  %12051 = vst [vmem:[%s17825_s19 + $0x38] sm:$0xff] %v12001_v28  ;;  %11506 = vmatprep.subr.bf16.mxu1 %v15863_v47  ;;  %v15873_v36 = vld [vmem:[#allocation16 + $0x6a8] ss:$200 sps:$4 sm:$0xff]   ;;  %v15878_v39 = vld [vmem:[#allocation16 + $0x834] ss:$200 sps:$4 sm:$0xff]  }
 0x755   : > { %v15881_v50 = vld [vmem:[#allocation16 + $0x83c] ss:$200 sps:$4 sm:$0xff]   ;;  %v15876_v62 = vld [vmem:[#allocation16 + $0x830] ss:$200 sps:$4 sm:$0xff]   ;;  %v15887_v43 = vld [vmem:[#allocation16 + $0x9cc] ss:$200 sps:$4 sm:$0xff]  }
 0x756   : > { %11466 = vmatpush1.bf16.msra.mxu0 %v15858_v31  ;;  %v15884_v47 = vld [vmem:[#allocation16 + $0x9c4] ss:$200 sps:$4 sm:$0xff]   ;;  %v15882_v11 = vld [vmem:[#allocation16 + $0x9c0] ss:$200 sps:$4 sm:$0xff]   ;;  %v15890_v49 = vld [vmem:[#allocation16 + $0xb54] ss:$200 sps:$4 sm:$0xff]  }
 0x757   : > { %11507 = vmatpush1.bf16.msra.mxu1 %v15861_v46  ;;  %11467 = vmatprep.subr.bf16.mxu0 %v15866_v9  ;;  %v15885_v20 = vld [vmem:[#allocation16 + $0x9c8] ss:$200 sps:$4 sm:$0xff]   ;;  %v15893_v25 = vld [vmem:[#allocation16 + $0xb5c] ss:$200 sps:$4 sm:$0xff]   ;;  %v15891_v17 = vld [vmem:[#allocation16 + $0xb58] ss:$200 sps:$4 sm:$0xff]  }
 0x758   : > { %11508 = vmatprep.subr.bf16.mxu1 %v15869_v44  ;;  %v15888_v28 = vld [vmem:[#allocation16 + $0xb50] ss:$200 sps:$4 sm:$0xff]   ;;  %v15896_v24 = vld [vmem:[#allocation16 + $0xce4] ss:$200 sps:$4 sm:$0xff]   ;;  %v15894_v42 = vld [vmem:[#allocation16 + $0xce0] ss:$200 sps:$4 sm:$0xff]  }
 0x759   : > { %v15899_v31 = vld [vmem:[#allocation16 + $0xcec] ss:$200 sps:$4 sm:$0xff]   ;;  %v15897_v56 = vld [vmem:[#allocation16 + $0xce8] ss:$200 sps:$4 sm:$0xff]   ;;  %v15905_v9 = vld [vmem:[#allocation16 + $0xe7c] ss:$200 sps:$4 sm:$0xff]  }
 0x75a   : > { %11468 = vmatpush1.bf16.msra.mxu0 %v15864_v1  ;;  %v15902_v46 = vld [vmem:[#allocation16 + $0xe74] ss:$200 sps:$4 sm:$0xff]   ;;  %v15900_v44 = vld [vmem:[#allocation16 + $0xe70] ss:$200 sps:$4 sm:$0xff]  }
 0x75b   : > { %11509 = vmatpush1.bf16.msra.mxu1 %v15867_v26  ;;  %11469 = vmatprep.subr.bf16.mxu0 %v15872_v4  ;;  %v15903_v1 = vld [vmem:[#allocation16 + $0xe78] ss:$200 sps:$4 sm:$0xff]   ;;  %v15908_v26 = vld [vmem:[#allocation16 + $0x1004] ss:$200 sps:$4 sm:$0xff]  }
 0x75c   : > { %11510 = vmatprep.subr.bf16.mxu1 %v15875_v6  ;;  %v15911_v4 = vld [vmem:[#allocation16 + $0x100c] ss:$200 sps:$4 sm:$0xff]   ;;  %v15906_v6 = vld [vmem:[#allocation16 + $0x1000] ss:$200 sps:$4 sm:$0xff]  }
 0x75e   : > { %11470 = vmatpush1.bf16.msra.mxu0 %v15870_v59  ;;  %v15909_v59 = vld [vmem:[#allocation16 + $0x1008] ss:$200 sps:$4 sm:$0xff]  }
 0x75f   : > { %11511 = vmatpush1.bf16.msra.mxu1 %v15873_v36  ;;  %11471 = vmatprep.subr.bf16.mxu0 %v15878_v39  ;;  %v15914_v36 = vld [vmem:[#allocation16 + $0x1194] ss:$200 sps:$4 sm:$0xff]  }
 0x760   : > { %11512 = vmatprep.subr.bf16.mxu1 %v15881_v50  ;;  %v15917_v39 = vld [vmem:[#allocation16 + $0x119c] ss:$200 sps:$4 sm:$0xff]  }
 0x761   : > { %v7676_v50 = vld [vmem:[#allocation16 + $0x1320] sm:$0xff] }
 0x762   : > { %11472 = vmatpush1.bf16.msra.mxu0 %v15876_v62  ;;  %v7677_v62 = vld [vmem:[#allocation16 + $0x1328] sm:$0xff] }
 0x763   : > { %11513 = vmatpush1.bf16.msra.mxu1 %v15879_v27  ;;  %11473 = vmatprep.subr.bf16.mxu0 %v15884_v47  ;;  %v15912_v27 = vld [vmem:[#allocation16 + $0x1190] ss:$200 sps:$4 sm:$0xff]  }
 0x764   : > { %11514 = vmatprep.subr.bf16.mxu1 %v15887_v43  ;;  %v15915_v47 = vld [vmem:[#allocation16 + $0x1198] ss:$200 sps:$4 sm:$0xff]   ;;  %v13581_v43 = vcombine.high %v7676_v50, %v7676_v50 }
 0x766   : > { %11474 = vmatpush1.bf16.msra.mxu0 %v15882_v11  ;;  %v13580_v11 = vcombine.low %v7676_v50, %v7676_v50 }
 0x767   : > { %11515 = vmatpush1.bf16.msra.mxu1 %v15885_v20  ;;  %11475 = vmatprep.subr.bf16.mxu0 %v15890_v49  ;;  %v13583_v20 = vcombine.high %v7677_v62, %v7677_v62  ;;  %v13582_v49 = vcombine.low %v7677_v62, %v7677_v62 }
 0x768   : > { %11516 = vmatprep.subr.bf16.mxu1 %v15893_v25  ;;  %v10892_v25 = vsel %vm10818_vm7, %v13580_v11, 0 }
 0x76a   : > { %11476 = vmatpush1.bf16.msra.mxu0 %v15888_v28  ;;  %v15924_v28 = vld [vmem:[#allocation16 + $0x74] ss:$200 sps:$4 sm:$0xff]  }
 0x76b   : > { %11517 = vmatpush1.bf16.msra.mxu1 %v15891_v17  ;;  %11477 = vmatprep.subr.bf16.mxu0 %v15896_v24  ;;  %v10898_v17 = vsel %vm10818_vm7, %v13582_v49, 0  ;;  %v15927_v24 = vld [vmem:[#allocation16 + $0x7c] ss:$200 sps:$4 sm:$0xff]  }
 0x76c   : > { %11518 = vmatprep.subr.bf16.mxu1 %v15899_v31  ;;  %v15922_v31 = vld [vmem:[#allocation16 + $0x70] ss:$200 sps:$4 sm:$0xff]   ;;  %v15942_v49 = vld [vmem:[#allocation16 + $0x524] ss:$200 sps:$4 sm:$0xff]  }
 0x76e   : > { %11478 = vmatpush1.bf16.msra.mxu0 %v15894_v42  ;;  %v15925_v42 = vld [vmem:[#allocation16 + $0x78] ss:$200 sps:$4 sm:$0xff]  }
 0x76f   : > { %11519 = vmatpush1.bf16.msra.mxu1 %v15897_v56  ;;  %11479 = vmatprep.subr.bf16.mxu0 %v15902_v46  ;;  %v15930_v56 = vld [vmem:[#allocation16 + $0x204] ss:$200 sps:$4 sm:$0xff]  }
 0x770   : > { %11520 = vmatprep.subr.bf16.mxu1 %v15905_v9  ;;  %v15933_v46 = vld [vmem:[#allocation16 + $0x20c] ss:$200 sps:$4 sm:$0xff]   ;;  %v15928_v9 = vld [vmem:[#allocation16 + $0x200] ss:$200 sps:$4 sm:$0xff]  }
 0x772   : > { %11480 = vmatpush1.bf16.msra.mxu0 %v15900_v44  ;;  %v15931_v44 = vld [vmem:[#allocation16 + $0x208] ss:$200 sps:$4 sm:$0xff]  }
 0x773   : > { %11521 = vmatpush1.bf16.msra.mxu1 %v15903_v1  ;;  %11481 = vmatprep.subr.bf16.mxu0 %v15908_v26  ;;  %v15936_v1 = vld [vmem:[#allocation16 + $0x394] ss:$200 sps:$4 sm:$0xff]  }
 0x774   : > { %11522 = vmatprep.subr.bf16.mxu1 %v15911_v4  ;;  %v15939_v4 = vld [vmem:[#allocation16 + $0x39c] ss:$200 sps:$4 sm:$0xff]  }
 0x776   : > { %11482 = vmatpush1.bf16.msra.mxu0 %v15906_v6 }
 0x777   : > { %11523 = vmatpush1.bf16.msra.mxu1 %v15909_v59  ;;  %11483 = vmatprep.subr.bf16.mxu0 %v15914_v36 }
 0x778   : > { %11524 = vmatprep.subr.bf16.mxu1 %v15917_v39 }
 0x77a   : > { %11484 = vmatpush1.bf16.msra.mxu0 %v15912_v27 }
 0x77b   : > { %11525 = vmatpush1.bf16.msra.mxu1 %v15915_v47  ;;  %13630 = vmatprep.subr.msk.bf16.mxu0 %vm10818_vm7, %v13581_v43  ;;  %v15934_v47 = vld [vmem:[#allocation16 + $0x390] ss:$200 sps:$4 sm:$0xff]  }
 0x77c   : > { %13632 = vmatprep.subr.msk.bf16.mxu1 %vm10818_vm7, %v13583_v20  ;;  %v15937_v20 = vld [vmem:[#allocation16 + $0x398] ss:$200 sps:$4 sm:$0xff]  }
 0x77e   : > { %11486 = vmatpush1.bf16.msra.mxu0 %v10892_v25 }
 0x77f   : > { %11527 = vmatpush1.bf16.msra.mxu1 %v10898_v17  ;;  %11543 = vmatprep.subr.bf16.mxu0 %v15924_v28  ;;  %v15943_v28 = vld [vmem:[#allocation16 + $0x528] ss:$200 sps:$4 sm:$0xff]   ;;  %v15948_v17 = vld [vmem:[#allocation16 + $0x6b4] ss:$200 sps:$4 sm:$0xff]  }
 0x780   : > { %11584 = vmatprep.subr.bf16.mxu1 %v15927_v24  ;;  %v15946_v24 = vld [vmem:[#allocation16 + $0x6b0] ss:$200 sps:$4 sm:$0xff]  }
 0x781   : > { %11494 = vmatmul.mubr.bf16.vlgmr.msra.gmra.mrb[76].mxu0 %v17760_v7 }
 0x782   : > { %11535 = vmatmul.mubr.bf16.vlgmr.msra.gmra.mrb[84].mxu1 %v17760_v7  ;;  %11544 = vmatpush1.bf16.msra.mxu0 %v15922_v31  ;;  %v15949_v31 = vld [vmem:[#allocation16 + $0x6b8] ss:$200 sps:$4 sm:$0xff]  }
 0x783   : > { %13635 = vmatprep.mubr.msk.bf16.mxu0 %vm10814_vm8, %v17758_v22  ;;  %11585 = vmatpush1.bf16.msra.mxu1 %v15925_v42  ;;  %v15954_v42 = vld [vmem:[#allocation16 + $0x844] ss:$200 sps:$4 sm:$0xff]  }
 0x784   : > { %13637 = vmatprep.mubr.msk.bf16.mxu1 %vm10814_vm8, %v17758_v22  ;;  %v11167_v26 = vpop.f32.mrb[60].mxu0  ;;  %11545 = vmatprep.subr.bf16.mxu0 %v15930_v56  ;;  %v15957_v56 = vld [vmem:[#allocation16 + $0x84c] ss:$200 sps:$4 sm:$0xff]  }
 0x785   : > { %v12002_v6 = vmul.f32 %v11167_v26, %v17618_v30  ;;  %v11208_v59 = vpop.f32.mrb[68].mxu1  ;;  %v11169_v36 = vpop.f32.mrb[61].mxu0  ;;  %11586 = vmatprep.subr.bf16.mxu1 %v15933_v46  ;;  %v15952_v46 = vld [vmem:[#allocation16 + $0x840] ss:$200 sps:$4 sm:$0xff]   ;;  %v15958_v26 = vld [vmem:[#allocation16 + $0x9d0] ss:$200 sps:$4 sm:$0xff]  }
 0x786   : > { %v12004_v39 = vmul.f32 %v11208_v59, %v17604_v61  ;;  %v12003_v50 = vmul.f32 %v11169_v36, %v17620_v51  ;;  %v11210_v62 = vpop.f32.mrb[69].mxu1  ;;  %v11171_v27 = vpop.f32.mrb[62].mxu0  ;;  %11546 = vmatpush1.bf16.msra.mxu0 %v15928_v9  ;;  %v15945_v61 = vld [vmem:[#allocation16 + $0x52c] ss:$200 sps:$4 sm:$0xff]   ;;  %v15940_v51 = vld [vmem:[#allocation16 + $0x520] ss:$200 sps:$4 sm:$0xff]  }
 0x787   : > { %12052 = vst [vmem:[%s17825_s19 + $0x40] sm:$0xff] %v12002_v6  ;;  %v12005_v43 = vmul.f32 %v11210_v62, %v17606_v54  ;;  %v11212_v11 = vpop.f32.mrb[70].mxu1  ;;  %11587 = vmatpush1.bf16.msra.mxu1 %v15931_v44  ;;  %v11172_v30 = vpop.f32.mrb[63].mxu0  ;;  %11547 = vmatprep.subr.bf16.mxu0 %v15936_v1  ;;  %v15951_v54 = vld [vmem:[#allocation16 + $0x6bc] ss:$200 sps:$4 sm:$0xff]  }
 0x788   : > { %12054 = vst [vmem:[%s17825_s19 + $0x50] sm:$0xff] %v12004_v39  ;;  %12053 = vst [vmem:[%s17825_s19 + $0x48] sm:$0xff] %v12003_v50  ;;  %v11213_v25 = vpop.f32.mrb[71].mxu1  ;;  %11588 = vmatprep.subr.bf16.mxu1 %v15939_v4  ;;  %v15955_v9 = vld [vmem:[#allocation16 + $0x848] ss:$200 sps:$4 sm:$0xff]  }
 0x789   : > { %12055 = vst [vmem:[%s17825_s19 + $0x58] sm:$0xff] %v12005_v43  ;;  %v15960_v44 = vld [vmem:[#allocation16 + $0x9d4] ss:$200 sps:$4 sm:$0xff]   ;;  %v15961_v4 = vld [vmem:[#allocation16 + $0x9d8] ss:$200 sps:$4 sm:$0xff]  }
 0x78a   : > { %11548 = vmatpush1.bf16.msra.mxu0 %v15934_v47  ;;  %v15963_v1 = vld [vmem:[#allocation16 + $0x9dc] ss:$200 sps:$4 sm:$0xff]   ;;  %v15969_v59 = vld [vmem:[#allocation16 + $0xb6c] ss:$200 sps:$4 sm:$0xff]   ;;  %v15964_v36 = vld [vmem:[#allocation16 + $0xb60] ss:$200 sps:$4 sm:$0xff]  }
 0x78b   : > { %11589 = vmatpush1.bf16.msra.mxu1 %v15937_v20  ;;  %11549 = vmatprep.subr.bf16.mxu0 %v15942_v49  ;;  %v15966_v6 = vld [vmem:[#allocation16 + $0xb64] ss:$200 sps:$4 sm:$0xff]   ;;  %v15967_v39 = vld [vmem:[#allocation16 + $0xb68] ss:$200 sps:$4 sm:$0xff]   ;;  %v15972_v50 = vld [vmem:[#allocation16 + $0xcf4] ss:$200 sps:$4 sm:$0xff]  }
 0x78c   : > { %11590 = vmatprep.subr.bf16.mxu1 %v15945_v61  ;;  %v15975_v62 = vld [vmem:[#allocation16 + $0xcfc] ss:$200 sps:$4 sm:$0xff]   ;;  %v15970_v27 = vld [vmem:[#allocation16 + $0xcf0] ss:$200 sps:$4 sm:$0xff]   ;;  %v15981_v11 = vld [vmem:[#allocation16 + $0xe8c] ss:$200 sps:$4 sm:$0xff]  }
 0x78d   : > { %v15973_v47 = vld [vmem:[#allocation16 + $0xcf8] ss:$200 sps:$4 sm:$0xff]   ;;  %v15978_v43 = vld [vmem:[#allocation16 + $0xe84] ss:$200 sps:$4 sm:$0xff]   ;;  %v15979_v20 = vld [vmem:[#allocation16 + $0xe88] ss:$200 sps:$4 sm:$0xff]  }
 0x78e   : > { %11550 = vmatpush1.bf16.msra.mxu0 %v15940_v51  ;;  %v15976_v30 = vld [vmem:[#allocation16 + $0xe80] ss:$200 sps:$4 sm:$0xff]   ;;  %v15984_v49 = vld [vmem:[#allocation16 + $0x1014] ss:$200 sps:$4 sm:$0xff]   ;;  %v15982_v61 = vld [vmem:[#allocation16 + $0x1010] ss:$200 sps:$4 sm:$0xff]  }
 0x78f   : > { %11591 = vmatpush1.bf16.msra.mxu1 %v15943_v28  ;;  %11551 = vmatprep.subr.bf16.mxu0 %v15948_v17  ;;  %v15987_v25 = vld [vmem:[#allocation16 + $0x101c] ss:$200 sps:$4 sm:$0xff]   ;;  %v15985_v51 = vld [vmem:[#allocation16 + $0x1018] ss:$200 sps:$4 sm:$0xff]   ;;  %v15993_v17 = vld [vmem:[#allocation16 + $0x11ac] ss:$200 sps:$4 sm:$0xff]  }
 0x790   : > { %11592 = vmatprep.subr.bf16.mxu1 %v15951_v54  ;;  %v15990_v28 = vld [vmem:[#allocation16 + $0x11a4] ss:$200 sps:$4 sm:$0xff]   ;;  %v7678_v54 = vld [vmem:[#allocation16 + $0x1330] sm:$0xff] }
 0x792   : > { %11552 = vmatpush1.bf16.msra.mxu0 %v15946_v24  ;;  %v7679_v24 = vld [vmem:[#allocation16 + $0x1338] sm:$0xff] }
 0x793   : > { %11593 = vmatpush1.bf16.msra.mxu1 %v15949_v31  ;;  %11553 = vmatprep.subr.bf16.mxu0 %v15954_v42  ;;  %v15988_v31 = vld [vmem:[#allocation16 + $0x11a0] ss:$200 sps:$4 sm:$0xff]  }
 0x794   : > { %11594 = vmatprep.subr.bf16.mxu1 %v15957_v56  ;;  %v15991_v42 = vld [vmem:[#allocation16 + $0x11a8] ss:$200 sps:$4 sm:$0xff]   ;;  %v13585_v56 = vcombine.high %v7678_v54, %v7678_v54 }
 0x796   : > { %11554 = vmatpush1.bf16.msra.mxu0 %v15952_v46  ;;  %v13584_v46 = vcombine.low %v7678_v54, %v7678_v54 }
 0x797   : > { %11595 = vmatpush1.bf16.msra.mxu1 %v15955_v9  ;;  %11555 = vmatprep.subr.bf16.mxu0 %v15960_v44  ;;  %v13587_v9 = vcombine.high %v7679_v24, %v7679_v24  ;;  %v13586_v44 = vcombine.low %v7679_v24, %v7679_v24 }
 0x798   : > { %11596 = vmatprep.subr.bf16.mxu1 %v15963_v1  ;;  %v10904_v1 = vsel %vm10818_vm7, %v13584_v46, 0  ;;  %v16019_v46 = vld [vmem:[#allocation16 + $0x538] ss:$200 sps:$4 sm:$0xff]  }
 0x79a   : > { %11556 = vmatpush1.bf16.msra.mxu0 %v15958_v26  ;;  %v16000_v26 = vld [vmem:[#allocation16 + $0x84] ss:$200 sps:$4 sm:$0xff]  }
 0x79b   : > { %11597 = vmatpush1.bf16.msra.mxu1 %v15961_v4  ;;  %11557 = vmatprep.subr.bf16.mxu0 %v15966_v6  ;;  %v10910_v4 = vsel %vm10818_vm7, %v13586_v44, 0  ;;  %v16003_v6 = vld [vmem:[#allocation16 + $0x8c] ss:$200 sps:$4 sm:$0xff]   ;;  %v16022_v44 = vld [vmem:[#allocation16 + $0x6c0] ss:$200 sps:$4 sm:$0xff]  }
 0x79c   : > { %11598 = vmatprep.subr.bf16.mxu1 %v15969_v59  ;;  %v15998_v59 = vld [vmem:[#allocation16 + $0x80] ss:$200 sps:$4 sm:$0xff]  }
 0x79e   : > { %11558 = vmatpush1.bf16.msra.mxu0 %v15964_v36  ;;  %v16001_v36 = vld [vmem:[#allocation16 + $0x88] ss:$200 sps:$4 sm:$0xff]  }
 0x79f   : > { %11599 = vmatpush1.bf16.msra.mxu1 %v15967_v39  ;;  %11559 = vmatprep.subr.bf16.mxu0 %v15972_v50  ;;  %v16006_v39 = vld [vmem:[#allocation16 + $0x214] ss:$200 sps:$4 sm:$0xff]  }
 0x7a0   : > { %11600 = vmatprep.subr.bf16.mxu1 %v15975_v62  ;;  %v16009_v50 = vld [vmem:[#allocation16 + $0x21c] ss:$200 sps:$4 sm:$0xff]   ;;  %v16004_v62 = vld [vmem:[#allocation16 + $0x210] ss:$200 sps:$4 sm:$0xff]  }
 0x7a2   : > { %11560 = vmatpush1.bf16.msra.mxu0 %v15970_v27  ;;  %v16007_v27 = vld [vmem:[#allocation16 + $0x218] ss:$200 sps:$4 sm:$0xff]  }
 0x7a3   : > { %11601 = vmatpush1.bf16.msra.mxu1 %v15973_v47  ;;  %11561 = vmatprep.subr.bf16.mxu0 %v15978_v43  ;;  %v16012_v47 = vld [vmem:[#allocation16 + $0x3a4] ss:$200 sps:$4 sm:$0xff]  }
 0x7a4   : > { %11602 = vmatprep.subr.bf16.mxu1 %v15981_v11  ;;  %v16015_v11 = vld [vmem:[#allocation16 + $0x3ac] ss:$200 sps:$4 sm:$0xff]  }
 0x7a6   : > { %11562 = vmatpush1.bf16.msra.mxu0 %v15976_v30 }
 0x7a7   : > { %11603 = vmatpush1.bf16.msra.mxu1 %v15979_v20  ;;  %11563 = vmatprep.subr.bf16.mxu0 %v15984_v49 }
 0x7a8   : > { %11604 = vmatprep.subr.bf16.mxu1 %v15987_v25 }
 0x7aa   : > { %11564 = vmatpush1.bf16.msra.mxu0 %v15982_v61 }
 0x7ab   : > { %11605 = vmatpush1.bf16.msra.mxu1 %v15985_v51  ;;  %11565 = vmatprep.subr.bf16.mxu0 %v15990_v28 }
 0x7ac   : > { %11606 = vmatprep.subr.bf16.mxu1 %v15993_v17  ;;  %v16010_v17 = vld [vmem:[#allocation16 + $0x3a0] ss:$200 sps:$4 sm:$0xff]  }
 0x7ae   : > { %11566 = vmatpush1.bf16.msra.mxu0 %v15988_v31  ;;  %v16013_v31 = vld [vmem:[#allocation16 + $0x3a8] ss:$200 sps:$4 sm:$0xff]  }
 0x7af   : > { %11607 = vmatpush1.bf16.msra.mxu1 %v15991_v42  ;;  %13634 = vmatprep.subr.msk.bf16.mxu0 %vm10818_vm7, %v13585_v56  ;;  %v16018_v42 = vld [vmem:[#allocation16 + $0x534] ss:$200 sps:$4 sm:$0xff]  }
 0x7b0   : > { %13636 = vmatprep.subr.msk.bf16.mxu1 %vm10818_vm7, %v13587_v9  ;;  %v16024_v9 = vld [vmem:[#allocation16 + $0x6c4] ss:$200 sps:$4 sm:$0xff]  }
 0x7b2   : > { %11568 = vmatpush1.bf16.msra.mxu0 %v10904_v1  ;;  %v16025_v1 = vld [vmem:[#allocation16 + $0x6c8] ss:$200 sps:$4 sm:$0xff]  }
 0x7b3   : > { %11609 = vmatpush1.bf16.msra.mxu1 %v10910_v4  ;;  %11625 = vmatprep.subr.bf16.mxu0 %v16000_v26  ;;  %v16030_v26 = vld [vmem:[#allocation16 + $0x854] ss:$200 sps:$4 sm:$0xff]  }
 0x7b4   : > { %11666 = vmatprep.subr.bf16.mxu1 %v16003_v6  ;;  %v16033_v4 = vld [vmem:[#allocation16 + $0x85c] ss:$200 sps:$4 sm:$0xff]   ;;  %v16028_v6 = vld [vmem:[#allocation16 + $0x850] ss:$200 sps:$4 sm:$0xff]  }
 0x7b5   : > { %11576 = vmatmul.mubr.bf16.vlgmr.msra.gmra.mrb[80].mxu0 %v17760_v7 }
 0x7b6   : > { %11617 = vmatmul.mubr.bf16.vlgmr.msra.gmra.mrb[88].mxu1 %v17760_v7  ;;  %11626 = vmatpush1.bf16.msra.mxu0 %v15998_v59  ;;  %v16031_v59 = vld [vmem:[#allocation16 + $0x858] ss:$200 sps:$4 sm:$0xff]  }
 0x7b7   : > { %13639 = vmatprep.mubr.msk.bf16.mxu0 %vm10814_vm8, %v17758_v22  ;;  %11667 = vmatpush1.bf16.msra.mxu1 %v16001_v36  ;;  %v16036_v36 = vld [vmem:[#allocation16 + $0x9e4] ss:$200 sps:$4 sm:$0xff]  }
 0x7b8   : > { %13641 = vmatprep.mubr.msk.bf16.mxu1 %vm10814_vm8, %v17758_v22  ;;  %v11249_v43 = vpop.f32.mrb[64].mxu0  ;;  %11627 = vmatprep.subr.bf16.mxu0 %v16006_v39  ;;  %v16039_v39 = vld [vmem:[#allocation16 + $0x9ec] ss:$200 sps:$4 sm:$0xff]  }
 0x7b9   : > { %v12006_v30 = vmul.f32 %v11249_v43, %v17636_v48  ;;  %v11290_v20 = vpop.f32.mrb[72].mxu1  ;;  %v11251_v49 = vpop.f32.mrb[65].mxu0  ;;  %11668 = vmatprep.subr.bf16.mxu1 %v16009_v50  ;;  %v16034_v50 = vld [vmem:[#allocation16 + $0x9e0] ss:$200 sps:$4 sm:$0xff]   ;;  %v16040_v43 = vld [vmem:[#allocation16 + $0xb70] ss:$200 sps:$4 sm:$0xff]  }
 0x7ba   : > { %v12008_v25 = vmul.f32 %v11290_v20, %v17627_v55  ;;  %v12007_v61 = vmul.f32 %v11251_v49, %v17638_v34  ;;  %v11292_v51 = vpop.f32.mrb[73].mxu1  ;;  %v11253_v28 = vpop.f32.mrb[66].mxu0  ;;  %11628 = vmatpush1.bf16.msra.mxu0 %v16004_v62  ;;  %v16021_v55 = vld [vmem:[#allocation16 + $0x53c] ss:$200 sps:$4 sm:$0xff]   ;;  %v16016_v34 = vld [vmem:[#allocation16 + $0x530] ss:$200 sps:$4 sm:$0xff]  }
 0x7bb   : > { %12056 = vst [vmem:[%s17825_s19 + $0x60] sm:$0xff] %v12006_v30  ;;  %v12009_v54 = vmul.f32 %v11292_v51, %v17629_v63  ;;  %v11294_v24 = vpop.f32.mrb[74].mxu1  ;;  %11669 = vmatpush1.bf16.msra.mxu1 %v16007_v27  ;;  %v11254_v48 = vpop.f32.mrb[67].mxu0  ;;  %11629 = vmatprep.subr.bf16.mxu0 %v16012_v47  ;;  %v16027_v63 = vld [vmem:[#allocation16 + $0x6cc] ss:$200 sps:$4 sm:$0xff]  }
 0x7bc   : > { %12058 = vst [vmem:[%s17825_s19 + $0x70] sm:$0xff] %v12008_v25  ;;  %12057 = vst [vmem:[%s17825_s19 + $0x68] sm:$0xff] %v12007_v61  ;;  %v11295_v56 = vpop.f32.mrb[75].mxu1  ;;  %11670 = vmatprep.subr.bf16.mxu1 %v16015_v11  ;;  %v16037_v62 = vld [vmem:[#allocation16 + $0x9e8] ss:$200 sps:$4 sm:$0xff]  }
 0x7bd   : > { %12059 = vst [vmem:[%s17825_s19 + $0x78] sm:$0xff] %v12009_v54  ;;  %v16042_v27 = vld [vmem:[#allocation16 + $0xb74] ss:$200 sps:$4 sm:$0xff]   ;;  %v16043_v11 = vld [vmem:[#allocation16 + $0xb78] ss:$200 sps:$4 sm:$0xff]  }
 0x7be   : > { %11630 = vmatpush1.bf16.msra.mxu0 %v16010_v17  ;;  %v16045_v47 = vld [vmem:[#allocation16 + $0xb7c] ss:$200 sps:$4 sm:$0xff]   ;;  %v16051_v20 = vld [vmem:[#allocation16 + $0xd0c] ss:$200 sps:$4 sm:$0xff]   ;;  %v16046_v49 = vld [vmem:[#allocation16 + $0xd00] ss:$200 sps:$4 sm:$0xff]  }
 0x7bf   : > { %11671 = vmatpush1.bf16.msra.mxu1 %v16013_v31  ;;  %11631 = vmatprep.subr.bf16.mxu0 %v16018_v42  ;;  %v16048_v30 = vld [vmem:[#allocation16 + $0xd04] ss:$200 sps:$4 sm:$0xff]   ;;  %v16049_v25 = vld [vmem:[#allocation16 + $0xd08] ss:$200 sps:$4 sm:$0xff]   ;;  %v16054_v61 = vld [vmem:[#allocation16 + $0xe94] ss:$200 sps:$4 sm:$0xff]  }
 0x7c0   : > { %11672 = vmatprep.subr.bf16.mxu1 %v16021_v55  ;;  %v16057_v51 = vld [vmem:[#allocation16 + $0xe9c] ss:$200 sps:$4 sm:$0xff]   ;;  %v16052_v28 = vld [vmem:[#allocation16 + $0xe90] ss:$200 sps:$4 sm:$0xff]   ;;  %v16063_v24 = vld [vmem:[#allocation16 + $0x102c] ss:$200 sps:$4 sm:$0xff]  }
 0x7c1   : > { %v16055_v17 = vld [vmem:[#allocation16 + $0xe98] ss:$200 sps:$4 sm:$0xff]   ;;  %v16060_v54 = vld [vmem:[#allocation16 + $0x1024] ss:$200 sps:$4 sm:$0xff]   ;;  %v16061_v31 = vld [vmem:[#allocation16 + $0x1028] ss:$200 sps:$4 sm:$0xff]  }
 0x7c2   : > { %11632 = vmatpush1.bf16.msra.mxu0 %v16016_v34  ;;  %v16058_v48 = vld [vmem:[#allocation16 + $0x1020] ss:$200 sps:$4 sm:$0xff]   ;;  %v16066_v42 = vld [vmem:[#allocation16 + $0x11b4] ss:$200 sps:$4 sm:$0xff]  }
 0x7c3   : > { %11673 = vmatpush1.bf16.msra.mxu1 %v16019_v46  ;;  %11633 = vmatprep.subr.bf16.mxu0 %v16024_v9  ;;  %v16069_v56 = vld [vmem:[#allocation16 + $0x11bc] ss:$200 sps:$4 sm:$0xff]   ;;  %v7681_v34 = vld [vmem:[#allocation16 + $0x1348] sm:$0xff]  ;;  %v16064_v46 = vld [vmem:[#allocation16 + $0x11b0] ss:$200 sps:$4 sm:$0xff]  }
 0x7c4   : > { %11674 = vmatprep.subr.bf16.mxu1 %v16027_v63  ;;  %v7680_v55 = vld [vmem:[#allocation16 + $0x1340] sm:$0xff] }
 0x7c5   : > { %v16067_v9 = vld [vmem:[#allocation16 + $0x11b8] ss:$200 sps:$4 sm:$0xff]   ;;  %v13589_v63 = vcombine.high %v7680_v55, %v7680_v55 }
 0x7c6   : > { %11634 = vmatpush1.bf16.msra.mxu0 %v16022_v44  ;;  %v13588_v44 = vcombine.low %v7680_v55, %v7680_v55 }
 0x7c7   : > { %11675 = vmatpush1.bf16.msra.mxu1 %v16025_v1  ;;  %11635 = vmatprep.subr.bf16.mxu0 %v16030_v26  ;;  %v13591_v1 = vcombine.high %v7681_v34, %v7681_v34  ;;  %v13590_v26 = vcombine.low %v7681_v34, %v7681_v34  ;;  %v16095_v34 = vld [vmem:[#allocation16 + $0x548] ss:$200 sps:$4 sm:$0xff]  }
 0x7c8   : > { %11676 = vmatprep.subr.bf16.mxu1 %v16033_v4  ;;  %v10916_v4 = vsel %vm10818_vm7, %v13588_v44, 0  ;;  %v16106_v44 = vld [vmem:[#allocation16 + $0x864] ss:$200 sps:$4 sm:$0xff]  }
 0x7ca   : > { %11636 = vmatpush1.bf16.msra.mxu0 %v16028_v6  ;;  %v16076_v6 = vld [vmem:[#allocation16 + $0x94] ss:$200 sps:$4 sm:$0xff]  }
 0x7cb   : > { %11677 = vmatpush1.bf16.msra.mxu1 %v16031_v59  ;;  %11637 = vmatprep.subr.bf16.mxu0 %v16036_v36  ;;  %v10922_v59 = vsel %vm10818_vm7, %v13590_v26, 0  ;;  %v16079_v36 = vld [vmem:[#allocation16 + $0x9c] ss:$200 sps:$4 sm:$0xff]   ;;  %v16104_v26 = vld [vmem:[#allocation16 + $0x860] ss:$200 sps:$4 sm:$0xff]  }
 0x7cc   : > { %11678 = vmatprep.subr.bf16.mxu1 %v16039_v39  ;;  %v16074_v39 = vld [vmem:[#allocation16 + $0x90] ss:$200 sps:$4 sm:$0xff]  }
 0x7ce   : > { %11638 = vmatpush1.bf16.msra.mxu0 %v16034_v50  ;;  %v16077_v50 = vld [vmem:[#allocation16 + $0x98] ss:$200 sps:$4 sm:$0xff]  }
 0x7cf   : > { %11679 = vmatpush1.bf16.msra.mxu1 %v16037_v62  ;;  %11639 = vmatprep.subr.bf16.mxu0 %v16042_v27  ;;  %v16082_v62 = vld [vmem:[#allocation16 + $0x224] ss:$200 sps:$4 sm:$0xff]  }
 0x7d0   : > { %11680 = vmatprep.subr.bf16.mxu1 %v16045_v47  ;;  %v16085_v27 = vld [vmem:[#allocation16 + $0x22c] ss:$200 sps:$4 sm:$0xff]   ;;  %v16080_v47 = vld [vmem:[#allocation16 + $0x220] ss:$200 sps:$4 sm:$0xff]  }
 0x7d2   : > { %11640 = vmatpush1.bf16.msra.mxu0 %v16040_v43  ;;  %v16083_v43 = vld [vmem:[#allocation16 + $0x228] ss:$200 sps:$4 sm:$0xff]  }
 0x7d3   : > { %11681 = vmatpush1.bf16.msra.mxu1 %v16043_v11  ;;  %11641 = vmatprep.subr.bf16.mxu0 %v16048_v30  ;;  %v16088_v11 = vld [vmem:[#allocation16 + $0x3b4] ss:$200 sps:$4 sm:$0xff]  }
 0x7d4   : > { %11682 = vmatprep.subr.bf16.mxu1 %v16051_v20  ;;  %v16091_v20 = vld [vmem:[#allocation16 + $0x3bc] ss:$200 sps:$4 sm:$0xff]  }
 0x7d6   : > { %11642 = vmatpush1.bf16.msra.mxu0 %v16046_v49 }
 0x7d7   : > { %11683 = vmatpush1.bf16.msra.mxu1 %v16049_v25  ;;  %11643 = vmatprep.subr.bf16.mxu0 %v16054_v61 }
 0x7d8   : > { %11684 = vmatprep.subr.bf16.mxu1 %v16057_v51 }
 0x7da   : > { %11644 = vmatpush1.bf16.msra.mxu0 %v16052_v28 }
 0x7db   : > { %11685 = vmatpush1.bf16.msra.mxu1 %v16055_v17  ;;  %11645 = vmatprep.subr.bf16.mxu0 %v16060_v54 }
 0x7dc   : > { %11686 = vmatprep.subr.bf16.mxu1 %v16063_v24  ;;  %v16086_v24 = vld [vmem:[#allocation16 + $0x3b0] ss:$200 sps:$4 sm:$0xff]  }
 0x7de   : > { %11646 = vmatpush1.bf16.msra.mxu0 %v16058_v48 }
 0x7df   : > { %11687 = vmatpush1.bf16.msra.mxu1 %v16061_v31  ;;  %11647 = vmatprep.subr.bf16.mxu0 %v16066_v42  ;;  %v16089_v42 = vld [vmem:[#allocation16 + $0x3b8] ss:$200 sps:$4 sm:$0xff]  }
 0x7e0   : > { %11688 = vmatprep.subr.bf16.mxu1 %v16069_v56  ;;  %v16094_v56 = vld [vmem:[#allocation16 + $0x544] ss:$200 sps:$4 sm:$0xff]  }
 0x7e2   : > { %11648 = vmatpush1.bf16.msra.mxu0 %v16064_v46  ;;  %v16100_v46 = vld [vmem:[#allocation16 + $0x6d4] ss:$200 sps:$4 sm:$0xff]  }
 0x7e3   : > { %11689 = vmatpush1.bf16.msra.mxu1 %v16067_v9  ;;  %13638 = vmatprep.subr.msk.bf16.mxu0 %vm10818_vm7, %v13589_v63  ;;  %v16098_v9 = vld [vmem:[#allocation16 + $0x6d0] ss:$200 sps:$4 sm:$0xff]  }
 0x7e4   : > { %13640 = vmatprep.subr.msk.bf16.mxu1 %vm10818_vm7, %v13591_v1  ;;  %v16101_v63 = vld [vmem:[#allocation16 + $0x6d8] ss:$200 sps:$4 sm:$0xff]   ;;  %v16109_v1 = vld [vmem:[#allocation16 + $0x86c] ss:$200 sps:$4 sm:$0xff]  }
 0x7e6   : > { %11650 = vmatpush1.bf16.msra.mxu0 %v10916_v4  ;;  %v16107_v4 = vld [vmem:[#allocation16 + $0x868] ss:$200 sps:$4 sm:$0xff]  }
 0x7e7   : > { %11691 = vmatpush1.bf16.msra.mxu1 %v10922_v59  ;;  %11707 = vmatprep.subr.bf16.mxu0 %v16076_v6  ;;  %v16112_v6 = vld [vmem:[#allocation16 + $0x9f4] ss:$200 sps:$4 sm:$0xff]  }
 0x7e8   : > { %11748 = vmatprep.subr.bf16.mxu1 %v16079_v36  ;;  %v16115_v59 = vld [vmem:[#allocation16 + $0x9fc] ss:$200 sps:$4 sm:$0xff]   ;;  %v16110_v36 = vld [vmem:[#allocation16 + $0x9f0] ss:$200 sps:$4 sm:$0xff]  }
 0x7e9   : > { %11658 = vmatmul.mubr.bf16.vlgmr.msra.gmra.mrb[84].mxu0 %v17760_v7 }
 0x7ea   : > { %11699 = vmatmul.mubr.bf16.vlgmr.msra.gmra.mrb[92].mxu1 %v17760_v7  ;;  %11708 = vmatpush1.bf16.msra.mxu0 %v16074_v39  ;;  %v16113_v39 = vld [vmem:[#allocation16 + $0x9f8] ss:$200 sps:$4 sm:$0xff]  }
 0x7eb   : > { %13643 = vmatprep.mubr.msk.bf16.mxu0 %vm10814_vm8, %v17758_v22  ;;  %11749 = vmatpush1.bf16.msra.mxu1 %v16077_v50  ;;  %v16118_v50 = vld [vmem:[#allocation16 + $0xb84] ss:$200 sps:$4 sm:$0xff]  }
 0x7ec   : > { %13645 = vmatprep.mubr.msk.bf16.mxu1 %vm10814_vm8, %v17758_v22  ;;  %v11331_v30 = vpop.f32.mrb[68].mxu0  ;;  %11709 = vmatprep.subr.bf16.mxu0 %v16082_v62  ;;  %v16121_v62 = vld [vmem:[#allocation16 + $0xb8c] ss:$200 sps:$4 sm:$0xff]  }
 0x7ed   : > { %v12010_v49 = vmul.f32 %v11331_v30, %v17654_v53  ;;  %v11372_v25 = vpop.f32.mrb[76].mxu1  ;;  %v11333_v61 = vpop.f32.mrb[69].mxu0  ;;  %11750 = vmatprep.subr.bf16.mxu1 %v16085_v27  ;;  %v16116_v27 = vld [vmem:[#allocation16 + $0xb80] ss:$200 sps:$4 sm:$0xff]   ;;  %v16122_v30 = vld [vmem:[#allocation16 + $0xd10] ss:$200 sps:$4 sm:$0xff]  }
 0x7ee   : > { %v12012_v51 = vmul.f32 %v11372_v25, %v17645_v52  ;;  %v12011_v28 = vmul.f32 %v11333_v61, %v17656_v58  ;;  %v11374_v17 = vpop.f32.mrb[77].mxu1  ;;  %v11335_v54 = vpop.f32.mrb[70].mxu0  ;;  %11710 = vmatpush1.bf16.msra.mxu0 %v16080_v47  ;;  %v16097_v52 = vld [vmem:[#allocation16 + $0x54c] ss:$200 sps:$4 sm:$0xff]   ;;  %v16092_v58 = vld [vmem:[#allocation16 + $0x540] ss:$200 sps:$4 sm:$0xff]  }
 0x7ef   : > { %12060 = vst [vmem:[%s17825_s19 + $0x80] sm:$0xff] %v12010_v49  ;;  %v12013_v48 = vmul.f32 %v11374_v17, %v17647_v5  ;;  %v11376_v31 = vpop.f32.mrb[78].mxu1  ;;  %11751 = vmatpush1.bf16.msra.mxu1 %v16083_v43  ;;  %v11336_v53 = vpop.f32.mrb[71].mxu0  ;;  %11711 = vmatprep.subr.bf16.mxu0 %v16088_v11  ;;  %v16103_v5 = vld [vmem:[#allocation16 + $0x6dc] ss:$200 sps:$4 sm:$0xff]  }
 0x7f0   : > { %12062 = vst [vmem:[%s17825_s19 + $0x90] sm:$0xff] %v12012_v51  ;;  %12061 = vst [vmem:[%s17825_s19 + $0x88] sm:$0xff] %v12011_v28  ;;  %v11377_v55 = vpop.f32.mrb[79].mxu1  ;;  %11752 = vmatprep.subr.bf16.mxu1 %v16091_v20  ;;  %v16119_v47 = vld [vmem:[#allocation16 + $0xb88] ss:$200 sps:$4 sm:$0xff]  }
 0x7f1   : > { %12063 = vst [vmem:[%s17825_s19 + $0x98] sm:$0xff] %v12013_v48  ;;  %v16124_v43 = vld [vmem:[#allocation16 + $0xd14] ss:$200 sps:$4 sm:$0xff]   ;;  %v16125_v20 = vld [vmem:[#allocation16 + $0xd18] ss:$200 sps:$4 sm:$0xff]  }
 0x7f2   : > { %11712 = vmatpush1.bf16.msra.mxu0 %v16086_v24  ;;  %v16127_v11 = vld [vmem:[#allocation16 + $0xd1c] ss:$200 sps:$4 sm:$0xff]   ;;  %v16133_v25 = vld [vmem:[#allocation16 + $0xeac] ss:$200 sps:$4 sm:$0xff]   ;;  %v16128_v61 = vld [vmem:[#allocation16 + $0xea0] ss:$200 sps:$4 sm:$0xff]  }
 0x7f3   : > { %11753 = vmatpush1.bf16.msra.mxu1 %v16089_v42  ;;  %11713 = vmatprep.subr.bf16.mxu0 %v16094_v56  ;;  %v16130_v49 = vld [vmem:[#allocation16 + $0xea4] ss:$200 sps:$4 sm:$0xff]   ;;  %v16131_v51 = vld [vmem:[#allocation16 + $0xea8] ss:$200 sps:$4 sm:$0xff]   ;;  %v16136_v28 = vld [vmem:[#allocation16 + $0x1034] ss:$200 sps:$4 sm:$0xff]  }
 0x7f4   : > { %11754 = vmatprep.subr.bf16.mxu1 %v16097_v52  ;;  %v16139_v17 = vld [vmem:[#allocation16 + $0x103c] ss:$200 sps:$4 sm:$0xff]   ;;  %v16134_v54 = vld [vmem:[#allocation16 + $0x1030] ss:$200 sps:$4 sm:$0xff]   ;;  %v16145_v31 = vld [vmem:[#allocation16 + $0x11cc] ss:$200 sps:$4 sm:$0xff]  }
 0x7f5   : > { %v16137_v24 = vld [vmem:[#allocation16 + $0x1038] ss:$200 sps:$4 sm:$0xff]   ;;  %v16142_v48 = vld [vmem:[#allocation16 + $0x11c4] ss:$200 sps:$4 sm:$0xff]   ;;  %v7682_v53 = vld [vmem:[#allocation16 + $0x1350] sm:$0xff] }
 0x7f6   : > { %11714 = vmatpush1.bf16.msra.mxu0 %v16092_v58  ;;  %v7683_v42 = vld [vmem:[#allocation16 + $0x1358] sm:$0xff]  ;;  %v16140_v56 = vld [vmem:[#allocation16 + $0x11c0] ss:$200 sps:$4 sm:$0xff]   ;;  %v13593_v52 = vcombine.high %v7682_v53, %v7682_v53  ;;  %v13592_v58 = vcombine.low %v7682_v53, %v7682_v53 }
 0x7f7   : > { %11755 = vmatpush1.bf16.msra.mxu1 %v16095_v34  ;;  %11715 = vmatprep.subr.bf16.mxu0 %v16100_v46  ;;  %v16143_v55 = vld [vmem:[#allocation16 + $0x11c8] ss:$200 sps:$4 sm:$0xff]   ;;  %v13595_v34 = vcombine.high %v7683_v42, %v7683_v42  ;;  %v13594_v46 = vcombine.low %v7683_v42, %v7683_v42  ;;  %v16182_v42 = vld [vmem:[#allocation16 + $0x874] ss:$200 sps:$4 sm:$0xff]  }
 0x7f8   : > { %11756 = vmatprep.subr.bf16.mxu1 %v16103_v5  ;;  %v10928_v5 = vsel %vm10818_vm7, %v13592_v58, 0  ;;  %v16177_v53 = vld [vmem:[#allocation16 + $0x6e8] ss:$200 sps:$4 sm:$0xff]   ;;  %v16188_v58 = vld [vmem:[#allocation16 + $0xa04] ss:$200 sps:$4 sm:$0xff]  }
 0x7fa   : > { %11716 = vmatpush1.bf16.msra.mxu0 %v16098_v9  ;;  %v16152_v9 = vld [vmem:[#allocation16 + $0xa4] ss:$200 sps:$4 sm:$0xff]  }
 0x7fb   : > { %11757 = vmatpush1.bf16.msra.mxu1 %v16101_v63  ;;  %11717 = vmatprep.subr.bf16.mxu0 %v16106_v44  ;;  %v10934_v63 = vsel %vm10818_vm7, %v13594_v46, 0  ;;  %v16155_v44 = vld [vmem:[#allocation16 + $0xac] ss:$200 sps:$4 sm:$0xff]   ;;  %v16186_v46 = vld [vmem:[#allocation16 + $0xa00] ss:$200 sps:$4 sm:$0xff]  }
 0x7fc   : > { %11758 = vmatprep.subr.bf16.mxu1 %v16109_v1  ;;  %v16150_v1 = vld [vmem:[#allocation16 + $0xa0] ss:$200 sps:$4 sm:$0xff]  }
 0x7fe   : > { %11718 = vmatpush1.bf16.msra.mxu0 %v16104_v26  ;;  %v16153_v26 = vld [vmem:[#allocation16 + $0xa8] ss:$200 sps:$4 sm:$0xff]  }
 0x7ff   : > { %11759 = vmatpush1.bf16.msra.mxu1 %v16107_v4  ;;  %11719 = vmatprep.subr.bf16.mxu0 %v16112_v6  ;;  %v16158_v4 = vld [vmem:[#allocation16 + $0x234] ss:$200 sps:$4 sm:$0xff]  }
 0x800   : > { %11760 = vmatprep.subr.bf16.mxu1 %v16115_v59  ;;  %v16161_v6 = vld [vmem:[#allocation16 + $0x23c] ss:$200 sps:$4 sm:$0xff]   ;;  %v16156_v59 = vld [vmem:[#allocation16 + $0x230] ss:$200 sps:$4 sm:$0xff]  }
 0x802   : > { %11720 = vmatpush1.bf16.msra.mxu0 %v16110_v36  ;;  %v16159_v36 = vld [vmem:[#allocation16 + $0x238] ss:$200 sps:$4 sm:$0xff]  }
 0x803   : > { %11761 = vmatpush1.bf16.msra.mxu1 %v16113_v39  ;;  %11721 = vmatprep.subr.bf16.mxu0 %v16118_v50  ;;  %v16164_v39 = vld [vmem:[#allocation16 + $0x3c4] ss:$200 sps:$4 sm:$0xff]  }
 0x804   : > { %11762 = vmatprep.subr.bf16.mxu1 %v16121_v62  ;;  %v16167_v62 = vld [vmem:[#allocation16 + $0x3cc] ss:$200 sps:$4 sm:$0xff]  }
 0x806   : > { %11722 = vmatpush1.bf16.msra.mxu0 %v16116_v27 }
 0x807   : > { %11763 = vmatpush1.bf16.msra.mxu1 %v16119_v47  ;;  %11723 = vmatprep.subr.bf16.mxu0 %v16124_v43 }
 0x808   : > { %11764 = vmatprep.subr.bf16.mxu1 %v16127_v11 }
 0x80a   : > { %11724 = vmatpush1.bf16.msra.mxu0 %v16122_v30 }
 0x80b   : > { %11765 = vmatpush1.bf16.msra.mxu1 %v16125_v20  ;;  %11725 = vmatprep.subr.bf16.mxu0 %v16130_v49 }
 0x80c   : > { %11766 = vmatprep.subr.bf16.mxu1 %v16133_v25  ;;  %v16162_v25 = vld [vmem:[#allocation16 + $0x3c0] ss:$200 sps:$4 sm:$0xff]  }
 0x80e   : > { %11726 = vmatpush1.bf16.msra.mxu0 %v16128_v61 }
 0x80f   : > { %11767 = vmatpush1.bf16.msra.mxu1 %v16131_v51  ;;  %11727 = vmatprep.subr.bf16.mxu0 %v16136_v28  ;;  %v16165_v28 = vld [vmem:[#allocation16 + $0x3c8] ss:$200 sps:$4 sm:$0xff]  }
 0x810   : > { %11768 = vmatprep.subr.bf16.mxu1 %v16139_v17  ;;  %v16170_v17 = vld [vmem:[#allocation16 + $0x554] ss:$200 sps:$4 sm:$0xff]  }
 0x812   : > { %11728 = vmatpush1.bf16.msra.mxu0 %v16134_v54 }
 0x813   : > { %11769 = vmatpush1.bf16.msra.mxu1 %v16137_v24  ;;  %11729 = vmatprep.subr.bf16.mxu0 %v16142_v48  ;;  %v16171_v24 = vld [vmem:[#allocation16 + $0x558] ss:$200 sps:$4 sm:$0xff]   ;;  %v16176_v48 = vld [vmem:[#allocation16 + $0x6e4] ss:$200 sps:$4 sm:$0xff]  }
 0x814   : > { %11770 = vmatprep.subr.bf16.mxu1 %v16145_v31  ;;  %v16174_v31 = vld [vmem:[#allocation16 + $0x6e0] ss:$200 sps:$4 sm:$0xff]  }
 0x816   : > { %11730 = vmatpush1.bf16.msra.mxu0 %v16140_v56  ;;  %v16185_v56 = vld [vmem:[#allocation16 + $0x87c] ss:$200 sps:$4 sm:$0xff]  }
 0x817   : > { %11771 = vmatpush1.bf16.msra.mxu1 %v16143_v55  ;;  %13642 = vmatprep.subr.msk.bf16.mxu0 %vm10818_vm7, %v13593_v52  ;;  %v16180_v55 = vld [vmem:[#allocation16 + $0x870] ss:$200 sps:$4 sm:$0xff]  }
 0x818   : > { %13644 = vmatprep.subr.msk.bf16.mxu1 %vm10818_vm7, %v13595_v34  ;;  %v16183_v52 = vld [vmem:[#allocation16 + $0x878] ss:$200 sps:$4 sm:$0xff]   ;;  %v16191_v34 = vld [vmem:[#allocation16 + $0xa0c] ss:$200 sps:$4 sm:$0xff]  }
 0x81a   : > { %11732 = vmatpush1.bf16.msra.mxu0 %v10928_v5  ;;  %v16189_v5 = vld [vmem:[#allocation16 + $0xa08] ss:$200 sps:$4 sm:$0xff]  }
 0x81b   : > { %11773 = vmatpush1.bf16.msra.mxu1 %v10934_v63  ;;  %11789 = vmatprep.subr.bf16.mxu0 %v16152_v9  ;;  %v16194_v9 = vld [vmem:[#allocation16 + $0xb94] ss:$200 sps:$4 sm:$0xff]  }
 0x81c   : > { %11830 = vmatprep.subr.bf16.mxu1 %v16155_v44  ;;  %v16197_v63 = vld [vmem:[#allocation16 + $0xb9c] ss:$200 sps:$4 sm:$0xff]   ;;  %v16192_v44 = vld [vmem:[#allocation16 + $0xb90] ss:$200 sps:$4 sm:$0xff]  }
 0x81d   : > { %11740 = vmatmul.mubr.bf16.vlgmr.msra.gmra.mrb[88].mxu0 %v17760_v7 }
 0x81e   : > { %11781 = vmatmul.mubr.bf16.vlgmr.msra.gmra.mrb[96].mxu1 %v17760_v7  ;;  %11790 = vmatpush1.bf16.msra.mxu0 %v16150_v1  ;;  %v16195_v1 = vld [vmem:[#allocation16 + $0xb98] ss:$200 sps:$4 sm:$0xff]  }
 0x81f   : > { %13647 = vmatprep.mubr.msk.bf16.mxu0 %vm10814_vm8, %v17758_v22  ;;  %11831 = vmatpush1.bf16.msra.mxu1 %v16153_v26  ;;  %v16200_v26 = vld [vmem:[#allocation16 + $0xd24] ss:$200 sps:$4 sm:$0xff]  }
 0x820   : > { %13649 = vmatprep.mubr.msk.bf16.mxu1 %vm10814_vm8, %v17758_v22  ;;  %v11413_v50 = vpop.f32.mrb[72].mxu0  ;;  %11791 = vmatprep.subr.bf16.mxu0 %v16158_v4  ;;  %v16203_v4 = vld [vmem:[#allocation16 + $0xd2c] ss:$200 sps:$4 sm:$0xff]  }
 0x821   : > { %v12014_v27 = vmul.f32 %v11413_v50, %v17676_v13  ;;  %v11454_v47 = vpop.f32.mrb[80].mxu1  ;;  %v11415_v43 = vpop.f32.mrb[73].mxu0  ;;  %11832 = vmatprep.subr.bf16.mxu1 %v16161_v6  ;;  %v16198_v6 = vld [vmem:[#allocation16 + $0xd20] ss:$200 sps:$4 sm:$0xff]   ;;  %v16204_v50 = vld [vmem:[#allocation16 + $0xeb0] ss:$200 sps:$4 sm:$0xff]  }
 0x822   : > { %v12016_v11 = vmul.f32 %v11454_v47, %v17663_v38  ;;  %v12015_v30 = vmul.f32 %v11415_v43, %v17678_v0  ;;  %v11456_v20 = vpop.f32.mrb[81].mxu1  ;;  %v11417_v49 = vpop.f32.mrb[74].mxu0  ;;  %11792 = vmatpush1.bf16.msra.mxu0 %v16156_v59  ;;  %v16173_v38 = vld [vmem:[#allocation16 + $0x55c] ss:$200 sps:$4 sm:$0xff]   ;;  %v16168_v0 = vld [vmem:[#allocation16 + $0x550] ss:$200 sps:$4 sm:$0xff]  }
 0x823   : > { %12064 = vst [vmem:[%s17825_s19 + $0xa0] sm:$0xff] %v12014_v27  ;;  %v12017_v61 = vmul.f32 %v11456_v20, %v17665_v33  ;;  %v11458_v51 = vpop.f32.mrb[82].mxu1  ;;  %11833 = vmatpush1.bf16.msra.mxu1 %v16159_v36  ;;  %v11418_v13 = vpop.f32.mrb[75].mxu0  ;;  %11793 = vmatprep.subr.bf16.mxu0 %v16164_v39  ;;  %v16179_v33 = vld [vmem:[#allocation16 + $0x6ec] ss:$200 sps:$4 sm:$0xff]   ;;  %v7684_v49 = vld [vmem:[#allocation16 + $0x1360] sm:$0xff] }
 0x824   : > { %12066 = vst [vmem:[%s17825_s19 + $0xb0] sm:$0xff] %v12016_v11  ;;  %12065 = vst [vmem:[%s17825_s19 + $0xa8] sm:$0xff] %v12015_v30  ;;  %v11459_v54 = vpop.f32.mrb[83].mxu1  ;;  %11834 = vmatprep.subr.bf16.mxu1 %v16167_v62  ;;  %v16201_v59 = vld [vmem:[#allocation16 + $0xd28] ss:$200 sps:$4 sm:$0xff]   ;;  %v13597_v13 = vcombine.high %v7684_v49, %v7684_v49 }
 0x825   : > { %12067 = vst [vmem:[%s17825_s19 + $0xb8] sm:$0xff] %v12017_v61  ;;  %v16206_v36 = vld [vmem:[#allocation16 + $0xeb4] ss:$200 sps:$4 sm:$0xff]   ;;  %v16207_v62 = vld [vmem:[#allocation16 + $0xeb8] ss:$200 sps:$4 sm:$0xff]  }
 0x826   : > { %11794 = vmatpush1.bf16.msra.mxu0 %v16162_v25  ;;  %v16209_v39 = vld [vmem:[#allocation16 + $0xebc] ss:$200 sps:$4 sm:$0xff]   ;;  %v16215_v47 = vld [vmem:[#allocation16 + $0x104c] ss:$200 sps:$4 sm:$0xff]   ;;  %v16210_v43 = vld [vmem:[#allocation16 + $0x1040] ss:$200 sps:$4 sm:$0xff]  }
 0x827   : > { %11835 = vmatpush1.bf16.msra.mxu1 %v16165_v28  ;;  %11795 = vmatprep.subr.bf16.mxu0 %v16170_v17  ;;  %v16212_v27 = vld [vmem:[#allocation16 + $0x1044] ss:$200 sps:$4 sm:$0xff]   ;;  %v16213_v11 = vld [vmem:[#allocation16 + $0x1048] ss:$200 sps:$4 sm:$0xff]   ;;  %v16218_v30 = vld [vmem:[#allocation16 + $0x11d4] ss:$200 sps:$4 sm:$0xff]   ;;  %v13596_v28 = vcombine.low %v7684_v49, %v7684_v49 }
 0x828   : > { %11836 = vmatprep.subr.bf16.mxu1 %v16173_v38  ;;  %v16221_v20 = vld [vmem:[#allocation16 + $0x11dc] ss:$200 sps:$4 sm:$0xff]   ;;  %v7685_v25 = vld [vmem:[#allocation16 + $0x1368] sm:$0xff]  ;;  %v16216_v61 = vld [vmem:[#allocation16 + $0x11d0] ss:$200 sps:$4 sm:$0xff]  }
 0x829   : > { %v16219_v51 = vld [vmem:[#allocation16 + $0x11d8] ss:$200 sps:$4 sm:$0xff]   ;;  %v13599_v17 = vcombine.high %v7685_v25, %v7685_v25  ;;  %v13598_v54 = vcombine.low %v7685_v25, %v7685_v25  ;;  %v10940_v38 = vsel %vm10818_vm7, %v13596_v28, 0  ;;  %v16259_v49 = vld [vmem:[#allocation16 + $0x888] ss:$200 sps:$4 sm:$0xff]  }
 0x82a   : > { %11796 = vmatpush1.bf16.msra.mxu0 %v16168_v0  ;;  %v16228_v0 = vld [vmem:[#allocation16 + $0xb4] ss:$200 sps:$4 sm:$0xff]   ;;  %v16270_v28 = vld [vmem:[#allocation16 + $0xba4] ss:$200 sps:$4 sm:$0xff]  }
 0x82b   : > { %11837 = vmatpush1.bf16.msra.mxu1 %v16171_v24  ;;  %11797 = vmatprep.subr.bf16.mxu0 %v16176_v48  ;;  %v10946_v24 = vsel %vm10818_vm7, %v13598_v54, 0  ;;  %v16231_v48 = vld [vmem:[#allocation16 + $0xbc] ss:$200 sps:$4 sm:$0xff]   ;;  %v16268_v54 = vld [vmem:[#allocation16 + $0xba0] ss:$200 sps:$4 sm:$0xff]  }
 0x82c   : > { %11838 = vmatprep.subr.bf16.mxu1 %v16179_v33  ;;  %v16226_v33 = vld [vmem:[#allocation16 + $0xb0] ss:$200 sps:$4 sm:$0xff]   ;;  %v16264_v25 = vld [vmem:[#allocation16 + $0xa14] ss:$200 sps:$4 sm:$0xff]  }
 0x82e   : > { %11798 = vmatpush1.bf16.msra.mxu0 %v16174_v31  ;;  %v16229_v31 = vld [vmem:[#allocation16 + $0xb8] ss:$200 sps:$4 sm:$0xff]  }
 0x82f   : > { %11839 = vmatpush1.bf16.msra.mxu1 %v16177_v53  ;;  %11799 = vmatprep.subr.bf16.mxu0 %v16182_v42  ;;  %v16234_v53 = vld [vmem:[#allocation16 + $0x244] ss:$200 sps:$4 sm:$0xff]  }
 0x830   : > { %11840 = vmatprep.subr.bf16.mxu1 %v16185_v56  ;;  %v16237_v42 = vld [vmem:[#allocation16 + $0x24c] ss:$200 sps:$4 sm:$0xff]   ;;  %v16232_v56 = vld [vmem:[#allocation16 + $0x240] ss:$200 sps:$4 sm:$0xff]  }
 0x832   : > { %11800 = vmatpush1.bf16.msra.mxu0 %v16180_v55  ;;  %v16235_v55 = vld [vmem:[#allocation16 + $0x248] ss:$200 sps:$4 sm:$0xff]  }
 0x833   : > { %11841 = vmatpush1.bf16.msra.mxu1 %v16183_v52  ;;  %11801 = vmatprep.subr.bf16.mxu0 %v16188_v58  ;;  %v16240_v52 = vld [vmem:[#allocation16 + $0x3d4] ss:$200 sps:$4 sm:$0xff]  }
 0x834   : > { %11842 = vmatprep.subr.bf16.mxu1 %v16191_v34  ;;  %v16243_v34 = vld [vmem:[#allocation16 + $0x3dc] ss:$200 sps:$4 sm:$0xff]  }
 0x836   : > { %11802 = vmatpush1.bf16.msra.mxu0 %v16186_v46 }
 0x837   : > { %11843 = vmatpush1.bf16.msra.mxu1 %v16189_v5  ;;  %11803 = vmatprep.subr.bf16.mxu0 %v16194_v9 }
 0x838   : > { %11844 = vmatprep.subr.bf16.mxu1 %v16197_v63 }
 0x83a   : > { %11804 = vmatpush1.bf16.msra.mxu0 %v16192_v44 }
 0x83b   : > { %11845 = vmatpush1.bf16.msra.mxu1 %v16195_v1  ;;  %11805 = vmatprep.subr.bf16.mxu0 %v16200_v26 }
 0x83c   : > { %11846 = vmatprep.subr.bf16.mxu1 %v16203_v4  ;;  %v16238_v4 = vld [vmem:[#allocation16 + $0x3d0] ss:$200 sps:$4 sm:$0xff]  }
 0x83e   : > { %11806 = vmatpush1.bf16.msra.mxu0 %v16198_v6 }
 0x83f   : > { %11847 = vmatpush1.bf16.msra.mxu1 %v16201_v59  ;;  %11807 = vmatprep.subr.bf16.mxu0 %v16206_v36  ;;  %v16241_v36 = vld [vmem:[#allocation16 + $0x3d8] ss:$200 sps:$4 sm:$0xff]  }
 0x840   : > { %11848 = vmatprep.subr.bf16.mxu1 %v16209_v39  ;;  %v16246_v39 = vld [vmem:[#allocation16 + $0x564] ss:$200 sps:$4 sm:$0xff]  }
 0x842   : > { %11808 = vmatpush1.bf16.msra.mxu0 %v16204_v50 }
 0x843   : > { %11849 = vmatpush1.bf16.msra.mxu1 %v16207_v62  ;;  %11809 = vmatprep.subr.bf16.mxu0 %v16212_v27  ;;  %v16247_v62 = vld [vmem:[#allocation16 + $0x568] ss:$200 sps:$4 sm:$0xff]   ;;  %v16252_v27 = vld [vmem:[#allocation16 + $0x6f4] ss:$200 sps:$4 sm:$0xff]  }
 0x844   : > { %11850 = vmatprep.subr.bf16.mxu1 %v16215_v47  ;;  %v16250_v47 = vld [vmem:[#allocation16 + $0x6f0] ss:$200 sps:$4 sm:$0xff]  }
 0x846   : > { %11810 = vmatpush1.bf16.msra.mxu0 %v16210_v43  ;;  %v16253_v43 = vld [vmem:[#allocation16 + $0x6f8] ss:$200 sps:$4 sm:$0xff]  }
 0x847   : > { %11851 = vmatpush1.bf16.msra.mxu1 %v16213_v11  ;;  %11811 = vmatprep.subr.bf16.mxu0 %v16218_v30  ;;  %v16258_v11 = vld [vmem:[#allocation16 + $0x884] ss:$200 sps:$4 sm:$0xff]  }
 0x848   : > { %11852 = vmatprep.subr.bf16.mxu1 %v16221_v20  ;;  %v16261_v30 = vld [vmem:[#allocation16 + $0x88c] ss:$200 sps:$4 sm:$0xff]   ;;  %v16256_v20 = vld [vmem:[#allocation16 + $0x880] ss:$200 sps:$4 sm:$0xff]  }
 0x84a   : > { %11812 = vmatpush1.bf16.msra.mxu0 %v16216_v61  ;;  %v16267_v61 = vld [vmem:[#allocation16 + $0xa1c] ss:$200 sps:$4 sm:$0xff]  }
 0x84b   : > { %11853 = vmatpush1.bf16.msra.mxu1 %v16219_v51  ;;  %13646 = vmatprep.subr.msk.bf16.mxu0 %vm10818_vm7, %v13597_v13  ;;  %v16262_v51 = vld [vmem:[#allocation16 + $0xa10] ss:$200 sps:$4 sm:$0xff]  }
 0x84c   : > { %13648 = vmatprep.subr.msk.bf16.mxu1 %vm10818_vm7, %v13599_v17  ;;  %v16265_v13 = vld [vmem:[#allocation16 + $0xa18] ss:$200 sps:$4 sm:$0xff]   ;;  %v16273_v17 = vld [vmem:[#allocation16 + $0xbac] ss:$200 sps:$4 sm:$0xff]  }
 0x84e   : > { %11814 = vmatpush1.bf16.msra.mxu0 %v10940_v38  ;;  %v16271_v38 = vld [vmem:[#allocation16 + $0xba8] ss:$200 sps:$4 sm:$0xff]  }
 0x84f   : > { %11855 = vmatpush1.bf16.msra.mxu1 %v10946_v24  ;;  %11871 = vmatprep.subr.bf16.mxu0 %v16228_v0  ;;  %v16276_v0 = vld [vmem:[#allocation16 + $0xd34] ss:$200 sps:$4 sm:$0xff]  }
 0x850   : > { %11912 = vmatprep.subr.bf16.mxu1 %v16231_v48  ;;  %v16279_v24 = vld [vmem:[#allocation16 + $0xd3c] ss:$200 sps:$4 sm:$0xff]   ;;  %v16274_v48 = vld [vmem:[#allocation16 + $0xd30] ss:$200 sps:$4 sm:$0xff]  }
 0x851   : > { %11822 = vmatmul.mubr.bf16.vlgmr.msra.gmra.mrb[92].mxu0 %v17760_v7 }
 0x852   : > { %11863 = vmatmul.mubr.bf16.vlgmr.msra.gmra.mrb[100].mxu1 %v17760_v7  ;;  %11872 = vmatpush1.bf16.msra.mxu0 %v16226_v33  ;;  %v16277_v33 = vld [vmem:[#allocation16 + $0xd38] ss:$200 sps:$4 sm:$0xff]  }
 0x853   : > { %13651 = vmatprep.mubr.msk.bf16.mxu0 %vm10814_vm8, %v17758_v22  ;;  %11913 = vmatpush1.bf16.msra.mxu1 %v16229_v31  ;;  %v16282_v31 = vld [vmem:[#allocation16 + $0xec4] ss:$200 sps:$4 sm:$0xff]  }
 0x854   : > { %13653 = vmatprep.mubr.msk.bf16.mxu1 %vm10814_vm8, %v17758_v22  ;;  %v11495_v58 = vpop.f32.mrb[76].mxu0  ;;  %11873 = vmatprep.subr.bf16.mxu0 %v16234_v53  ;;  %v16285_v53 = vld [vmem:[#allocation16 + $0xecc] ss:$200 sps:$4 sm:$0xff]  }
 0x855   : > { %v12018_v46 = vmul.f32 %v11495_v58, %v17697_v2  ;;  %v11536_v5 = vpop.f32.mrb[84].mxu1  ;;  %v11497_v9 = vpop.f32.mrb[77].mxu0  ;;  %11914 = vmatprep.subr.bf16.mxu1 %v16237_v42  ;;  %v16280_v42 = vld [vmem:[#allocation16 + $0xec0] ss:$200 sps:$4 sm:$0xff]   ;;  %v16286_v58 = vld [vmem:[#allocation16 + $0x1050] ss:$200 sps:$4 sm:$0xff]  }
 0x856   : > { %v12020_v63 = vmul.f32 %v11536_v5, %v17688_v41  ;;  %v12019_v44 = vmul.f32 %v11497_v9, %v17699_v29  ;;  %v11538_v1 = vpop.f32.mrb[85].mxu1  ;;  %v11499_v26 = vpop.f32.mrb[78].mxu0  ;;  %11874 = vmatpush1.bf16.msra.mxu0 %v16232_v56  ;;  %v16249_v41 = vld [vmem:[#allocation16 + $0x56c] ss:$200 sps:$4 sm:$0xff]   ;;  %v16244_v29 = vld [vmem:[#allocation16 + $0x560] ss:$200 sps:$4 sm:$0xff]  }
 0x857   : > { %12068 = vst [vmem:[%s17825_s19 + $0xc0] sm:$0xff] %v12018_v46  ;;  %v12021_v6 = vmul.f32 %v11538_v1, %v17690_v45  ;;  %v11540_v59 = vpop.f32.mrb[86].mxu1  ;;  %11915 = vmatpush1.bf16.msra.mxu1 %v16235_v55  ;;  %v11500_v2 = vpop.f32.mrb[79].mxu0  ;;  %11875 = vmatprep.subr.bf16.mxu0 %v16240_v52  ;;  %v16255_v45 = vld [vmem:[#allocation16 + $0x6fc] ss:$200 sps:$4 sm:$0xff]   ;;  %v7686_v9 = vld [vmem:[#allocation16 + $0x1370] sm:$0xff] }
 0x858   : > { %12070 = vst [vmem:[%s17825_s19 + $0xd0] sm:$0xff] %v12020_v63  ;;  %12069 = vst [vmem:[%s17825_s19 + $0xc8] sm:$0xff] %v12019_v44  ;;  %v11541_v50 = vpop.f32.mrb[87].mxu1  ;;  %11916 = vmatprep.subr.bf16.mxu1 %v16243_v34  ;;  %v16283_v56 = vld [vmem:[#allocation16 + $0xec8] ss:$200 sps:$4 sm:$0xff]   ;;  %v7687_v63 = vld [vmem:[#allocation16 + $0x1378] sm:$0xff]  ;;  %v13601_v26 = vcombine.high %v7686_v9, %v7686_v9 }
 0x859   : > { %12071 = vst [vmem:[%s17825_s19 + $0xd8] sm:$0xff] %v12021_v6  ;;  %v16288_v55 = vld [vmem:[#allocation16 + $0x1054] ss:$200 sps:$4 sm:$0xff]   ;;  %v16289_v34 = vld [vmem:[#allocation16 + $0x1058] ss:$200 sps:$4 sm:$0xff]   ;;  %v13603_v6 = vcombine.high %v7687_v63, %v7687_v63  ;;  %v13602_v59 = vcombine.low %v7687_v63, %v7687_v63 }
 0x85a   : > { %11876 = vmatpush1.bf16.msra.mxu0 %v16238_v4  ;;  %v16291_v52 = vld [vmem:[#allocation16 + $0x105c] ss:$200 sps:$4 sm:$0xff]   ;;  %v16297_v5 = vld [vmem:[#allocation16 + $0x11ec] ss:$200 sps:$4 sm:$0xff]   ;;  %v16292_v44 = vld [vmem:[#allocation16 + $0x11e0] ss:$200 sps:$4 sm:$0xff]   ;;  %v13600_v4 = vcombine.low %v7686_v9, %v7686_v9 }
 0x85b   : > { %11917 = vmatpush1.bf16.msra.mxu1 %v16241_v36  ;;  %11877 = vmatprep.subr.bf16.mxu0 %v16246_v39  ;;  %v16294_v46 = vld [vmem:[#allocation16 + $0x11e4] ss:$200 sps:$4 sm:$0xff]   ;;  %v16295_v1 = vld [vmem:[#allocation16 + $0x11e8] ss:$200 sps:$4 sm:$0xff]   ;;  %v10958_v39 = vsel %vm10818_vm7, %v13602_v59, 0 }
 0x85c   : > { %11918 = vmatprep.subr.bf16.mxu1 %v16249_v41  ;;  %v10952_v2 = vsel %vm10818_vm7, %v13600_v4, 0  ;;  %v16304_v36 = vld [vmem:[#allocation16 + $0xc4] ss:$200 sps:$4 sm:$0xff]   ;;  %v16302_v50 = vld [vmem:[#allocation16 + $0xc0] ss:$200 sps:$4 sm:$0xff]  }
 0x85d   : > { %v16307_v41 = vld [vmem:[#allocation16 + $0x254] ss:$200 sps:$4 sm:$0xff]  }
 0x85e   : > { %11878 = vmatpush1.bf16.msra.mxu0 %v16244_v29  ;;  %v16305_v29 = vld [vmem:[#allocation16 + $0x250] ss:$200 sps:$4 sm:$0xff]  }
 0x85f   : > { %11919 = vmatpush1.bf16.msra.mxu1 %v16247_v62  ;;  %11879 = vmatprep.subr.bf16.mxu0 %v16252_v27  ;;  %v16310_v62 = vld [vmem:[#allocation16 + $0x3e4] ss:$200 sps:$4 sm:$0xff]  }
 0x860   : > { %11920 = vmatprep.subr.bf16.mxu1 %v16255_v45 }
 0x862   : > { %11880 = vmatpush1.bf16.msra.mxu0 %v16250_v47 }
 0x863   : > { %11921 = vmatpush1.bf16.msra.mxu1 %v16253_v43  ;;  %11881 = vmatprep.subr.bf16.mxu0 %v16258_v11 }
 0x864   : > { %11922 = vmatprep.subr.bf16.mxu1 %v16261_v30 }
 0x866   : > { %11882 = vmatpush1.bf16.msra.mxu0 %v16256_v20 }
 0x867   : > { %11923 = vmatpush1.bf16.msra.mxu1 %v16259_v49  ;;  %11883 = vmatprep.subr.bf16.mxu0 %v16264_v25  ;;  %v16308_v25 = vld [vmem:[#allocation16 + $0x3e0] ss:$200 sps:$4 sm:$0xff]  }
 0x868   : > { %11924 = vmatprep.subr.bf16.mxu1 %v16267_v61 }
 0x86a   : > { %11884 = vmatpush1.bf16.msra.mxu0 %v16262_v51 }
 0x86b   : > { %11925 = vmatpush1.bf16.msra.mxu1 %v16265_v13  ;;  %11885 = vmatprep.subr.bf16.mxu0 %v16270_v28  ;;  %v16313_v13 = vld [vmem:[#allocation16 + $0x574] ss:$200 sps:$4 sm:$0xff]   ;;  %v16311_v28 = vld [vmem:[#allocation16 + $0x570] ss:$200 sps:$4 sm:$0xff]  }
 0x86c   : > { %11926 = vmatprep.subr.bf16.mxu1 %v16273_v17  ;;  %v16319_v17 = vld [vmem:[#allocation16 + $0x894] ss:$200 sps:$4 sm:$0xff]  }
 0x86e   : > { %11886 = vmatpush1.bf16.msra.mxu0 %v16268_v54  ;;  %v16317_v54 = vld [vmem:[#allocation16 + $0x890] ss:$200 sps:$4 sm:$0xff]  }
 0x86f   : > { %11927 = vmatpush1.bf16.msra.mxu1 %v16271_v38  ;;  %11887 = vmatprep.subr.bf16.mxu0 %v16276_v0  ;;  %v16320_v38 = vld [vmem:[#allocation16 + $0xa20] ss:$200 sps:$4 sm:$0xff]   ;;  %v16325_v0 = vld [vmem:[#allocation16 + $0xbb4] ss:$200 sps:$4 sm:$0xff]  }
 0x870   : > { %11928 = vmatprep.subr.bf16.mxu1 %v16279_v24  ;;  %v16323_v24 = vld [vmem:[#allocation16 + $0xbb0] ss:$200 sps:$4 sm:$0xff]  }
 0x872   : > { %11888 = vmatpush1.bf16.msra.mxu0 %v16274_v48  ;;  %v16328_v48 = vld [vmem:[#allocation16 + $0xd44] ss:$200 sps:$4 sm:$0xff]  }
 0x873   : > { %11929 = vmatpush1.bf16.msra.mxu1 %v16277_v33  ;;  %11889 = vmatprep.subr.bf16.mxu0 %v16282_v31  ;;  %v16326_v33 = vld [vmem:[#allocation16 + $0xd40] ss:$200 sps:$4 sm:$0xff]   ;;  %v16331_v31 = vld [vmem:[#allocation16 + $0xed4] ss:$200 sps:$4 sm:$0xff]  }
 0x874   : > { %11930 = vmatprep.subr.bf16.mxu1 %v16285_v53  ;;  %v16329_v53 = vld [vmem:[#allocation16 + $0xed0] ss:$200 sps:$4 sm:$0xff]  }
 0x876   : > { %11890 = vmatpush1.bf16.msra.mxu0 %v16280_v42  ;;  %v16334_v42 = vld [vmem:[#allocation16 + $0x1064] ss:$200 sps:$4 sm:$0xff]  }
 0x877   : > { %11931 = vmatpush1.bf16.msra.mxu1 %v16283_v56  ;;  %11891 = vmatprep.subr.bf16.mxu0 %v16288_v55  ;;  %v16332_v56 = vld [vmem:[#allocation16 + $0x1060] ss:$200 sps:$4 sm:$0xff]   ;;  %v16337_v55 = vld [vmem:[#allocation16 + $0x11f4] ss:$200 sps:$4 sm:$0xff]  }
 0x878   : > { %11932 = vmatprep.subr.bf16.mxu1 %v16291_v52  ;;  %v7688_v52 = vld [vmem:[#allocation16 + $0x1380] sm:$0xff] }
 0x87a   : > { %11892 = vmatpush1.bf16.msra.mxu0 %v16286_v58  ;;  %v16335_v58 = vld [vmem:[#allocation16 + $0x11f0] ss:$200 sps:$4 sm:$0xff]  }
 0x87b   : > { %11933 = vmatpush1.bf16.msra.mxu1 %v16289_v34  ;;  %11893 = vmatprep.subr.bf16.mxu0 %v16294_v46  ;;  %v13605_v34 = vcombine.high %v7688_v52, %v7688_v52  ;;  %v13604_v46 = vcombine.low %v7688_v52, %v7688_v52 }
 0x87c   : > { %11934 = vmatprep.subr.bf16.mxu1 %v16297_v5 }
 0x87d   : > { %v10964_v5 = vsel %vm10818_vm7, %v13604_v46, 0 }
 0x87e   : > { %11894 = vmatpush1.bf16.msra.mxu0 %v16292_v44 }
 0x87f   : > { %11935 = vmatpush1.bf16.msra.mxu1 %v16295_v1  ;;  %13650 = vmatprep.subr.msk.bf16.mxu0 %vm10818_vm7, %v13601_v26 }
 0x880   : > { %13652 = vmatprep.subr.msk.bf16.mxu1 %vm10818_vm7, %v13603_v6 }
 0x882   : > { %11896 = vmatpush1.bf16.msra.mxu0 %v10952_v2 }
 0x883   : > { %11937 = vmatpush1.bf16.msra.mxu1 %v10958_v39  ;;  %11953 = vmatprep.subr.bf16.mxu0 %v16304_v36 }
 0x885   : > { %11904 = vmatmul.mubr.bf16.vlgmr.msra.gmra.mrb[96].mxu0 %v17760_v7 }
 0x886   : > { %11945 = vmatmul.mubr.bf16.vlgmr.msra.gmra.mrb[104].mxu1 %v17760_v7  ;;  %11954 = vmatpush1.bf16.msra.mxu0 %v16302_v50 }
 0x887   : > { %13655 = vmatprep.mubr.msk.bf16.mxu0 %vm10814_vm8, %v17758_v22  ;;  %11955 = vmatprep.subr.bf16.mxu0 %v16307_v41 }
 0x888   : > { %v11577_v27 = vpop.f32.mrb[80].mxu0 }
 0x889   : > { %v12022_v45 = vmul.f32 %v11577_v27, %v17713_v21  ;;  %v11618_v47 = vpop.f32.mrb[88].mxu1  ;;  %v11579_v43 = vpop.f32.mrb[81].mxu0 }
 0x88a   : > { %v12024_v11 = vmul.f32 %v11618_v47, %v17704_v3  ;;  %v12023_v30 = vmul.f32 %v11579_v43, %v17715_v40  ;;  %v11620_v20 = vpop.f32.mrb[89].mxu1  ;;  %v11581_v49 = vpop.f32.mrb[82].mxu0  ;;  %11956 = vmatpush1.bf16.msra.mxu0 %v16305_v29  ;;  %v16316_v3 = vld [vmem:[#allocation16 + $0x704] ss:$200 sps:$4 sm:$0xff]   ;;  %v16314_v40 = vld [vmem:[#allocation16 + $0x700] ss:$200 sps:$4 sm:$0xff]  }
 0x88b   : > { %12072 = vst [vmem:[%s17825_s19 + $0xe0] sm:$0xff] %v12022_v45  ;;  %v12025_v22 = vmul.f32 %v11620_v20, %v17706_v32  ;;  %v11622_v61 = vpop.f32.mrb[90].mxu1  ;;  %v11582_v51 = vpop.f32.mrb[83].mxu0  ;;  %11957 = vmatprep.subr.bf16.mxu0 %v16310_v62  ;;  %v16322_v32 = vld [vmem:[#allocation16 + $0xa24] ss:$200 sps:$4 sm:$0xff]  }
 0x88c   : > { %12074 = vst [vmem:[%s17825_s19 + $0xf0] sm:$0xff] %v12024_v11  ;;  %12073 = vst [vmem:[%s17825_s19 + $0xe8] sm:$0xff] %v12023_v30  ;;  %v11623_v21 = vpop.f32.mrb[91].mxu1 }
 0x88d   : > { %12075 = vst [vmem:[%s17825_s19 + $0xf8] sm:$0xff] %v12025_v22  ;;  %v18098_v21 = vld [vmem:[#allocation24_spill] sm:$0xff] }
 0x88e   : > { %11958 = vmatpush1.bf16.msra.mxu0 %v16308_v25 }
 0x88f   : > { %11959 = vmatprep.subr.bf16.mxu0 %v16313_v13 }
 0x892   : > { %11960 = vmatpush1.bf16.msra.mxu0 %v16311_v28 }
 0x893   : > { %11961 = vmatprep.subr.bf16.mxu0 %v16316_v3  ;;  %v18099_v3 = vld [vmem:[#allocation26_spill] sm:$0xff] }
 0x896   : > { %11962 = vmatpush1.bf16.msra.mxu0 %v16314_v40 }
 0x897   : > { %11963 = vmatprep.subr.bf16.mxu0 %v16319_v17 }
 0x89a   : > { %11964 = vmatpush1.bf16.msra.mxu0 %v16317_v54  ;;  %v18100_v54 = vld [vmem:[#allocation25_spill] sm:$0xff] }
 0x89b   : > { %11965 = vmatprep.subr.bf16.mxu0 %v16322_v32 }
 0x89e   : > { %11966 = vmatpush1.bf16.msra.mxu0 %v16320_v38 }
 0x89f   : > { %11967 = vmatprep.subr.bf16.mxu0 %v16325_v0 }
 0x8a2   : > { %11968 = vmatpush1.bf16.msra.mxu0 %v16323_v24 }
 0x8a3   : > { %11969 = vmatprep.subr.bf16.mxu0 %v16328_v48  ;;  %v18101_v48 = vld [vmem:[#allocation27_spill] sm:$0xff] }
 0x8a6   : > { %11970 = vmatpush1.bf16.msra.mxu0 %v16326_v33 }
 0x8a7   : > { %11971 = vmatprep.subr.bf16.mxu0 %v16331_v31 }
 0x8aa   : > { %11972 = vmatpush1.bf16.msra.mxu0 %v16329_v53  ;;  %v18102_v53 = vld [vmem:[#allocation28_spill] sm:$0xff] }
 0x8ab   : > { %11973 = vmatprep.subr.bf16.mxu0 %v16334_v42 }
 0x8ae   : > { %11974 = vmatpush1.bf16.msra.mxu0 %v16332_v56 }
 0x8af   : > { %11975 = vmatprep.subr.bf16.mxu0 %v16337_v55 }
 0x8b2   : > { %11976 = vmatpush1.bf16.msra.mxu0 %v16335_v58 }
 0x8b3   : > { %13654 = vmatprep.subr.msk.bf16.mxu0 %vm10818_vm7, %v13605_v34 }
 0x8b6   : > { %11978 = vmatpush1.bf16.msra.mxu0 %v10964_v5 }
 0x8b9   : > { %11986 = vmatmul.mubr.bf16.vlgmr.msra.gmra.mrb[100].mxu0 %v17760_v7 }
 0x8bc   : > { %v11659_v9 = vpop.f32.mrb[84].mxu0 }
 0x8bd   : > { %v12026_v63 = vmul.f32 %v11659_v9, %v17724_v14  ;;  %v11700_v44 = vpop.f32.mrb[92].mxu1  ;;  %v11661_v1 = vpop.f32.mrb[85].mxu0 }
 0x8be   : > { %v12028_v26 = vmul.f32 %v11700_v44, %v17717_v18  ;;  %v12027_v4 = vmul.f32 %v11661_v1, %v17726_v16  ;;  %v11702_v6 = vpop.f32.mrb[93].mxu1  ;;  %v11663_v59 = vpop.f32.mrb[86].mxu0 }
 0x8bf   : > { %12076 = vst [vmem:[%s17825_s19 + $0x100] sm:$0xff] %v12026_v63  ;;  %v12029_v2 = vmul.f32 %v11702_v6, %v17719_v19  ;;  %v11704_v36 = vpop.f32.mrb[94].mxu1  ;;  %v11664_v39 = vpop.f32.mrb[87].mxu0 }
 0x8c0   : > { %12078 = vst [vmem:[%s17825_s19 + $0x110] sm:$0xff] %v12028_v26  ;;  %12077 = vst [vmem:[%s17825_s19 + $0x108] sm:$0xff] %v12027_v4  ;;  %v11705_v7 = vpop.f32.mrb[95].mxu1 }
 0x8c1   : > { %12079 = vst [vmem:[%s17825_s19 + $0x118] sm:$0xff] %v12029_v2 }
 0x8f0   : > { %v11741_v14 = vpop.f32.mrb[88].mxu0 }
 0x8f1   : > { %v12030_v18 = vmul.f32 %v11741_v14, %v17740_v8  ;;  %v11782_v50 = vpop.f32.mrb[96].mxu1  ;;  %v11743_v16 = vpop.f32.mrb[89].mxu0 }
 0x8f2   : > { %v12032_v41 = vmul.f32 %v11782_v50, %v17734_v15  ;;  %v12031_v29 = vmul.f32 %v11743_v16, %v17742_v57  ;;  %v11784_v62 = vpop.f32.mrb[97].mxu1  ;;  %v11745_v19 = vpop.f32.mrb[90].mxu0 }
 0x8f3   : > { %12080 = vst [vmem:[%s17825_s19 + $0x120] sm:$0xff] %v12030_v18  ;;  %v12033_v27 = vmul.f32 %v11784_v62, %v17736_v10  ;;  %v11786_v45 = vpop.f32.mrb[98].mxu1  ;;  %v11746_v47 = vpop.f32.mrb[91].mxu0 }
 0x8f4   : > { %12082 = vst [vmem:[%s17825_s19 + $0x130] sm:$0xff] %v12032_v41  ;;  %12081 = vst [vmem:[%s17825_s19 + $0x128] sm:$0xff] %v12031_v29  ;;  %v11787_v43 = vpop.f32.mrb[99].mxu1 }
 0x8f5   : > { %12083 = vst [vmem:[%s17825_s19 + $0x138] sm:$0xff] %v12033_v27 }
 0x924   : > { %v11823_v8 = vpop.f32.mrb[92].mxu0 }
 0x925   : > { %v12034_v15 = vmul.f32 %v11823_v8, %v17748_v35  ;;  %v11864_v11 = vpop.f32.mrb[100].mxu1  ;;  %v11825_v57 = vpop.f32.mrb[93].mxu0 }
 0x926   : > { %v12036_v30 = vmul.f32 %v11864_v11, %v17744_v60  ;;  %v12035_v20 = vmul.f32 %v11825_v57, %v17750_v37  ;;  %v11866_v49 = vpop.f32.mrb[101].mxu1  ;;  %v11827_v10 = vpop.f32.mrb[94].mxu0 }
 0x927   : > { %12084 = vst [vmem:[%s17825_s19 + $0x140] sm:$0xff] %v12034_v15  ;;  %v12037_v25 = vmul.f32 %v11866_v49, %v17746_v12  ;;  %v11868_v22 = vpop.f32.mrb[102].mxu1  ;;  %v11828_v61 = vpop.f32.mrb[95].mxu0 }
 0x928   : > { %12086 = vst [vmem:[%s17825_s19 + $0x150] sm:$0xff] %v12036_v30  ;;  %12085 = vst [vmem:[%s17825_s19 + $0x148] sm:$0xff] %v12035_v20  ;;  %v11869_v51 = vpop.f32.mrb[103].mxu1 }
 0x929   : > { %12087 = vst [vmem:[%s17825_s19 + $0x158] sm:$0xff] %v12037_v25 }
 0x958   : > { %v11905_v35 = vpop.f32.mrb[96].mxu0 }
 0x959   : > { %v12038_v60 = vmul.f32 %v11905_v35, %v17772_v23  ;;  %v11946_v37 = vpop.f32.mrb[104].mxu1  ;;  %v11907_v13 = vpop.f32.mrb[97].mxu0 }
 0x95a   : > { %v12040_v28 = vmul.f32 %v11946_v37, %v18098_v21  ;;  %v12039_v12 = vmul.f32 %v11907_v13, %v18099_v3  ;;  %v11948_v40 = vpop.f32.mrb[105].mxu1  ;;  %v11909_v17 = vpop.f32.mrb[98].mxu0 }
 0x95b   : > { %12088 = vst [vmem:[%s17825_s19 + $0x160] sm:$0xff] %v12038_v60  ;;  %v12041_v32 = vmul.f32 %v11948_v40, %v18100_v54  ;;  %v11950_v38 = vpop.f32.mrb[106].mxu1  ;;  %v11910_v0 = vpop.f32.mrb[99].mxu0 }
 0x95c   : > { %12090 = vst [vmem:[%s17825_s19 + $0x170] sm:$0xff] %v12040_v28  ;;  %12089 = vst [vmem:[%s17825_s19 + $0x168] sm:$0xff] %v12039_v12  ;;  %v11951_v23 = vpop.f32.mrb[107].mxu1 }
 0x95d   : > { %12091 = vst [vmem:[%s17825_s19 + $0x178] sm:$0xff] %v12041_v32 }
 0x98c   : > { %v11987_v24 = vpop.f32.mrb[100].mxu0 }
 0x98d   : > { %v12042_v33 = vmul.f32 %v11987_v24, %v18101_v48  ;;  %v11989_v31 = vpop.f32.mrb[101].mxu0 }
 0x98e   : > { %v12043_v42 = vmul.f32 %v11989_v31, %v18102_v53  ;;  %v11991_v56 = vpop.f32.mrb[102].mxu0 }
 0x98f   : > { %12092 = vst [vmem:[%s17825_s19 + $0x180] sm:$0xff] %v12042_v33  ;;  %v11992_v55 = vpop.f32.mrb[103].mxu0 }
 0x990   : > { %12093 = vst [vmem:[%s17825_s19 + $0x188] sm:$0xff] %v12043_v42 }
 0x991   : > { %16617 = shalt.err (!%p16614_p10)
}
 0x992   : > { %s16618_s1 = scalar_lea.hbm %s17997_s26, 6400  ;;  %s16622_s19 = scalar_lea.hbm %s18103_s25, 12800 }
 0x993   : > { %p16619_p11 = scmp.ne.s32.totalorder %s17997_s26, %s16618_s1  ;;  %p16623_p7 = scmp.lt.u32.totalorder %s17997_s26, %s18103_s25 }
 0x994   : > { %p16624_p6 = scmp.lt.u32.totalorder %s16622_s19, %s16618_s1  ;;  %p16626_p12 = scmp.lt.u32.totalorder %s16618_s1, %s17997_s26 }
 0x995   : > { %p16620_p8 = pnand %p16619_p11, %p18104_p1 }
 0x996   : > { %p16625_p9 = por %p16624_p6, %p16623_p7 }
 0x997   : > { %p16621_p5 = pneg %p16620_p8 }
 0x998   : > { %p16627_p13 = por %p16626_p12, %p16625_p9 }
 0x99a   : > { %p16628_p0 = pnand %p16627_p13, %p16621_p5 }
 0x99c   : > { %16631 = shalt.err (!%p16628_p0)
}
 0x99d   : > { %14337 = dma.vmem_to_hbm [thread:$0]  (%p18104_p1), %s17999_s23, 6400, %s17997_s26, %s12095_s15  }
 0x99e PF: > { %s12121_s18 = sand.u32 1, %s16674_s30   ;;  %p18105_p2 = scmp.ne.s32.totalorder %s18074_s22, 0 }
 0x99f   : > { %p18106_p3 = scmp.ge.s32.totalorder %s16686_s12, 2  ;;  %s12122_s28 = scalar_lea.sflag [#allocation4], %s12121_s18 }
 0x9a1   : > { %p14369_p4 = pnand %p18106_p3, %p18105_p2 }
 0x9a3   : > { %16669 = dma.done.wait (!%p14369_p4), %s12122_s28, 6400  }
 0x9a4   : > { %16671 = vsyncadd (!%p14369_p4), %s12122_s28, 4294960896  ;;  %p26_p10 = scmp.ge.s32.totalorder %s17000_s27, 4   ;;  %s18107_s30 = smov %s16678_s10 }
 0x9a5   : > { %s18108_s10 = smov %s16682_s11  ;;  %s18109_s11 = smov %s17011_s9 }
 0x9a6   : > { %s18110_s12 = smov %s17000_s27  ;;  %28 = sbr.rel (!%p26_p10) target bundleno = 12 (0xc), region = 133 }
 0x9ad   :  { %12127 = vsyncpa [#allocation3], 1 }
 0x9ae   :  { %12129 = vsyncpa [#allocation3 + $0x1], 1 }
 0x9af   :  { %12130 = vsyncpa [#allocation6], 1 }
 0x9b0   :  { %12131 = vsyncpa [#allocation9], 1 }
 0x9b1   :  { %12132 = vsyncpa [#allocation12], 1 }
 0x9b2   :  { %12133 = vsyncpa [#allocation15], 1 }
 0x9b3   :  { %12134 = vsyncpa [#allocation4], 1 }
 0x9b4   :  { %12136 = vsyncpa [#allocation4 + $0x1], 1 }

</bundles_post_ra>
